<compile_context>
chip_gen: v7x
topology: tpu7x:2x2x1
jax: 0.10.0
libtpu: 0.0.40
codegen_flags: <defaults>
</compile_context>

<pallas_src>
import functools

import jax
import jax.numpy as jnp
from jax import lax
from jax.experimental import pallas as pl
from jax.experimental.pallas import tpu as pltpu

LANES = 128   # logits padded to 128 lanes -> dense output store


def _round_up(x, m):
    return (x + m - 1) // m * m


# ----------------------------- fused Pallas kernel -----------------------------------
#
# One grid step == one image.
#
# Activations are stored row-flattened with row stride W+2 (a zero pad column on each
# side of every image row) plus >= W+3 zero halo rows before/after the image.  A 3x3
# SAME conv tap (dh, dw) is then just a contiguous slice of M = H*(W+2) rows starting
# at FP - (W+2) - 1 + dh*(W+2) + dw, matmul'd with that tap's (K, Cout) weight slice.
# The pad columns / halo rows provide all zero boundary values, so no per-tap masks are
# needed; one mask per conv re-zeroes the pad-column rows of the output.

def _fused_resnet_kernel(x_ref,
                         w0_ref, s0_ref, b0_ref,
                         w1_ref, s1_ref, b1_ref,
                         w2_ref, s2_ref, b2_ref,
                         wfc_ref, bfc_ref,
                         o_ref,
                         pad1_ref, pad2_ref,
                         *, H, W, FP, ROWS):
    W2 = W + 2
    M = H * W2
    CMID = pad1_ref.shape[-1]
    TAIL = ROWS - FP - M

    # Zero only the halo rows (interior image rows are fully rewritten below).  This is
    # a handful of aligned bf16 stores per step, vs. zero-filling the whole buffer.
    zf = jnp.zeros((FP, CMID), jnp.bfloat16)
    zt = jnp.zeros((TAIL, CMID), jnp.bfloat16)
    pad1_ref[pl.ds(0, FP), :] = zf
    pad2_ref[pl.ds(0, FP), :] = zf
    pad1_ref[pl.ds(FP + M, TAIL), :] = zt
    pad2_ref[pl.ds(FP + M, TAIL), :] = zt

    # In-kernel validity mask for the stride-(W+2) layout (zero the two pad columns of
    # every image row).  f32 floor-division trick avoids vector integer rem.
    ridx = jax.lax.broadcasted_iota(jnp.int32, (M, CMID), 0).astype(jnp.float32)
    q = jnp.floor((ridx + 0.5) * (1.0 / W2))
    col = ridx - q * W2                              # exact small integers in f32
    valid = jnp.where(jnp.logical_and(col > 0.5, col < W2 - 1.5), 1.0, 0.0)

    def conv3x3_bn_relu(src_ref, w_ref, s_ref, b_ref, residual=None):
        # 9 shifted-row matmuls, accumulated as a chained f32 value (no VMEM RMW).
        # bf16 operands feed the MXU with K = real channel width; epilogue in f32.
        acc = None
        for dh in range(3):
            for dw in range(3):
                start = FP - W2 - 1 + dh * W2 + dw
                part = jnp.dot(src_ref[pl.ds(start, M), :], w_ref[dh * 3 + dw],
                               preferred_element_type=jnp.float32)
                acc = part if acc is None else acc + part
        y = acc * s_ref[...] + b_ref[...]
        if residual is not None:
            y = y + residual
        return jnp.maximum(y, 0.0) * valid           # re-zero pad-column rows

    # Stem: 3x3 conv + folded BN + ReLU -> bf16 activation scratch (halo'd layout).
    pad1_ref[pl.ds(FP, M), :] = conv3x3_bn_relu(
        x_ref, w0_ref, s0_ref, b0_ref).astype(jnp.bfloat16)
    # Basic block, conv1.
    pad2_ref[pl.ds(FP, M), :] = conv3x3_bn_relu(
        pad1_ref, w1_ref, s1_ref, b1_ref).astype(jnp.bfloat16)
    # Basic block, conv2 + residual add + ReLU (identity read back from VMEM as bf16).
    h = conv3x3_bn_relu(pad2_ref, w2_ref, s2_ref, b2_ref,
                        residual=pad1_ref[pl.ds(FP, M), :].astype(jnp.float32))
    # Fused global-average-pool + classifier head (pad rows are zero, so the plain row
    # sum over the slab equals the sum over the H*W image pixels).
    pooled = jnp.sum(h, axis=0, keepdims=True) * (1.0 / (H * W))
    o_ref[...] = (jnp.dot(pooled, wfc_ref[...],
                          preferred_element_type=jnp.float32) + bfc_ref[...])


# ----------------------------- parameters --------------------------------------------

def init_params(key, in_channels, num_classes, width=16):
    ks = jax.random.split(key, 8)

    def conv_w(k, cin, cout):                       # HWIO layout (3, 3, Cin, Cout)
        return 0.1 * jax.random.normal(k, (3, 3, cin, cout), jnp.float32)

    def folded_bn(k, c):
        kg, kb, km, kv = jax.random.split(k, 4)
        gamma = 1.0 + 0.1 * jax.random.normal(kg, (c,), jnp.float32)
        beta = 0.1 * jax.random.normal(kb, (c,), jnp.float32)
        mean = 0.1 * jax.random.normal(km, (c,), jnp.float32)
        var = 1.0 + 0.1 * jnp.abs(jax.random.normal(kv, (c,), jnp.float32))
        scale = gamma / jnp.sqrt(var + 1e-5)
        bias = beta - mean * scale
        return scale, bias

    p = {
        "w_stem": conv_w(ks[0], in_channels, width),
        "w1": conv_w(ks[2], width, width),
        "w2": conv_w(ks[4], width, width),
        "w_fc": 0.1 * jax.random.normal(ks[6], (width, num_classes), jnp.float32),
        "b_fc": 0.1 * jax.random.normal(ks[7], (num_classes,), jnp.float32),
    }
    p["s_stem"], p["b_stem"] = folded_bn(ks[1], width)
    p["s1"], p["b1"] = folded_bn(ks[3], width)
    p["s2"], p["b2"] = folded_bn(ks[5], width)
    return p


def pack_params(params, in_channels):
    """Pack parameters into the kernel layout: bf16 conv weights with K = real width."""
    width = params["w_stem"].shape[-1]
    num_classes = params["w_fc"].shape[-1]
    cin_p = _round_up(in_channels, 16)
    cmid_p = _round_up(width, 16)
    assert num_classes <= LANES

    def pack_conv(w, k_pad):
        _, _, cin, cout = w.shape
        wp = jnp.zeros((9, k_pad, cmid_p), jnp.float32)
        wp = wp.at[:, :cin, :cout].set(w.reshape(9, cin, cout))
        return wp.astype(jnp.bfloat16)

    def pack_vec(v, n):                             # zero-padded lanes stay exactly 0
        return jnp.zeros((1, n), jnp.float32).at[0, :v.shape[0]].set(v)

    wfc = jnp.zeros((cmid_p, LANES), jnp.float32)
    wfc = wfc.at[:width, :num_classes].set(params["w_fc"])
    return {
        "w0": pack_conv(params["w_stem"], cin_p),
        "s0": pack_vec(params["s_stem"], cmid_p), "b0": pack_vec(params["b_stem"], cmid_p),
        "w1": pack_conv(params["w1"], cmid_p),
        "s1": pack_vec(params["s1"], cmid_p), "b1": pack_vec(params["b1"], cmid_p),
        "w2": pack_conv(params["w2"], cmid_p),
        "s2": pack_vec(params["s2"], cmid_p), "b2": pack_vec(params["b2"], cmid_p),
        "wfc": wfc, "bfc": pack_vec(params["b_fc"], LANES),
    }


# ----------------------------- forward ------------------------------------------------

@jax.jit
def _forward_padded(kparams, x_nchw):
    x = jnp.transpose(x_nchw, (0, 2, 3, 1)).astype(jnp.float32)   # NCHW -> NHWC
    N, H, W, Cin = x.shape
    cmid_p = kparams["s0"].shape[-1]
    cin_p = kparams["w0"].shape[1]

    W2 = W + 2
    M = H * W2
    FP = _round_up(W + 3, 16)                      # 16-aligned front halo (bf16 pack)
    ROWS = _round_up(FP + M + W + 3, 16)           # >= W+3 rear halo

    # Stride-(W+2), halo-padded, row-flattened bf16 input slab.
    x = jnp.pad(x, ((0, 0), (0, 0), (1, 1), (0, cin_p - Cin)))    # zero pad columns
    x_flat = x.reshape(N, M, cin_p)
    xpad = jnp.pad(x_flat, ((0, 0), (FP, ROWS - FP - M), (0, 0))).astype(jnp.bfloat16)

    kernel = functools.partial(_fused_resnet_kernel, H=H, W=W, FP=FP, ROWS=ROWS)

    def rep(shape):                                 # replicated (grid-invariant) block
        nd = len(shape)
        return pl.BlockSpec(shape, lambda n, _nd=nd: (0,) * _nd)

    out = pl.pallas_call(
        kernel,
        out_shape=jax.ShapeDtypeStruct((N, 1, LANES), jnp.float32),
        grid=(N,),
        in_specs=[
            pl.BlockSpec((None, ROWS, cin_p), lambda n: (n, 0, 0)),       # image n
            rep((9, cin_p, cmid_p)), rep((1, cmid_p)), rep((1, cmid_p)),  # stem
            rep((9, cmid_p, cmid_p)), rep((1, cmid_p)), rep((1, cmid_p)), # block conv1
            rep((9, cmid_p, cmid_p)), rep((1, cmid_p)), rep((1, cmid_p)), # block conv2
            rep((cmid_p, LANES)), rep((1, LANES)),                        # fc head
        ],
        out_specs=pl.BlockSpec((None, 1, LANES), lambda n: (n, 0, 0)),
        scratch_shapes=[
            pltpu.VMEM((ROWS, cmid_p), jnp.bfloat16),   # stem output (halo'd, bf16)
            pltpu.VMEM((ROWS, cmid_p), jnp.bfloat16),   # block conv1 output (halo'd)
        ],
        compiler_params=pltpu.CompilerParams(
            dimension_semantics=("parallel",)),          # batch axis split on v7x
    )(xpad,
      kparams["w0"], kparams["s0"], kparams["b0"],
      kparams["w1"], kparams["s1"], kparams["b1"],
      kparams["w2"], kparams["s2"], kparams["b2"],
      kparams["wfc"], kparams["bfc"])
    return out.reshape(N, LANES)


def forward(kparams, x_nchw, num_classes):
    return _forward_padded(kparams, x_nchw)[:, :num_classes]


# ----------------------------- pure-JAX reference -------------------------------------

@jax.jit
def reference_forward(params, x_nchw):
    x = jnp.transpose(x_nchw, (0, 2, 3, 1)).astype(jnp.float32)

    def conv_bn_relu(h, w, s, b, residual=None):
        y = lax.conv_general_dilated(
            h.astype(jnp.bfloat16), w.astype(jnp.bfloat16),
            window_strides=(1, 1), padding="SAME",
            dimension_numbers=("NHWC", "HWIO", "NHWC"),
            preferred_element_type=jnp.float32)
        y = y * s + b
        if residual is not None:
            y = y + residual
        return jnp.maximum(y, 0.0)

    def round_bf16(h):        # kernel stores inter-layer activations as bf16
        return h.astype(jnp.bfloat16).astype(jnp.float32)

    h1 = round_bf16(conv_bn_relu(x, params["w_stem"], params["s_stem"], params["b_stem"]))
    h2 = round_bf16(conv_bn_relu(h1, params["w1"], params["s1"], params["b1"]))
    h3 = conv_bn_relu(h2, params["w2"], params["s2"], params["b2"], residual=h1)
    pooled = jnp.mean(h3, axis=(1, 2))
    return pooled @ params["w_fc"] + params["b_fc"]


# ----------------------------- main ----------------------------------------------------

if __name__ == "__main__":
    in_channels, num_classes, width = 4, 6, 16
    N, H, W = 2, 16, 16

    key = jax.random.PRNGKey(0)
    kx, kp = jax.random.split(key)
    x = jax.random.normal(kx, (N, in_channels, H, W), jnp.float32)
    params = init_params(kp, in_channels, num_classes, width=width)
    kparams = pack_params(params, in_channels)

    logits = jax.block_until_ready(forward(kparams, x, num_classes))
    assert logits.shape == (N, num_classes)
    assert bool(jnp.all(jnp.isfinite(logits)))

    ref = jax.block_until_ready(reference_forward(params, x))
    max_err = float(jnp.max(jnp.abs(logits - ref)))
    assert max_err < 2e-2, f"mismatch vs reference: {max_err}"

    print("KERNEL_OK")
</pallas_src>

<mosaic_0001>
module attributes {stable_mosaic.version = 11 : i64} {
  func.func @_fused_resnet_kernel(%arg0: i32, %arg1: memref<1x352x16xbf16, #tpu.memory_space<vmem>>, %arg2: memref<9x16x16xbf16, #tpu.memory_space<vmem>>, %arg3: memref<1x16xf32, #tpu.memory_space<vmem>>, %arg4: memref<1x16xf32, #tpu.memory_space<vmem>>, %arg5: memref<9x16x16xbf16, #tpu.memory_space<vmem>>, %arg6: memref<1x16xf32, #tpu.memory_space<vmem>>, %arg7: memref<1x16xf32, #tpu.memory_space<vmem>>, %arg8: memref<9x16x16xbf16, #tpu.memory_space<vmem>>, %arg9: memref<1x16xf32, #tpu.memory_space<vmem>>, %arg10: memref<1x16xf32, #tpu.memory_space<vmem>>, %arg11: memref<16x128xf32, #tpu.memory_space<vmem>>, %arg12: memref<1x128xf32, #tpu.memory_space<vmem>>, %arg13: memref<1x1x128xf32, #tpu.memory_space<vmem>>, %arg14: memref<352x16xbf16, #tpu.memory_space<vmem>>, %arg15: memref<352x16xbf16, #tpu.memory_space<vmem>>) attributes {dimension_semantics = [#tpu.dimension_semantics<parallel>], iteration_bounds = array<i64: 2>, scalar_prefetch = 0 : i64, scratch_operands = 2 : i64, tpu.core_type = #tpu.core_type<tc>, window_params = [{transform_indices = @transform_0, window_bounds = array<i64: 1, 352, 16>}, {pipeline_mode = #tpu.pipeline_mode<synchronous>, transform_indices = @transform_1, window_bounds = array<i64: 9, 16, 16>}, {pipeline_mode = #tpu.pipeline_mode<synchronous>, transform_indices = @transform_2, window_bounds = array<i64: 1, 16>}, {pipeline_mode = #tpu.pipeline_mode<synchronous>, transform_indices = @transform_3, window_bounds = array<i64: 1, 16>}, {pipeline_mode = #tpu.pipeline_mode<synchronous>, transform_indices = @transform_4, window_bounds = array<i64: 9, 16, 16>}, {pipeline_mode = #tpu.pipeline_mode<synchronous>, transform_indices = @transform_5, window_bounds = array<i64: 1, 16>}, {pipeline_mode = #tpu.pipeline_mode<synchronous>, transform_indices = @transform_6, window_bounds = array<i64: 1, 16>}, {pipeline_mode = #tpu.pipeline_mode<synchronous>, transform_indices = @transform_7, window_bounds = array<i64: 9, 16, 16>}, {pipeline_mode = #tpu.pipeline_mode<synchronous>, transform_indices = @transform_8, window_bounds = array<i64: 1, 16>}, {pipeline_mode = #tpu.pipeline_mode<synchronous>, transform_indices = @transform_9, window_bounds = array<i64: 1, 16>}, {pipeline_mode = #tpu.pipeline_mode<synchronous>, transform_indices = @transform_10, window_bounds = array<i64: 16, 128>}, {pipeline_mode = #tpu.pipeline_mode<synchronous>, transform_indices = @transform_11, window_bounds = array<i64: 1, 128>}, {transform_indices = @transform_12, window_bounds = array<i64: 1, 1, 128>}]} {
    %cst = arith.constant 0.000000e+00 : bf16
    %0 = vector.broadcast %cst : bf16 to vector<32x16xbf16>
    %cst_0 = arith.constant 0.000000e+00 : bf16
    %1 = vector.broadcast %cst_0 : bf16 to vector<32x16xbf16>
    %c0 = arith.constant 0 : index
    %c0_1 = arith.constant 0 : index
    %2 = vector.load %arg14[%c0, %c0_1] : memref<352x16xbf16, #tpu.memory_space<vmem>>, vector<32x16xbf16>
    tpu.vector_store %arg14[%c0, %c0_1], %0 {strides = array<i32>} : memref<352x16xbf16, #tpu.memory_space<vmem>>, vector<32x16xbf16>,
    %c0_2 = arith.constant 0 : index
    %c0_3 = arith.constant 0 : index
    %3 = vector.load %arg15[%c0_2, %c0_3] : memref<352x16xbf16, #tpu.memory_space<vmem>>, vector<32x16xbf16>
    tpu.vector_store %arg15[%c0_2, %c0_3], %0 {strides = array<i32>} : memref<352x16xbf16, #tpu.memory_space<vmem>>, vector<32x16xbf16>,
    %c320 = arith.constant 320 : index
    %c0_4 = arith.constant 0 : index
    %4 = vector.load %arg14[%c320, %c0_4] : memref<352x16xbf16, #tpu.memory_space<vmem>>, vector<32x16xbf16>
    tpu.vector_store %arg14[%c320, %c0_4], %1 {strides = array<i32>} : memref<352x16xbf16, #tpu.memory_space<vmem>>, vector<32x16xbf16>,
    %c320_5 = arith.constant 320 : index
    %c0_6 = arith.constant 0 : index
    %5 = vector.load %arg15[%c320_5, %c0_6] : memref<352x16xbf16, #tpu.memory_space<vmem>>, vector<32x16xbf16>
    tpu.vector_store %arg15[%c320_5, %c0_6], %1 {strides = array<i32>} : memref<352x16xbf16, #tpu.memory_space<vmem>>, vector<32x16xbf16>,
    %6 = tpu.iota {dimensions = array<i32: 0>} : vector<288x16xi32>
    %7 = arith.sitofp %6 : vector<288x16xi32> to vector<288x16xf32>
    %cst_7 = arith.constant 5.000000e-01 : f32
    %8 = vector.broadcast %cst_7 : f32 to vector<288x16xf32>
    %9 = arith.addf %7, %8 : vector<288x16xf32>
    %cst_8 = arith.constant 0.055555556 : f32
    %10 = vector.broadcast %cst_8 : f32 to vector<288x16xf32>
    %11 = arith.mulf %9, %10 : vector<288x16xf32>
    %12 = math.floor %11 : vector<288x16xf32>
    %cst_9 = arith.constant 1.800000e+01 : f32
    %13 = vector.broadcast %cst_9 : f32 to vector<288x16xf32>
    %14 = arith.mulf %12, %13 : vector<288x16xf32>
    %15 = arith.subf %7, %14 : vector<288x16xf32>
    %cst_10 = arith.constant 5.000000e-01 : f32
    %16 = vector.broadcast %cst_10 : f32 to vector<288x16xf32>
    %17 = arith.cmpf ogt, %15, %16 : vector<288x16xf32>
    %cst_11 = arith.constant 1.650000e+01 : f32
    %18 = vector.broadcast %cst_11 : f32 to vector<288x16xf32>
    %19 = arith.cmpf olt, %15, %18 : vector<288x16xf32>
    %20 = arith.andi %17, %19 : vector<288x16xi1>
    %cst_12 = arith.constant 1.000000e+00 : f32
    %cst_13 = arith.constant 0.000000e+00 : f32
    %21 = vector.broadcast %cst_12 : f32 to vector<288x16xf32>
    %22 = vector.broadcast %cst_13 : f32 to vector<288x16xf32>
    %23 = arith.select %20, %21, %22 : vector<288x16xi1>, vector<288x16xf32>
    %c0_14 = arith.constant 0 : index
    %c13 = arith.constant 13 : index
    %c0_15 = arith.constant 0 : index
    %24 = vector.load %arg1[%c0_14, %c13, %c0_15] : memref<1x352x16xbf16, #tpu.memory_space<vmem>>, vector<1x288x16xbf16>
    %25 = vector.shape_cast %24 : vector<1x288x16xbf16> to vector<288x16xbf16>
    %c0_16 = arith.constant 0 : index
    %c0_17 = arith.constant 0 : index
    %c0_18 = arith.constant 0 : index
    %26 = vector.load %arg2[%c0_16, %c0_17, %c0_18] : memref<9x16x16xbf16, #tpu.memory_space<vmem>>, vector<1x16x16xbf16>
    %27 = vector.shape_cast %26 : vector<1x16x16xbf16> to vector<16x16xbf16>
    %cst_19 = arith.constant dense<0.000000e+00> : vector<288x16xf32>
    %28 = tpu.matmul %25, %27, %cst_19 {dimension_numbers = #tpu.dot_dimension_numbers<[1], [0], [0], [1], [0, 0, 1, 1], [], []>} : vector<288x16xbf16>, vector<16x16xbf16>, vector<288x16xf32> -> vector<288x16xf32>
    %c0_20 = arith.constant 0 : index
    %c14 = arith.constant 14 : index
    %c0_21 = arith.constant 0 : index
    %29 = vector.load %arg1[%c0_20, %c14, %c0_21] : memref<1x352x16xbf16, #tpu.memory_space<vmem>>, vector<1x288x16xbf16>
    %30 = vector.shape_cast %29 : vector<1x288x16xbf16> to vector<288x16xbf16>
    %c1 = arith.constant 1 : index
    %c0_22 = arith.constant 0 : index
    %c0_23 = arith.constant 0 : index
    %31 = vector.load %arg2[%c1, %c0_22, %c0_23] : memref<9x16x16xbf16, #tpu.memory_space<vmem>>, vector<1x16x16xbf16>
    %32 = vector.shape_cast %31 : vector<1x16x16xbf16> to vector<16x16xbf16>
    %cst_24 = arith.constant dense<0.000000e+00> : vector<288x16xf32>
    %33 = tpu.matmul %30, %32, %cst_24 {dimension_numbers = #tpu.dot_dimension_numbers<[1], [0], [0], [1], [0, 0, 1, 1], [], []>} : vector<288x16xbf16>, vector<16x16xbf16>, vector<288x16xf32> -> vector<288x16xf32>
    %34 = arith.addf %28, %33 : vector<288x16xf32>
    %c0_25 = arith.constant 0 : index
    %c15 = arith.constant 15 : index
    %c0_26 = arith.constant 0 : index
    %35 = vector.load %arg1[%c0_25, %c15, %c0_26] : memref<1x352x16xbf16, #tpu.memory_space<vmem>>, vector<1x288x16xbf16>
    %36 = vector.shape_cast %35 : vector<1x288x16xbf16> to vector<288x16xbf16>
    %c2 = arith.constant 2 : index
    %c0_27 = arith.constant 0 : index
    %c0_28 = arith.constant 0 : index
    %37 = vector.load %arg2[%c2, %c0_27, %c0_28] : memref<9x16x16xbf16, #tpu.memory_space<vmem>>, vector<1x16x16xbf16>
    %38 = vector.shape_cast %37 : vector<1x16x16xbf16> to vector<16x16xbf16>
    %cst_29 = arith.constant dense<0.000000e+00> : vector<288x16xf32>
    %39 = tpu.matmul %36, %38, %cst_29 {dimension_numbers = #tpu.dot_dimension_numbers<[1], [0], [0], [1], [0, 0, 1, 1], [], []>} : vector<288x16xbf16>, vector<16x16xbf16>, vector<288x16xf32> -> vector<288x16xf32>
    %40 = arith.addf %34, %39 : vector<288x16xf32>
    %c0_30 = arith.constant 0 : index
    %c31 = arith.constant 31 : index
    %c0_31 = arith.constant 0 : index
    %41 = vector.load %arg1[%c0_30, %c31, %c0_31] : memref<1x352x16xbf16, #tpu.memory_space<vmem>>, vector<1x288x16xbf16>
    %42 = vector.shape_cast %41 : vector<1x288x16xbf16> to vector<288x16xbf16>
    %c3 = arith.constant 3 : index
    %c0_32 = arith.constant 0 : index
    %c0_33 = arith.constant 0 : index
    %43 = vector.load %arg2[%c3, %c0_32, %c0_33] : memref<9x16x16xbf16, #tpu.memory_space<vmem>>, vector<1x16x16xbf16>
    %44 = vector.shape_cast %43 : vector<1x16x16xbf16> to vector<16x16xbf16>
    %cst_34 = arith.constant dense<0.000000e+00> : vector<288x16xf32>
    %45 = tpu.matmul %42, %44, %cst_34 {dimension_numbers = #tpu.dot_dimension_numbers<[1], [0], [0], [1], [0, 0, 1, 1], [], []>} : vector<288x16xbf16>, vector<16x16xbf16>, vector<288x16xf32> -> vector<288x16xf32>
    %46 = arith.addf %40, %45 : vector<288x16xf32>
    %c0_35 = arith.constant 0 : index
    %c32 = arith.constant 32 : index
    %c0_36 = arith.constant 0 : index
    %47 = vector.load %arg1[%c0_35, %c32, %c0_36] : memref<1x352x16xbf16, #tpu.memory_space<vmem>>, vector<1x288x16xbf16>
    %48 = vector.shape_cast %47 : vector<1x288x16xbf16> to vector<288x16xbf16>
    %c4 = arith.constant 4 : index
    %c0_37 = arith.constant 0 : index
    %c0_38 = arith.constant 0 : index
    %49 = vector.load %arg2[%c4, %c0_37, %c0_38] : memref<9x16x16xbf16, #tpu.memory_space<vmem>>, vector<1x16x16xbf16>
    %50 = vector.shape_cast %49 : vector<1x16x16xbf16> to vector<16x16xbf16>
    %cst_39 = arith.constant dense<0.000000e+00> : vector<288x16xf32>
    %51 = tpu.matmul %48, %50, %cst_39 {dimension_numbers = #tpu.dot_dimension_numbers<[1], [0], [0], [1], [0, 0, 1, 1], [], []>} : vector<288x16xbf16>, vector<16x16xbf16>, vector<288x16xf32> -> vector<288x16xf32>
    %52 = arith.addf %46, %51 : vector<288x16xf32>
    %c0_40 = arith.constant 0 : index
    %c33 = arith.constant 33 : index
    %c0_41 = arith.constant 0 : index
    %53 = vector.load %arg1[%c0_40, %c33, %c0_41] : memref<1x352x16xbf16, #tpu.memory_space<vmem>>, vector<1x288x16xbf16>
    %54 = vector.shape_cast %53 : vector<1x288x16xbf16> to vector<288x16xbf16>
    %c5 = arith.constant 5 : index
    %c0_42 = arith.constant 0 : index
    %c0_43 = arith.constant 0 : index
    %55 = vector.load %arg2[%c5, %c0_42, %c0_43] : memref<9x16x16xbf16, #tpu.memory_space<vmem>>, vector<1x16x16xbf16>
    %56 = vector.shape_cast %55 : vector<1x16x16xbf16> to vector<16x16xbf16>
    %cst_44 = arith.constant dense<0.000000e+00> : vector<288x16xf32>
    %57 = tpu.matmul %54, %56, %cst_44 {dimension_numbers = #tpu.dot_dimension_numbers<[1], [0], [0], [1], [0, 0, 1, 1], [], []>} : vector<288x16xbf16>, vector<16x16xbf16>, vector<288x16xf32> -> vector<288x16xf32>
    %58 = arith.addf %52, %57 : vector<288x16xf32>
    %c0_45 = arith.constant 0 : index
    %c49 = arith.constant 49 : index
    %c0_46 = arith.constant 0 : index
    %59 = vector.load %arg1[%c0_45, %c49, %c0_46] : memref<1x352x16xbf16, #tpu.memory_space<vmem>>, vector<1x288x16xbf16>
    %60 = vector.shape_cast %59 : vector<1x288x16xbf16> to vector<288x16xbf16>
    %c6 = arith.constant 6 : index
    %c0_47 = arith.constant 0 : index
    %c0_48 = arith.constant 0 : index
    %61 = vector.load %arg2[%c6, %c0_47, %c0_48] : memref<9x16x16xbf16, #tpu.memory_space<vmem>>, vector<1x16x16xbf16>
    %62 = vector.shape_cast %61 : vector<1x16x16xbf16> to vector<16x16xbf16>
    %cst_49 = arith.constant dense<0.000000e+00> : vector<288x16xf32>
    %63 = tpu.matmul %60, %62, %cst_49 {dimension_numbers = #tpu.dot_dimension_numbers<[1], [0], [0], [1], [0, 0, 1, 1], [], []>} : vector<288x16xbf16>, vector<16x16xbf16>, vector<288x16xf32> -> vector<288x16xf32>
    %64 = arith.addf %58, %63 : vector<288x16xf32>
    %c0_50 = arith.constant 0 : index
    %c50 = arith.constant 50 : index
    %c0_51 = arith.constant 0 : index
    %65 = vector.load %arg1[%c0_50, %c50, %c0_51] : memref<1x352x16xbf16, #tpu.memory_space<vmem>>, vector<1x288x16xbf16>
    %66 = vector.shape_cast %65 : vector<1x288x16xbf16> to vector<288x16xbf16>
    %c7 = arith.constant 7 : index
    %c0_52 = arith.constant 0 : index
    %c0_53 = arith.constant 0 : index
    %67 = vector.load %arg2[%c7, %c0_52, %c0_53] : memref<9x16x16xbf16, #tpu.memory_space<vmem>>, vector<1x16x16xbf16>
    %68 = vector.shape_cast %67 : vector<1x16x16xbf16> to vector<16x16xbf16>
    %cst_54 = arith.constant dense<0.000000e+00> : vector<288x16xf32>
    %69 = tpu.matmul %66, %68, %cst_54 {dimension_numbers = #tpu.dot_dimension_numbers<[1], [0], [0], [1], [0, 0, 1, 1], [], []>} : vector<288x16xbf16>, vector<16x16xbf16>, vector<288x16xf32> -> vector<288x16xf32>
    %70 = arith.addf %64, %69 : vector<288x16xf32>
    %c0_55 = arith.constant 0 : index
    %c51 = arith.constant 51 : index
    %c0_56 = arith.constant 0 : index
    %71 = vector.load %arg1[%c0_55, %c51, %c0_56] : memref<1x352x16xbf16, #tpu.memory_space<vmem>>, vector<1x288x16xbf16>
    %72 = vector.shape_cast %71 : vector<1x288x16xbf16> to vector<288x16xbf16>
    %c8 = arith.constant 8 : index
    %c0_57 = arith.constant 0 : index
    %c0_58 = arith.constant 0 : index
    %73 = vector.load %arg2[%c8, %c0_57, %c0_58] : memref<9x16x16xbf16, #tpu.memory_space<vmem>>, vector<1x16x16xbf16>
    %74 = vector.shape_cast %73 : vector<1x16x16xbf16> to vector<16x16xbf16>
    %cst_59 = arith.constant dense<0.000000e+00> : vector<288x16xf32>
    %75 = tpu.matmul %72, %74, %cst_59 {dimension_numbers = #tpu.dot_dimension_numbers<[1], [0], [0], [1], [0, 0, 1, 1], [], []>} : vector<288x16xbf16>, vector<16x16xbf16>, vector<288x16xf32> -> vector<288x16xf32>
    %76 = arith.addf %70, %75 : vector<288x16xf32>
    %c0_60 = arith.constant 0 : index
    %c0_61 = arith.constant 0 : index
    %77 = vector.load %arg3[%c0_60, %c0_61] : memref<1x16xf32, #tpu.memory_space<vmem>>, vector<1x16xf32>
    %78 = vector.broadcast %77 : vector<1x16xf32> to vector<288x16xf32>
    %79 = arith.mulf %76, %78 : vector<288x16xf32>
    %c0_62 = arith.constant 0 : index
    %c0_63 = arith.constant 0 : index
    %80 = vector.load %arg4[%c0_62, %c0_63] : memref<1x16xf32, #tpu.memory_space<vmem>>, vector<1x16xf32>
    %81 = vector.broadcast %80 : vector<1x16xf32> to vector<288x16xf32>
    %82 = arith.addf %79, %81 : vector<288x16xf32>
    %cst_64 = arith.constant 0.000000e+00 : f32
    %83 = vector.broadcast %cst_64 : f32 to vector<288x16xf32>
    %84 = arith.maximumf %82, %83 : vector<288x16xf32>
    %85 = arith.mulf %84, %23 : vector<288x16xf32>
    %86 = arith.truncf %85 : vector<288x16xf32> to vector<288x16xbf16>
    %c32_65 = arith.constant 32 : index
    %c0_66 = arith.constant 0 : index
    %87 = vector.load %arg14[%c32_65, %c0_66] : memref<352x16xbf16, #tpu.memory_space<vmem>>, vector<288x16xbf16>
    tpu.vector_store %arg14[%c32_65, %c0_66], %86 {strides = array<i32>} : memref<352x16xbf16, #tpu.memory_space<vmem>>, vector<288x16xbf16>,
    %c13_67 = arith.constant 13 : index
    %c0_68 = arith.constant 0 : index
    %88 = vector.load %arg14[%c13_67, %c0_68] : memref<352x16xbf16, #tpu.memory_space<vmem>>, vector<288x16xbf16>
    %c0_69 = arith.constant 0 : index
    %c0_70 = arith.constant 0 : index
    %c0_71 = arith.constant 0 : index
    %89 = vector.load %arg5[%c0_69, %c0_70, %c0_71] : memref<9x16x16xbf16, #tpu.memory_space<vmem>>, vector<1x16x16xbf16>
    %90 = vector.shape_cast %89 : vector<1x16x16xbf16> to vector<16x16xbf16>
    %cst_72 = arith.constant dense<0.000000e+00> : vector<288x16xf32>
    %91 = tpu.matmul %88, %90, %cst_72 {dimension_numbers = #tpu.dot_dimension_numbers<[1], [0], [0], [1], [0, 0, 1, 1], [], []>} : vector<288x16xbf16>, vector<16x16xbf16>, vector<288x16xf32> -> vector<288x16xf32>
    %c14_73 = arith.constant 14 : index
    %c0_74 = arith.constant 0 : index
    %92 = vector.load %arg14[%c14_73, %c0_74] : memref<352x16xbf16, #tpu.memory_space<vmem>>, vector<288x16xbf16>
    %c1_75 = arith.constant 1 : index
    %c0_76 = arith.constant 0 : index
    %c0_77 = arith.constant 0 : index
    %93 = vector.load %arg5[%c1_75, %c0_76, %c0_77] : memref<9x16x16xbf16, #tpu.memory_space<vmem>>, vector<1x16x16xbf16>
    %94 = vector.shape_cast %93 : vector<1x16x16xbf16> to vector<16x16xbf16>
    %cst_78 = arith.constant dense<0.000000e+00> : vector<288x16xf32>
    %95 = tpu.matmul %92, %94, %cst_78 {dimension_numbers = #tpu.dot_dimension_numbers<[1], [0], [0], [1], [0, 0, 1, 1], [], []>} : vector<288x16xbf16>, vector<16x16xbf16>, vector<288x16xf32> -> vector<288x16xf32>
    %96 = arith.addf %91, %95 : vector<288x16xf32>
    %c15_79 = arith.constant 15 : index
    %c0_80 = arith.constant 0 : index
    %97 = vector.load %arg14[%c15_79, %c0_80] : memref<352x16xbf16, #tpu.memory_space<vmem>>, vector<288x16xbf16>
    %c2_81 = arith.constant 2 : index
    %c0_82 = arith.constant 0 : index
    %c0_83 = arith.constant 0 : index
    %98 = vector.load %arg5[%c2_81, %c0_82, %c0_83] : memref<9x16x16xbf16, #tpu.memory_space<vmem>>, vector<1x16x16xbf16>
    %99 = vector.shape_cast %98 : vector<1x16x16xbf16> to vector<16x16xbf16>
    %cst_84 = arith.constant dense<0.000000e+00> : vector<288x16xf32>
    %100 = tpu.matmul %97, %99, %cst_84 {dimension_numbers = #tpu.dot_dimension_numbers<[1], [0], [0], [1], [0, 0, 1, 1], [], []>} : vector<288x16xbf16>, vector<16x16xbf16>, vector<288x16xf32> -> vector<288x16xf32>
    %101 = arith.addf %96, %100 : vector<288x16xf32>
    %c31_85 = arith.constant 31 : index
    %c0_86 = arith.constant 0 : index
    %102 = vector.load %arg14[%c31_85, %c0_86] : memref<352x16xbf16, #tpu.memory_space<vmem>>, vector<288x16xbf16>
    %c3_87 = arith.constant 3 : index
    %c0_88 = arith.constant 0 : index
    %c0_89 = arith.constant 0 : index
    %103 = vector.load %arg5[%c3_87, %c0_88, %c0_89] : memref<9x16x16xbf16, #tpu.memory_space<vmem>>, vector<1x16x16xbf16>
    %104 = vector.shape_cast %103 : vector<1x16x16xbf16> to vector<16x16xbf16>
    %cst_90 = arith.constant dense<0.000000e+00> : vector<288x16xf32>
    %105 = tpu.matmul %102, %104, %cst_90 {dimension_numbers = #tpu.dot_dimension_numbers<[1], [0], [0], [1], [0, 0, 1, 1], [], []>} : vector<288x16xbf16>, vector<16x16xbf16>, vector<288x16xf32> -> vector<288x16xf32>
    %106 = arith.addf %101, %105 : vector<288x16xf32>
    %c32_91 = arith.constant 32 : index
    %c0_92 = arith.constant 0 : index
    %107 = vector.load %arg14[%c32_91, %c0_92] : memref<352x16xbf16, #tpu.memory_space<vmem>>, vector<288x16xbf16>
    %c4_93 = arith.constant 4 : index
    %c0_94 = arith.constant 0 : index
    %c0_95 = arith.constant 0 : index
    %108 = vector.load %arg5[%c4_93, %c0_94, %c0_95] : memref<9x16x16xbf16, #tpu.memory_space<vmem>>, vector<1x16x16xbf16>
    %109 = vector.shape_cast %108 : vector<1x16x16xbf16> to vector<16x16xbf16>
    %cst_96 = arith.constant dense<0.000000e+00> : vector<288x16xf32>
    %110 = tpu.matmul %107, %109, %cst_96 {dimension_numbers = #tpu.dot_dimension_numbers<[1], [0], [0], [1], [0, 0, 1, 1], [], []>} : vector<288x16xbf16>, vector<16x16xbf16>, vector<288x16xf32> -> vector<288x16xf32>
    %111 = arith.addf %106, %110 : vector<288x16xf32>
    %c33_97 = arith.constant 33 : index
    %c0_98 = arith.constant 0 : index
    %112 = vector.load %arg14[%c33_97, %c0_98] : memref<352x16xbf16, #tpu.memory_space<vmem>>, vector<288x16xbf16>
    %c5_99 = arith.constant 5 : index
    %c0_100 = arith.constant 0 : index
    %c0_101 = arith.constant 0 : index
    %113 = vector.load %arg5[%c5_99, %c0_100, %c0_101] : memref<9x16x16xbf16, #tpu.memory_space<vmem>>, vector<1x16x16xbf16>
    %114 = vector.shape_cast %113 : vector<1x16x16xbf16> to vector<16x16xbf16>
    %cst_102 = arith.constant dense<0.000000e+00> : vector<288x16xf32>
    %115 = tpu.matmul %112, %114, %cst_102 {dimension_numbers = #tpu.dot_dimension_numbers<[1], [0], [0], [1], [0, 0, 1, 1], [], []>} : vector<288x16xbf16>, vector<16x16xbf16>, vector<288x16xf32> -> vector<288x16xf32>
    %116 = arith.addf %111, %115 : vector<288x16xf32>
    %c49_103 = arith.constant 49 : index
    %c0_104 = arith.constant 0 : index
    %117 = vector.load %arg14[%c49_103, %c0_104] : memref<352x16xbf16, #tpu.memory_space<vmem>>, vector<288x16xbf16>
    %c6_105 = arith.constant 6 : index
    %c0_106 = arith.constant 0 : index
    %c0_107 = arith.constant 0 : index
    %118 = vector.load %arg5[%c6_105, %c0_106, %c0_107] : memref<9x16x16xbf16, #tpu.memory_space<vmem>>, vector<1x16x16xbf16>
    %119 = vector.shape_cast %118 : vector<1x16x16xbf16> to vector<16x16xbf16>
    %cst_108 = arith.constant dense<0.000000e+00> : vector<288x16xf32>
    %120 = tpu.matmul %117, %119, %cst_108 {dimension_numbers = #tpu.dot_dimension_numbers<[1], [0], [0], [1], [0, 0, 1, 1], [], []>} : vector<288x16xbf16>, vector<16x16xbf16>, vector<288x16xf32> -> vector<288x16xf32>
    %121 = arith.addf %116, %120 : vector<288x16xf32>
    %c50_109 = arith.constant 50 : index
    %c0_110 = arith.constant 0 : index
    %122 = vector.load %arg14[%c50_109, %c0_110] : memref<352x16xbf16, #tpu.memory_space<vmem>>, vector<288x16xbf16>
    %c7_111 = arith.constant 7 : index
    %c0_112 = arith.constant 0 : index
    %c0_113 = arith.constant 0 : index
    %123 = vector.load %arg5[%c7_111, %c0_112, %c0_113] : memref<9x16x16xbf16, #tpu.memory_space<vmem>>, vector<1x16x16xbf16>
    %124 = vector.shape_cast %123 : vector<1x16x16xbf16> to vector<16x16xbf16>
    %cst_114 = arith.constant dense<0.000000e+00> : vector<288x16xf32>
    %125 = tpu.matmul %122, %124, %cst_114 {dimension_numbers = #tpu.dot_dimension_numbers<[1], [0], [0], [1], [0, 0, 1, 1], [], []>} : vector<288x16xbf16>, vector<16x16xbf16>, vector<288x16xf32> -> vector<288x16xf32>
    %126 = arith.addf %121, %125 : vector<288x16xf32>
    %c51_115 = arith.constant 51 : index
    %c0_116 = arith.constant 0 : index
    %127 = vector.load %arg14[%c51_115, %c0_116] : memref<352x16xbf16, #tpu.memory_space<vmem>>, vector<288x16xbf16>
    %c8_117 = arith.constant 8 : index
    %c0_118 = arith.constant 0 : index
    %c0_119 = arith.constant 0 : index
    %128 = vector.load %arg5[%c8_117, %c0_118, %c0_119] : memref<9x16x16xbf16, #tpu.memory_space<vmem>>, vector<1x16x16xbf16>
    %129 = vector.shape_cast %128 : vector<1x16x16xbf16> to vector<16x16xbf16>
    %cst_120 = arith.constant dense<0.000000e+00> : vector<288x16xf32>
    %130 = tpu.matmul %127, %129, %cst_120 {dimension_numbers = #tpu.dot_dimension_numbers<[1], [0], [0], [1], [0, 0, 1, 1], [], []>} : vector<288x16xbf16>, vector<16x16xbf16>, vector<288x16xf32> -> vector<288x16xf32>
    %131 = arith.addf %126, %130 : vector<288x16xf32>
    %c0_121 = arith.constant 0 : index
    %c0_122 = arith.constant 0 : index
    %132 = vector.load %arg6[%c0_121, %c0_122] : memref<1x16xf32, #tpu.memory_space<vmem>>, vector<1x16xf32>
    %133 = vector.broadcast %132 : vector<1x16xf32> to vector<288x16xf32>
    %134 = arith.mulf %131, %133 : vector<288x16xf32>
    %c0_123 = arith.constant 0 : index
    %c0_124 = arith.constant 0 : index
    %135 = vector.load %arg7[%c0_123, %c0_124] : memref<1x16xf32, #tpu.memory_space<vmem>>, vector<1x16xf32>
    %136 = vector.broadcast %135 : vector<1x16xf32> to vector<288x16xf32>
    %137 = arith.addf %134, %136 : vector<288x16xf32>
    %cst_125 = arith.constant 0.000000e+00 : f32
    %138 = vector.broadcast %cst_125 : f32 to vector<288x16xf32>
    %139 = arith.maximumf %137, %138 : vector<288x16xf32>
    %140 = arith.mulf %139, %23 : vector<288x16xf32>
    %141 = arith.truncf %140 : vector<288x16xf32> to vector<288x16xbf16>
    %c32_126 = arith.constant 32 : index
    %c0_127 = arith.constant 0 : index
    %142 = vector.load %arg15[%c32_126, %c0_127] : memref<352x16xbf16, #tpu.memory_space<vmem>>, vector<288x16xbf16>
    tpu.vector_store %arg15[%c32_126, %c0_127], %141 {strides = array<i32>} : memref<352x16xbf16, #tpu.memory_space<vmem>>, vector<288x16xbf16>,
    %c32_128 = arith.constant 32 : index
    %c0_129 = arith.constant 0 : index
    %143 = vector.load %arg14[%c32_128, %c0_129] : memref<352x16xbf16, #tpu.memory_space<vmem>>, vector<288x16xbf16>
    %144 = arith.extf %143 : vector<288x16xbf16> to vector<288x16xf32>
    %c13_130 = arith.constant 13 : index
    %c0_131 = arith.constant 0 : index
    %145 = vector.load %arg15[%c13_130, %c0_131] : memref<352x16xbf16, #tpu.memory_space<vmem>>, vector<288x16xbf16>
    %c0_132 = arith.constant 0 : index
    %c0_133 = arith.constant 0 : index
    %c0_134 = arith.constant 0 : index
    %146 = vector.load %arg8[%c0_132, %c0_133, %c0_134] : memref<9x16x16xbf16, #tpu.memory_space<vmem>>, vector<1x16x16xbf16>
    %147 = vector.shape_cast %146 : vector<1x16x16xbf16> to vector<16x16xbf16>
    %cst_135 = arith.constant dense<0.000000e+00> : vector<288x16xf32>
    %148 = tpu.matmul %145, %147, %cst_135 {dimension_numbers = #tpu.dot_dimension_numbers<[1], [0], [0], [1], [0, 0, 1, 1], [], []>} : vector<288x16xbf16>, vector<16x16xbf16>, vector<288x16xf32> -> vector<288x16xf32>
    %c14_136 = arith.constant 14 : index
    %c0_137 = arith.constant 0 : index
    %149 = vector.load %arg15[%c14_136, %c0_137] : memref<352x16xbf16, #tpu.memory_space<vmem>>, vector<288x16xbf16>
    %c1_138 = arith.constant 1 : index
    %c0_139 = arith.constant 0 : index
    %c0_140 = arith.constant 0 : index
    %150 = vector.load %arg8[%c1_138, %c0_139, %c0_140] : memref<9x16x16xbf16, #tpu.memory_space<vmem>>, vector<1x16x16xbf16>
    %151 = vector.shape_cast %150 : vector<1x16x16xbf16> to vector<16x16xbf16>
    %cst_141 = arith.constant dense<0.000000e+00> : vector<288x16xf32>
    %152 = tpu.matmul %149, %151, %cst_141 {dimension_numbers = #tpu.dot_dimension_numbers<[1], [0], [0], [1], [0, 0, 1, 1], [], []>} : vector<288x16xbf16>, vector<16x16xbf16>, vector<288x16xf32> -> vector<288x16xf32>
    %153 = arith.addf %148, %152 : vector<288x16xf32>
    %c15_142 = arith.constant 15 : index
    %c0_143 = arith.constant 0 : index
    %154 = vector.load %arg15[%c15_142, %c0_143] : memref<352x16xbf16, #tpu.memory_space<vmem>>, vector<288x16xbf16>
    %c2_144 = arith.constant 2 : index
    %c0_145 = arith.constant 0 : index
    %c0_146 = arith.constant 0 : index
    %155 = vector.load %arg8[%c2_144, %c0_145, %c0_146] : memref<9x16x16xbf16, #tpu.memory_space<vmem>>, vector<1x16x16xbf16>
    %156 = vector.shape_cast %155 : vector<1x16x16xbf16> to vector<16x16xbf16>
    %cst_147 = arith.constant dense<0.000000e+00> : vector<288x16xf32>
    %157 = tpu.matmul %154, %156, %cst_147 {dimension_numbers = #tpu.dot_dimension_numbers<[1], [0], [0], [1], [0, 0, 1, 1], [], []>} : vector<288x16xbf16>, vector<16x16xbf16>, vector<288x16xf32> -> vector<288x16xf32>
    %158 = arith.addf %153, %157 : vector<288x16xf32>
    %c31_148 = arith.constant 31 : index
    %c0_149 = arith.constant 0 : index
    %159 = vector.load %arg15[%c31_148, %c0_149] : memref<352x16xbf16, #tpu.memory_space<vmem>>, vector<288x16xbf16>
    %c3_150 = arith.constant 3 : index
    %c0_151 = arith.constant 0 : index
    %c0_152 = arith.constant 0 : index
    %160 = vector.load %arg8[%c3_150, %c0_151, %c0_152] : memref<9x16x16xbf16, #tpu.memory_space<vmem>>, vector<1x16x16xbf16>
    %161 = vector.shape_cast %160 : vector<1x16x16xbf16> to vector<16x16xbf16>
    %cst_153 = arith.constant dense<0.000000e+00> : vector<288x16xf32>
    %162 = tpu.matmul %159, %161, %cst_153 {dimension_numbers = #tpu.dot_dimension_numbers<[1], [0], [0], [1], [0, 0, 1, 1], [], []>} : vector<288x16xbf16>, vector<16x16xbf16>, vector<288x16xf32> -> vector<288x16xf32>
    %163 = arith.addf %158, %162 : vector<288x16xf32>
    %c32_154 = arith.constant 32 : index
    %c0_155 = arith.constant 0 : index
    %164 = vector.load %arg15[%c32_154, %c0_155] : memref<352x16xbf16, #tpu.memory_space<vmem>>, vector<288x16xbf16>
    %c4_156 = arith.constant 4 : index
    %c0_157 = arith.constant 0 : index
    %c0_158 = arith.constant 0 : index
    %165 = vector.load %arg8[%c4_156, %c0_157, %c0_158] : memref<9x16x16xbf16, #tpu.memory_space<vmem>>, vector<1x16x16xbf16>
    %166 = vector.shape_cast %165 : vector<1x16x16xbf16> to vector<16x16xbf16>
    %cst_159 = arith.constant dense<0.000000e+00> : vector<288x16xf32>
    %167 = tpu.matmul %164, %166, %cst_159 {dimension_numbers = #tpu.dot_dimension_numbers<[1], [0], [0], [1], [0, 0, 1, 1], [], []>} : vector<288x16xbf16>, vector<16x16xbf16>, vector<288x16xf32> -> vector<288x16xf32>
    %168 = arith.addf %163, %167 : vector<288x16xf32>
    %c33_160 = arith.constant 33 : index
    %c0_161 = arith.constant 0 : index
    %169 = vector.load %arg15[%c33_160, %c0_161] : memref<352x16xbf16, #tpu.memory_space<vmem>>, vector<288x16xbf16>
    %c5_162 = arith.constant 5 : index
    %c0_163 = arith.constant 0 : index
    %c0_164 = arith.constant 0 : index
    %170 = vector.load %arg8[%c5_162, %c0_163, %c0_164] : memref<9x16x16xbf16, #tpu.memory_space<vmem>>, vector<1x16x16xbf16>
    %171 = vector.shape_cast %170 : vector<1x16x16xbf16> to vector<16x16xbf16>
    %cst_165 = arith.constant dense<0.000000e+00> : vector<288x16xf32>
    %172 = tpu.matmul %169, %171, %cst_165 {dimension_numbers = #tpu.dot_dimension_numbers<[1], [0], [0], [1], [0, 0, 1, 1], [], []>} : vector<288x16xbf16>, vector<16x16xbf16>, vector<288x16xf32> -> vector<288x16xf32>
    %173 = arith.addf %168, %172 : vector<288x16xf32>
    %c49_166 = arith.constant 49 : index
    %c0_167 = arith.constant 0 : index
    %174 = vector.load %arg15[%c49_166, %c0_167] : memref<352x16xbf16, #tpu.memory_space<vmem>>, vector<288x16xbf16>
    %c6_168 = arith.constant 6 : index
    %c0_169 = arith.constant 0 : index
    %c0_170 = arith.constant 0 : index
    %175 = vector.load %arg8[%c6_168, %c0_169, %c0_170] : memref<9x16x16xbf16, #tpu.memory_space<vmem>>, vector<1x16x16xbf16>
    %176 = vector.shape_cast %175 : vector<1x16x16xbf16> to vector<16x16xbf16>
    %cst_171 = arith.constant dense<0.000000e+00> : vector<288x16xf32>
    %177 = tpu.matmul %174, %176, %cst_171 {dimension_numbers = #tpu.dot_dimension_numbers<[1], [0], [0], [1], [0, 0, 1, 1], [], []>} : vector<288x16xbf16>, vector<16x16xbf16>, vector<288x16xf32> -> vector<288x16xf32>
    %178 = arith.addf %173, %177 : vector<288x16xf32>
    %c50_172 = arith.constant 50 : index
    %c0_173 = arith.constant 0 : index
    %179 = vector.load %arg15[%c50_172, %c0_173] : memref<352x16xbf16, #tpu.memory_space<vmem>>, vector<288x16xbf16>
    %c7_174 = arith.constant 7 : index
    %c0_175 = arith.constant 0 : index
    %c0_176 = arith.constant 0 : index
    %180 = vector.load %arg8[%c7_174, %c0_175, %c0_176] : memref<9x16x16xbf16, #tpu.memory_space<vmem>>, vector<1x16x16xbf16>
    %181 = vector.shape_cast %180 : vector<1x16x16xbf16> to vector<16x16xbf16>
    %cst_177 = arith.constant dense<0.000000e+00> : vector<288x16xf32>
    %182 = tpu.matmul %179, %181, %cst_177 {dimension_numbers = #tpu.dot_dimension_numbers<[1], [0], [0], [1], [0, 0, 1, 1], [], []>} : vector<288x16xbf16>, vector<16x16xbf16>, vector<288x16xf32> -> vector<288x16xf32>
    %183 = arith.addf %178, %182 : vector<288x16xf32>
    %c51_178 = arith.constant 51 : index
    %c0_179 = arith.constant 0 : index
    %184 = vector.load %arg15[%c51_178, %c0_179] : memref<352x16xbf16, #tpu.memory_space<vmem>>, vector<288x16xbf16>
    %c8_180 = arith.constant 8 : index
    %c0_181 = arith.constant 0 : index
    %c0_182 = arith.constant 0 : index
    %185 = vector.load %arg8[%c8_180, %c0_181, %c0_182] : memref<9x16x16xbf16, #tpu.memory_space<vmem>>, vector<1x16x16xbf16>
    %186 = vector.shape_cast %185 : vector<1x16x16xbf16> to vector<16x16xbf16>
    %cst_183 = arith.constant dense<0.000000e+00> : vector<288x16xf32>
    %187 = tpu.matmul %184, %186, %cst_183 {dimension_numbers = #tpu.dot_dimension_numbers<[1], [0], [0], [1], [0, 0, 1, 1], [], []>} : vector<288x16xbf16>, vector<16x16xbf16>, vector<288x16xf32> -> vector<288x16xf32>
    %188 = arith.addf %183, %187 : vector<288x16xf32>
    %c0_184 = arith.constant 0 : index
    %c0_185 = arith.constant 0 : index
    %189 = vector.load %arg9[%c0_184, %c0_185] : memref<1x16xf32, #tpu.memory_space<vmem>>, vector<1x16xf32>
    %190 = vector.broadcast %189 : vector<1x16xf32> to vector<288x16xf32>
    %191 = arith.mulf %188, %190 : vector<288x16xf32>
    %c0_186 = arith.constant 0 : index
    %c0_187 = arith.constant 0 : index
    %192 = vector.load %arg10[%c0_186, %c0_187] : memref<1x16xf32, #tpu.memory_space<vmem>>, vector<1x16xf32>
    %193 = vector.broadcast %192 : vector<1x16xf32> to vector<288x16xf32>
    %194 = arith.addf %191, %193 : vector<288x16xf32>
    %195 = arith.addf %194, %144 : vector<288x16xf32>
    %cst_188 = arith.constant 0.000000e+00 : f32
    %196 = vector.broadcast %cst_188 : f32 to vector<288x16xf32>
    %197 = arith.maximumf %195, %196 : vector<288x16xf32>
    %198 = arith.mulf %197, %23 : vector<288x16xf32>
    %cst_189 = arith.constant dense<0.000000e+00> : vector<16xf32>
    %199 = vector.multi_reduction <add>, %198, %cst_189 [0] : vector<288x16xf32> to vector<16xf32>
    %200 = vector.shape_cast %199 : vector<16xf32> to vector<1x16xf32>
    %cst_190 = arith.constant 3.906250e-03 : f32
    %201 = vector.broadcast %cst_190 : f32 to vector<1x16xf32>
    %202 = arith.mulf %200, %201 : vector<1x16xf32>
    %c0_191 = arith.constant 0 : index
    %c0_192 = arith.constant 0 : index
    %203 = vector.load %arg11[%c0_191, %c0_192] : memref<16x128xf32, #tpu.memory_space<vmem>>, vector<16x128xf32>
    %cst_193 = arith.constant dense<0.000000e+00> : vector<1x128xf32>
    %204 = tpu.matmul %202, %203, %cst_193 {dimension_numbers = #tpu.dot_dimension_numbers<[1], [0], [0], [1], [0, 0, 1, 1], [], []>} : vector<1x16xf32>, vector<16x128xf32>, vector<1x128xf32> -> vector<1x128xf32>
    %c0_194 = arith.constant 0 : index
    %c0_195 = arith.constant 0 : index
    %205 = vector.load %arg12[%c0_194, %c0_195] : memref<1x128xf32, #tpu.memory_space<vmem>>, vector<1x128xf32>
    %206 = arith.addf %204, %205 : vector<1x128xf32>
    %c0_196 = arith.constant 0 : index
    %c0_197 = arith.constant 0 : index
    %c0_198 = arith.constant 0 : index
    %207 = vector.load %arg13[%c0_196, %c0_197, %c0_198] : memref<1x1x128xf32, #tpu.memory_space<vmem>>, vector<1x1x128xf32>
    %208 = vector.shape_cast %207 : vector<1x1x128xf32> to vector<1x128xf32>
    %209 = vector.shape_cast %206 : vector<1x128xf32> to vector<1x1x128xf32>
    tpu.vector_store %arg13[%c0_196, %c0_197, %c0_198], %209 {strides = array<i32>} : memref<1x1x128xf32, #tpu.memory_space<vmem>>, vector<1x1x128xf32>,
    return
  }
  func.func @transform_0(%arg0: i32) -> (i32, i32, i32) {
    %c0_i32 = arith.constant 0 : i32
    %c0_i32_0 = arith.constant 0 : i32
    %c0_i32_1 = arith.constant 0 : i32
    return %arg0, %c0_i32, %c0_i32_0 : i32, i32, i32
  }
  func.func @transform_1(%arg0: i32) -> (i32, i32, i32) {
    %c0_i32 = arith.constant 0 : i32
    %c0_i32_0 = arith.constant 0 : i32
    %c0_i32_1 = arith.constant 0 : i32
    %c0_i32_2 = arith.constant 0 : i32
    return %c0_i32, %c0_i32_0, %c0_i32_1 : i32, i32, i32
  }
  func.func @transform_2(%arg0: i32) -> (i32, i32) {
    %c0_i32 = arith.constant 0 : i32
    %c0_i32_0 = arith.constant 0 : i32
    %c0_i32_1 = arith.constant 0 : i32
    return %c0_i32, %c0_i32_0 : i32, i32
  }
  func.func @transform_3(%arg0: i32) -> (i32, i32) {
    %c0_i32 = arith.constant 0 : i32
    %c0_i32_0 = arith.constant 0 : i32
    %c0_i32_1 = arith.constant 0 : i32
    return %c0_i32, %c0_i32_0 : i32, i32
  }
  func.func @transform_4(%arg0: i32) -> (i32, i32, i32) {
    %c0_i32 = arith.constant 0 : i32
    %c0_i32_0 = arith.constant 0 : i32
    %c0_i32_1 = arith.constant 0 : i32
    %c0_i32_2 = arith.constant 0 : i32
    return %c0_i32, %c0_i32_0, %c0_i32_1 : i32, i32, i32
  }
  func.func @transform_5(%arg0: i32) -> (i32, i32) {
    %c0_i32 = arith.constant 0 : i32
    %c0_i32_0 = arith.constant 0 : i32
    %c0_i32_1 = arith.constant 0 : i32
    return %c0_i32, %c0_i32_0 : i32, i32
  }
  func.func @transform_6(%arg0: i32) -> (i32, i32) {
    %c0_i32 = arith.constant 0 : i32
    %c0_i32_0 = arith.constant 0 : i32
    %c0_i32_1 = arith.constant 0 : i32
    return %c0_i32, %c0_i32_0 : i32, i32
  }
  func.func @transform_7(%arg0: i32) -> (i32, i32, i32) {
    %c0_i32 = arith.constant 0 : i32
    %c0_i32_0 = arith.constant 0 : i32
    %c0_i32_1 = arith.constant 0 : i32
    %c0_i32_2 = arith.constant 0 : i32
    return %c0_i32, %c0_i32_0, %c0_i32_1 : i32, i32, i32
  }
  func.func @transform_8(%arg0: i32) -> (i32, i32) {
    %c0_i32 = arith.constant 0 : i32
    %c0_i32_0 = arith.constant 0 : i32
    %c0_i32_1 = arith.constant 0 : i32
    return %c0_i32, %c0_i32_0 : i32, i32
  }
  func.func @transform_9(%arg0: i32) -> (i32, i32) {
    %c0_i32 = arith.constant 0 : i32
    %c0_i32_0 = arith.constant 0 : i32
    %c0_i32_1 = arith.constant 0 : i32
    return %c0_i32, %c0_i32_0 : i32, i32
  }
  func.func @transform_10(%arg0: i32) -> (i32, i32) {
    %c0_i32 = arith.constant 0 : i32
    %c0_i32_0 = arith.constant 0 : i32
    %c0_i32_1 = arith.constant 0 : i32
    return %c0_i32, %c0_i32_0 : i32, i32
  }
  func.func @transform_11(%arg0: i32) -> (i32, i32) {
    %c0_i32 = arith.constant 0 : i32
    %c0_i32_0 = arith.constant 0 : i32
    %c0_i32_1 = arith.constant 0 : i32
    return %c0_i32, %c0_i32_0 : i32, i32
  }
  func.func @transform_12(%arg0: i32) -> (i32, i32, i32) {
    %c0_i32 = arith.constant 0 : i32
    %c0_i32_0 = arith.constant 0 : i32
    %c0_i32_1 = arith.constant 0 : i32
    return %arg0, %c0_i32, %c0_i32_0 : i32, i32, i32
  }
}

</mosaic_0001>

<bundles_post_ra>
// kernel: _forward_padded.1
= control target key start
LH: loop header
LB: loop body
LE: loop exit
PB: predicated region body
PF: predicated region fallthrough
CT: control target
= control target key end

     0   :  { %s20453_s0 = inlined_call_operand.vmem [shape: bf16[2,352,16], index: 0, kind: input, shape index: {}]   ;;  %s20454_s1 = inlined_call_operand.vmem [shape: bf16[9,16,16], index: 1, kind: input, shape index: {}]   ;;  %s20455_s2 = inlined_call_operand.vmem [shape: f32[1,16], index: 2, kind: input, shape index: {}]   ;;  %s20456_s3 = inlined_call_operand.vmem [shape: f32[1,16], index: 3, kind: input, shape index: {}]   ;;  %s20457_s4 = inlined_call_operand.vmem [shape: bf16[9,16,16], index: 4, kind: input, shape index: {}]   ;;  %s20458_s5 = inlined_call_operand.vmem [shape: f32[1,16], index: 5, kind: input, shape index: {}]   ;;  %s20459_s6 = inlined_call_operand.vmem [shape: f32[1,16], index: 6, kind: input, shape index: {}]   ;;  %s20460_s7 = inlined_call_operand.vmem [shape: bf16[9,16,16], index: 7, kind: input, shape index: {}]   ;;  %s20461_s8 = inlined_call_operand.vmem [shape: f32[1,16], index: 8, kind: input, shape index: {}]   ;;  %s20462_s9 = inlined_call_operand.vmem [shape: f32[1,16], index: 9, kind: input, shape index: {}]   ;;  %s20463_s10 = inlined_call_operand.vmem [shape: f32[16,128], index: 10, kind: input, shape index: {}]   ;;  %s20464_s11 = inlined_call_operand.vmem [shape: f32[1,128], index: 11, kind: input, shape index: {}]   ;;  %s20465_s12 = inlined_call_operand.hbm [shape: f32[2,1,128], index: 12, kind: output, shape index: {}]  }
   0x1   :  { %20684 = sst [smem:[#allocation86_spill]] %s20453_s0 }
   0x2   :  { %17 = vsyncpa [#allocation5], 0 }
   0x3   :  { %19 = vsyncpa [#allocation5 + $0x1], 0  ;;  %s15642_s21 = smov 0   ;;  %s15644_s22 = smov 0  }
   0x4   :  { %s15646_s23 = smov 0   ;;  %s15648_s24 = smov 0  }
   0x5 LB: > { %s15663_s25 = sadd.s32 4294967295, %s15570_s24   ;;  %s12225_s26 = sadd.s32 4294967294, %s15570_s24   ;;  %s15570_s24 = sphi %s15648_s24, %s21931_s24   ;;  %s15566_s23 = sphi %s15646_s23, %s21930_s23   ;;  %s15562_s22 = sphi %s15644_s22, %s21929_s22   ;;  %s15558_s21 = sphi %s15642_s21, %s21928_s21  }
   0x6   : > { %s15667_s27 = sadd.s32 1, %s15570_s24   ;;  %s289_s28 = sadd.s32 1, %s15566_s23 }
   0x7   : > { %s286_s29 = ssub.s32 %s15570_s24, %s15667_s27  ;;  %p299_p0 = scmp.ne.s32.totalorder %s15566_s23, %s15562_s22 }
   0x8   : > { %p287_p1 = scmp.eq.s32.totalorder %s286_s29, 0  ;;  %p300_p2 = scmp.eq.s32.totalorder %s15663_s25, 1 }
   0x9   : > { %p305_p3 = scmp.ne.s32.totalorder %s15562_s22, %s15558_s21  ;;  %p306_p4 = scmp.eq.s32.totalorder %s12225_s26, 1 }
   0xa   : > { %s15678_s30 = scalar_select %p287_p1, %s15566_s23, %s289_s28  }
   0xb   : > { %p15680_p5 = por %p300_p2, %p299_p0  ;;  %p15684_p6 = por %p306_p4, %p305_p3 }
   0xc   : > { %20685 = sst [smem:[#allocation7_spill]] %s15678_s30  ;;  %p12228_p7 = scmp.ge.s32.totalorder %s15570_s24, 1 }
   0xd   : > { %p365_p8 = scmp.lt.s32.totalorder %s15570_s24, 3 }
   0xf   : > { %p366_p9 = pnand %p12228_p7, %p365_p8 }
  0x11   : > { %369 = sbr.rel (%p366_p9) target bundleno = 2461 (0x99d), region = 68 }
  0x18   : > { %v15361_v0 = vld [vmem:[%s20454_s1 + $0x20] sm:$0xff]   ;;  %p406_p10 = scmp.lt.s32.totalorder %s15663_s25, 1  ;;  %v15362_v1 = vld [vmem:[%s20454_s1 + $0x8] sm:$0xff]   ;;  %s20688_s0 = sld [smem:[#allocation86_spill]]  ;;  %vm20540_vm0 = vcmask 130048   ;;  %v15724_v14 = vld [vmem:[%s20454_s1 + $0x30] sm:$0xff]  }
  0x19   : > { %13567 = vmatprep.subr.bf16.mxu0 %v15361_v0  ;;  %v15368_v2 = vld [vmem:[%s20454_s1 + $0x28] sm:$0xff]   ;;  %13415 = vmatprep.subr.bf16.mxu1 %v15362_v1  ;;  %v15373_v3 = vld [vmem:[%s20454_s1] sm:$0xff]   ;;  %vm954_vm1 = vcmask 1044480   ;;  %v15753_v28 = vld [vmem:[%s20454_s1 + $0x10] sm:$0xff]   ;;  %vm20538_vm2 = vsmask.f32 7424 }
  0x1a   : > { %s407_s19 = scalar_select %p406_p10, %s15663_s25, 1  ;;  %13568 = vmatpush3.bf16.msra.mxu0 %v15361_v0  ;;  %13416 = vmatpush3.bf16.msra.mxu1 %v15362_v1  ;;  %vm1232_vm3 = vsmask.f32 5376  ;;  %vm1647_vm4 = vsmask.f32 4352  ;;  %vm20537_vm5 = vcmask 1046528  }
  0x1b   : > { %13605 = vmatprep.subr.bf16.mxu0 %v15368_v2  ;;  %13453 = vmatprep.subr.bf16.mxu1 %v15373_v3  ;;  %vm20536_vm6 = vsmask.f32 6400  ;;  %vm20539_vm7 = vcmask 1040384   ;;  %s404_s29 = sand.u32 1, %s15562_s22   ;;  %s12896_s30 = sshll.u32 %s15663_s25, 4 }
  0x1c   : > { %s15317_s15 = smul.u32 176, %s407_s19  ;;  %s405_s18 = scalar_lea.vmem [#allocation4], %s404_s29 }
  0x1d   : > { %s12170_s19 = sshll.u32 %s405_s18, 4  ;;  %s20411_s26 = scalar_lea.hbm %s20465_s12, %s12896_s30  ;;  %s20413_s19 = int_to_ptr.vmem [resolvable:$true] %s12170_s19 }
  0x1e   : > { %s15707_s17 = scalar_lea.vmem %s20688_s0, %s15317_s15  ;;  %s12158_s28 = scalar_lea.sflag [#allocation5], %s404_s29 }
  0x1f   : > { %v2007_v4 = vld [vmem:[%s15707_s17 + $0x10] sm:$0xf]  ;;  %v2008_v5 = vld [vmem:[%s15707_s17 + $0x14] sm:$0xf]  ;;  %v2009_v6 = vld [vmem:[%s15707_s17 + $0x18] sm:$0xf] }
  0x20   : > { %v2010_v7 = vld [vmem:[%s15707_s17 + $0x1c] sm:$0xf]  ;;  %v2011_v8 = vld [vmem:[%s15707_s17 + $0x20] sm:$0xf]  ;;  %v12354_v9 = vcombine.low %v2007_v4, %v2008_v5  ;;  %v15714_v10 = vcombine.low %v2008_v5, %v2009_v6  ;;  %v15719_v13 = vld [vmem:[%s15707_s17 + $0x8] sm:$0xf] }
  0x21   : > { %v15716_v11 = vcombine.low %v2010_v7, %v2011_v8  ;;  %v12355_v12 = vcombine.low %v2009_v6, %v2010_v7  ;;  %v857_v15 = vld [vmem:[%s15707_s17 + $0x4] sm:$0x8]  ;;  %v15730_v16 = vld [vmem:[%s15707_s17 + $0xc] sm:$0xff]   ;;  %v15733_v17 = vld [vmem:[%s15707_s17 + $0x14] sm:$0xff]   ;;  %s15508_s15 = scalar_lea.vmem %s20413_s19, 16  ;;  %s15576_s25 = smov [#allocation4]  }
  0x22   : > { %13569 = vmatprep.mubr.msk.bf16.mxu0 %vm20540_vm0, %v12354_v9  ;;  %v15736_v18 = vcombine.low %v857_v15, %v15719_v13  ;;  %v2012_v19 = vld [vmem:[%s15707_s17 + $0x24] sm:$0xf]  ;;  %v956_v21 = vrot.slane %v15730_v16, 3  ;;  %v958_v22 = vrot.slane %v15733_v17, 3  ;;  %v2013_v24 = vld [vmem:[%s15707_s17 + $0x28] sm:$0xf]  ;;  %p15509_p11 = scmp.ne.s32.totalorder %s20413_s19, %s15508_s15 }
  0x23   : > { %13570 = vmatmul.mubr.msk.bf16.vlgmr.msra.gmra.mrb[0].mxu0 %vm20540_vm0, %v12355_v12  ;;  %v12356_v23 = vcombine.low %v2011_v8, %v2012_v19  ;;  %v15745_v25 = vld [vmem:[%s15707_s17 + $0x1c] sm:$0xff]   ;;  %v2014_v26 = vld [vmem:[%s15707_s17 + $0x2c] sm:$0xf]  ;;  %v15748_v27 = vcombine.low %v2012_v19, %v2013_v24  ;;  %v15760_v33 = vld [vmem:[%s15707_s17 + $0x24] sm:$0xff]   ;;  %v2148_v5 = vshrl.u32 %v15714_v10, 16  ;;  %v2151_v8 = vshll.u32 %v15714_v10, 16 }
  0x24   : > { %13606 = vmatpush3.bf16.msra.mxu0 %v15368_v2  ;;  %v955_v20 = vrot.slane %v15736_v18, 3  ;;  %v959_v30 = vsel %vm954_vm1, %v956_v21, %v958_v22  ;;  %v12357_v31 = vcombine.low %v2013_v24, %v2014_v26  ;;  %v960_v32 = vrot.slane %v15745_v25, 3  ;;  %v2006_v34 = vld [vmem:[%s15707_s17 + $0xc] sm:$0x8]  ;;  %v2015_v35 = vld [vmem:[%s15707_s17 + $0x30] sm:$0xf]  ;;  %p15510_p12 = pnand %p15509_p11, %p15680_p5 }
  0x25   : > { %13643 = vmatprep.subr.bf16.mxu0 %v15724_v14  ;;  %20689 = vst [vmem:[#allocation8_spill] sm:$0xff] %v15748_v27  ;;  %13573 = vmatprep.mubr.msk.bf16.mxu0 %vm20540_vm0, %v12356_v23  ;;  %v2016_v36 = vld [vmem:[%s15707_s17 + $0x34] sm:$0xf]  ;;  %v962_v38 = vrot.slane %v15760_v33, 3  ;;  %v15769_v39 = vcombine.low %v2014_v26, %v2015_v35  ;;  %v2017_v41 = vld [vmem:[%s15707_s17 + $0x38] sm:$0xf]  ;;  %v12314_v51 = vcombine.low %v2006_v34, %v2007_v4 }
  0x26   : > { %v957_v29 = vsel %vm954_vm1, %v955_v20, %v956_v21  ;;  %v961_v37 = vsel %vm954_vm1, %v958_v22, %v960_v32  ;;  %v12358_v40 = vcombine.low %v2015_v35, %v2016_v36  ;;  %v15773_v42 = vld [vmem:[%s15707_s17 + $0x2c] sm:$0xff]   ;;  %v15776_v43 = vcombine.low %v2016_v36, %v2017_v41  ;;  %v2018_v44 = vld [vmem:[%s15707_s17 + $0x3c] sm:$0xf]  ;;  %v2019_v46 = vld [vmem:[%s15707_s17 + $0x40] sm:$0xf]  ;;  %p15511_p13 = pneg %p15510_p12  ;;  %s15512_s16 = sshll.u32 %s15576_s25, 4  ;;  %s15513_s16 = int_to_ptr.vmem [resolvable:$false] %s15512_s16 }
  0x27   : > { %13417 = vmatprep.mubr.msk.bf16.mxu1 %vm20540_vm0, %v957_v29  ;;  %20690 = vst [vmem:[#allocation9_spill] sm:$0xff] %v15769_v39  ;;  %v964_v45 = vrot.slane %v15773_v42, 3  ;;  %v15784_v47 = vld [vmem:[%s15707_s17 + $0x34] sm:$0xff]   ;;  %v2020_v48 = vld [vmem:[%s15707_s17 + $0x44] sm:$0xf]  ;;  %v15787_v49 = vcombine.low %v2018_v44, %v2019_v46  ;;  %v963_v54 = vsel %vm954_vm1, %v960_v32, %v962_v38  ;;  %v12359_v55 = vcombine.low %v2017_v41, %v2018_v44  ;;  %v15796_v56 = vld [vmem:[%s15707_s17 + $0x3c] sm:$0xff]   ;;  %p15515_p0 = scmp.lt.s32.totalorder %s20413_s19, %s15513_s16 }
  0x28   : > { %13418 = vmatmul.mubr.msk.bf16.vlgmr.msra.gmra.mrb[0].mxu1 %vm20540_vm0, %v959_v30  ;;  %20691 = vst [vmem:[#allocation10_spill] sm:$0xff] %v15776_v43  ;;  %v2021_v50 = vld [vmem:[%s15707_s17 + $0x48] sm:$0xf]  ;;  %v2022_v52 = vld [vmem:[%s15707_s17 + $0x4c] sm:$0xf]  ;;  %v12360_v59 = vcombine.low %v2019_v46, %v2020_v48  ;;  %v2140_v0 = vshrl.u32 %v12314_v51, 16 }
  0x29   : > { %13454 = vmatpush3.bf16.msra.mxu1 %v15373_v3  ;;  %13421 = vmatprep.mubr.msk.bf16.mxu1 %vm20540_vm0, %v961_v37  ;;  %20692 = vst [vmem:[#allocation11_spill] sm:$0xff] %v15787_v49  ;;  %v15792_v53 = vcombine.low %v2020_v48, %v2021_v50  ;;  %v2023_v57 = vld [vmem:[%s15707_s17 + $0x50] sm:$0xf]  ;;  %v965_v58 = vsel %vm954_vm1, %v962_v38, %v964_v45  ;;  %v2024_v60 = vld [vmem:[%s15707_s17 + $0x54] sm:$0xf]  ;;  %v966_v2 = vrot.slane %v15784_v47, 3 }
  0x2a   : > { %13491 = vmatprep.subr.bf16.mxu1 %v15753_v28  ;;  %v15801_v61 = vcombine.low %v2022_v52, %v2023_v57  ;;  %v2025_v62 = vld [vmem:[%s15707_s17 + $0x58] sm:$0xf]  ;;  %v15398_v1 = vld [vmem:[%s15707_s17 + $0x10] sm:$0xff]   ;;  %v968_v3 = vrot.slane %v15796_v56, 3  ;;  %v2143_v4 = vshll.u32 %v12314_v51, 16  ;;  %v2157_v9 = vshrl.u32 %v15716_v11, 16 }
  0x2b   : > { %13574 = vmatmul.mubr.msk.bf16.gmra.mrb[4].mxu0 %vm20540_vm0, %v12357_v31  ;;  %20693 = vst [vmem:[#allocation12_spill] sm:$0xff] %v15792_v53  ;;  %v15804_v63 = vcombine.low %v2024_v60, %v2025_v62  ;;  %v15399_v6 = vld [vmem:[%s15707_s17 + $0x18] sm:$0xff]   ;;  %v3013_v7 = vshll.u32 %v15398_v1, 16  ;;  %v15817_v12 = vrot.slane %v2140_v0, 3  ;;  %v2160_v15 = vshll.u32 %v15716_v11, 16  ;;  %v15822_v21 = vld [vmem:[%s15707_s17 + $0x44] sm:$0xff]  }
  0x2c   : > { %13577 = vmatprep.mubr.msk.bf16.mxu0 %vm20540_vm0, %v12358_v40  ;;  %20694 = vst [vmem:[#allocation13_spill] sm:$0xff] %v15801_v61  ;;  %v967_v19 = vsel %vm954_vm1, %v964_v45, %v966_v2  ;;  %v12361_v20 = vcombine.low %v2021_v50, %v2022_v52  ;;  %v969_v22 = vsel %vm954_vm1, %v966_v2, %v968_v3  ;;  %v15826_v24 = vld [vmem:[%s15707_s17 + $0x4c] sm:$0xff]   ;;  %v3011_v10 = vshrl.u32 %v15398_v1, 16  ;;  %v15830_v30 = vld [vmem:[%s15707_s17 + $0x5c] sm:$0xf]  ;;  %v15401_v31 = vld [vmem:[%s15707_s17 + $0x20] sm:$0xff]  }
  0x2d   : > { %20695 = vst [vmem:[#allocation14_spill] sm:$0xff] %v15804_v63  ;;  %v12362_v23 = vcombine.low %v2023_v57, %v2024_v60  ;;  %v3015_v26 = vrot.slane %v3013_v7, 1  ;;  %v3018_v29 = vshll.u32 %v15399_v6, 16  ;;  %v970_v11 = vrot.slane %v15822_v21, 3  ;;  %v818_v32 = vld [vmem:[%s15707_s17 + $0x4] sm:$0xc] }
  0x2e   : > { %v972_v34 = vrot.slane %v15826_v24, 3  ;;  %v15404_v35 = vld [vmem:[%s15707_s17 + $0x28] sm:$0xff]   ;;  %v15840_v36 = vrot.slane %v2143_v4, 4  ;;  %v15842_v40 = vrot.slane %v2148_v5, 3  ;;  %v15844_v41 = vrot.slane %v2151_v8, 4  ;;  %v15847_v44 = vld [vmem:[%s15707_s17 + $0x54] sm:$0xff]  }
  0x2f   : > { %v3016_v37 = vor.u32 %v3015_v26, %v3011_v10  ;;  %v3020_v38 = vrot.slane %v3018_v29, 1  ;;  %v3022_v45 = vshrl.u32 %v15399_v6, 16  ;;  %v971_v46 = vsel %vm954_vm1, %v968_v3, %v970_v11  ;;  %v15852_v51 = vld [vmem:[%s15707_s17 + $0x5c] sm:$0xff]   ;;  %v15875_v6 = vld [vmem:[%s15707_s17 + $0x6c] sm:$0xff]   ;;  %s15514_s0 = scalar_lea.vmem %s15513_s16, 32 }
  0x30   : > { %13422 = vmatmul.mubr.msk.bf16.gmra.mrb[4].mxu1 %vm20540_vm0, %v963_v54  ;;  %20696 = vst [vmem:[#allocation15_spill] sm:$0xff] %v15840_v36  ;;  %20697 = vst [vmem:[#allocation16_spill] sm:$0xff] %v15842_v40  ;;  %v12363_v48 = vcombine.low %v2025_v62, %v15830_v30  ;;  %v3026_v50 = vshll.u32 %v15401_v31, 16  ;;  %v973_v52 = vsel %vm954_vm1, %v970_v11, %v972_v34  ;;  %v15856_v54 = vld [vmem:[%s15707_s17 + $0x64] sm:$0xff]   ;;  %v3034_v57 = vshll.u32 %v15404_v35, 16  ;;  %v15408_v2 = vld [vmem:[%s15707_s17 + $0x38] sm:$0xff]   ;;  %p15516_p1 = scmp.lt.s32.totalorder %s15514_s0, %s15508_s15 }
  0x31   : > { %13425 = vmatprep.mubr.msk.bf16.mxu1 %vm20540_vm0, %v965_v58  ;;  %20698 = vst [vmem:[#allocation17_spill] sm:$0xff] %v15844_v41  ;;  %v15405_v58 = vld [vmem:[%s15707_s17 + $0x30] sm:$0xff]   ;;  %v3021_v60 = vsel %vm20538_vm2, %v3016_v37, %v3020_v38  ;;  %v15863_v0 = vrot.slane %v2157_v9, 3  ;;  %v15865_v62 = vrot.slane %v2160_v15, 4  ;;  %v974_v1 = vrot.slane %v15847_v44, 3  ;;  %v15409_v15 = vld [vmem:[%s15707_s17 + $0x40] sm:$0xff]  }
  0x32   : > { %v976_v3 = vrot.slane %v15852_v51, 3  ;;  %v3024_v4 = vor.u32 %v3022_v45, %v3020_v38  ;;  %v3042_v5 = vshll.u32 %v15405_v58, 16  ;;  %v978_v7 = vrot.slane %v15856_v54, 3  ;;  %v15884_v10 = vld [vmem:[%s15707_s17 + $0x7c] sm:$0xff]   ;;  %v15412_v11 = vld [vmem:[%s15707_s17 + $0x48] sm:$0xff]   ;;  %p15517_p2 = por %p15516_p1, %p15515_p0 }
  0x33   : > { %13578 = vmatmul.mubr.msk.bf16.gmra.mrb[8].mxu0 %vm20540_vm0, %v12359_v55  ;;  %v3030_v55 = vshrl.u32 %v15401_v31, 16  ;;  %v3036_v9 = vrot.slane %v3034_v57, 1  ;;  %v975_v26 = vsel %vm954_vm1, %v972_v34, %v974_v1  ;;  %v3046_v29 = vshrl.u32 %v15405_v58, 16  ;;  %v15981_v61 = vld [vmem:[%s15707_s17 + $0x68] sm:$0xff]   ;;  %v15422_v40 = vld [vmem:[%s15707_s17 + $0x80] sm:$0xff]  }
  0x34   : > { %13581 = vmatprep.mubr.msk.bf16.mxu0 %vm20540_vm0, %v12360_v59  ;;  %v15860_v59 = vcombine.low %v818_v32, %v15719_v13  ;;  %v3028_v13 = vrot.slane %v3026_v50, 1  ;;  %v977_v32 = vsel %vm954_vm1, %v974_v1, %v976_v3  ;;  %v3044_v37 = vrot.slane %v3042_v5, 1  ;;  %p15518_p3 = pnand %p15517_p2, %p15511_p13 }
  0x35   : > { %v980_v38 = vrot.slane %v15875_v6, 3  ;;  %v984_v58 = vrot.slane %v15884_v10, 3  ;;  %v3066_v1 = vshll.u32 %v15412_v11, 16  ;;  %v20499_v43 = vshll.u32 %v15822_v21, 16 }
  0x36   : > { %v3032_v8 = vor.u32 %v3030_v55, %v3028_v13  ;;  %v3029_v31 = vsel %vm20538_vm2, %v3024_v4, %v3028_v13  ;;  %v15898_v55 = vld [vmem:[%s15707_s17 + $0x50] sm:$0xff]   ;;  %v3048_v57 = vor.u32 %v3046_v29, %v3044_v37  ;;  %v979_v4 = vsel %vm954_vm1, %v976_v3, %v978_v7 }
  0x37   : > { %v15906_v13 = vld [vmem:[%s15707_s17 + $0x8c] sm:$0xff]   ;;  %v3068_v3 = vrot.slane %v3066_v1, 1  ;;  %v3078_v1 = vshrl.u32 %v15898_v55, 16  ;;  %v20487_v36 = vshll.u32 %v15826_v24, 16 }
  0x38   : > { %13426 = vmatmul.mubr.msk.bf16.gmra.mrb[8].mxu1 %vm20540_vm0, %v967_v19  ;;  %v3037_v45 = vsel %vm20538_vm2, %v3032_v8, %v3036_v9 }
  0x39   : > { %13429 = vmatprep.mubr.msk.bf16.mxu1 %vm20540_vm0, %v969_v22  ;;  %v15881_v22 = vld [vmem:[%s15707_s17 + $0x74] sm:$0xff]  }
  0x3a   : > { %v982_v34 = vrot.slane %v15881_v22, 3 }
  0x3b   : > { %13582 = vmatmul.mubr.msk.bf16.gmra.mrb[12].mxu0 %vm20540_vm0, %v12361_v20  ;;  %v3038_v20 = vshrl.u32 %v15404_v35, 16  ;;  %v3058_v35 = vshll.u32 %v15409_v15, 16 }
  0x3c   : > { %13585 = vmatprep.mubr.msk.bf16.mxu0 %vm20540_vm0, %v12362_v23  ;;  %v3050_v23 = vshll.u32 %v15408_v2, 16  ;;  %v983_v29 = vsel %vm954_vm1, %v980_v38, %v982_v34 }
  0x3d   : > { %v3060_v5 = vrot.slane %v3058_v35, 1  ;;  %v985_v35 = vsel %vm954_vm1, %v982_v34, %v984_v58 }
  0x3e   : > { %v3052_v50 = vrot.slane %v3050_v23, 1 }
  0x40   : > { %13430 = vmatmul.mubr.msk.bf16.gmra.mrb[12].mxu1 %vm20540_vm0, %v971_v46  ;;  %v15893_v46 = vld [vmem:[%s15707_s17 + $0x84] sm:$0xff]  }
  0x41   : > { %13433 = vmatprep.mubr.msk.bf16.mxu1 %vm20540_vm0, %v973_v52  ;;  %v3054_v52 = vshrl.u32 %v15408_v2, 16  ;;  %v20468_v2 = vshrl.u32 %v15733_v17, 16  ;;  %v986_v8 = vrot.slane %v15893_v46, 3 }
  0x43   : > { %13586 = vmatmul.mubr.msk.bf16.gmra.mrb[16].mxu0 %vm20540_vm0, %v12363_v48  ;;  %v3040_v48 = vor.u32 %v3038_v20, %v3036_v9  ;;  %v20466_v9 = vshll.u32 %v15733_v17, 16  ;;  %v3056_v23 = vor.u32 %v3054_v52, %v3052_v50  ;;  %v20467_v52 = vshrl.u32 %v15745_v25, 16 }
  0x44   : > { %13607 = vmatprep.mubr.msk.bf16.mxu0 %vm20540_vm0, %v3021_v60  ;;  %v3062_v60 = vshrl.u32 %v15409_v15, 16  ;;  %v981_v15 = vsel %vm954_vm1, %v978_v7, %v980_v38  ;;  %v1253_v7 = vrot.slane %v20468_v2, 2  ;;  %v20469_v38 = vshll.u32 %v15745_v25, 16 }
  0x45   : > { %v3045_v20 = vsel %vm20538_vm2, %v3040_v48, %v3044_v37  ;;  %v20477_v37 = vrot.slane %v15906_v13, 3  ;;  %v1256_v48 = vrot.slane %v20466_v9, 3  ;;  %v15935_v34 = vsel %vm954_vm1, %v984_v58, %v986_v8 }
  0x46   : > { %v3064_v19 = vor.u32 %v3062_v60, %v3060_v5 }
  0x47   : > { %v15958_v2 = vor.u32 %v1256_v48, %v1253_v7  ;;  %v20478_v48 = vshrl.u32 %v15784_v47, 16 }
  0x48   : > { %13434 = vmatmul.mubr.msk.bf16.gmra.mrb[16].mxu1 %vm20540_vm0, %v975_v26  ;;  %v15916_v26 = vld [vmem:[%s15707_s17 + $0x94] ss:$0 sps:$4 sm:$0x77]   ;;  %v3069_v58 = vsel %vm20538_vm2, %v3064_v19, %v3068_v3  ;;  %v1237_v19 = vshll.u32 %v15860_v59, 16 }
  0x49   : > { %13437 = vmatprep.mubr.msk.bf16.mxu1 %vm20540_vm0, %v977_v32  ;;  %v3070_v32 = vshrl.u32 %v15412_v11, 16  ;;  %v3061_v11 = vsel %vm20538_vm2, %v3056_v23, %v3060_v5  ;;  %v1265_v5 = vrot.slane %v20469_v38, 3 }
  0x4b   : > { %13608 = vmatmul.mubr.msk.bf16.vlgmr.msra.gmra.mrb[0].mxu0 %vm20540_vm0, %v3029_v31  ;;  %v3053_v31 = vsel %vm20538_vm2, %v3048_v57, %v3052_v50  ;;  %v20470_v50 = vshrl.u32 %v15760_v33, 16  ;;  %v3072_v23 = vor.u32 %v3070_v32, %v3068_v3 }
  0x4c   : > { %13644 = vmatpush3.bf16.msra.mxu0 %v15724_v14  ;;  %13611 = vmatprep.mubr.msk.bf16.mxu0 %vm20540_vm0, %v3037_v45  ;;  %v3074_v14 = vshll.u32 %v15898_v55, 16  ;;  %v15921_v45 = vld [vmem:[%s15707_s17 + $0x58] sm:$0xff]  }
  0x4d   : > { %v3082_v9 = vshll.u32 %v15921_v45, 16  ;;  %v15954_v55 = vld [vmem:[%s20454_s1 + $0x38] sm:$0xff]  }
  0x4e   : > { %v3076_v57 = vrot.slane %v3074_v14, 1  ;;  %v15417_v14 = vld [vmem:[%s15707_s17 + $0x60] sm:$0xff]   ;;  %13681 = vmatprep.subr.bf16.mxu0 %v15954_v55 }
  0x4f   : > { %v3090_v63 = vshll.u32 %v15417_v14, 16  ;;  %v3094_v49 = vshrl.u32 %v15417_v14, 16 }
  0x50   : > { %13438 = vmatmul.mubr.msk.bf16.gmra.mrb[20].mxu1 %vm20540_vm0, %v979_v4  ;;  %v1262_v4 = vrot.slane %v20467_v52, 2  ;;  %v3086_v52 = vshrl.u32 %v15921_v45, 16  ;;  %v3080_v60 = vor.u32 %v3078_v1, %v3076_v57  ;;  %v20700_v1 = vshrl.u32 %v15730_v16, 16 }
  0x51   : > { %13441 = vmatprep.mubr.msk.bf16.mxu1 %vm20540_vm0, %v981_v15  ;;  %v20471_v15 = vshll.u32 %v15760_v33, 16  ;;  %v3077_v14 = vsel %vm20538_vm2, %v3072_v23, %v3076_v57 }
  0x52   : > { %v1266_v38 = vor.u32 %v1265_v5, %v1262_v4  ;;  %v989_v4 = vsel %vm954_vm1, %v986_v8, %v20477_v37  ;;  %v3084_v5 = vrot.slane %v3082_v9, 1  ;;  %v20699_v8 = vshrl.u32 %v15860_v59, 16 }
  0x53   : > { %13612 = vmatmul.mubr.msk.bf16.gmra.mrb[4].mxu0 %vm20540_vm0, %v3045_v20  ;;  %v1271_v20 = vrot.slane %v20470_v50, 2  ;;  %v1274_v32 = vrot.slane %v20471_v15, 3  ;;  %v20476_v50 = vshll.u32 %v15773_v42, 16  ;;  %v1244_v37 = vrot.slane %v20700_v1, 2 }
  0x54   : > { %13615 = vmatprep.mubr.msk.bf16.mxu0 %vm20540_vm0, %v3053_v31  ;;  %v20474_v31 = vshrl.u32 %v15773_v42, 16  ;;  %v15970_v45 = vsel %vm1232_vm3, %v15958_v2, %v1266_v38  ;;  %v1236_v9 = vrot.slane %v20699_v8, 2  ;;  %v20702_v59 = vshll.u32 %v15784_v47, 16 }
  0x55   : > { %v1275_v15 = vor.u32 %v1274_v32, %v1271_v20  ;;  %v1283_v3 = vrot.slane %v20476_v50, 3  ;;  %v1239_v20 = vrot.slane %v1237_v19, 3  ;;  %v3098_v8 = vshll.u32 %v15981_v61, 16 }
  0x56   : > { %v1280_v7 = vrot.slane %v20474_v31, 2  ;;  %v1289_v31 = vrot.slane %v20478_v48, 2  ;;  %v20701_v48 = vshll.u32 %v15730_v16, 16  ;;  %v1292_v19 = vrot.slane %v20702_v59, 3 }
  0x57   : > { %v15990_v32 = vsel %vm1232_vm3, %v1266_v38, %v1275_v15  ;;  %v16005_v38 = vld [vmem:[%s15707_s17 + $0x78] sm:$0xff]   ;;  %v3085_v39 = vsel %vm20538_vm2, %v3080_v60, %v3084_v5  ;;  %v3088_v27 = vor.u32 %v3086_v52, %v3084_v5  ;;  %v1240_v57 = vor.u32 %v1239_v20, %v1236_v9 }
  0x58   : > { %13442 = vmatmul.mubr.msk.bf16.gmra.mrb[24].mxu1 %vm20540_vm0, %v983_v29  ;;  %v1284_v50 = vor.u32 %v1283_v3, %v1280_v7  ;;  %v1247_v53 = vrot.slane %v20701_v48, 3  ;;  %v15999_v29 = vld [vmem:[%s15707_s17 + $0x70] sm:$0xff]   ;;  %v20484_v3 = vshll.u32 %v15796_v56, 16  ;;  %v20485_v7 = vshrl.u32 %v15822_v21, 16 }
  0x59   : > { %13445 = vmatprep.mubr.msk.bf16.mxu1 %vm20540_vm0, %v985_v35  ;;  %v20483_v35 = vshrl.u32 %v15796_v56, 16  ;;  %v3092_v48 = vrot.slane %v3090_v63, 1  ;;  %v1293_v1 = vor.u32 %v1292_v19, %v1289_v31  ;;  %v3100_v41 = vrot.slane %v3098_v8, 1 }
  0x5a   : > { %v1307_v59 = vrot.slane %v20485_v7, 2  ;;  %v1248_v23 = vor.u32 %v1247_v53, %v1244_v37  ;;  %v20498_v7 = vshrl.u32 %v15826_v24, 16  ;;  %v3114_v52 = vshll.u32 %v16005_v38, 16 }
  0x5b   : > { %13616 = vmatmul.mubr.msk.bf16.gmra.mrb[8].mxu0 %vm20540_vm0, %v3061_v11  ;;  %v16008_v11 = vsel %vm1232_vm3, %v1275_v15, %v1284_v50  ;;  %v1301_v15 = vrot.slane %v20484_v3, 3  ;;  %v16024_v63 = vsel %vm1232_vm3, %v1284_v50, %v1293_v1  ;;  %v3096_v31 = vor.u32 %v3094_v49, %v3092_v48 }
  0x5c   : > { %13619 = vmatprep.mubr.msk.bf16.mxu0 %vm20540_vm0, %v3069_v58  ;;  %v1298_v58 = vrot.slane %v20483_v35, 2  ;;  %v1310_v35 = vrot.slane %v20499_v43, 3  ;;  %v3106_v3 = vshll.u32 %v15999_v29, 16  ;;  %v20486_v37 = vshrl.u32 %v15847_v44, 16 }
  0x5d   : > { %v20703_v50 = vrot.slane %v15916_v26, 3  ;;  %v20704_v60 = vrot.slane %v15906_v13, 3  ;;  %v1319_v9 = vrot.slane %v20487_v36, 3  ;;  %v3093_v20 = vsel %vm20538_vm2, %v3088_v27, %v3092_v48 }
  0x5e   : > { %v1302_v19 = vor.u32 %v1301_v15, %v1298_v58  ;;  %v1311_v49 = vor.u32 %v1310_v35, %v1307_v59  ;;  %v1249_v8 = vsel %vm1232_vm3, %v1240_v57, %v1248_v23  ;;  %v3102_v58 = vshrl.u32 %v15981_v61, 16  ;;  %v15423_v15 = vld [vmem:[%s15707_s17 + $0x88] sm:$0xff]  }
  0x5f   : > { %v991_v5 = vsel %vm954_vm1, %v20704_v60, %v20703_v50  ;;  %v3108_v50 = vrot.slane %v3106_v3, 1  ;;  %v3118_v27 = vshrl.u32 %v16005_v38, 16  ;;  %v3122_v60 = vshll.u32 %v15422_v40, 16 }
  0x60   : > { %13446 = vmatmul.mubr.msk.bf16.gmra.mrb[28].mxu1 %vm20540_vm0, %v15935_v34  ;;  %v16036_v53 = vsel %vm1232_vm3, %v1293_v1, %v1302_v19  ;;  %v1316_v34 = vrot.slane %v20498_v7, 2  ;;  %v16053_v35 = vsel %vm1232_vm3, %v1302_v19, %v1311_v49  ;;  %v3101_v1 = vsel %vm20538_vm2, %v3096_v31, %v3100_v41  ;;  %v2027_v19 = vld [vmem:[%s15707_s17 + $0x60] sm:$0xf] }
  0x61   : > { %13449 = vmatprep.mubr.msk.bf16.mxu1 %vm20540_vm0, %v989_v4  ;;  %v1325_v4 = vrot.slane %v20486_v37, 2  ;;  %v20492_v57 = vshrl.u32 %v15852_v51, 16  ;;  %v20489_v31 = vshll.u32 %v15852_v51, 16  ;;  %v3116_v61 = vrot.slane %v3114_v52, 1 }
  0x62   : > { %v1320_v59 = vor.u32 %v1319_v9, %v1316_v34  ;;  %v3126_v36 = vshrl.u32 %v15422_v40, 16  ;;  %v3130_v34 = vshll.u32 %v15423_v15, 16  ;;  %v3104_v40 = vor.u32 %v3102_v58, %v3100_v41 }
  0x63   : > { %13620 = vmatmul.mubr.msk.bf16.gmra.mrb[12].mxu0 %vm20540_vm0, %v3077_v14  ;;  %v20488_v14 = vshll.u32 %v15847_v44, 16  ;;  %v1334_v38 = vrot.slane %v20492_v57, 2  ;;  %v1337_v9 = vrot.slane %v20489_v31, 3  ;;  %v3124_v31 = vrot.slane %v3122_v60, 1 }
  0x64   : > { %13623 = vmatprep.mubr.msk.bf16.mxu0 %vm20540_vm0, %v3085_v39  ;;  %v3110_v39 = vshrl.u32 %v15999_v29, 16  ;;  %v16068_v37 = vsel %vm1232_vm3, %v1311_v49, %v1320_v59  ;;  %v20490_v29 = vshrl.u32 %v15856_v54, 16  ;;  %v20491_v49 = vshll.u32 %v15856_v54, 16 }
  0x65   : > { %v1328_v48 = vrot.slane %v20488_v14, 3  ;;  %v16080_v14 = vor.u32 %v15865_v62, %v15863_v0  ;;  %v16091_v0 = vld [vmem:[%s15707_s17 + $0x90] sm:$0xff]   ;;  %v1338_v62 = vor.u32 %v1337_v9, %v1334_v38  ;;  %v1258_v58 = vsel %vm1232_vm3, %v1248_v23, %v15958_v2 }
  0x66   : > { %v1346_v41 = vrot.slane %v20491_v49, 3  ;;  %v3132_v60 = vrot.slane %v3130_v34, 1  ;;  %v16109_v49 = vld [vmem:[%s15707_s17 + $0x1c] sm:$0xf]  ;;  %v20493_v2 = vshll.u32 %v15875_v6, 16  ;;  %v20495_v23 = vshrl.u32 %v15881_v22, 16 }
  0x67   : > { %v1329_v3 = vor.u32 %v1328_v48, %v1325_v4  ;;  %20705 = vst [vmem:[#allocation18_spill] sm:$0xff] %v16080_v14  ;;  %v1343_v4 = vrot.slane %v20490_v29, 2  ;;  %v3112_v48 = vor.u32 %v3110_v39, %v3108_v50  ;;  %v3128_v39 = vor.u32 %v3126_v36, %v3124_v31  ;;  %v16103_v29 = vld [vmem:[%s15707_s17 + $0x98] sm:$0xff]   ;;  %v16226_v14 = vld [vmem:[%s15707_s17 + $0x50] sm:$0xff]  }
  0x68   : > { %13450 = vmatmul.mubr.msk.bf16.gmra.mrb[32].mxu1 %vm20540_vm0, %v991_v5  ;;  %v16096_v5 = vcombine.low %v15830_v30, %v2027_v19  ;;  %v20496_v30 = vshrl.u32 %v15875_v6, 16  ;;  %v3109_v36 = vsel %vm20538_vm2, %v3104_v40, %v3108_v50  ;;  %v16119_v19 = vld [vmem:[%s15707_s17 + $0x20] sm:$0xff]   ;;  %v20506_v43 = vshrl.u32 %v15906_v13, 16  ;;  %20716 = vst [vmem:[#allocation27_spill] sm:$0xff] %v16226_v14 }
  0x69   : > { %v16084_v52 = vsel %vm1232_vm3, %v1320_v59, %v1329_v3  ;;  %13455 = vmatprep.mubr.msk.bf16.mxu1 %vm20540_vm0, %v1249_v8  ;;  %v3134_v8 = vshrl.u32 %v15423_v15, 16  ;;  %v3431_v59 = vld [vmem:[%s15707_s17 + $0x18] sm:$0xf]  ;;  %v16106_v38 = vsel %vm1232_vm3, %v1329_v3, %v1338_v62  ;;  %v1347_v9 = vor.u32 %v1346_v41, %v1343_v4  ;;  %20707 = vst [vmem:[#allocation20_spill] sm:$0xff] %v16119_v19 }
  0x6a   : > { %20706 = vst [vmem:[#allocation19_spill] sm:$0xff] %v16096_v5  ;;  %v3117_v15 = vsel %vm20538_vm2, %v3112_v48, %v3116_v61  ;;  %v1352_v34 = vrot.slane %v20496_v30, 2  ;;  %v1355_v4 = vrot.slane %v20493_v2, 3  ;;  %v1361_v41 = vrot.slane %v20495_v23, 2  ;;  %v16141_v2 = vld [vmem:[%s20454_s1 + $0x18] sm:$0xff]  }
  0x6b   : > { %13624 = vmatmul.mubr.msk.bf16.gmra.mrb[16].mxu0 %vm20540_vm0, %v3093_v20  ;;  %v3120_v20 = vor.u32 %v3118_v27, %v3116_v61  ;;  %v3138_v27 = vshll.u32 %v16091_v0, 16  ;;  %v16122_v3 = vsel %vm1232_vm3, %v1338_v62, %v1347_v9  ;;  %v3133_v40 = vsel %vm20538_vm2, %v3128_v39, %v3132_v60  ;;  %v15426_v62 = vld [vmem:[%s15707_s17 + $0xa0] ss:$0 sps:$4 sm:$0x11]   ;;  %20708 = vst [vmem:[#allocation21_spill] sm:$0xff] %v16141_v2 }
  0x6c   : > { %13627 = vmatprep.mubr.msk.bf16.mxu0 %vm20540_vm0, %v3101_v1  ;;  %v20494_v1 = vshll.u32 %v15881_v22, 16  ;;  %v3136_v48 = vor.u32 %v3134_v8, %v3132_v60  ;;  %v16136_v57 = vcombine.low %v3431_v59, %v16109_v49  ;;  %v1356_v23 = vor.u32 %v1355_v4, %v1352_v34  ;;  %v16150_v59 = vld [vmem:[%s15707_s17 + $0x28] sm:$0xff]  }
  0x6d   : > { %v3125_v61 = vsel %vm20538_vm2, %v3120_v20, %v3124_v31  ;;  %v20497_v31 = vshrl.u32 %v15884_v10, 16  ;;  %v3140_v20 = vrot.slane %v3138_v27, 1  ;;  %v3142_v8 = vshrl.u32 %v16091_v0, 16  ;;  %20709 = vst [vmem:[#allocation22_spill] sm:$0xff] %v16150_v59 }
  0x6e   : > { %v1364_v50 = vrot.slane %v20494_v1, 3  ;;  %v3146_v1 = vshll.u32 %v16103_v29, 16  ;;  %v20500_v39 = vshll.u32 %v15884_v10, 16  ;;  %v20504_v60 = vshll.u32 %v16119_v19, 16 }
  0x6f   : > { %v1370_v27 = vrot.slane %v20497_v31, 2  ;;  %v3150_v34 = vshrl.u32 %v16103_v29, 16  ;;  %v3154_v4 = vshll.u32 %v15426_v62, 16  ;;  %v20505_v31 = vshll.u32 %v15893_v46, 16 }
  0x70   : > { %13456 = vmatmul.mubr.msk.bf16.vlgmr.msra.gmra.mrb[0].mxu1 %vm20540_vm0, %v1258_v58  ;;  %v1365_v30 = vor.u32 %v1364_v50, %v1361_v41  ;;  %v20502_v58 = vshrl.u32 %v15893_v46, 16  ;;  %v16172_v41 = vld [vmem:[%s15707_s17 + $0x38] sm:$0xff]   ;;  %v3144_v29 = vor.u32 %v3142_v8, %v3140_v20  ;;  %v3565_v62 = vshrl.u32 %v16136_v57, 16 }
  0x71   : > { %13492 = vmatpush3.bf16.msra.mxu1 %v15753_v28  ;;  %13459 = vmatprep.mubr.msk.bf16.mxu1 %vm20540_vm0, %v15970_v45  ;;  %v16159_v28 = vld [vmem:[%s15707_s17 + $0x30] sm:$0xff]   ;;  %v3567_v45 = vshll.u32 %v16136_v57, 16  ;;  %20711 = vst [vmem:[#allocation24_spill] sm:$0xff] %v16172_v41  ;;  %v20507_v50 = vshll.u32 %v15906_v13, 16  ;;  %v1388_v57 = vrot.slane %v20506_v43, 2  ;;  %v1395_v8 = vshrl.u32 %v15916_v26, 16 }
  0x72   : > { %20710 = vst [vmem:[#allocation23_spill] sm:$0xff] %v16159_v28  ;;  %v16165_v0 = vsel %vm1232_vm3, %v1356_v23, %v1365_v30  ;;  %13529 = vmatprep.subr.bf16.mxu1 %v16141_v2  ;;  %v20509_v2 = vshll.u32 %v16150_v59, 16 }
  0x73   : > { %13628 = vmatmul.mubr.msk.bf16.gmra.mrb[20].mxu0 %vm20540_vm0, %v3109_v36  ;;  %v16162_v36 = vsel %vm1232_vm3, %v1347_v9, %v1356_v23  ;;  %v3148_v9 = vrot.slane %v3146_v1, 1  ;;  %v1379_v23 = vrot.slane %v20502_v58, 2  ;;  %v1382_v1 = vrot.slane %v20505_v31, 3 }
  0x74   : > { %13631 = vmatprep.mubr.msk.bf16.mxu0 %vm20540_vm0, %v3117_v15  ;;  %v1373_v15 = vrot.slane %v20500_v39, 3  ;;  %v3574_v39 = vrot.slane %v20504_v60, 1  ;;  %v3569_v58 = vrot.slane %v3567_v45, 1  ;;  %v16200_v60 = vld [vmem:[%s15707_s17 + $0x40] sm:$0xff]   ;;  %v20714_v45 = vshrl.u32 %v16119_v19, 16 }
  0x75   : > { %20712 = vst [vmem:[#allocation25_spill] sm:$0xff] %v16200_v60  ;;  %v1383_v31 = vor.u32 %v1382_v1, %v1379_v23  ;;  %v3156_v23 = vrot.slane %v3154_v4, 1  ;;  %v16213_v1 = vld [vmem:[%s15707_s17 + $0x48] sm:$0xff]   ;;  %v20722_v4 = vshll.u32 %v15730_v16, 16 }
  0x76   : > { %v1374_v7 = vor.u32 %v1373_v15, %v1370_v27  ;;  %v3141_v27 = vsel %vm20538_vm2, %v3136_v48, %v3140_v20  ;;  %v1398_v48 = vshll.u32 %v15916_v26, 16  ;;  %v3149_v20 = vsel %vm20538_vm2, %v3144_v29, %v3148_v9  ;;  %20713 = vst [vmem:[#allocation26_spill] sm:$0xff] %v16213_v1 }
  0x77   : > { %v3578_v43 = vor.u32 %v20714_v45, %v3574_v39  ;;  %v3570_v15 = vor.u32 %v3569_v58, %v3565_v62  ;;  %v16237_v58 = vld [vmem:[%s15707_s17 + $0x60] sm:$0xff]   ;;  %v20724_v45 = vshll.u32 %v15733_v17, 16 }
  0x78   : > { %v16190_v5 = vsel %vm1232_vm3, %v1365_v30, %v1374_v7  ;;  %13460 = vmatmul.mubr.msk.bf16.gmra.mrb[4].mxu1 %vm20540_vm0, %v15990_v32  ;;  %v1391_v30 = vrot.slane %v20507_v50, 3  ;;  %v1397_v32 = vrot.slane %v1395_v8, 2  ;;  %v3152_v50 = vor.u32 %v3150_v34, %v3148_v9  ;;  %20720 = vst [vmem:[#allocation29_spill] sm:$0xff] %v16237_v58 }
  0x79   : > { %13463 = vmatprep.mubr.msk.bf16.mxu1 %vm20540_vm0, %v16008_v11  ;;  %v3582_v8 = vrot.slane %v20509_v2, 1  ;;  %v1400_v26 = vrot.slane %v1398_v48, 3  ;;  %v20718_v34 = vshrl.u32 %v16150_v59, 16  ;;  %v20721_v2 = vshrl.u32 %v15730_v16, 16 }
  0x7a   : > { %v1392_v11 = vor.u32 %v1391_v30, %v1388_v57  ;;  %v20719_v57 = vshll.u32 %v16172_v41, 16  ;;  %v1661_v62 = vrot.slane %v20724_v45, 4 }
  0x7b   : > { %13632 = vmatmul.mubr.msk.bf16.gmra.mrb[24].mxu0 %vm20540_vm0, %v3125_v61  ;;  %v16216_v61 = vsel %vm1232_vm3, %v1374_v7, %v1383_v31  ;;  %v3586_v9 = vor.u32 %v20718_v34, %v3582_v8  ;;  %v1401_v48 = vor.u32 %v1400_v26, %v1397_v32  ;;  %v3157_v34 = vsel %vm20538_vm2, %v3152_v50, %v3156_v23  ;;  %v16267_v23 = vld [vmem:[%s15707_s17 + $0x58] sm:$0xff]  }
  0x7c   : > { %13635 = vmatprep.mubr.msk.bf16.mxu0 %vm20540_vm0, %v3133_v40  ;;  %v20715_v40 = vshll.u32 %v16159_v28, 16  ;;  %v16229_v7 = vsel %vm1232_vm3, %v1383_v31, %v1392_v11  ;;  %v3598_v30 = vrot.slane %v20719_v57, 1  ;;  %v1656_v31 = vrot.slane %v20721_v2, 3  ;;  %20725 = vst [vmem:[#allocation30_spill] sm:$0xff] %v16267_v23 }
  0x7d   : > { %20717 = vst [vmem:[#allocation28_spill] sm:$0xff] %v16229_v7  ;;  %v1657_v7 = vrot.slane %v20722_v4, 4  ;;  %v16247_v57 = vsel %vm1232_vm3, %v1392_v11, %v1401_v48  ;;  %v20723_v32 = vshrl.u32 %v15733_v17, 16  ;;  %v16257_v2 = vsel %vm20538_vm2, %v3578_v43, %v3582_v8  ;;  %v16283_v48 = vld [vmem:[%s15707_s17 + $0x68] sm:$0xff]  }
  0x7e   : > { %v3590_v29 = vrot.slane %v20715_v40, 1  ;;  %v3575_v40 = vsel %vm20538_vm2, %v3570_v15, %v3574_v39  ;;  %v20510_v50 = vshll.u32 %v16226_v14, 16  ;;  %v20726_v39 = vshrl.u32 %v15745_v25, 16  ;;  %20730 = vst [vmem:[#allocation31_spill] sm:$0xff] %v16283_v48 }
  0x7f   : > { %v1660_v26 = vrot.slane %v20723_v32, 3  ;;  %v16259_v16 = vor.u32 %v1657_v7, %v1656_v31  ;;  %v20729_v4 = vshll.u32 %v15745_v25, 16  ;;  %v20732_v31 = vshll.u32 %v15760_v33, 16 }
  0x80   : > { %13464 = vmatmul.mubr.msk.bf16.gmra.mrb[8].mxu1 %vm20540_vm0, %v16024_v63  ;;  %v1664_v43 = vrot.slane %v20726_v39, 3  ;;  %v16273_v15 = vsel %vm20538_vm2, %v3586_v9, %v3590_v29  ;;  %v20733_v32 = vshrl.u32 %v16172_v41, 16  ;;  %v20734_v25 = vshll.u32 %v16213_v1, 16 }
  0x81   : > { %13467 = vmatprep.mubr.msk.bf16.mxu1 %vm20540_vm0, %v16036_v53  ;;  %v1662_v63 = vor.u32 %v1661_v62, %v1660_v26  ;;  %v20728_v53 = vshll.u32 %v16200_v60, 16  ;;  %v1665_v7 = vrot.slane %v20729_v4, 4  ;;  %v3622_v4 = vrot.slane %v20510_v50, 1 }
  0x82   : > { %v3602_v26 = vor.u32 %v20733_v32, %v3598_v30  ;;  %v3614_v39 = vrot.slane %v20734_v25, 1  ;;  %v20511_v45 = vshll.u32 %v16267_v23, 16  ;;  %v20736_v25 = vshrl.u32 %v15773_v42, 16 }
  0x83   : > { %13636 = vmatmul.mubr.msk.bf16.gmra.mrb[28].mxu0 %vm20540_vm0, %v3141_v27  ;;  %v20727_v27 = vshrl.u32 %v16159_v28, 16  ;;  %v3606_v8 = vrot.slane %v20728_v53, 1  ;;  %v16287_v62 = vsel %vm1647_vm4, %v16259_v16, %v1662_v63  ;;  %v1666_v53 = vor.u32 %v1665_v7, %v1664_v43 }
  0x84   : > { %13639 = vmatprep.mubr.msk.bf16.mxu0 %vm20540_vm0, %v3149_v20  ;;  %v20731_v20 = vshrl.u32 %v15760_v33, 16  ;;  %v20737_v43 = vshll.u32 %v16237_v58, 16  ;;  %v20745_v50 = vshrl.u32 %v16267_v23, 16 }
  0x85   : > { %v3594_v11 = vor.u32 %v20727_v27, %v3590_v29  ;;  %v1669_v29 = vrot.slane %v20732_v31, 4  ;;  %v16307_v32 = vsel %vm1647_vm4, %v1662_v63, %v1666_v53  ;;  %v1672_v27 = vrot.slane %v20736_v25, 3 }
  0x86   : > { %v1668_v9 = vrot.slane %v20731_v20, 3  ;;  %20735 = vst [vmem:[#allocation32_spill] sm:$0xff] %v16307_v32  ;;  %v3638_v7 = vrot.slane %v20737_v43, 1  ;;  %v20741_v43 = vshll.u32 %v15784_v47, 16 }
  0x87   : > { %v16303_v33 = vsel %vm20538_vm2, %v3594_v11, %v3598_v30  ;;  %v1649_v11 = vshrl.u32 %v15736_v18, 16 }
  0x88   : > { %v1670_v20 = vor.u32 %v1669_v29, %v1668_v9  ;;  %v20739_v9 = vshll.u32 %v15773_v42, 16  ;;  %13468 = vmatmul.mubr.msk.bf16.gmra.mrb[12].mxu1 %vm20540_vm0, %v16053_v35  ;;  %v20740_v29 = vshrl.u32 %v15784_v47, 16  ;;  %v1677_v31 = vrot.slane %v20741_v43, 4 }
  0x89   : > { %13471 = vmatprep.mubr.msk.bf16.mxu1 %vm20540_vm0, %v16068_v37  ;;  %v16331_v42 = vsel %vm20538_vm2, %v3602_v26, %v3606_v8  ;;  %v3630_v35 = vrot.slane %v20511_v45, 1  ;;  %v20742_v47 = vshrl.u32 %v16200_v60, 16  ;;  %v20744_v37 = vshrl.u32 %v16226_v14, 16 }
  0x8a   : > { %v16315_v17 = vsel %vm1647_vm4, %v1666_v53, %v1670_v20  ;;  %v1673_v30 = vrot.slane %v20739_v9, 4  ;;  %v1676_v25 = vrot.slane %v20740_v29, 3  ;;  %v1652_v53 = vshll.u32 %v15736_v18, 16 }
  0x8b   : > { %20738 = vst [vmem:[#allocation33_spill] sm:$0xff] %v16315_v17  ;;  %13640 = vmatmul.mubr.msk.bf16.gmra.mrb[32].mxu0 %vm20540_vm0, %v3157_v34  ;;  %v3610_v29 = vor.u32 %v20742_v47, %v3606_v8  ;;  %v20743_v34 = vshrl.u32 %v16213_v1, 16  ;;  %v3626_v63 = vor.u32 %v20744_v37, %v3622_v4  ;;  %v3634_v17 = vor.u32 %v20745_v50, %v3630_v35 }
  0x8c   : > { %v1674_v9 = vor.u32 %v1673_v30, %v1672_v27  ;;  %13645 = vmatprep.mubr.msk.bf16.mxu0 %vm20540_vm0, %v3575_v40  ;;  %v1678_v26 = vor.u32 %v1677_v31, %v1676_v25  ;;  %v20747_v18 = vshrl.u32 %v15796_v56, 16  ;;  %v20748_v27 = vshll.u32 %v15796_v56, 16  ;;  %v16359_v25 = vld [vmem:[%s15707_s17 + $0x70] sm:$0xff]  }
  0x8d   : > { %v3618_v43 = vor.u32 %v20743_v34, %v3614_v39  ;;  %v20749_v30 = vshrl.u32 %v16237_v58, 16  ;;  %v20750_v34 = vshll.u32 %v16283_v48, 16  ;;  %v16356_v31 = vrot.slane %v1649_v11, 3 }
  0x8e   : > { %v16346_v45 = vsel %vm1647_vm4, %v1670_v20, %v1674_v9  ;;  %v1680_v40 = vrot.slane %v20747_v18, 3  ;;  %v1681_v8 = vrot.slane %v20748_v27, 4  ;;  %v16362_v50 = vsel %vm1647_vm4, %v1674_v9, %v1678_v26 }
  0x8f   : > { %20746 = vst [vmem:[#allocation34_spill] sm:$0xff] %v16346_v45  ;;  %v3642_v47 = vor.u32 %v20749_v30, %v3638_v7  ;;  %v3646_v37 = vrot.slane %v20750_v34, 1  ;;  %v16364_v20 = vrot.slane %v1652_v53, 4  ;;  %v20751_v18 = vshrl.u32 %v15822_v21, 16  ;;  %v3985_v53 = vld [vmem:[%s15707_s17 + $0x18] sm:$0xe] }
  0x90   : > { %v1682_v45 = vor.u32 %v1681_v8, %v1680_v40  ;;  %v20752_v27 = vshll.u32 %v15822_v21, 16  ;;  %v16371_v30 = vsel %vm20538_vm2, %v3610_v29, %v3614_v39  ;;  %v16374_v11 = vsel %vm20538_vm2, %v3618_v43, %v3622_v4  ;;  %v16392_v4 = vld [vmem:[%s20454_s1 + $0x40] sm:$0xff]   ;;  %13472 = vmatmul.mubr.msk.bf16.gmra.mrb[16].mxu1 %vm20540_vm0, %v16084_v52 }
  0x91   : > { %v1684_v56 = vrot.slane %v20751_v18, 3  ;;  %v16377_v34 = vsel %vm20538_vm2, %v3626_v63, %v3630_v35  ;;  %v20513_v9 = vshrl.u32 %v16283_v48, 16  ;;  %v16382_v40 = vsel %vm20538_vm2, %v3634_v17, %v3638_v7  ;;  %13475 = vmatprep.mubr.msk.bf16.mxu1 %vm20540_vm0, %v16106_v38 }
  0x92   : > { %v1685_v32 = vrot.slane %v20752_v27, 4  ;;  %v16385_v8 = vsel %vm1647_vm4, %v1678_v26, %v1682_v45  ;;  %v20753_v18 = vshrl.u32 %v15826_v24, 16  ;;  %v16397_v63 = vsel %vm20538_vm2, %v3642_v47, %v3646_v37 }
  0x93   : > { %v20512_v17 = vshll.u32 %v16359_v25, 16  ;;  %v20754_v7 = vshll.u32 %v15826_v24, 16  ;;  %13646 = vmatmul.mubr.msk.bf16.vlgmr.msra.gmra.mrb[0].mxu0 %vm20540_vm0, %v16257_v2  ;;  %v20756_v26 = vshll.u32 %v15847_v44, 16  ;;  %v16416_v24 = vcombine.low %v3985_v53, %v16109_v49 }
  0x94   : > { %v1686_v21 = vor.u32 %v1685_v32, %v1684_v56  ;;  %v1688_v39 = vrot.slane %v20753_v18, 3  ;;  %v20755_v32 = vshrl.u32 %v15847_v44, 16  ;;  %13682 = vmatpush3.bf16.msra.mxu0 %v15954_v55  ;;  %13649 = vmatprep.mubr.msk.bf16.mxu0 %vm20540_vm0, %v16273_v15  ;;  %v3650_v38 = vor.u32 %v20513_v9, %v3646_v37 }
  0x95   : > { %v1689_v35 = vrot.slane %v20754_v7, 4  ;;  %v1693_v47 = vrot.slane %v20756_v26, 4  ;;  %20757 = vst [vmem:[#allocation35_spill] sm:$0xff] %v16416_v24  ;;  %v3994_v56 = vrot.slane %v16119_v19, 1  ;;  %v3993_v27 = vrot.slane %v16416_v24, 1  ;;  %13719 = vmatprep.subr.bf16.mxu0 %v16392_v4 }
  0x96   : > { %v1692_v29 = vrot.slane %v20755_v32, 3  ;;  %v16411_v43 = vsel %vm1647_vm4, %v1682_v45, %v1686_v21  ;;  %v3996_v44 = vrot.slane %v16150_v59, 1  ;;  %v20758_v49 = vshrl.u32 %v15852_v51, 16 }
  0x97   : > { %v1690_v2 = vor.u32 %v1689_v35, %v1688_v39  ;;  %v16431_v15 = vrot.slane %v20512_v17, 1  ;;  %v20759_v53 = vshll.u32 %v15852_v51, 16  ;;  %v20760_v39 = vshrl.u32 %v15856_v54, 16 }
  0x98   : > { %v1694_v45 = vor.u32 %v1693_v47, %v1692_v29  ;;  %v1696_v55 = vrot.slane %v20758_v49, 3  ;;  %v16444_v32 = vsel %vm20537_vm5, %v3993_v27, %v3994_v56  ;;  %v16447_v29 = vsel %vm20537_vm5, %v3994_v56, %v3996_v44  ;;  %13476 = vmatmul.mubr.msk.bf16.gmra.mrb[20].mxu1 %vm20540_vm0, %v16122_v3 }
  0x99   : > { %v16434_v37 = vsel %vm1647_vm4, %v1686_v21, %v1690_v2  ;;  %v1697_v18 = vrot.slane %v20759_v53, 4  ;;  %v1700_v7 = vrot.slane %v20760_v39, 3  ;;  %v20761_v26 = vshll.u32 %v15856_v54, 16  ;;  %13479 = vmatprep.mubr.msk.bf16.mxu1 %vm20540_vm0, %v16162_v36 }
  0x9a   : > { %v16441_v35 = vsel %vm1647_vm4, %v1690_v2, %v1694_v45  ;;  %v3998_v51 = vrot.slane %v16159_v28, 1  ;;  %v4000_v49 = vrot.slane %v16172_v41, 1  ;;  %v20762_v53 = vshrl.u32 %v15875_v6, 16  ;;  %v16602_v28 = vld [vmem:[%s15707_s17 + $0x98] sm:$0xff]  }
  0x9b   : > { %v1701_v47 = vrot.slane %v20761_v26, 4  ;;  %v1698_v21 = vor.u32 %v1697_v18, %v1696_v55  ;;  %v20763_v17 = vshll.u32 %v15875_v6, 16  ;;  %v20764_v9 = vshrl.u32 %v15881_v22, 16  ;;  %13650 = vmatmul.mubr.msk.bf16.gmra.mrb[4].mxu0 %vm20540_vm0, %v16303_v33 }
  0x9c   : > { %v1704_v39 = vrot.slane %v20762_v53, 3  ;;  %v20765_v52 = vshll.u32 %v15881_v22, 16  ;;  %v16467_v18 = vsel %vm20537_vm5, %v3996_v44, %v3998_v51  ;;  %v4002_v6 = vrot.slane %v16200_v60, 1  ;;  %v16478_v22 = vld [vmem:[%s15707_s17 + $0x78] sm:$0xff]   ;;  %13653 = vmatprep.mubr.msk.bf16.mxu0 %vm20540_vm0, %v16331_v42 }
  0x9d   : > { %v1702_v2 = vor.u32 %v1701_v47, %v1700_v7  ;;  %v1705_v27 = vrot.slane %v20763_v17, 4  ;;  %v1708_v56 = vrot.slane %v20764_v9, 3  ;;  %v16464_v55 = vsel %vm1647_vm4, %v1694_v45, %v1698_v21 }
  0x9e   : > { %v1709_v54 = vrot.slane %v20765_v52, 4  ;;  %v16470_v7 = vsel %vm20537_vm5, %v3998_v51, %v4000_v49  ;;  %v4004_v52 = vrot.slane %v16213_v1, 1  ;;  %v16487_v45 = vsel %vm20537_vm5, %v4000_v49, %v4002_v6  ;;  %v16595_v1 = vld [vmem:[%s15707_s17 + $0x90] sm:$0xff]  }
  0x9f   : > { %v16481_v3 = vsel %vm1647_vm4, %v1698_v21, %v1702_v2  ;;  %v1706_v9 = vor.u32 %v1705_v27, %v1704_v39  ;;  %v20766_v33 = vshrl.u32 %v15884_v10, 16  ;;  %v20767_v36 = vshll.u32 %v15884_v10, 16 }
  0xa0   : > { %v1710_v17 = vor.u32 %v1709_v54, %v1708_v56  ;;  %v20768_v47 = vshrl.u32 %v15893_v46, 16  ;;  %v16502_v42 = vsel %vm20537_vm5, %v4002_v6, %v4004_v52  ;;  %v20769_v49 = vshll.u32 %v15893_v46, 16  ;;  %13480 = vmatmul.mubr.msk.bf16.gmra.mrb[24].mxu1 %vm20540_vm0, %v16165_v0 }
  0xa1   : > { %v1712_v44 = vrot.slane %v20766_v33, 3  ;;  %v1713_v26 = vrot.slane %v20767_v36, 4  ;;  %v16496_v51 = vsel %vm1647_vm4, %v1702_v2, %v1706_v9  ;;  %v4006_v10 = vrot.slane %v16226_v14, 1  ;;  %13483 = vmatprep.mubr.msk.bf16.mxu1 %vm20540_vm0, %v16190_v5  ;;  %v20776_v5 = vld [vmem:[#allocation18_spill] sm:$0xff]  ;;  %v20778_v2 = vld [vmem:[#allocation9_spill] sm:$0xff] }
  0xa2   : > { %v1716_v21 = vrot.slane %v20768_v47, 3  ;;  %v16499_v53 = vsel %vm1647_vm4, %v1706_v9, %v1710_v17  ;;  %v1717_v39 = vrot.slane %v20769_v49, 4  ;;  %v4008_v56 = vrot.slane %v16267_v23, 1  ;;  %v20779_v23 = vld [vmem:[#allocation10_spill] sm:$0xff] }
  0xa3   : > { %v1714_v27 = vor.u32 %v1713_v26, %v1712_v44  ;;  %v20770_v54 = vshrl.u32 %v15906_v13, 16  ;;  %v20771_v6 = vshll.u32 %v15906_v13, 16  ;;  %v16518_v44 = vsel %vm20537_vm5, %v4004_v52, %v4006_v10  ;;  %13654 = vmatmul.mubr.msk.bf16.gmra.mrb[8].mxu0 %vm20540_vm0, %v16371_v30 }
  0xa4   : > { %v1718_v36 = vor.u32 %v1717_v39, %v1716_v21  ;;  %v16521_v26 = vsel %vm20537_vm5, %v4006_v10, %v4008_v56  ;;  %v4010_v49 = vrot.slane %v16237_v58, 1  ;;  %v16533_v13 = vsel %vm20538_vm2, %v3650_v38, %v16431_v15  ;;  %v20774_v38 = vld [vmem:[#allocation16_spill] sm:$0xff]  ;;  %13657 = vmatprep.mubr.msk.bf16.mxu0 %vm20540_vm0, %v16374_v11 }
  0xa5   : > { %v1720_v33 = vrot.slane %v20770_v54, 3  ;;  %v1721_v47 = vrot.slane %v20771_v6, 4  ;;  %v16515_v46 = vsel %vm1647_vm4, %v1710_v17, %v1714_v27  ;;  %v20772_v54 = vor.u32 %v16364_v20, %v16356_v31  ;;  %v16536_v17 = vld [vmem:[%s15707_s17 + $0x80] sm:$0xff]   ;;  %v20775_v6 = vld [vmem:[#allocation17_spill] sm:$0xff] }
  0xa6   : > { %v16539_v52 = vsel %vm1647_vm4, %v1714_v27, %v1718_v36  ;;  %v16546_v10 = vsel %vm20537_vm5, %v4008_v56, %v4010_v49  ;;  %v20773_v31 = vld [vmem:[#allocation15_spill] sm:$0xff]  ;;  %v4014_v56 = vrot.slane %v16359_v25, 1  ;;  %v2175_v9 = vshrl.u32 %v20778_v2, 16 }
  0xa7   : > { %v16529_v21 = vsel %vm1647_vm4, %v20772_v54, %v16259_v16  ;;  %v16541_v39 = vor.u32 %v1721_v47, %v1720_v33  ;;  %v4012_v16 = vrot.slane %v16283_v48, 1  ;;  %v2146_v20 = vor.u32 %v20773_v31, %v15817_v12 }
  0xa8   : > { %v2154_v54 = vor.u32 %v20775_v6, %v20774_v38  ;;  %v4016_v33 = vrot.slane %v16478_v22, 1  ;;  %v16579_v6 = vld [vmem:[%s15707_s17 + $0x88] sm:$0xff]   ;;  %v4018_v48 = vrot.slane %v16536_v17, 1  ;;  %v2184_v14 = vshrl.u32 %v20779_v23, 16  ;;  %13484 = vmatmul.mubr.msk.bf16.gmra.mrb[28].mxu1 %vm20540_vm0, %v16216_v61 }
  0xa9   : > { %v16560_v27 = vsel %vm1647_vm4, %v1718_v36, %v16541_v39  ;;  %v16567_v12 = vsel %vm20537_vm5, %v4010_v49, %v4012_v16  ;;  %v20777_v36 = vld [vmem:[#allocation8_spill] sm:$0xff]  ;;  %v16582_v0 = vsel %vm20537_vm5, %v4012_v16, %v4014_v56  ;;  %v4020_v38 = vrot.slane %v16579_v6, 1 }
  0xaa   : > { %v16570_v30 = vsel %vm1647_vm4, %v2146_v20, %v2154_v54  ;;  %v16574_v47 = vsel %vm1647_vm4, %v2154_v54, %v20776_v5  ;;  %v2166_v31 = vshrl.u32 %v20777_v36, 16  ;;  %v16585_v11 = vsel %vm20537_vm5, %v4014_v56, %v4016_v33 }
  0xab   : > { %v2169_v49 = vshll.u32 %v20777_v36, 16  ;;  %v2178_v54 = vshll.u32 %v20778_v2, 16  ;;  %v2187_v16 = vshll.u32 %v20779_v23, 16  ;;  %v2177_v56 = vrot.slane %v2175_v9, 3  ;;  %13658 = vmatmul.mubr.msk.bf16.gmra.mrb[12].mxu0 %vm20540_vm0, %v16377_v34 }
  0xac   : > { %v2168_v20 = vrot.slane %v2166_v31, 3  ;;  %v16598_v36 = vsel %vm20537_vm5, %v4016_v33, %v4018_v48  ;;  %v20781_v31 = vld [vmem:[#allocation11_spill] sm:$0xff]  ;;  %v2186_v59 = vrot.slane %v2184_v14, 3  ;;  %v4024_v61 = vrot.slane %v16602_v28, 1  ;;  %13661 = vmatprep.mubr.msk.bf16.mxu0 %vm20540_vm0, %v16382_v40 }
  0xad   : > { %v2171_v58 = vrot.slane %v2169_v49, 4  ;;  %v2180_v60 = vrot.slane %v2178_v54, 4  ;;  %20780 = vst [vmem:[#allocation15_spill] sm:$0xff] %v16598_v36  ;;  %v2193_v41 = vshrl.u32 %v20781_v31, 16  ;;  %v16605_v49 = vsel %vm20537_vm5, %v4018_v48, %v4020_v38 }
  0xae   : > { %20782 = vst [vmem:[#allocation16_spill] sm:$0xff] %v16605_v49  ;;  %v2189_v19 = vrot.slane %v2187_v16, 4  ;;  %v2196_v33 = vshll.u32 %v20781_v31, 16  ;;  %v4022_v54 = vrot.slane %v16595_v1, 1 }
  0xaf   : > { %v2172_v2 = vor.u32 %v2171_v58, %v2168_v20  ;;  %v2181_v23 = vor.u32 %v2180_v60, %v2177_v56  ;;  %v2195_v9 = vrot.slane %v2193_v41, 3  ;;  %v20783_v58 = vld [vmem:[#allocation28_spill] sm:$0xff] }
  0xb0   : > { %13487 = vmatprep.mubr.msk.bf16.mxu1 %vm20540_vm0, %v20783_v58  ;;  %v2190_v48 = vor.u32 %v2189_v19, %v2186_v59  ;;  %v20784_v60 = vld [vmem:[#allocation12_spill] sm:$0xff]  ;;  %v2198_v34 = vrot.slane %v2196_v33, 4  ;;  %v16630_v56 = vsel %vm20537_vm5, %v4020_v38, %v4022_v54  ;;  %v16640_v59 = vsel %vm20537_vm5, %v4022_v54, %v4024_v61  ;;  %v20789_v58 = vld [vmem:[#allocation13_spill] sm:$0xff] }
  0xb1   : > { %v16617_v14 = vsel %vm1647_vm4, %v20776_v5, %v2172_v2  ;;  %v2202_v20 = vshrl.u32 %v20784_v60, 16  ;;  %v16624_v41 = vld [vmem:[%s15707_s17 + $0xa0] sm:$0xff]   ;;  %v16627_v16 = vsel %vm1647_vm4, %v2172_v2, %v2181_v23  ;;  %20786 = vst [vmem:[#allocation18_spill] sm:$0xff] %v16630_v56  ;;  %v2205_v5 = vshll.u32 %v20784_v60, 16  ;;  %20788 = vst [vmem:[#allocation9_spill] sm:$0xff] %v16640_v59  ;;  %13488 = vmatmul.mubr.msk.bf16.gmra.mrb[32].mxu1 %vm20540_vm0, %v16247_v57 }
  0xb2   : > { %20785 = vst [vmem:[#allocation17_spill] sm:$0xff] %v16627_v16  ;;  %v16634_v31 = vld [vmem:[%s15707_s17 + $0xa8] ss:$0 sps:$4 sm:$0x11]   ;;  %v16637_v19 = vsel %vm1647_vm4, %v2181_v23, %v2190_v48  ;;  %v2211_v24 = vshrl.u32 %v20789_v58, 16  ;;  %v2199_v49 = vor.u32 %v2198_v34, %v2195_v9  ;;  %v2214_v33 = vshll.u32 %v20789_v58, 16  ;;  %13493 = vmatprep.mubr.msk.bf16.mxu1 %vm20540_vm0, %v16529_v21 }
  0xb3   : > { %20787 = vst [vmem:[#allocation8_spill] sm:$0xff] %v16637_v19  ;;  %v2204_v40 = vrot.slane %v2202_v20, 3  ;;  %v2207_v2 = vrot.slane %v2205_v5, 4  ;;  %v4026_v38 = vrot.slane %v16624_v41, 1  ;;  %v4028_v60 = vrot.slane %v16634_v31, 1  ;;  %v20790_v16 = vld [vmem:[#allocation14_spill] sm:$0xff]  ;;  %13662 = vmatmul.mubr.msk.bf16.gmra.mrb[16].mxu0 %vm20540_vm0, %v16397_v63 }
  0xb4   : > { %v2213_v56 = vrot.slane %v2211_v24, 3  ;;  %v2220_v36 = vshrl.u32 %v20790_v16, 16  ;;  %v2223_v23 = vshll.u32 %v20790_v16, 16  ;;  %v16649_v19 = vsel %vm1647_vm4, %v2190_v48, %v2199_v49  ;;  %v20791_v24 = vld [vmem:[#allocation19_spill] sm:$0xff]  ;;  %13665 = vmatprep.mubr.msk.bf16.mxu0 %vm20540_vm0, %v16533_v13 }
  0xb5   : > { %v2208_v54 = vor.u32 %v2207_v2, %v2204_v40  ;;  %v2216_v20 = vrot.slane %v2214_v33, 4  ;;  %v16652_v59 = vsel %vm20537_vm5, %v4024_v61, %v4026_v38  ;;  %v16655_v9 = vsel %vm20537_vm5, %v4026_v38, %v4028_v60 }
  0xb6   : > { %v2222_v34 = vrot.slane %v2220_v36, 3  ;;  %v2225_v5 = vrot.slane %v2223_v23, 4  ;;  %v2229_v58 = vshrl.u32 %v20791_v24, 16  ;;  %v2232_v40 = vshll.u32 %v20791_v24, 16 }
  0xb7   : > { %v16661_v16 = vsel %vm1647_vm4, %v2199_v49, %v2208_v54  ;;  %v2217_v48 = vor.u32 %v2216_v20, %v2213_v56  ;;  %v20792_v36 = vshll.u32 %v16478_v22, 16  ;;  %v20793_v57 = vshrl.u32 %v16359_v25, 16 }
  0xb8   : > { %v2226_v2 = vor.u32 %v2225_v5, %v2222_v34  ;;  %v2231_v33 = vrot.slane %v2229_v58, 3  ;;  %v2234_v38 = vrot.slane %v2232_v40, 4  ;;  %v20794_v63 = vshrl.u32 %v16478_v22, 16 }
  0xb9   : > { %v3662_v61 = vrot.slane %v20792_v36, 1  ;;  %v3658_v49 = vor.u32 %v20793_v57, %v16431_v15  ;;  %v16676_v56 = vsel %vm1647_vm4, %v2208_v54, %v2217_v48  ;;  %v20795_v21 = vshll.u32 %v16536_v17, 16  ;;  %13494 = vmatmul.mubr.msk.bf16.vlgmr.msra.gmra.mrb[0].mxu1 %vm20540_vm0, %v16287_v62  ;;  %v15486_v57 = vld [vmem:[%s20454_s1 + $0x20] sm:$0xff]  }
  0xba   : > { %v16683_v20 = vsel %vm1647_vm4, %v2217_v48, %v2226_v2  ;;  %v16685_v34 = vor.u32 %v2234_v38, %v2231_v33  ;;  %v3676_v13 = vshll.u32 %v16579_v6, 16  ;;  %v3672_v15 = vshrl.u32 %v16536_v17, 16  ;;  %v20796_v48 = vld [vmem:[#allocation21_spill] sm:$0xff] }
  0xbb   : > { %v3666_v60 = vor.u32 %v20794_v63, %v3662_v61  ;;  %v3670_v23 = vrot.slane %v20795_v21, 1  ;;  %v3663_v5 = vsel %vm20538_vm2, %v3658_v49, %v3662_v61  ;;  %v3680_v58 = vshrl.u32 %v16579_v6, 16  ;;  %13530 = vmatpush3.bf16.msra.mxu1 %v20796_v48  ;;  %v20797_v61 = vld [vmem:[#allocation32_spill] sm:$0xff] }
  0xbc   : > { %v16692_v54 = vsel %vm1647_vm4, %v2226_v2, %v16685_v34  ;;  %v3684_v40 = vshll.u32 %v16595_v1, 16  ;;  %13666 = vmatmul.mubr.msk.bf16.gmra.mrb[20].mxu0 %vm20540_vm0, %v3663_v5  ;;  %v3678_v36 = vrot.slane %v3676_v13, 1  ;;  %13497 = vmatprep.mubr.msk.bf16.mxu1 %vm20540_vm0, %v20797_v61  ;;  %v3692_v49 = vshll.u32 %v16602_v28, 16  ;;  %v20798_v5 = vld [vmem:[#allocation33_spill] sm:$0xff] }
  0xbd   : > { %v3671_v24 = vsel %vm20538_vm2, %v3666_v60, %v3670_v23  ;;  %v3674_v2 = vor.u32 %v3672_v15, %v3670_v23  ;;  %14451 = vmatprep.subr.bf16.mxu1 %v15486_v57  ;;  %v3688_v63 = vshrl.u32 %v16595_v1, 16  ;;  %v3696_v21 = vshrl.u32 %v16602_v28, 16 }
  0xbe   : > { %13669 = vmatprep.mubr.msk.bf16.mxu0 %vm20540_vm0, %v3671_v24  ;;  %v3682_v33 = vor.u32 %v3680_v58, %v3678_v36  ;;  %v3686_v62 = vrot.slane %v3684_v40, 1  ;;  %v3700_v23 = vshll.u32 %v16624_v41, 16  ;;  %v20799_v24 = vld [vmem:[#allocation34_spill] sm:$0xff]  ;;  %v3694_v48 = vrot.slane %v3692_v49, 1 }
  0xbf   : > { %v3679_v38 = vsel %vm20538_vm2, %v3674_v2, %v3678_v36  ;;  %v4379_v1 = vrot.slane %v3696_v21, 1 }
  0xc0   : > { %v3687_v60 = vsel %vm20538_vm2, %v3682_v33, %v3686_v62  ;;  %v3690_v36 = vor.u32 %v3688_v63, %v3686_v62  ;;  %v3698_v61 = vor.u32 %v3696_v21, %v3694_v48  ;;  %v3702_v2 = vrot.slane %v3700_v23, 1 }
  0xc1   : > { %13498 = vmatmul.mubr.msk.bf16.gmra.mrb[4].mxu1 %vm20540_vm0, %v20798_v5  ;;  %v3708_v5 = vshll.u32 %v16634_v31, 16  ;;  %v16840_v31 = vld [vmem:[%s15707_s17 + $0x70] sm:$0xf] }
  0xc2   : > { %13501 = vmatprep.mubr.msk.bf16.mxu1 %vm20540_vm0, %v20799_v24  ;;  %v3695_v33 = vsel %vm20538_vm2, %v3690_v36, %v3694_v48  ;;  %v3703_v24 = vsel %vm20538_vm2, %v3698_v61, %v3702_v2  ;;  %v16843_v61 = vld [vmem:[%s15707_s17 + $0x74] sm:$0xf] }
  0xc4   : > { %13670 = vmatmul.mubr.msk.bf16.gmra.mrb[24].mxu0 %vm20540_vm0, %v3679_v38  ;;  %v3704_v38 = vshrl.u32 %v16624_v41, 16 }
  0xc5   : > { %13673 = vmatprep.mubr.msk.bf16.mxu0 %vm20540_vm0, %v3687_v60  ;;  %v3710_v60 = vrot.slane %v3708_v5, 1 }
  0xc6   : > { %v3706_v62 = vor.u32 %v3704_v38, %v3702_v2  ;;  %v20810_v2 = vld [vmem:[#allocation22_spill] sm:$0xff] }
  0xc8   : > { %v3711_v48 = vsel %vm20538_vm2, %v3706_v62, %v3710_v60 }
  0xc9   : > { %13502 = vmatmul.mubr.msk.bf16.gmra.mrb[8].mxu1 %vm20540_vm0, %v16362_v50  ;;  %v15450_v50 = vld [vmem:[%s15707_s17 + $0x94] ss:$0 sps:$4 sm:$0xff]  }
  0xca   : > { %13505 = vmatprep.mubr.msk.bf16.mxu1 %vm20540_vm0, %v16385_v8  ;;  %v1725_v8 = vshrl.u32 %v15450_v50, 16 }
  0xcc   : > { %13674 = vmatmul.mubr.msk.bf16.gmra.mrb[28].mxu0 %vm20540_vm0, %v3695_v33  ;;  %v20811_v33 = vshrl.u32 %v20810_v2, 16 }
  0xcd   : > { %13677 = vmatprep.mubr.msk.bf16.mxu0 %vm20540_vm0, %v3703_v24 }
  0xce   : > { %v4323_v5 = vrot.slane %v20811_v33, 1 }
  0xd1   : > { %13506 = vmatmul.mubr.msk.bf16.gmra.mrb[12].mxu1 %vm20540_vm0, %v16411_v43  ;;  %v1727_v43 = vrot.slane %v1725_v8, 3  ;;  %v20813_v8 = vld [vmem:[#allocation23_spill] sm:$0xff] }
  0xd2   : > { %13509 = vmatprep.mubr.msk.bf16.mxu1 %vm20540_vm0, %v16434_v37 }
  0xd4   : > { %13678 = vmatmul.mubr.msk.bf16.gmra.mrb[32].mxu0 %vm20540_vm0, %v3711_v48 }
  0xd5   : > { %13683 = vmatprep.mubr.msk.bf16.mxu0 %vm20540_vm0, %v16444_v32 }
  0xd9   : > { %13510 = vmatmul.mubr.msk.bf16.gmra.mrb[16].mxu1 %vm20540_vm0, %v16441_v35 }
  0xda   : > { %13513 = vmatprep.mubr.msk.bf16.mxu1 %vm20540_vm0, %v16464_v55  ;;  %v20801_v55 = vld [vmem:[#allocation17_spill] sm:$0xff] }
  0xdc   : > { %13684 = vmatmul.mubr.msk.bf16.vlgmr.msra.gmra.mrb[0].mxu0 %vm20540_vm0, %v16447_v29  ;;  %v20800_v29 = vld [vmem:[#allocation15_spill] sm:$0xff] }
  0xdd   : > { %13720 = vmatpush3.bf16.msra.mxu0 %v16392_v4  ;;  %13687 = vmatprep.mubr.msk.bf16.mxu0 %vm20540_vm0, %v16467_v18  ;;  %v1728_v4 = vshll.u32 %v15450_v50, 16  ;;  %v20802_v18 = vld [vmem:[#allocation16_spill] sm:$0xff] }
  0xdf   : > { %v1730_v37 = vrot.slane %v1728_v4, 4  ;;  %v20814_v4 = vshrl.u32 %v20813_v8, 16 }
  0xe1   : > { %13514 = vmatmul.mubr.msk.bf16.gmra.mrb[20].mxu1 %vm20540_vm0, %v16481_v3  ;;  %v1731_v35 = vor.u32 %v1730_v37, %v1727_v43  ;;  %v20804_v3 = vld [vmem:[#allocation18_spill] sm:$0xff]  ;;  %v4327_v43 = vrot.slane %v20814_v4, 1  ;;  %v20815_v37 = vshll.u32 %v20813_v8, 16  ;;  %v16902_v4 = vld [vmem:[%s15707_s17 + $0x8c] sm:$0xf] }
  0xe2   : > { %13517 = vmatprep.mubr.msk.bf16.mxu1 %vm20540_vm0, %v16496_v51 }
  0xe3   : > { %v1732_v32 = vsel %vm1647_vm4, %v16541_v39, %v1731_v35  ;;  %v20806_v39 = vld [vmem:[#allocation20_spill] sm:$0xff]  ;;  %v4328_v35 = vrot.slane %v20815_v37, 2 }
  0xe4   : > { %13688 = vmatmul.mubr.msk.bf16.gmra.mrb[4].mxu0 %vm20540_vm0, %v16470_v7  ;;  %v20803_v7 = vld [vmem:[#allocation8_spill] sm:$0xff] }
  0xe5   : > { %13691 = vmatprep.mubr.msk.bf16.mxu0 %vm20540_vm0, %v16487_v45  ;;  %v20805_v45 = vld [vmem:[#allocation35_spill] sm:$0xff] }
  0xe6   : > { %v4312_v51 = vshrl.u32 %v20805_v45, 16 }
  0xe9   : > { %13518 = vmatmul.mubr.msk.bf16.gmra.mrb[24].mxu1 %vm20540_vm0, %v16499_v53  ;;  %v4315_v53 = vshll.u32 %v20805_v45, 16 }
  0xea   : > { %13521 = vmatprep.mubr.msk.bf16.mxu1 %vm20540_vm0, %v16515_v46  ;;  %v16820_v46 = vld [vmem:[%s15707_s17 + $0x68] sm:$0xf] }
  0xec   : > { %13692 = vmatmul.mubr.msk.bf16.gmra.mrb[8].mxu0 %vm20540_vm0, %v16502_v42  ;;  %v16817_v42 = vld [vmem:[%s15707_s17 + $0x64] sm:$0xf] }
  0xed   : > { %13695 = vmatprep.mubr.msk.bf16.mxu0 %vm20540_vm0, %v16518_v44  ;;  %v12325_v44 = vcombine.low %v16817_v42, %v16820_v46 }
  0xf1   : > { %13522 = vmatmul.mubr.msk.bf16.gmra.mrb[28].mxu1 %vm20540_vm0, %v16539_v52  ;;  %v4317_v52 = vrot.slane %v4315_v53, 2  ;;  %v4329_v53 = vor.u32 %v4328_v35, %v4327_v43  ;;  %v16905_v43 = vld [vmem:[%s15707_s17 + $0x90] sm:$0xf]  ;;  %v16908_v35 = vld [vmem:[%s15707_s17 + $0x94] sm:$0xf] }
  0xf2   : > { %13525 = vmatprep.mubr.msk.bf16.mxu1 %vm20540_vm0, %v16560_v27  ;;  %v20808_v27 = vshll.u32 %v20806_v39, 16 }
  0xf4   : > { %13696 = vmatmul.mubr.msk.bf16.gmra.mrb[12].mxu0 %vm20540_vm0, %v16521_v26  ;;  %v4314_v26 = vrot.slane %v4312_v51, 1 }
  0xf5   : > { %13699 = vmatprep.mubr.msk.bf16.mxu0 %vm20540_vm0, %v16546_v10  ;;  %v20807_v10 = vshrl.u32 %v20806_v39, 16  ;;  %v20816_v39 = vld [vmem:[#allocation24_spill] sm:$0xff] }
  0xf9   : > { %13526 = vmatmul.mubr.msk.bf16.gmra.mrb[32].mxu1 %vm20540_vm0, %v1732_v32 }
  0xfa   : > { %13531 = vmatprep.mubr.msk.bf16.mxu1 %vm20540_vm0, %v16570_v30  ;;  %v20809_v30 = vld [vmem:[#allocation9_spill] sm:$0xff] }
  0xfc   : > { %13700 = vmatmul.mubr.msk.bf16.gmra.mrb[16].mxu0 %vm20540_vm0, %v16567_v12  ;;  %v4320_v12 = vrot.slane %v20808_v27, 2  ;;  %v20818_v27 = vshll.u32 %v20816_v39, 16 }
  0xfd   : > { %13703 = vmatprep.mubr.msk.bf16.mxu0 %vm20540_vm0, %v16582_v0  ;;  %v4319_v0 = vrot.slane %v20807_v10, 1  ;;  %v20817_v10 = vshrl.u32 %v20816_v39, 16  ;;  %v12330_v39 = vcombine.low %v16902_v4, %v16905_v43 }
  0xff   : > { %v4321_v36 = vor.u32 %v4320_v12, %v4319_v0  ;;  %v4331_v0 = vrot.slane %v20817_v10, 1  ;;  %v4332_v12 = vrot.slane %v20818_v27, 2 }
 0x101   : > { %13532 = vmatmul.mubr.msk.bf16.vlgmr.msra.gmra.mrb[0].mxu1 %vm20540_vm0, %v16574_v47  ;;  %v2238_v47 = vshrl.u32 %v12325_v44, 16 }
 0x102   : > { %14452 = vmatpush3.bf16.msra.mxu1 %v15486_v57  ;;  %13535 = vmatprep.mubr.msk.bf16.mxu1 %vm20540_vm0, %v16617_v14  ;;  %v16837_v14 = vld [vmem:[%s15707_s17 + $0x6c] sm:$0xf]  ;;  %v4318_v57 = vor.u32 %v4317_v52, %v4314_v26 }
 0x103   : > { %v12326_v24 = vcombine.low %v16837_v14, %v16840_v31  ;;  %v2240_v62 = vrot.slane %v2238_v47, 3 }
 0x104   : > { %13704 = vmatmul.mubr.msk.bf16.gmra.mrb[20].mxu0 %vm20540_vm0, %v16585_v11  ;;  %v2241_v11 = vshll.u32 %v12325_v44, 16  ;;  %v4322_v50 = vsel %vm20536_vm6, %v4318_v57, %v4321_v36  ;;  %v16878_v44 = vld [vmem:[%s15707_s17 + $0x88] sm:$0xf] }
 0x105   : > { %13707 = vmatprep.mubr.msk.bf16.mxu0 %vm20540_vm0, %v20800_v29  ;;  %v2247_v29 = vshrl.u32 %v12326_v24, 16 }
 0x106   : > { %v2243_v60 = vrot.slane %v2241_v11, 4 }
 0x107   : > { %v2249_v26 = vrot.slane %v2247_v29, 3 }
 0x109   : > { %13536 = vmatmul.mubr.msk.bf16.gmra.mrb[4].mxu1 %vm20540_vm0, %v20801_v55  ;;  %v2250_v55 = vshll.u32 %v12326_v24, 16 }
 0x10a   : > { %13539 = vmatprep.mubr.msk.bf16.mxu1 %vm20540_vm0, %v20803_v7  ;;  %v16871_v7 = vld [vmem:[%s15707_s17 + $0x80] sm:$0xf] }
 0x10b   : > { %v2252_v52 = vrot.slane %v2250_v55, 4  ;;  %v20822_v55 = vld [vmem:[#allocation26_spill] sm:$0xff] }
 0x10c   : > { %13708 = vmatmul.mubr.msk.bf16.gmra.mrb[24].mxu0 %vm20540_vm0, %v20802_v18  ;;  %v16868_v18 = vld [vmem:[%s15707_s17 + $0x7c] sm:$0xf] }
 0x10d   : > { %13711 = vmatprep.mubr.msk.bf16.mxu0 %vm20540_vm0, %v20804_v3  ;;  %v2244_v3 = vor.u32 %v2243_v60, %v2240_v62  ;;  %v2253_v62 = vor.u32 %v2252_v52, %v2249_v26  ;;  %v4333_v60 = vor.u32 %v4332_v12, %v4331_v0 }
 0x10f   : > { %v2254_v26 = vsel %vm1647_vm4, %v2244_v3, %v2253_v62  ;;  %v4334_v52 = vsel %vm20536_vm6, %v4329_v53, %v4333_v60 }
 0x111   : > { %13540 = vmatmul.mubr.msk.bf16.gmra.mrb[8].mxu1 %vm20540_vm0, %v16649_v19  ;;  %v16846_v19 = vld [vmem:[%s15707_s17 + $0x78] sm:$0xf] }
 0x112   : > { %13543 = vmatprep.mubr.msk.bf16.mxu1 %vm20540_vm0, %v16661_v16  ;;  %v20812_v16 = vshll.u32 %v20810_v2, 16  ;;  %v12327_v48 = vcombine.low %v16843_v61, %v16846_v19  ;;  %v20819_v2 = vld [vmem:[#allocation25_spill] sm:$0xff] }
 0x113   : > { %v20820_v33 = vshrl.u32 %v20819_v2, 16 }
 0x114   : > { %13712 = vmatmul.mubr.msk.bf16.gmra.mrb[28].mxu0 %vm20540_vm0, %v20809_v30  ;;  %v2256_v45 = vshrl.u32 %v12327_v48, 16  ;;  %v2259_v51 = vshll.u32 %v12327_v48, 16  ;;  %v2245_v30 = vsel %vm1647_vm4, %v16685_v34, %v2244_v3 }
 0x115   : > { %13715 = vmatprep.mubr.msk.bf16.mxu0 %vm20540_vm0, %v16652_v59  ;;  %v4324_v59 = vrot.slane %v20812_v16, 2  ;;  %v20821_v16 = vshll.u32 %v20819_v2, 16 }
 0x116   : > { %v2258_v47 = vrot.slane %v2256_v45, 3  ;;  %v2261_v11 = vrot.slane %v2259_v51, 4  ;;  %v20823_v45 = vshrl.u32 %v20822_v55, 16 }
 0x117   : > { %v4325_v32 = vor.u32 %v4324_v59, %v4323_v5  ;;  %v4335_v5 = vrot.slane %v20820_v33, 1  ;;  %v4336_v59 = vrot.slane %v20821_v16, 2  ;;  %v2283_v33 = vshrl.u32 %v12330_v39, 16 }
 0x118   : > { %v2262_v48 = vor.u32 %v2261_v11, %v2258_v47  ;;  %v4339_v51 = vrot.slane %v20823_v45, 1  ;;  %v20825_v47 = vld [vmem:[#allocation27_spill] sm:$0xff] }
 0x119   : > { %13544 = vmatmul.mubr.msk.bf16.gmra.mrb[12].mxu1 %vm20540_vm0, %v16676_v56  ;;  %v16875_v56 = vld [vmem:[%s15707_s17 + $0x84] sm:$0xf]  ;;  %v4337_v37 = vor.u32 %v4336_v59, %v4335_v5  ;;  %v20826_v11 = vshrl.u32 %v20825_v47, 16  ;;  %v20827_v3 = vshll.u32 %v20825_v47, 16  ;;  %v2286_v5 = vshll.u32 %v12330_v39, 16 }
 0x11a   : > { %13547 = vmatprep.mubr.msk.bf16.mxu1 %vm20540_vm0, %v16683_v20  ;;  %v12328_v20 = vcombine.low %v16868_v18, %v16871_v7  ;;  %v12329_v57 = vcombine.low %v16875_v56, %v16878_v44  ;;  %v2263_v10 = vsel %vm1647_vm4, %v2253_v62, %v2262_v48 }
 0x11c   : > { %13716 = vmatmul.mubr.msk.bf16.gmra.mrb[32].mxu0 %vm20540_vm0, %v16655_v9  ;;  %v4326_v9 = vsel %vm20536_vm6, %v4321_v36, %v4325_v32  ;;  %v4330_v36 = vsel %vm20536_vm6, %v4325_v32, %v4329_v53  ;;  %v2265_v34 = vshrl.u32 %v12328_v20, 16  ;;  %v2268_v24 = vshll.u32 %v12328_v20, 16 }
 0x11d   : > { %13721 = vmatprep.mubr.msk.bf16.mxu0 %vm20540_vm0, %v4322_v50  ;;  %v2274_v50 = vshrl.u32 %v12329_v57, 16  ;;  %v2277_v8 = vshll.u32 %v12329_v57, 16  ;;  %v4343_v57 = vrot.slane %v20826_v11, 1 }
 0x11e   : > { %v2267_v32 = vrot.slane %v2265_v34, 3  ;;  %v2270_v29 = vrot.slane %v2268_v24, 4  ;;  %v16934_v24 = vld [vmem:[%s15707_s17 + $0x9c] sm:$0xf] }
 0x11f   : > { %v2276_v0 = vrot.slane %v2274_v50, 3  ;;  %v2279_v27 = vrot.slane %v2277_v8, 4  ;;  %v2285_v8 = vrot.slane %v2283_v33, 3 }
 0x120   : > { %v2271_v53 = vor.u32 %v2270_v29, %v2267_v32  ;;  %v2288_v32 = vrot.slane %v2286_v5, 4  ;;  %v20828_v29 = vld [vmem:[#allocation30_spill] sm:$0xff] }
 0x121   : > { %13548 = vmatmul.mubr.msk.bf16.gmra.mrb[16].mxu1 %vm20540_vm0, %v16692_v54  ;;  %v16911_v54 = vld [vmem:[%s15707_s17 + $0x98] sm:$0xf]  ;;  %v2280_v16 = vor.u32 %v2279_v27, %v2276_v0 }
 0x122   : > { %13551 = vmatprep.mubr.msk.bf16.mxu1 %vm20540_vm0, %v2245_v30  ;;  %v12331_v12 = vcombine.low %v16908_v35, %v16911_v54  ;;  %v4338_v30 = vsel %vm20536_vm6, %v4333_v60, %v4337_v37  ;;  %v2272_v60 = vsel %vm1647_vm4, %v2262_v48, %v2271_v53  ;;  %v20831_v48 = vld [vmem:[#allocation29_spill] sm:$0xff] }
 0x123   : > { %v20832_v0 = vshrl.u32 %v20831_v48, 16  ;;  %v20833_v27 = vshll.u32 %v20831_v48, 16 }
 0x124   : > { %13722 = vmatmul.mubr.msk.bf16.vlgmr.msra.gmra.mrb[0].mxu0 %vm20540_vm0, %v4326_v9  ;;  %v20824_v9 = vshll.u32 %v20822_v55, 16  ;;  %v2292_v59 = vshrl.u32 %v12331_v12, 16  ;;  %v2295_v34 = vshll.u32 %v12331_v12, 16  ;;  %v20829_v55 = vshrl.u32 %v20828_v29, 16 }
 0x125   : > { %13725 = vmatprep.mubr.msk.bf16.mxu0 %vm20540_vm0, %v4330_v36  ;;  %v4344_v36 = vrot.slane %v20827_v3, 2  ;;  %v4352_v12 = vrot.slane %v20833_v27, 2 }
 0x126   : > { %v4340_v20 = vrot.slane %v20824_v9, 2  ;;  %v4347_v45 = vrot.slane %v20829_v55, 1  ;;  %v2281_v9 = vsel %vm1647_vm4, %v2271_v53, %v2280_v16  ;;  %v2297_v39 = vrot.slane %v2295_v34, 4  ;;  %v20834_v34 = vld [vmem:[#allocation31_spill] sm:$0xff] }
 0x127   : > { %v4345_v62 = vor.u32 %v4344_v36, %v4343_v57  ;;  %v20837_v55 = vshrl.u32 %v16359_v25, 16 }
 0x128   : > { %v4341_v2 = vor.u32 %v4340_v20, %v4339_v51  ;;  %v12332_v51 = vcombine.low %v16934_v24, %v16934_v24  ;;  %v20830_v20 = vshll.u32 %v20828_v29, 16 }
 0x129   : > { %13552 = vmatmul.mubr.msk.bf16.gmra.mrb[20].mxu1 %vm20540_vm0, %v2254_v26 }
 0x12a   : > { %13555 = vmatprep.mubr.msk.bf16.mxu1 %vm20540_vm0, %v2263_v10  ;;  %v4342_v50 = vsel %vm20536_vm6, %v4337_v37, %v4341_v2  ;;  %v4348_v26 = vrot.slane %v20830_v20, 2  ;;  %v4346_v10 = vsel %vm20536_vm6, %v4341_v2, %v4345_v62  ;;  %v4351_v37 = vrot.slane %v20832_v0, 1 }
 0x12b   : > { %v2301_v47 = vshrl.u32 %v12332_v51, 16  ;;  %v2304_v11 = vshll.u32 %v12332_v51, 16  ;;  %v20840_v0 = vshll.u32 %v16478_v22, 16 }
 0x12c   : > { %13726 = vmatmul.mubr.msk.bf16.gmra.mrb[4].mxu0 %vm20540_vm0, %v4334_v52  ;;  %v2294_v52 = vrot.slane %v2292_v59, 3  ;;  %v4349_v57 = vor.u32 %v4348_v26, %v4347_v45  ;;  %v4353_v36 = vor.u32 %v4352_v12, %v4351_v37  ;;  %v4359_v45 = vrot.slane %v20837_v55, 1 }
 0x12d   : > { %13729 = vmatprep.mubr.msk.bf16.mxu0 %vm20540_vm0, %v4338_v30  ;;  %v2289_v30 = vor.u32 %v2288_v32, %v2285_v8  ;;  %v2303_v2 = vrot.slane %v2301_v47, 3  ;;  %v2306_v33 = vrot.slane %v2304_v11, 4  ;;  %v20836_v8 = vshll.u32 %v20834_v34, 16 }
 0x12e   : > { %v2298_v3 = vor.u32 %v2297_v39, %v2294_v52  ;;  %v4350_v5 = vsel %vm20536_vm6, %v4345_v62, %v4349_v57  ;;  %v4354_v29 = vsel %vm20536_vm6, %v4349_v57, %v4353_v36  ;;  %v15487_v52 = vld [vmem:[%s15707_s17 + $0x60] sm:$0xf]  ;;  %v4364_v37 = vrot.slane %v20840_v0, 2 }
 0x12f   : > { %v2290_v53 = vsel %vm1647_vm4, %v2280_v16, %v2289_v30  ;;  %v4356_v32 = vrot.slane %v20836_v8, 2  ;;  %v20838_v16 = vshll.u32 %v16359_v25, 16  ;;  %v2307_v62 = vor.u32 %v2306_v33, %v2303_v2  ;;  %v15469_v8 = vld [vmem:[%s20457_s4] sm:$0xff]  }
 0x130   : > { %v2299_v59 = vsel %vm1647_vm4, %v2289_v30, %v2298_v3  ;;  %v12364_v39 = vcombine.low %v15487_v52, %v16817_v42  ;;  %v20839_v25 = vshrl.u32 %v16478_v22, 16  ;;  %v4367_v12 = vrot.slane %v3672_v15, 1 }
 0x131   : > { %13556 = vmatmul.mubr.msk.bf16.gmra.mrb[24].mxu1 %vm20540_vm0, %v2272_v60  ;;  %v20835_v60 = vshrl.u32 %v20834_v34, 16  ;;  %v4360_v51 = vrot.slane %v20838_v16, 2  ;;  %v2308_v26 = vsel %vm1647_vm4, %v2298_v3, %v2307_v62  ;;  %v20841_v30 = vshll.u32 %v16536_v17, 16 }
 0x132   : > { %13559 = vmatprep.mubr.msk.bf16.mxu1 %vm20540_vm0, %v2281_v9  ;;  %v4363_v48 = vrot.slane %v20839_v25, 1  ;;  %v12365_v22 = vcombine.low %v16820_v46, %v16837_v14  ;;  %v12366_v57 = vcombine.low %v16840_v31, %v16843_v61  ;;  %v4371_v17 = vrot.slane %v3680_v58, 1  ;;  %v15467_v31 = vld [vmem:[%s15707_s17 + $0xa8] ss:$0 sps:$4 sm:$0x33]  }
 0x133   : > { %v4361_v20 = vor.u32 %v4360_v51, %v4359_v45  ;;  %v4368_v47 = vrot.slane %v20841_v30, 2  ;;  %v4372_v3 = vrot.slane %v3676_v13, 2  ;;  %v4376_v46 = vrot.slane %v3684_v40, 2 }
 0x134   : > { %13730 = vmatmul.mubr.msk.bf16.gmra.mrb[8].mxu0 %vm20540_vm0, %v4342_v50  ;;  %v4355_v50 = vrot.slane %v20835_v60, 1  ;;  %v4365_v42 = vor.u32 %v4364_v37, %v4363_v48  ;;  %v12367_v13 = vcombine.low %v16846_v19, %v16868_v18  ;;  %v12368_v14 = vcombine.low %v16871_v7, %v16875_v56 }
 0x135   : > { %13733 = vmatprep.mubr.msk.bf16.mxu0 %vm20540_vm0, %v4346_v10  ;;  %v4369_v11 = vor.u32 %v4368_v47, %v4367_v12  ;;  %v4373_v58 = vor.u32 %v4372_v3, %v4371_v17  ;;  %v4380_v40 = vrot.slane %v3692_v49, 2  ;;  %v4383_v2 = vrot.slane %v3704_v38, 1 }
 0x136   : > { %v4357_v9 = vor.u32 %v4356_v32, %v4355_v50  ;;  %v4366_v15 = vsel %vm20536_vm6, %v4361_v20, %v4365_v42  ;;  %v4384_v19 = vrot.slane %v3700_v23, 2  ;;  %v4388_v28 = vshrl.u32 %v15467_v31, 16 }
 0x137   : > { %v4381_v21 = vor.u32 %v4380_v40, %v4379_v1  ;;  %v4391_v49 = vshll.u32 %v15467_v31, 16  ;;  %v12369_v7 = vcombine.low %v16878_v44, %v16902_v4  ;;  %v12370_v38 = vcombine.low %v16905_v43, %v16908_v35  ;;  %v15468_v43 = vld [vmem:[%s20457_s4 + $0x8] sm:$0xff]  }
 0x138   : > { %v4358_v10 = vsel %vm20536_vm6, %v4353_v36, %v4357_v9  ;;  %v4362_v27 = vsel %vm20536_vm6, %v4357_v9, %v4361_v20  ;;  %v4370_v36 = vsel %vm20536_vm6, %v4365_v42, %v4369_v11  ;;  %v4385_v18 = vor.u32 %v4384_v19, %v4383_v2  ;;  %13757 = vmatprep.subr.bf16.mxu1 %v15468_v43 }
 0x139   : > { %13560 = vmatmul.mubr.msk.bf16.gmra.mrb[28].mxu1 %vm20540_vm0, %v2290_v53  ;;  %v4375_v53 = vrot.slane %v3688_v63, 1  ;;  %v4374_v63 = vsel %vm20536_vm6, %v4369_v11, %v4373_v58  ;;  %v4390_v23 = vrot.slane %v4388_v28, 1  ;;  %v4393_v56 = vrot.slane %v4391_v49, 2 }
 0x13a   : > { %13563 = vmatprep.mubr.msk.bf16.mxu1 %vm20540_vm0, %v2299_v59  ;;  %v4386_v33 = vsel %vm20536_vm6, %v4381_v21, %v4385_v18  ;;  %v12371_v44 = vcombine.low %v16911_v54, %v16934_v24  ;;  %v421_v35 = vlaneseq  ;;  %v15572_v34 = vmov 0  }
 0x13b   : > { %v4377_v6 = vor.u32 %v4376_v46, %v4375_v53  ;;  %413 = vst.msk [vmem:[#allocation2] sm:$0xff] %vm20540_vm0, %v15572_v34  ;;  %414 = vst.msk [vmem:[#allocation2 + $0x8] sm:$0xff] %vm20540_vm0, %v15572_v34 }
 0x13c   : > { %13734 = vmatmul.mubr.msk.bf16.gmra.mrb[12].mxu0 %vm20540_vm0, %v4350_v5  ;;  %v4394_v5 = vor.u32 %v4393_v56, %v4390_v23  ;;  %v17042_v59 = vshrl.u32 %v421_v35, 7  ;;  %415 = vst.msk [vmem:[#allocation3] sm:$0xff] %vm20540_vm0, %v15572_v34  ;;  %416 = vst.msk [vmem:[#allocation3 + $0x8] sm:$0xff] %vm20540_vm0, %v15572_v34 }
 0x13d   : > { %13737 = vmatprep.mubr.msk.bf16.mxu0 %vm20540_vm0, %v4354_v29  ;;  %v4378_v61 = vsel %vm20536_vm6, %v4373_v58, %v4377_v6  ;;  %v4382_v41 = vsel %vm20536_vm6, %v4377_v6, %v4381_v21  ;;  %417 = vst.msk [vmem:[#allocation2 + $0xa0] sm:$0xff] %vm20540_vm0, %v15572_v34  ;;  %418 = vst.msk [vmem:[#allocation2 + $0xa8] sm:$0xff] %vm20540_vm0, %v15572_v34 }
 0x13e   : > { %v4395_v4 = vsel %vm20536_vm6, %v4385_v18, %v4394_v5  ;;  %419 = vst.msk [vmem:[#allocation3 + $0xa0] sm:$0xff] %vm20540_vm0, %v15572_v34  ;;  %420 = vst.msk [vmem:[#allocation3 + $0xa8] sm:$0xff] %vm20540_vm0, %v15572_v34  ;;  %v424_v54 = vadd.s32 16, %v17042_v59  ;;  %v458_v60 = vcvt.s32.f32 %v17042_v59  ;;  %v17061_v55 = vadd.s32 24, %v17042_v59 }
 0x13f   : > { %v17064_v45 = vadd.s32 8, %v17042_v59  ;;  %v17076_v25 = vadd.s32 32, %v17042_v59  ;;  %v17079_v48 = vadd.s32 56, %v17042_v59  ;;  %v17089_v11 = vadd.s32 80, %v17042_v59 }
 0x140   : > { %v460_v24 = vcvt.s32.f32 %v424_v54  ;;  %v494_v62 = vadd.f32 0.5, %v458_v60  ;;  %v461_v20 = vcvt.s32.f32 %v17061_v55  ;;  %v17102_v58 = vadd.s32 72, %v17042_v59 }
 0x141   : > { %13564 = vmatmul.mubr.msk.bf16.gmra.mrb[32].mxu1 %vm20540_vm0, %v2308_v26  ;;  %v459_v26 = vcvt.s32.f32 %v17064_v45  ;;  %v462_v42 = vcvt.s32.f32 %v17076_v25  ;;  %v17126_v54 = vadd.s32 96, %v17042_v59 }
 0x142   : > { %13589 = vmatprep.mubr.msk.bf16.mxu1 %vm20540_vm0, %v12364_v39  ;;  %v17054_v50 = vld [vmem:[#allocation2 + $0x8] sm:$0xff]  ;;  %v4884_v32 = vld [vmem:[#allocation2] sm:$0x80]  ;;  %v496_v51 = vadd.f32 0.5, %v460_v24  ;;  %v17073_v39 = vadd.s32 48, %v17042_v59  ;;  %v497_v0 = vadd.f32 0.5, %v461_v20  ;;  %v467_v28 = vcvt.s32.f32 %v17102_v58 }
 0x143   : > { %v20541_v29 = vrot.slane %v17054_v50, 7  ;;  %v4908_v16 = vrot.slane %v4884_v32, 7  ;;  %v495_v37 = vadd.f32 0.5, %v459_v26 }
 0x144   : > { %13738 = vmatmul.mubr.msk.bf16.gmra.mrb[16].mxu0 %vm20540_vm0, %v4358_v10  ;;  %v532_v52 = vmul.f32 0.055555556, %v496_v51  ;;  %v530_v10 = vmul.f32 0.055555556, %v494_v62  ;;  %v464_v30 = vcvt.s32.f32 %v17073_v39  ;;  %v533_v17 = vmul.f32 0.055555556, %v497_v0 }
 0x145   : > { %13741 = vmatprep.mubr.msk.bf16.mxu0 %vm20540_vm0, %v4362_v27  ;;  %v4910_v9 = vsel %vm20539_vm7, %v4908_v16, %v20541_v29  ;;  %v17084_v27 = vadd.s32 40, %v17042_v59  ;;  %v531_v3 = vmul.f32 0.055555556, %v495_v37  ;;  %v17130_v51 = vadd.s32 120, %v17042_v59 }
 0x146   : > { %v568_v12 = vfloor.f32 %v532_v52  ;;  %v566_v47 = vfloor.f32 %v530_v10  ;;  %v500_v46 = vadd.f32 0.5, %v464_v30  ;;  %v569_v31 = vfloor.f32 %v533_v17 }
 0x147   : > { %v470_v37 = vcvt.s32.f32 %v17126_v54 }
 0x148   : > { %v604_v53 = vmul.f32 18.0, %v568_v12  ;;  %v602_v6 = vmul.f32 18.0, %v566_v47  ;;  %v536_v21 = vmul.f32 0.055555556, %v500_v46  ;;  %v605_v56 = vmul.f32 18.0, %v569_v31 }
 0x149   : > { %13590 = vmatmul.mubr.msk.bf16.vlgmr.msra.gmra.mrb[20].mxu1 %vm20540_vm0, %v12365_v22  ;;  %v465_v22 = vcvt.s32.f32 %v17079_v48  ;;  %v20552_v12 = vmov 0.0  }
 0x14a   : > { %13593 = vmatprep.mubr.msk.bf16.mxu1 %vm20540_vm0, %v12366_v57  ;;  %13758 = vmatpush3.bf16.msra.mxu1 %v15468_v43  ;;  %v17093_v57 = vadd.s32 64, %v17042_v59  ;;  %v640_v19 = vsub.f32 %v460_v24, %v604_v53  ;;  %v638_v49 = vsub.f32 %v458_v60, %v602_v6  ;;  %v503_v43 = vadd.f32 0.5, %v467_v28 }
 0x14b   : > { %13795 = vmatprep.subr.bf16.mxu1 %v15469_v8  ;;  %v641_v32 = vsub.f32 %v461_v20, %v605_v56  ;;  %v473_v6 = vcvt.s32.f32 %v17130_v51 }
 0x14c   : > { %13742 = vmatmul.mubr.msk.bf16.gmra.mrb[20].mxu0 %vm20540_vm0, %v4366_v15  ;;  %v17096_v15 = vadd.s32 88, %v17042_v59  ;;  %v466_v1 = vcvt.s32.f32 %v17093_v57  ;;  %vm676_vm8 = vcmp.gt.f32.partialorder %v640_v19, 0.5  ;;  %vm712_vm9 = vcmp.lt.f32.partialorder %v640_v19, 16.5 }
 0x14d   : > { %13745 = vmatprep.mubr.msk.bf16.mxu0 %vm20540_vm0, %v4370_v36  ;;  %v463_v36 = vcvt.s32.f32 %v17084_v27  ;;  %vm674_vm10 = vcmp.gt.f32.partialorder %v638_v49, 0.5  ;;  %vm710_vm11 = vcmp.lt.f32.partialorder %v638_v49, 16.5  ;;  %vm748_vm12 = vmand %vm676_vm8, %vm712_vm9  ;;  %vm677_vm14 = vcmp.gt.f32.partialorder %v641_v32, 0.5 }
 0x14e   : > { %v469_v40 = vcvt.s32.f32 %v17096_v15  ;;  %vm746_vm13 = vmand %vm674_vm10, %vm710_vm11  ;;  %v17137_v20 = vsel %vm748_vm12, 1.0, %v20552_v12  ;;  %vm713_vm15 = vcmp.lt.f32.partialorder %v641_v32, 16.5  ;;  %v509_v25 = vadd.f32 0.5, %v473_v6 }
 0x14f   : > { %v499_v2 = vadd.f32 0.5, %v463_v36  ;;  %20842 = vst [vmem:[#allocation10_spill] sm:$0xff] %v17137_v20  ;;  %v17143_v45 = vsel %vm746_vm13, 1.0, %v20552_v12  ;;  %vm17168_vm10 = vmand %vm677_vm14, %vm713_vm15 }
 0x150   : > { %v505_v23 = vadd.f32 0.5, %v469_v40  ;;  %20843 = vst [vmem:[#allocation11_spill] sm:$0xff] %v17143_v45  ;;  %v17204_v58 = vsel %vm17168_vm10, 1.0, %v20552_v12 }
 0x151   : > { %13594 = vmatmul.mubr.msk.bf16.gmra.mrb[24].mxu1 %vm20540_vm0, %v12367_v13  ;;  %v498_v13 = vadd.f32 0.5, %v462_v42  ;;  %v535_v5 = vmul.f32 0.055555556, %v499_v2  ;;  %v17152_v2 = vadd.s32 104, %v17042_v59  ;;  %20852 = vst [vmem:[#allocation28_spill] sm:$0xff] %v17204_v58 }
 0x152   : > { %13597 = vmatprep.mubr.msk.bf16.mxu1 %vm20540_vm0, %v12368_v14  ;;  %v468_v14 = vcvt.s32.f32 %v17089_v11  ;;  %v541_v8 = vmul.f32 0.055555556, %v505_v23  ;;  %v17314_v11 = vadd.s32 192, %v17042_v59  ;;  %v17320_v23 = vadd.s32 200, %v17042_v59 }
 0x153   : > { %v534_v18 = vmul.f32 0.055555556, %v498_v13  ;;  %v571_v55 = vfloor.f32 %v535_v5 }
 0x154   : > { %13746 = vmatmul.mubr.msk.bf16.gmra.mrb[24].mxu0 %vm20540_vm0, %v4374_v63  ;;  %v501_v63 = vadd.f32 0.5, %v465_v22 }
 0x155   : > { %13749 = vmatprep.mubr.msk.bf16.mxu0 %vm20540_vm0, %v4378_v61  ;;  %v567_v61 = vfloor.f32 %v531_v3  ;;  %v570_v35 = vfloor.f32 %v534_v18  ;;  %v577_v3 = vfloor.f32 %v541_v8  ;;  %v607_v53 = vmul.f32 18.0, %v571_v55 }
 0x156   : > { %v17161_v18 = vadd.s32 144, %v17042_v59 }
 0x157   : > { %v606_v10 = vmul.f32 18.0, %v570_v35  ;;  %v613_v49 = vmul.f32 18.0, %v577_v3  ;;  %v643_v39 = vsub.f32 %v463_v36, %v607_v53  ;;  %v17218_v35 = vadd.s32 152, %v17042_v59 }
 0x158   : > { %v476_v15 = vcvt.s32.f32 %v17161_v18 }
 0x159   : > { %13598 = vmatmul.mubr.msk.bf16.gmra.mrb[28].mxu1 %vm20540_vm0, %v12369_v7  ;;  %v504_v7 = vadd.f32 0.5, %v468_v14  ;;  %vm679_vm5 = vcmp.gt.f32.partialorder %v643_v39, 0.5  ;;  %vm715_vm15 = vcmp.lt.f32.partialorder %v643_v39, 16.5 }
 0x15a   : > { %13601 = vmatprep.mubr.msk.bf16.mxu1 %vm20540_vm0, %v12370_v38  ;;  %v537_v38 = vmul.f32 0.055555556, %v501_v63  ;;  %v642_v63 = vsub.f32 %v462_v42, %v606_v10  ;;  %vm17213_vm7 = vmand %vm679_vm5, %vm715_vm15 }
 0x15b   : > { %v540_v34 = vmul.f32 0.055555556, %v504_v7  ;;  %v471_v7 = vcvt.s32.f32 %v17152_v2 }
 0x15c   : > { %13750 = vmatmul.mubr.msk.bf16.gmra.mrb[28].mxu0 %vm20540_vm0, %v4382_v41  ;;  %v502_v41 = vadd.f32 0.5, %v466_v1  ;;  %v573_v24 = vfloor.f32 %v537_v38  ;;  %vm678_vm9 = vcmp.gt.f32.partialorder %v642_v63, 0.5  ;;  %vm714_vm11 = vcmp.lt.f32.partialorder %v642_v63, 16.5 }
 0x15d   : > { %13753 = vmatprep.mubr.msk.bf16.mxu0 %vm20540_vm0, %v4386_v33  ;;  %v603_v33 = vmul.f32 18.0, %v567_v61  ;;  %v576_v0 = vfloor.f32 %v540_v34  ;;  %v506_v61 = vadd.f32 0.5, %v470_v37  ;;  %v649_v38 = vsub.f32 %v469_v40, %v613_v49 }
 0x15e   : > { %v538_v60 = vmul.f32 0.055555556, %v502_v41  ;;  %v609_v47 = vmul.f32 18.0, %v573_v24  ;;  %v545_v41 = vmul.f32 0.055555556, %v509_v25  ;;  %v512_v24 = vadd.f32 0.5, %v476_v15 }
 0x15f   : > { %v639_v52 = vsub.f32 %v459_v26, %v603_v33  ;;  %v612_v31 = vmul.f32 18.0, %v576_v0  ;;  %v507_v33 = vadd.f32 0.5, %v471_v7  ;;  %v17255_v0 = vadd.s32 136, %v17042_v59 }
 0x160   : > { %v574_v17 = vfloor.f32 %v538_v60  ;;  %v645_v19 = vsub.f32 %v465_v22, %v609_v47  ;;  %v542_v22 = vmul.f32 0.055555556, %v506_v61  ;;  %v17258_v47 = vadd.s32 176, %v17042_v59 }
 0x161   : > { %13602 = vmatmul.mubr.msk.bf16.gmra.mrb[32].mxu1 %vm20540_vm0, %v12371_v44  ;;  %v17121_v44 = vadd.s32 112, %v17042_v59  ;;  %vm675_vm1 = vcmp.gt.f32.partialorder %v639_v52, 0.5  ;;  %vm711_vm3 = vcmp.lt.f32.partialorder %v639_v52, 16.5  ;;  %v648_v48 = vsub.f32 %v468_v14, %v612_v31 }
 0x162   : > { %13759 = vmatprep.mubr.msk.bf16.mxu1 %vm20540_vm0, %v4910_v9  ;;  %v539_v9 = vmul.f32 0.055555556, %v503_v43  ;;  %vm681_vm12 = vcmp.gt.f32.partialorder %v645_v19, 0.5  ;;  %vm17178_vm13 = vmand %vm675_vm1, %vm711_vm3  ;;  %vm717_vm6 = vcmp.lt.f32.partialorder %v645_v19, 16.5  ;;  %v578_v56 = vfloor.f32 %v542_v22 }
 0x163   : > { %v472_v16 = vcvt.s32.f32 %v17121_v44  ;;  %vm17195_vm1 = vmand %vm678_vm9, %vm714_vm11  ;;  %vm684_vm3 = vcmp.gt.f32.partialorder %v648_v48, 0.5  ;;  %vm720_vm2 = vcmp.lt.f32.partialorder %v648_v48, 16.5  ;;  %vm685_vm11 = vcmp.gt.f32.partialorder %v649_v38, 0.5 }
 0x164   : > { %13754 = vmatmul.mubr.msk.bf16.gmra.mrb[32].mxu0 %vm20540_vm0, %v4395_v4  ;;  %v572_v4 = vfloor.f32 %v536_v21  ;;  %v575_v13 = vfloor.f32 %v539_v9  ;;  %v610_v21 = vmul.f32 18.0, %v574_v17  ;;  %vm721_vm0 = vcmp.lt.f32.partialorder %v649_v38, 16.5  ;;  %vm17220_vm10 = vmand %vm684_vm3, %vm720_vm2 }
 0x165   : > { %v508_v46 = vadd.f32 0.5, %v472_v16  ;;  %v581_v43 = vfloor.f32 %v545_v41  ;;  %v17230_v8 = vsel %vm17178_vm13, 1.0, %v20552_v12  ;;  %v543_v9 = vmul.f32 0.055555556, %v507_v33  ;;  %vm757_vm5 = vmand %vm685_vm11, %vm721_vm0 }
 0x166   : > { %v608_v62 = vmul.f32 18.0, %v572_v4  ;;  %v611_v42 = vmul.f32 18.0, %v575_v13  ;;  %v646_v36 = vsub.f32 %v466_v1, %v610_v21  ;;  %v17192_v1 = vadd.s32 128, %v17042_v59  ;;  %20859 = vst [vmem:[#allocation12_spill] sm:$0xff] %v17230_v8 }
 0x167   : > { %v17245_v52 = vsel %vm17195_vm1, 1.0, %v20552_v12  ;;  %v17263_v17 = vsel %vm17213_vm7, 1.0, %v20552_v12  ;;  %v617_v53 = vmul.f32 18.0, %v581_v43  ;;  %v548_v13 = vmul.f32 0.055555556, %v512_v24 }
 0x168   : > { %v644_v26 = vsub.f32 %v464_v30, %v608_v62  ;;  %v544_v30 = vmul.f32 0.055555556, %v508_v46  ;;  %v647_v57 = vsub.f32 %v467_v28, %v611_v42  ;;  %vm718_vm9 = vcmp.lt.f32.partialorder %v646_v36, 16.5  ;;  %20863 = vst [vmem:[#allocation14_spill] sm:$0xff] %v17245_v52  ;;  %20865 = vst [vmem:[#allocation21_spill] sm:$0xff] %v17263_v17 }
 0x169   : > { %v474_v60 = vcvt.s32.f32 %v17192_v1  ;;  %v614_v62 = vmul.f32 18.0, %v578_v56  ;;  %v477_v46 = vcvt.s32.f32 %v17218_v35  ;;  %v17277_v31 = vadd.s32 160, %v17042_v59 }
 0x16a   : > { %vm680_vm4 = vcmp.gt.f32.partialorder %v644_v26, 0.5  ;;  %vm716_vm8 = vcmp.lt.f32.partialorder %v644_v26, 16.5  ;;  %v580_v14 = vfloor.f32 %v544_v30  ;;  %v17272_v26 = vsel %vm17220_vm10, 1.0, %v20552_v12 }
 0x16b   : > { %vm17184_vm14 = vmand %vm680_vm4, %vm716_vm8  ;;  %vm682_vm8 = vcmp.gt.f32.partialorder %v646_v36, 0.5  ;;  %20866 = vst [vmem:[#allocation32_spill] sm:$0xff] %v17272_v26  ;;  %v510_v63 = vadd.f32 0.5, %v474_v60  ;;  %v650_v61 = vsub.f32 %v470_v37, %v614_v62  ;;  %v579_v19 = vfloor.f32 %v543_v9 }
 0x16c   : > { %vm17208_vm4 = vmand %vm681_vm12, %vm717_vm6  ;;  %v616_v4 = vmul.f32 18.0, %v580_v14  ;;  %vm683_vm6 = vcmp.gt.f32.partialorder %v647_v57, 0.5  ;;  %vm719_vm12 = vcmp.lt.f32.partialorder %v647_v57, 16.5  ;;  %v17235_v32 = vsel %vm17184_vm14, 1.0, %v20552_v12 }
 0x16d   : > { %20860 = vst [vmem:[#allocation13_spill] sm:$0xff] %v17235_v32  ;;  %vm17238_vm2 = vmand %vm682_vm8, %vm718_vm9  ;;  %v17250_v10 = vsel %vm17208_vm4, 1.0, %v20552_v12  ;;  %v20550_v49 = vcvt.s32.f32 %v17255_v0  ;;  %v20549_v39 = vcvt.s32.f32 %v17258_v47  ;;  %v17295_v30 = vadd.s32 184, %v17042_v59 }
 0x16e   : > { %20864 = vst [vmem:[#allocation19_spill] sm:$0xff] %v17250_v10  ;;  %vm755_vm13 = vmand %vm683_vm6, %vm719_vm12  ;;  %v652_v3 = vsub.f32 %v472_v16, %v616_v4  ;;  %v17282_v44 = vsel %vm17238_vm2, 1.0, %v20552_v12  ;;  %v17285_v16 = vsel %vm757_vm5, 1.0, %v20552_v12  ;;  %v653_v25 = vsub.f32 %v473_v6, %v617_v53 }
 0x16f   : > { %20867 = vst [vmem:[#allocation33_spill] sm:$0xff] %v17282_v44  ;;  %20868 = vst [vmem:[#allocation34_spill] sm:$0xff] %v17285_v16  ;;  %v17290_v21 = vsel %vm755_vm13, 1.0, %v20552_v12  ;;  %v513_v54 = vadd.f32 0.5, %v477_v46  ;;  %v584_v37 = vfloor.f32 %v548_v13  ;;  %v546_v42 = vmul.f32 0.055555556, %v510_v63 }
 0x170   : > { %20869 = vst [vmem:[#allocation15_spill] sm:$0xff] %v17290_v21  ;;  %vm688_vm0 = vcmp.gt.f32.partialorder %v652_v3, 0.5  ;;  %vm724_vm7 = vcmp.lt.f32.partialorder %v652_v3, 16.5  ;;  %v20548_v48 = vcvt.s32.f32 %v17277_v31  ;;  %v17303_v22 = vadd.s32 168, %v17042_v59 }
 0x171   : > { %vm686_vm14 = vcmp.gt.f32.partialorder %v650_v61, 0.5  ;;  %vm722_vm15 = vcmp.lt.f32.partialorder %v650_v61, 16.5  ;;  %v615_v27 = vmul.f32 18.0, %v579_v19  ;;  %v17306_v36 = vadd.s32 208, %v17042_v59  ;;  %vm17324_vm3 = vmand %vm688_vm0, %vm724_vm7 }
 0x172   : > { %v511_v51 = vadd.f32 0.5, %v20550_v49  ;;  %v516_v6 = vadd.f32 0.5, %v20549_v39  ;;  %v20547_v38 = vcvt.s32.f32 %v17295_v30  ;;  %vm689_vm1 = vcmp.gt.f32.partialorder %v653_v25, 0.5  ;;  %vm758_vm8 = vmand %vm686_vm14, %vm722_vm15 }
 0x173   : > { %v549_v14 = vmul.f32 0.055555556, %v513_v54  ;;  %v17317_v41 = vadd.s32 216, %v17042_v59  ;;  %v620_v40 = vmul.f32 18.0, %v584_v37  ;;  %v582_v56 = vfloor.f32 %v546_v42 }
 0x174   : > { %v514_v33 = vadd.f32 0.5, %v20548_v48  ;;  %v20546_v28 = vcvt.s32.f32 %v17303_v22  ;;  %vm725_vm4 = vcmp.lt.f32.partialorder %v653_v25, 16.5  ;;  %v651_v4 = vsub.f32 %v471_v7, %v615_v27 }
 0x175   : > { %v20545_v43 = vcvt.s32.f32 %v17306_v36  ;;  %v17337_v34 = vadd.s32 240, %v17042_v59  ;;  %v547_v55 = vmul.f32 0.055555556, %v511_v51  ;;  %v552_v62 = vmul.f32 0.055555556, %v516_v6  ;;  %vm761_vm9 = vmand %vm689_vm1, %vm725_vm4 }
 0x176   : > { %v517_v9 = vadd.f32 0.5, %v20547_v38  ;;  %v20544_v3 = vcvt.s32.f32 %v17314_v11  ;;  %v17349_v2 = vsel %vm17324_vm3, 1.0, %v20552_v12  ;;  %v585_v7 = vfloor.f32 %v549_v14 }
 0x177   : > { %20872 = vst [vmem:[#allocation17_spill] sm:$0xff] %v17349_v2  ;;  %v20543_v13 = vcvt.s32.f32 %v17317_v41  ;;  %v20542_v63 = vcvt.s32.f32 %v17320_v23  ;;  %v17359_v54 = vsub.f32 %v476_v15, %v620_v40  ;;  %v618_v37 = vmul.f32 18.0, %v582_v56 }
 0x178   : > { %v550_v42 = vmul.f32 0.055555556, %v514_v33  ;;  %v515_v27 = vadd.f32 0.5, %v20546_v28  ;;  %vm687_vm11 = vcmp.gt.f32.partialorder %v651_v4, 0.5  ;;  %vm723_vm10 = vcmp.lt.f32.partialorder %v651_v4, 16.5 }
 0x179   : > { %v520_v51 = vadd.f32 0.5, %v20545_v43  ;;  %v20551_v61 = vcvt.s32.f32 %v17337_v34  ;;  %v583_v6 = vfloor.f32 %v547_v55  ;;  %v588_v14 = vfloor.f32 %v552_v62  ;;  %vm17387_vm6 = vmand %vm687_vm11, %vm723_vm10 }
 0x17a   : > { %v553_v18 = vmul.f32 0.055555556, %v517_v9  ;;  %v518_v15 = vadd.f32 0.5, %v20544_v3  ;;  %v17371_v57 = vsel %vm758_vm8, 1.0, %v20552_v12  ;;  %v621_v40 = vmul.f32 18.0, %v585_v7 }
 0x17b   : > { %20873 = vst [vmem:[#allocation16_spill] sm:$0xff] %v17371_v57  ;;  %v521_v25 = vadd.f32 0.5, %v20543_v13  ;;  %v519_v56 = vadd.f32 0.5, %v20542_v63  ;;  %v17378_v33 = vsel %vm761_vm9, 1.0, %v20552_v12  ;;  %v586_v29 = vfloor.f32 %v550_v42 }
 0x17c   : > { %20874 = vst [vmem:[#allocation8_spill] sm:$0xff] %v17378_v33  ;;  %v551_v55 = vmul.f32 0.055555556, %v515_v27  ;;  %v17381_v62 = vadd.s32 224, %v17042_v59  ;;  %vm692_vm12 = vcmp.gt.f32.partialorder %v17359_v54, 0.5  ;;  %vm728_vm2 = vcmp.lt.f32.partialorder %v17359_v54, 16.5 }
 0x17d   : > { %v654_v63 = vsub.f32 %v474_v60, %v618_v37  ;;  %v556_v42 = vmul.f32 0.055555556, %v520_v51  ;;  %v524_v27 = vadd.f32 0.5, %v20551_v61  ;;  %v619_v3 = vmul.f32 18.0, %v583_v6  ;;  %vm17443_vm3 = vmand %vm692_vm12, %vm728_vm2 }
 0x17e   : > { %v624_v43 = vmul.f32 18.0, %v588_v14  ;;  %v589_v4 = vfloor.f32 %v553_v18  ;;  %v554_v28 = vmul.f32 0.055555556, %v518_v15  ;;  %v657_v48 = vsub.f32 %v477_v46, %v621_v40 }
 0x17f   : > { %v557_v39 = vmul.f32 0.055555556, %v521_v25  ;;  %v555_v49 = vmul.f32 0.055555556, %v519_v56  ;;  %v17404_v1 = vadd.s32 248, %v17042_v59  ;;  %v17411_v37 = vsel %vm17387_vm6, 1.0, %v20552_v12 }
 0x180   : > { %20877 = vst [vmem:[#allocation18_spill] sm:$0xff] %v17411_v37  ;;  %v622_v51 = vmul.f32 18.0, %v586_v29  ;;  %v587_v6 = vfloor.f32 %v551_v55  ;;  %vm690_vm5 = vcmp.gt.f32.partialorder %v654_v63, 0.5  ;;  %v592_v18 = vfloor.f32 %v556_v42 }
 0x181   : > { %v560_v35 = vmul.f32 0.055555556, %v524_v27  ;;  %v17415_v46 = vadd.s32 232, %v17042_v59  ;;  %vm726_vm13 = vcmp.lt.f32.partialorder %v654_v63, 16.5  ;;  %v20878_v15 = vcvt.s32.f32 %v17255_v0 }
 0x182   : > { %v625_v25 = vmul.f32 18.0, %v589_v4  ;;  %v590_v56 = vfloor.f32 %v554_v28  ;;  %v20879_v7 = vcvt.s32.f32 %v17258_v47  ;;  %v593_v12 = vfloor.f32 %v557_v39  ;;  %vm17451_vm9 = vmand %vm690_vm5, %vm726_vm13 }
 0x183   : > { %v655_v40 = vsub.f32 %v20878_v15, %v619_v3  ;;  %v591_v29 = vfloor.f32 %v555_v49  ;;  %v20560_v55 = vcvt.s32.f32 %v17404_v1  ;;  %vm693_vm0 = vcmp.gt.f32.partialorder %v657_v48, 0.5 }
 0x184   : > { %v660_v61 = vsub.f32 %v20879_v7, %v624_v43  ;;  %v20880_v42 = vcvt.s32.f32 %v17277_v31  ;;  %v623_v14 = vmul.f32 18.0, %v587_v6  ;;  %v20881_v37 = vcvt.s32.f32 %v17381_v62 }
 0x185   : > { %vm729_vm7 = vcmp.lt.f32.partialorder %v657_v48, 16.5  ;;  %v628_v0 = vmul.f32 18.0, %v592_v18  ;;  %v596_v28 = vfloor.f32 %v560_v35  ;;  %v20559_v47 = vcvt.s32.f32 %v17415_v46 }
 0x186   : > { %v658_v27 = vsub.f32 %v20880_v42, %v622_v51  ;;  %v522_v33 = vadd.f32 0.5, %v20881_v37  ;;  %vm691_vm14 = vcmp.gt.f32.partialorder %v655_v40, 0.5  ;;  %vm727_vm15 = vcmp.lt.f32.partialorder %v655_v40, 16.5  ;;  %vm17461_vm10 = vmand %vm693_vm0, %vm729_vm7  ;;  %v17591_v40 = vld [vmem:[%s20455_s2] ss:$0 sm:$0xff] }
 0x187   : > { %v20882_v49 = vcvt.s32.f32 %v17295_v30  ;;  %v626_v31 = vmul.f32 18.0, %v590_v56  ;;  %vm696_vm1 = vcmp.gt.f32.partialorder %v660_v61, 0.5  ;;  %v629_v4 = vmul.f32 18.0, %v593_v12  ;;  %vm17475_vm12 = vmand %vm691_vm14, %vm727_vm15 }
 0x188   : > { %v627_v37 = vmul.f32 18.0, %v591_v29  ;;  %v525_v51 = vadd.f32 0.5, %v20560_v55  ;;  %vm732_vm4 = vcmp.lt.f32.partialorder %v660_v61, 16.5  ;;  %vm694_vm8 = vcmp.gt.f32.partialorder %v658_v27, 0.5 }
 0x189   : > { %v661_v39 = vsub.f32 %v20882_v49, %v625_v25  ;;  %v20885_v30 = vcvt.s32.f32 %v17303_v22  ;;  %v558_v12 = vmul.f32 0.055555556, %v522_v33  ;;  %vm730_vm11 = vcmp.lt.f32.partialorder %v658_v27, 16.5  ;;  %vm17490_vm5 = vmand %vm696_vm1, %vm732_vm4 }
 0x18a   : > { %v20888_v25 = vcvt.s32.f32 %v17306_v36  ;;  %v632_v56 = vmul.f32 18.0, %v596_v28  ;;  %v523_v7 = vadd.f32 0.5, %v20559_v47  ;;  %v20891_v63 = vcvt.s32.f32 %v17314_v11  ;;  %vm17498_vm7 = vmand %vm694_vm8, %vm730_vm11 }
 0x18b   : > { %v659_v35 = vsub.f32 %v20885_v30, %v623_v14  ;;  %vm697_vm6 = vcmp.gt.f32.partialorder %v661_v39, 0.5  ;;  %v17468_v14 = vadd.s32 272, %v17042_v59  ;;  %v17471_v36 = vadd.s32 256, %v17042_v59 }
 0x18c   : > { %v664_v54 = vsub.f32 %v20888_v25, %v628_v0  ;;  %v662_v33 = vsub.f32 %v20891_v63, %v626_v31  ;;  %vm733_vm2 = vcmp.lt.f32.partialorder %v661_v39, 16.5  ;;  %v20894_v48 = vcvt.s32.f32 %v17317_v41 }
 0x18d   : > { %v20895_v0 = vcvt.s32.f32 %v17320_v23  ;;  %v561_v28 = vmul.f32 0.055555556, %v525_v51  ;;  %v20896_v49 = vmov 0.0   ;;  %vm695_vm13 = vcmp.gt.f32.partialorder %v659_v35, 0.5  ;;  %vm17508_vm1 = vmand %vm697_vm6, %vm733_vm2 }
 0x18e   : > { %v665_v42 = vsub.f32 %v20894_v48, %v629_v4  ;;  %v17486_v31 = vsel %vm17443_vm3, 1.0, %v20896_v49  ;;  %vm731_vm0 = vcmp.lt.f32.partialorder %v659_v35, 16.5  ;;  %v594_v30 = vfloor.f32 %v558_v12 }
 0x18f   : > { %v663_v11 = vsub.f32 %v20895_v0, %v627_v37  ;;  %20897 = vst [vmem:[#allocation35_spill] sm:$0xff] %v17486_v31  ;;  %vm736_vm15 = vcmp.lt.f32.partialorder %v664_v54, 16.5  ;;  %v20902_v4 = vcvt.s32.f32 %v17337_v34  ;;  %v559_v37 = vmul.f32 0.055555556, %v523_v7  ;;  %vm17518_vm8 = vmand %vm695_vm13, %vm731_vm0 }
 0x190   : > { %v20558_v27 = vcvt.s32.f32 %v17468_v14  ;;  %v20557_v12 = vcvt.s32.f32 %v17471_v36  ;;  %vm701_vm11 = vcmp.gt.f32.partialorder %v665_v42, 0.5  ;;  %vm737_vm14 = vcmp.lt.f32.partialorder %v665_v42, 16.5 }
 0x191   : > { %v668_v61 = vsub.f32 %v20902_v4, %v632_v56  ;;  %v597_v39 = vfloor.f32 %v561_v28  ;;  %vm20907_vm2 = vcmp.gt.f32.partialorder %v664_v54, 0.5  ;;  %vm735_vm4 = vcmp.lt.f32.partialorder %v663_v11, 16.5  ;;  %v17634_v54 = vld [vmem:[%s20456_s3] ss:$0 sm:$0xff] }
 0x192   : > { %vm17526_vm3 = vmand %vm20907_vm2, %vm736_vm15  ;;  %v630_v63 = vmul.f32 18.0, %v594_v30  ;;  %v17531_v35 = vadd.s32 280, %v17042_v59  ;;  %v17534_v48 = vadd.s32 264, %v17042_v59  ;;  %v17539_v0 = vsel %vm17451_vm9, 1.0, %v20896_v49 }
 0x193   : > { %20910 = vst [vmem:[#allocation20_spill] sm:$0xff] %v17539_v0  ;;  %vm20911_vm13 = vcmp.lt.f32.partialorder %v662_v33, 16.5  ;;  %vm20912_vm0 = vcmp.gt.f32.partialorder %v662_v33, 0.5  ;;  %vm704_vm15 = vcmp.gt.f32.partialorder %v668_v61, 0.5  ;;  %vm740_vm2 = vcmp.lt.f32.partialorder %v668_v61, 16.5  ;;  %vm17559_vm9 = vmand %vm701_vm11, %vm737_vm14 }
 0x194   : > { %vm17543_vm6 = vmand %vm20912_vm0, %vm20911_vm13  ;;  %v595_v28 = vfloor.f32 %v559_v37  ;;  %v17550_v30 = vsel %vm17461_vm10, 1.0, %v20896_v49  ;;  %v17555_v59 = vsel %vm17475_vm12, 1.0, %v20896_v49  ;;  %v528_v33 = vadd.f32 0.5, %v20558_v27 }
 0x195   : > { %20915 = vst [vmem:[#allocation9_spill] sm:$0xff] %v17550_v30  ;;  %20916 = vst [vmem:[#allocation22_spill] sm:$0xff] %v17555_v59  ;;  %v526_v4 = vadd.f32 0.5, %v20557_v12  ;;  %v17570_v22 = vsel %vm17490_vm5, 1.0, %v20896_v49  ;;  %v17575_v29 = vsel %vm17498_vm7, 1.0, %v20896_v49  ;;  %v17580_v42 = vsel %vm17508_vm1, 1.0, %v20896_v49 }
 0x196   : > { %20919 = vst [vmem:[#allocation23_spill] sm:$0xff] %v17570_v22  ;;  %20920 = vst [vmem:[#allocation24_spill] sm:$0xff] %v17575_v29  ;;  %vm20922_vm10 = vcmp.gt.f32.partialorder %v663_v11, 0.5  ;;  %v633_v12 = vmul.f32 18.0, %v597_v39  ;;  %v17596_v23 = vsel %vm17518_vm8, 1.0, %v20896_v49  ;;  %v20928_v11 = vcvt.s32.f32 %v17381_v62 }
 0x197   : > { %20921 = vst [vmem:[#allocation25_spill] sm:$0xff] %v17580_v42  ;;  %vm17584_vm12 = vmand %vm20922_vm10, %vm735_vm4  ;;  %v17614_v34 = vsel %vm17526_vm3, 1.0, %v20896_v49  ;;  %v17619_v61 = vsel %vm17543_vm6, 1.0, %v20896_v49  ;;  %v17624_v62 = vsel %vm17559_vm9, 1.0, %v20896_v49  ;;  %v564_v39 = vmul.f32 0.055555556, %v528_v33 }
 0x198   : > { %20925 = vst [vmem:[#allocation26_spill] sm:$0xff] %v17596_v23  ;;  %vm17599_vm5 = vmand %vm704_vm15, %vm740_vm2  ;;  %v17605_v27 = vsub.f32 %v20928_v11, %v630_v63  ;;  %v631_v63 = vmul.f32 18.0, %v595_v28  ;;  %v562_v23 = vmul.f32 0.055555556, %v526_v4  ;;  %v17639_v15 = vsel %vm17584_vm12, 1.0, %v20896_v49 }
 0x199   : > { %20929 = vst [vmem:[#allocation27_spill] sm:$0xff] %v17614_v34  ;;  %20930 = vst [vmem:[#allocation30_spill] sm:$0xff] %v17619_v61  ;;  %v17644_v28 = vsel %vm17599_vm5, 1.0, %v20896_v49  ;;  %v20934_v33 = vcvt.s32.f32 %v17404_v1  ;;  %v20935_v34 = vcvt.s32.f32 %v17531_v35  ;;  %v20937_v1 = vcvt.s32.f32 %v17415_v46 }
 0x19a   : > { %20931 = vst [vmem:[#allocation29_spill] sm:$0xff] %v17624_v62  ;;  %20932 = vst [vmem:[#allocation31_spill] sm:$0xff] %v17639_v15  ;;  %vm702_vm7 = vcmp.gt.f32.partialorder %v17605_v27, 0.5  ;;  %v20936_v15 = vcvt.s32.f32 %v17534_v48  ;;  %vm738_vm14 = vcmp.lt.f32.partialorder %v17605_v27, 16.5  ;;  %v598_v59 = vfloor.f32 %v562_v23 }
 0x19b   : > { %20933 = vst [vmem:[#allocation36_spill] sm:$0xff] %v17644_v28  ;;  %v669_v4 = vsub.f32 %v20934_v33, %v633_v12  ;;  %v529_v37 = vadd.f32 0.5, %v20935_v34  ;;  %v667_v12 = vsub.f32 %v20937_v1, %v631_v63  ;;  %v600_v33 = vfloor.f32 %v564_v39  ;;  %vm17681_vm11 = vmand %vm702_vm7, %vm738_vm14 }
 0x19c   : > { %v527_v29 = vadd.f32 0.5, %v20936_v15  ;;  %vm20940_vm0 = vcmask 130048   ;;  %vm5182_vm2 = vsmask.f32 1280  ;;  %vm20952_vm12 = vcmask 1040384  }
 0x19d   : > { %vm705_vm1 = vcmp.gt.f32.partialorder %v669_v4, 0.5  ;;  %vm741_vm3 = vcmp.lt.f32.partialorder %v669_v4, 16.5  ;;  %vm703_vm4 = vcmp.gt.f32.partialorder %v667_v12, 0.5  ;;  %vm739_vm8 = vcmp.lt.f32.partialorder %v667_v12, 16.5  ;;  %vm20943_vm15 = vmmov %vm20940_vm0 }
 0x19e   : > { %v563_v30 = vmul.f32 0.055555556, %v527_v29  ;;  %v636_v39 = vmul.f32 18.0, %v600_v33  ;;  %vm777_vm6 = vmand %vm705_vm1, %vm741_vm3  ;;  %v17706_v12 = vsel %vm17681_vm11, 1.0, %v20896_v49 }
 0x19f   : > { %vm775_vm13 = vmand %vm703_vm4, %vm739_vm8  ;;  %20941 = vst [vmem:[#allocation37_spill] sm:$0xff] %v17706_v12 }
 0x1a0   : > { %v599_v0 = vfloor.f32 %v563_v30  ;;  %vm20949_vm9 = vmmov %vm20940_vm0 }
 0x1a1   : > { %vm20950_vm10 = vmmov %vm20940_vm0 }
 0x1a2   : > { %vm20953_vm5 = vmmov %vm20940_vm0 }
 0x1a3   : > { %vm20954_vm7 = vmmov %vm20952_vm12 }
 0x1a4   : > { %vm20955_vm14 = vmmov %vm20940_vm0 }
 0x1a5   : > { %vm20956_vm1 = vmmov %vm20940_vm0 }
 0x1a6   : > { %vm20957_vm3 = vmmov %vm20940_vm0 }
 0x1a7   : > { %vm20959_vm4 = vmmov %vm20954_vm7 }
 0x1a8   : > { %vm20961_vm8 = vmmov %vm20940_vm0 }
 0x1a9   : > { %vm20962_vm11 = vmmov %vm20959_vm4 }
 0x1d4   : > { %v17331_v5 = vpop.f32.mrb[0].mxu1 }
 0x1d5   : > { %v17339_v24 = vpop.f32.mrb[1].mxu1 }
 0x1d6   : > { %v17344_v53 = vpop.f32.mrb[2].mxu1 }
 0x1d7   : > { %v17353_v19 = vpop.f32.mrb[3].mxu1 }
 0x1dc   : > { %v17383_v9 = vpop.f32.mrb[4].mxu1 }
 0x1dd   : > { %v17397_v13 = vpop.f32.mrb[5].mxu1 }
 0x1de   : > { %v17399_v38 = vpop.f32.mrb[6].mxu1 }
 0x1df   : > { %v17406_v60 = vpop.f32.mrb[7].mxu1 }
 0x1e4   : > { %v17426_v57 = vpop.f32.mrb[8].mxu1 }
 0x1e5   : > { %v17429_v43 = vpop.f32.mrb[9].mxu1 }
 0x1e6   : > { %v17433_v3 = vpop.f32.mrb[10].mxu1 }
 0x1e7   : > { %v17437_v6 = vpop.f32.mrb[11].mxu1 }
 0x1ec   : > { %v17494_v41 = vpop.f32.mrb[12].mxu1 }
 0x1ed   : > { %v17504_v51 = vpop.f32.mrb[13].mxu1 }
 0x1ee   : > { %v17514_v25 = vpop.f32.mrb[14].mxu1 }
 0x1ef   : > { %v17522_v56 = vpop.f32.mrb[15].mxu1 }
 0x1f4   : > { %v17609_v55 = vpop.f32.mrb[16].mxu1 }
 0x1f5   : > { %v17626_v11 = vpop.f32.mrb[17].mxu1 }
 0x1f6   : > { %v17628_v42 = vpop.f32.mrb[18].mxu1 }
 0x1f7   : > { %v13723_v47 = vpop.f32.mrb[0].mxu0 }
 0x1f8   : > { %v14453_v7 = vadd.f32 %v13723_v47, %v17331_v5  ;;  %v4490_v61 = vpop.f32.mrb[1].mxu0  ;;  %v17648_v5 = vpop.f32.mrb[19].mxu1 }
 0x1f9   : > { %v14454_v47 = vadd.f32 %v4490_v61, %v17339_v24  ;;  %v13724_v62 = vpop.f32.mrb[2].mxu0 }
 0x1fa   : > { %v4678_v18 = vmul.f32 %v14453_v7, %v17591_v40  ;;  %v14455_v28 = vadd.f32 %v13724_v62, %v17344_v53  ;;  %v4493_v22 = vpop.f32.mrb[3].mxu0  ;;  %v565_v7 = vmul.f32 0.055555556, %v529_v37  ;;  %v20573_v37 = vshll.u32 %v17054_v50, 16 }
 0x1fb   : > { %v4676_v24 = vmul.f32 %v14454_v47, %v17591_v40  ;;  %v14456_v61 = vadd.f32 %v4493_v22, %v17353_v19  ;;  %v634_v47 = vmul.f32 18.0, %v598_v59 }
 0x1fc   : > { %v4721_v34 = vadd.f32 %v17634_v54, %v4678_v18  ;;  %v4679_v15 = vmul.f32 %v14455_v28, %v17591_v40 }
 0x1fd   : > { %v4719_v53 = vadd.f32 %v17634_v54, %v4676_v24  ;;  %v4677_v62 = vmul.f32 %v14456_v61, %v17591_v40  ;;  %v20579_v24 = vshrl.u32 %v17054_v50, 16 }
 0x1fe   : > { %v4757_v46 = vmax.f32 %v4721_v34, 0.0  ;;  %v4722_v63 = vadd.f32 %v17634_v54, %v4679_v15  ;;  %v601_v15 = vfloor.f32 %v565_v7 }
 0x1ff   : > { %v4755_v19 = vmax.f32 %v4719_v53, 0.0  ;;  %v4720_v22 = vadd.f32 %v17634_v54, %v4677_v62  ;;  %v13727_v23 = vpop.f32.mrb[4].mxu0 }
 0x200   : > { %v4758_v28 = vmax.f32 %v4722_v63, 0.0  ;;  %v14457_v18 = vadd.f32 %v13727_v23, %v17383_v9  ;;  %v4506_v1 = vpop.f32.mrb[5].mxu0  ;;  %v4793_v53 = vmul.f32 %v4757_v46, %v17137_v20 }
 0x201   : > { %v4756_v29 = vmax.f32 %v4720_v22, 0.0  ;;  %v14458_v61 = vadd.f32 %v4506_v1, %v17397_v13  ;;  %v13728_v34 = vpop.f32.mrb[6].mxu0  ;;  %v4791_v13 = vmul.f32 %v4755_v19, %v17143_v45  ;;  %v5194_v19 = vrot.slane %v20579_v24, 6 }
 0x202   : > { %v4794_v62 = vmul.f32 %v4758_v28, %v17204_v58  ;;  %v4682_v59 = vmul.f32 %v14457_v18, %v17591_v40  ;;  %v14459_v33 = vadd.f32 %v13728_v34, %v17399_v38  ;;  %v4509_v9 = vpop.f32.mrb[7].mxu0 }
 0x203   : > { %v4792_v30 = vmul.f32 %v4756_v29, %v17230_v8  ;;  %v4680_v7 = vmul.f32 %v14458_v61, %v17591_v40  ;;  %v14460_v46 = vadd.f32 %v4509_v9, %v17406_v60  ;;  %v5197_v60 = vrot.slane %v20573_v37, 7 }
 0x204   : > { %v4828_v38 = vpack.c.bf16 %v4794_v62, %v4793_v53  ;;  %v4725_v22 = vadd.f32 %v17634_v54, %v4682_v59  ;;  %v4683_v27 = vmul.f32 %v14459_v33, %v17591_v40  ;;  %v17709_v29 = vsel %vm777_vm6, 1.0, %v20896_v49  ;;  %vm20964_vm6 = vmmov %vm20940_vm0 }
 0x205   : > { %v4827_v23 = vpack.c.bf16 %v4792_v30, %v4791_v13  ;;  %v4723_v28 = vadd.f32 %v17634_v54, %v4680_v7  ;;  %v4681_v18 = vmul.f32 %v14460_v46, %v17591_v40  ;;  %20942 = vst [vmem:[#allocation38_spill] sm:$0xff] %v17709_v29  ;;  %v17714_v62 = vsel %vm775_vm13, 1.0, %v20896_v49  ;;  %vm20965_vm13 = vmmov %vm20940_vm0 }
 0x206   : > { %4846 = vst.msk [vmem:[#allocation2 + $0x18] sm:$0xff] %vm20940_vm0, %v4828_v38  ;;  %v4761_v4 = vmax.f32 %v4725_v22, 0.0  ;;  %v4726_v1 = vadd.f32 %v17634_v54, %v4683_v27  ;;  %20944 = vst [vmem:[#allocation39_spill] sm:$0xff] %v17714_v62  ;;  %v20945_v59 = vcvt.s32.f32 %v17468_v14  ;;  %v20946_v30 = vcvt.s32.f32 %v17471_v36 }
 0x207   : > { %4845 = vst.msk [vmem:[#allocation2 + $0x10] sm:$0xff] %vm20943_vm15, %v4827_v23  ;;  %v4759_v61 = vmax.f32 %v4723_v28, 0.0  ;;  %v4724_v34 = vadd.f32 %v17634_v54, %v4681_v18  ;;  %v13731_v53 = vpop.f32.mrb[8].mxu0  ;;  %v637_v46 = vmul.f32 18.0, %v601_v15  ;;  %v635_v23 = vmul.f32 18.0, %v599_v0  ;;  %vm20967_vm15 = vmmov %vm20959_vm4 }
 0x208   : > { %v17718_v33 = vsub.f32 %v20945_v59, %v636_v39  ;;  %v4762_v9 = vmax.f32 %v4726_v1, 0.0  ;;  %v14461_v63 = vadd.f32 %v13731_v53, %v17426_v57  ;;  %v4522_v13 = vpop.f32.mrb[9].mxu0  ;;  %v17723_v7 = vsub.f32 %v20946_v30, %v634_v47 }
 0x209   : > { %v4760_v38 = vmax.f32 %v4724_v34, 0.0  ;;  %v14462_v22 = vadd.f32 %v4522_v13, %v17429_v43  ;;  %v13732_v27 = vpop.f32.mrb[10].mxu0  ;;  %v17726_v28 = vor.u32 %v5197_v60, %v5194_v19  ;;  %v4797_v14 = vmul.f32 %v4761_v4, %v17235_v32 }
 0x20a   : > { %v4798_v39 = vmul.f32 %v4762_v9, %v17250_v10  ;;  %v4686_v18 = vmul.f32 %v14461_v63, %v17591_v40  ;;  %v14463_v57 = vadd.f32 %v13732_v27, %v17433_v3  ;;  %v4525_v1 = vpop.f32.mrb[11].mxu0  ;;  %v4795_v36 = vmul.f32 %v4759_v61, %v17245_v52 }
 0x20b   : > { %v4796_v47 = vmul.f32 %v4760_v38, %v17263_v17  ;;  %v4684_v15 = vmul.f32 %v14462_v22, %v17591_v40  ;;  %v14464_v43 = vadd.f32 %v4525_v1, %v17437_v6  ;;  %v20947_v4 = vcvt.s32.f32 %v17531_v35  ;;  %v17765_v1 = vld [vmem:[%s20457_s4 + $0x10] sm:$0xff]  }
 0x20c   : > { %v4830_v0 = vpack.c.bf16 %v4798_v39, %v4797_v14  ;;  %v4729_v19 = vadd.f32 %v17634_v54, %v4686_v18  ;;  %v4687_v60 = vmul.f32 %v14463_v57, %v17591_v40  ;;  %v20948_v9 = vcvt.s32.f32 %v17534_v48 }
 0x20d   : > { %v17740_v34 = vsub.f32 %v20947_v4, %v637_v46  ;;  %v4829_v53 = vpack.c.bf16 %v4796_v47, %v4795_v36  ;;  %v4727_v3 = vadd.f32 %v17634_v54, %v4684_v15  ;;  %v4685_v61 = vmul.f32 %v14464_v43, %v17591_v40  ;;  %v17744_v59 = vld [vmem:[#allocation2 + $0x18] sm:$0xff] }
 0x20e   : > { %v17748_v63 = vsub.f32 %v20948_v9, %v635_v23  ;;  %4848 = vst.msk [vmem:[#allocation2 + $0x28] sm:$0xff] %vm20949_vm9, %v4830_v0  ;;  %v4765_v6 = vmax.f32 %v4729_v19, 0.0  ;;  %v4730_v13 = vadd.f32 %v17634_v54, %v4687_v60  ;;  %v17752_v35 = vld [vmem:[#allocation2 + $0x10] sm:$0xff]  ;;  %v4913_v30 = vrot.slane %v17744_v59, 7  ;;  %vm20969_vm9 = vmmov %vm20940_vm0 }
 0x20f   : > { %v20577_v46 = vshrl.u32 %v17744_v59, 16  ;;  %4847 = vst.msk [vmem:[#allocation2 + $0x20] sm:$0xff] %vm20950_vm10, %v4829_v53  ;;  %v4763_v38 = vmax.f32 %v4727_v3, 0.0  ;;  %v4728_v22 = vadd.f32 %v17634_v54, %v4685_v61  ;;  %v13735_v48 = vpop.f32.mrb[12].mxu0  ;;  %v4911_v27 = vrot.slane %v17752_v35, 7  ;;  %vm20971_vm10 = vmmov %vm20959_vm4 }
 0x210   : > { %v20578_v23 = vshrl.u32 %v17752_v35, 16  ;;  %v4801_v14 = vmul.f32 %v4765_v6, %v17272_v26  ;;  %v4766_v39 = vmax.f32 %v4730_v13, 0.0  ;;  %v14465_v18 = vadd.f32 %v13735_v48, %v17494_v41  ;;  %v4538_v57 = vpop.f32.mrb[13].mxu0  ;;  %v15488_v13 = vld [vmem:[%s20457_s4] sm:$0xff]  }
 0x211   : > { %v20575_v36 = vshll.u32 %v17752_v35, 16  ;;  %v4799_v47 = vmul.f32 %v4763_v38, %v17282_v44  ;;  %v4764_v15 = vmax.f32 %v4728_v22, 0.0  ;;  %v14466_v43 = vadd.f32 %v4538_v57, %v17504_v51  ;;  %v13736_v0 = vpop.f32.mrb[14].mxu0 }
 0x212   : > { %v20951_v19 = vrot.slane %v17054_v50, 7  ;;  %v4802_v41 = vmul.f32 %v4766_v39, %v17285_v16  ;;  %v4690_v4 = vmul.f32 %v14465_v18, %v17591_v40  ;;  %v14467_v53 = vadd.f32 %v13736_v0, %v17514_v25  ;;  %v4541_v3 = vpop.f32.mrb[15].mxu0 }
 0x213   : > { %v4914_v61 = vsel %vm20954_vm7, %v4911_v27, %v4913_v30  ;;  %v4800_v51 = vmul.f32 %v4764_v15, %v17290_v21  ;;  %v4688_v9 = vmul.f32 %v14466_v43, %v17591_v40  ;;  %v14468_v6 = vadd.f32 %v4541_v3, %v17522_v56  ;;  %vm20975_vm7 = vmmov %vm20940_vm0 }
 0x214   : > { %v4912_v60 = vsel %vm20952_vm12, %v20951_v19, %v4911_v27  ;;  %v5203_v25 = vrot.slane %v20578_v23, 6  ;;  %v4832_v38 = vpack.c.bf16 %v4802_v41, %v4801_v14  ;;  %v4733_v22 = vadd.f32 %v17634_v54, %v4690_v4  ;;  %vm20973_vm12 = vmmov %vm20940_vm0 }
 0x215   : > { %13760 = vmatmul.mubr.msk.bf16.vlgmr.msra.gmra.mrb[36].mxu1 %vm20953_vm5, %v4912_v60  ;;  %v4691_v48 = vmul.f32 %v14467_v53, %v17591_v40  ;;  %v5206_v56 = vrot.slane %v20575_v36, 7  ;;  %v4831_v27 = vpack.c.bf16 %v4800_v51, %v4799_v47  ;;  %v4731_v39 = vadd.f32 %v17634_v54, %v4688_v9  ;;  %v17796_v57 = vld [vmem:[#allocation2 + $0x28] sm:$0xff]  ;;  %vm20974_vm5 = vmmov %vm20940_vm0 }
 0x216   : > { %13796 = vmatpush3.bf16.msra.mxu1 %v15488_v13  ;;  %13763 = vmatprep.mubr.msk.bf16.mxu1 %vm20955_vm14, %v4914_v61  ;;  %v4689_v18 = vmul.f32 %v14468_v6, %v17591_v40  ;;  %v5212_v15 = vrot.slane %v20577_v46, 6  ;;  %4850 = vst.msk [vmem:[#allocation2 + $0x38] sm:$0xff] %vm20956_vm1, %v4832_v38  ;;  %v4769_v14 = vmax.f32 %v4733_v22, 0.0  ;;  %v17802_v0 = vld [vmem:[#allocation2 + $0x20] sm:$0xff]  ;;  %v4917_v19 = vrot.slane %v17796_v57, 7  ;;  %vm20979_vm14 = vmmov %vm20959_vm4 }
 0x217   : > { %13833 = vmatprep.subr.bf16.mxu1 %v17765_v1  ;;  %v4734_v43 = vadd.f32 %v17634_v54, %v4691_v48  ;;  %v5207_v60 = vor.u32 %v5206_v56, %v5203_v25  ;;  %4849 = vst.msk [vmem:[#allocation2 + $0x30] sm:$0xff] %vm20957_vm3, %v4831_v27  ;;  %v4767_v47 = vmax.f32 %v4731_v39, 0.0  ;;  %v13739_v4 = vpop.f32.mrb[16].mxu0  ;;  %v4915_v53 = vrot.slane %v17802_v0, 7  ;;  %v20958_v25 = vld [vmem:[#allocation16_spill] sm:$0xff]  ;;  %vm20981_vm1 = vmmov %vm20940_vm0 }
 0x218   : > { %v4732_v41 = vadd.f32 %v17634_v54, %v4689_v18  ;;  %v20574_v3 = vshll.u32 %v17744_v59, 16  ;;  %v4805_v61 = vmul.f32 %v4769_v14, %v17349_v2  ;;  %v14469_v9 = vadd.f32 %v13739_v4, %v17609_v55  ;;  %v4554_v6 = vpop.f32.mrb[17].mxu0  ;;  %v20960_v39 = vld [vmem:[#allocation8_spill] sm:$0xff]  ;;  %vm20983_vm3 = vmmov %vm20959_vm4 }
 0x219   : > { %v4770_v51 = vmax.f32 %v4734_v43, 0.0  ;;  %v17813_v13 = vsel %vm5182_vm2, %v17726_v28, %v5207_v60  ;;  %v4803_v38 = vmul.f32 %v4767_v47, %v20958_v25  ;;  %v14470_v48 = vadd.f32 %v4554_v6, %v17626_v11  ;;  %v13740_v56 = vpop.f32.mrb[18].mxu0 }
 0x21a   : > { %v4768_v22 = vmax.f32 %v4732_v41, 0.0  ;;  %v4916_v27 = vsel %vm20959_vm4, %v4913_v30, %v4915_v53  ;;  %v4694_v14 = vmul.f32 %v14469_v9, %v17591_v40  ;;  %v14471_v55 = vadd.f32 %v13740_v56, %v17628_v42  ;;  %v4557_v43 = vpop.f32.mrb[19].mxu0  ;;  %v20963_v41 = vld [vmem:[#allocation18_spill] sm:$0xff]  ;;  %vm20985_vm4 = vmmov %vm20940_vm0 }
 0x21b   : > { %v4806_v18 = vmul.f32 %v4770_v51, %v20960_v39  ;;  %v4918_v47 = vsel %vm20962_vm11, %v4915_v53, %v4917_v19  ;;  %v4692_v4 = vmul.f32 %v14470_v48, %v17591_v40  ;;  %v14472_v6 = vadd.f32 %v4557_v43, %v17648_v5 }
 0x21c   : > { %v4804_v11 = vmul.f32 %v4768_v22, %v20963_v41  ;;  %v5215_v30 = vrot.slane %v20574_v3, 7  ;;  %v4737_v42 = vadd.f32 %v17634_v54, %v4694_v14  ;;  %v4695_v9 = vmul.f32 %v14471_v55, %v17591_v40 }
 0x21d   : > { %13764 = vmatmul.mubr.msk.bf16.gmra.mrb[40].mxu1 %vm20961_vm8, %v4916_v27  ;;  %v4834_v51 = vpack.c.bf16 %v4806_v18, %v4805_v61  ;;  %v20576_v56 = vshrl.u32 %v17802_v0, 16  ;;  %v4735_v53 = vadd.f32 %v17634_v54, %v4692_v4  ;;  %v4693_v22 = vmul.f32 %v14472_v6, %v17591_v40  ;;  %v17838_v48 = vld [vmem:[#allocation2 + $0x38] sm:$0xff]  ;;  %v13591_v61 = vpop.f32.mrb[20].mxu1  ;;  %vm20986_vm8 = vmmov %vm20940_vm0 }
 0x21e   : > { %13767 = vmatprep.mubr.msk.bf16.mxu1 %vm20964_vm6, %v4918_v47  ;;  %v4833_v27 = vpack.c.bf16 %v4804_v11, %v4803_v38  ;;  %v5216_v5 = vor.u32 %v5215_v30, %v5212_v15  ;;  %v4773_v43 = vmax.f32 %v4737_v42, 0.0  ;;  %v4738_v47 = vadd.f32 %v17634_v54, %v4695_v9  ;;  %v17842_v18 = vld [vmem:[#allocation2 + $0x30] sm:$0xff]  ;;  %v2777_v4 = vpop.f32.mrb[21].mxu1 }
 0x21f   : > { %4852 = vst.msk [vmem:[#allocation2 + $0x48] sm:$0xff] %vm20965_vm13, %v4834_v51  ;;  %v5221_v38 = vrot.slane %v20576_v56, 6  ;;  %v4771_v55 = vmax.f32 %v4735_v53, 0.0  ;;  %v4736_v11 = vadd.f32 %v17634_v54, %v4693_v22  ;;  %v13743_v15 = vpop.f32.mrb[20].mxu0  ;;  %v4919_v6 = vrot.slane %v17842_v18, 7  ;;  %v13592_v9 = vpop.f32.mrb[22].mxu1  ;;  %vm20987_vm13 = vmmov %vm20940_vm0 }
 0x220   : > { %4851 = vst.msk [vmem:[#allocation2 + $0x40] sm:$0xff] %vm20940_vm0, %v4833_v27  ;;  %v17851_v30 = vsel %vm5182_vm2, %v5207_v60, %v5216_v5  ;;  %v4809_v51 = vmul.f32 %v4773_v43, %v17486_v31  ;;  %v4774_v42 = vmax.f32 %v4738_v47, 0.0  ;;  %v14473_v37 = vadd.f32 %v13743_v15, %v13591_v61  ;;  %v4570_v3 = vpop.f32.mrb[21].mxu0  ;;  %v20966_v56 = vld [vmem:[#allocation20_spill] sm:$0xff]  ;;  %v2780_v46 = vpop.f32.mrb[23].mxu1  ;;  %v20968_v60 = vld [vmem:[#allocation9_spill] sm:$0xff] }
 0x221   : > { %v20582_v36 = vshll.u32 %v17802_v0, 16  ;;  %v4807_v27 = vmul.f32 %v4771_v55, %v20966_v56  ;;  %v4772_v53 = vmax.f32 %v4736_v11, 0.0  ;;  %v14474_v22 = vadd.f32 %v4570_v3, %v2777_v4  ;;  %v13744_v23 = vpop.f32.mrb[22].mxu0  ;;  %v20972_v11 = vld [vmem:[#allocation22_spill] sm:$0xff] }
 0x222   : > { %v4920_v24 = vsel %vm20967_vm15, %v4917_v19, %v4919_v6  ;;  %v4810_v14 = vmul.f32 %v4774_v42, %v20968_v60  ;;  %v4698_v43 = vmul.f32 %v14473_v37, %v17591_v40  ;;  %v14475_v47 = vadd.f32 %v13744_v23, %v13592_v9  ;;  %v4573_v31 = vpop.f32.mrb[23].mxu0 }
 0x223   : > { %v20970_v61 = vrot.slane %v17838_v48, 7  ;;  %v4808_v15 = vmul.f32 %v4772_v53, %v20972_v11  ;;  %v4696_v3 = vmul.f32 %v14474_v22, %v17591_v40  ;;  %v14476_v4 = vadd.f32 %v4573_v31, %v2780_v46 }
 0x224   : > { %v5224_v19 = vrot.slane %v20582_v36, 7  ;;  %v4836_v42 = vpack.c.bf16 %v4810_v14, %v4809_v51  ;;  %v4741_v37 = vadd.f32 %v17634_v54, %v4698_v43  ;;  %v4699_v23 = vmul.f32 %v14475_v47, %v17591_v40  ;;  %v13595_v51 = vpop.f32.mrb[24].mxu1 }
 0x225   : > { %13768 = vmatmul.mubr.msk.bf16.gmra.mrb[44].mxu1 %vm20969_vm9, %v4920_v24  ;;  %v4922_v55 = vsel %vm20971_vm10, %v4919_v6, %v20970_v61  ;;  %v20583_v24 = vshrl.u32 %v17796_v57, 16  ;;  %v4835_v9 = vpack.c.bf16 %v4808_v15, %v4807_v27  ;;  %v4739_v6 = vadd.f32 %v17634_v54, %v4696_v3  ;;  %vm20991_vm9 = vmmov %vm20983_vm3 }
 0x226   : > { %13771 = vmatprep.mubr.msk.bf16.mxu1 %vm20973_vm12, %v4922_v55  ;;  %v4697_v53 = vmul.f32 %v14476_v4, %v17591_v40  ;;  %v17875_v61 = vld [vmem:[#allocation2 + $0x48] sm:$0xff]  ;;  %v17877_v31 = vor.u32 %v5224_v19, %v5221_v38  ;;  %4854 = vst.msk [vmem:[#allocation2 + $0x58] sm:$0xff] %vm20974_vm5, %v4836_v42  ;;  %v4777_v46 = vmax.f32 %v4741_v37, 0.0  ;;  %v4742_v14 = vadd.f32 %v17634_v54, %v4699_v23  ;;  %v2793_v38 = vpop.f32.mrb[25].mxu1  ;;  %v20976_v19 = vld [vmem:[#allocation23_spill] sm:$0xff]  ;;  %vm20993_vm5 = vmmov %vm20981_vm1 }
 0x227   : > { %v17881_v22 = vld [vmem:[#allocation2 + $0x40] sm:$0xff]  ;;  %v5230_v27 = vrot.slane %v20583_v24, 6  ;;  %4853 = vst.msk [vmem:[#allocation2 + $0x50] sm:$0xff] %vm20975_vm7, %v4835_v9  ;;  %v4775_v47 = vmax.f32 %v4739_v6, 0.0  ;;  %v13747_v15 = vpop.f32.mrb[24].mxu0  ;;  %v13596_v23 = vpop.f32.mrb[26].mxu1  ;;  %vm20995_vm7 = vmmov %vm20983_vm3 }
 0x228   : > { %v4740_v55 = vadd.f32 %v17634_v54, %v4697_v53  ;;  %v4923_v3 = vrot.slane %v17881_v22, 7  ;;  %v17891_v4 = vsel %vm5182_vm2, %v5216_v5, %v17877_v31  ;;  %v4813_v42 = vmul.f32 %v4777_v46, %v20976_v19  ;;  %v4586_v43 = vpop.f32.mrb[25].mxu0  ;;  %v20977_v9 = vld [vmem:[#allocation24_spill] sm:$0xff]  ;;  %v2796_v53 = vpop.f32.mrb[27].mxu1  ;;  %v20980_v5 = vld [vmem:[#allocation25_spill] sm:$0xff] }
 0x229   : > { %v4778_v37 = vmax.f32 %v4742_v14, 0.0  ;;  %v14477_v36 = vadd.f32 %v13747_v15, %v13595_v51  ;;  %v20584_v24 = vshll.u32 %v17796_v57, 16  ;;  %v4811_v6 = vmul.f32 %v4775_v47, %v20977_v9  ;;  %v13748_v60 = vpop.f32.mrb[26].mxu0 }
 0x22a   : > { %v4776_v11 = vmax.f32 %v4740_v55, 0.0  ;;  %v14478_v56 = vadd.f32 %v4586_v43, %v2793_v38  ;;  %v20978_v41 = vrot.slane %v17838_v48, 7  ;;  %v14479_v14 = vadd.f32 %v13748_v60, %v13596_v23  ;;  %v4589_v19 = vpop.f32.mrb[27].mxu0  ;;  %v20984_v55 = vld [vmem:[#allocation26_spill] sm:$0xff] }
 0x22b   : > { %v4814_v39 = vmul.f32 %v4778_v37, %v20980_v5  ;;  %v4702_v46 = vmul.f32 %v14477_v36, %v17591_v40  ;;  %v20982_v51 = vrot.slane %v17875_v61, 7  ;;  %v14480_v38 = vadd.f32 %v4589_v19, %v2796_v53 }
 0x22c   : > { %v4924_v25 = vsel %vm20979_vm14, %v20978_v41, %v4923_v3  ;;  %v4812_v15 = vmul.f32 %v4776_v11, %v20984_v55  ;;  %v4700_v43 = vmul.f32 %v14478_v56, %v17591_v40  ;;  %v5233_v41 = vrot.slane %v20584_v24, 7 }
 0x22d   : > { %13772 = vmatmul.mubr.msk.bf16.gmra.mrb[48].mxu1 %vm20981_vm1, %v4924_v25  ;;  %v4926_v47 = vsel %vm20983_vm3, %v4923_v3, %v20982_v51  ;;  %v4838_v37 = vpack.c.bf16 %v4814_v39, %v4813_v42  ;;  %v4745_v36 = vadd.f32 %v17634_v54, %v4702_v46  ;;  %v4703_v60 = vmul.f32 %v14479_v14, %v17591_v40  ;;  %v17915_v51 = vld [vmem:[#allocation2 + $0x58] sm:$0xff]  ;;  %v13599_v42 = vpop.f32.mrb[28].mxu1  ;;  %vm20997_vm3 = vmmov %vm20985_vm4 }
 0x22e   : > { %13775 = vmatprep.mubr.msk.bf16.mxu1 %vm20985_vm4, %v4926_v47  ;;  %v20585_v25 = vshrl.u32 %v17842_v18, 16  ;;  %v4837_v23 = vpack.c.bf16 %v4812_v15, %v4811_v6  ;;  %v4743_v3 = vadd.f32 %v17634_v54, %v4700_v43  ;;  %v4701_v11 = vmul.f32 %v14480_v38, %v17591_v40  ;;  %v17921_v53 = vld [vmem:[#allocation2 + $0x50] sm:$0xff]  ;;  %v2809_v47 = vpop.f32.mrb[29].mxu1  ;;  %vm20999_vm4 = vmmov %vm20997_vm3 }
 0x22f   : > { %v17917_v56 = vor.u32 %v5233_v41, %v5230_v27  ;;  %4856 = vst.msk [vmem:[#allocation2 + $0x68] sm:$0xff] %vm20986_vm8, %v4838_v37  ;;  %v4781_v19 = vmax.f32 %v4745_v36, 0.0  ;;  %v4746_v39 = vadd.f32 %v17634_v54, %v4703_v60  ;;  %vm708_vm11 = vcmp.gt.f32.partialorder %v17718_v33, 0.5  ;;  %v13751_v15 = vpop.f32.mrb[28].mxu0  ;;  %v20988_v41 = vld [vmem:[#allocation27_spill] sm:$0xff]  ;;  %v13600_v60 = vpop.f32.mrb[30].mxu1  ;;  %vm21000_vm8 = vmmov %vm20997_vm3 }
 0x230   : > { %vm744_vm6 = vcmp.lt.f32.partialorder %v17718_v33, 16.5  ;;  %v5239_v6 = vrot.slane %v20585_v25, 6  ;;  %4855 = vst.msk [vmem:[#allocation2 + $0x60] sm:$0xff] %vm20987_vm13, %v4837_v23  ;;  %v4779_v27 = vmax.f32 %v4743_v3, 0.0  ;;  %v4744_v14 = vadd.f32 %v17634_v54, %v4701_v11  ;;  %v4602_v25 = vpop.f32.mrb[29].mxu0  ;;  %v20989_v3 = vld [vmem:[#allocation30_spill] sm:$0xff] }
 0x231   : > { %v4927_v43 = vrot.slane %v17921_v53, 7  ;;  %v17934_v38 = vsel %vm5182_vm2, %v17877_v31, %v17917_v56  ;;  %v4817_v37 = vmul.f32 %v4781_v19, %v20988_v41  ;;  %v4782_v36 = vmax.f32 %v4746_v39, 0.0  ;;  %v2812_v55 = vpop.f32.mrb[31].mxu1  ;;  %v13752_v5 = vpop.f32.mrb[30].mxu0  ;;  %v20992_v39 = vld [vmem:[#allocation29_spill] sm:$0xff]  ;;  %vm17987_vm13 = vmand %vm708_vm11, %vm744_vm6 }
 0x232   : > { %v14481_v24 = vadd.f32 %v13751_v15, %v13599_v42  ;;  %vm709_vm0 = vcmp.gt.f32.partialorder %v17740_v34, 0.5  ;;  %vm745_vm15 = vcmp.lt.f32.partialorder %v17740_v34, 16.5  ;;  %v4815_v11 = vmul.f32 %v4779_v27, %v20989_v3  ;;  %v4605_v23 = vpop.f32.mrb[31].mxu0  ;;  %vm21009_vm6 = vmmov %vm20997_vm3 }
 0x233   : > { %v4780_v46 = vmax.f32 %v4744_v14, 0.0  ;;  %v14482_v9 = vadd.f32 %v4602_v25, %v2809_v47  ;;  %v20990_v31 = vrot.slane %v17875_v61, 7  ;;  %vm706_vm10 = vcmp.gt.f32.partialorder %v17723_v7, 0.5  ;;  %v20996_v14 = vld [vmem:[#allocation31_spill] sm:$0xff]  ;;  %vm18004_vm11 = vmand %vm709_vm0, %vm745_vm15 }
 0x234   : > { %vm742_vm12 = vcmp.lt.f32.partialorder %v17723_v7, 16.5  ;;  %v4818_v42 = vmul.f32 %v4782_v36, %v20992_v39  ;;  %v4706_v15 = vmul.f32 %v14481_v24, %v17591_v40  ;;  %v14483_v41 = vadd.f32 %v13752_v5, %v13600_v60 }
 0x235   : > { %v4928_v19 = vsel %vm20991_vm9, %v20990_v31, %v4927_v43  ;;  %v20994_v27 = vrot.slane %v17915_v51, 7  ;;  %vm707_vm14 = vcmp.gt.f32.partialorder %v17748_v63, 0.5  ;;  %vm743_vm1 = vcmp.lt.f32.partialorder %v17748_v63, 16.5  ;;  %vm21005_vm9 = vmmov %vm20995_vm7 }
 0x236   : > { %13776 = vmatmul.mubr.msk.bf16.gmra.mrb[52].mxu1 %vm20993_vm5, %v4928_v19  ;;  %v4816_v47 = vmul.f32 %v4780_v46, %v20996_v14  ;;  %v4704_v31 = vmul.f32 %v14482_v9, %v17591_v40  ;;  %v14484_v3 = vadd.f32 %v4605_v23, %v2812_v55  ;;  %v20998_v24 = vshll.u32 %v17842_v18, 16  ;;  %v17964_v14 = vld [vmem:[#allocation2 + $0x68] sm:$0xff]  ;;  %vm21006_vm5 = vmmov %vm20997_vm3 }
 0x237   : > { %v4930_v25 = vsel %vm20995_vm7, %v4927_v43, %v20994_v27  ;;  %v4840_v36 = vpack.c.bf16 %v4818_v42, %v4817_v37  ;;  %v4749_v60 = vadd.f32 %v17634_v54, %v4706_v15  ;;  %v4707_v19 = vmul.f32 %v14483_v41, %v17591_v40  ;;  %v13603_v37 = vpop.f32.mrb[32].mxu1  ;;  %v17968_v42 = vld [vmem:[#allocation2 + $0x60] sm:$0xff]  ;;  %vm18021_vm0 = vmand %vm706_vm10, %vm742_vm12 }
 0x238   : > { %13779 = vmatprep.mubr.msk.bf16.mxu1 %vm20997_vm3, %v4930_v25  ;;  %v5242_v5 = vrot.slane %v20998_v24, 7  ;;  %v20588_v43 = vshrl.u32 %v17838_v48, 16  ;;  %v4839_v27 = vpack.c.bf16 %v4816_v47, %v4815_v11  ;;  %v4747_v39 = vadd.f32 %v17634_v54, %v4704_v31  ;;  %v2825_v25 = vpop.f32.mrb[33].mxu1  ;;  %v21001_v24 = vld [vmem:[#allocation36_spill] sm:$0xff]  ;;  %vm18031_vm15 = vmand %vm707_vm14, %vm743_vm1 }
 0x239   : > { %v4705_v46 = vmul.f32 %v14484_v3, %v17591_v40  ;;  %4858 = vst.msk [vmem:[#allocation2 + $0x78] sm:$0xff] %vm20999_vm4, %v4840_v36  ;;  %v4785_v55 = vmax.f32 %v4749_v60, 0.0  ;;  %v4750_v23 = vadd.f32 %v17634_v54, %v4707_v19  ;;  %v4933_v41 = vrot.slane %v17964_v14, 7  ;;  %v13604_v60 = vpop.f32.mrb[34].mxu1  ;;  %vm21017_vm10 = vmmov %vm20997_vm3 }
 0x23a   : > { %v5243_v9 = vor.u32 %v5242_v5, %v5239_v6  ;;  %v5248_v11 = vrot.slane %v20588_v43, 6  ;;  %4857 = vst.msk [vmem:[#allocation2 + $0x70] sm:$0xff] %vm21000_vm8, %v4839_v27  ;;  %v4783_v15 = vmax.f32 %v4747_v39, 0.0  ;;  %v13755_v6 = vpop.f32.mrb[32].mxu0  ;;  %v4931_v47 = vrot.slane %v17968_v42, 7  ;;  %vm21020_vm12 = vmmov %vm20997_vm3 }
 0x23b   : > { %v4748_v3 = vadd.f32 %v17634_v54, %v4705_v46  ;;  %v4821_v5 = vmul.f32 %v4785_v55, %v21001_v24  ;;  %v4786_v36 = vmax.f32 %v4750_v23, 0.0  ;;  %v14485_v19 = vadd.f32 %v13755_v6, %v13603_v37  ;;  %v4618_v2 = vpop.f32.mrb[33].mxu0  ;;  %v2828_v46 = vpop.f32.mrb[35].mxu1  ;;  %vm21023_vm14 = vmmov %vm20995_vm7 }
 0x23c   : > { %v17978_v31 = vsel %vm5182_vm2, %v17917_v56, %v5243_v9  ;;  %v4819_v39 = vmul.f32 %v4783_v15, %v17706_v12  ;;  %v14486_v56 = vadd.f32 %v4618_v2, %v2825_v25  ;;  %v13756_v55 = vpop.f32.mrb[34].mxu0  ;;  %v21004_v23 = vrot.slane %v17915_v51, 7  ;;  %v4863_v2 = vld [vmem:[#allocation2] sm:$0xc0]  ;;  %vm21024_vm1 = vmmov %vm20995_vm7 }
 0x23d   : > { %v4784_v27 = vmax.f32 %v4748_v3, 0.0  ;;  %v4822_v6 = vmul.f32 %v4786_v36, %v17709_v29  ;;  %v4710_v15 = vmul.f32 %v14485_v19, %v17591_v40  ;;  %v14487_v3 = vadd.f32 %v13756_v55, %v13604_v60  ;;  %v4621_v43 = vpop.f32.mrb[35].mxu0  ;;  %vm21025_vm4 = vmmov %vm20997_vm3 }
 0x23e   : > { %v4932_v37 = vsel %vm21005_vm9, %v21004_v23, %v4931_v47  ;;  %v4934_v33 = vsel %vm20995_vm7, %v4931_v47, %v4933_v41  ;;  %v4708_v24 = vmul.f32 %v14486_v56, %v17591_v40  ;;  %v14488_v25 = vadd.f32 %v4621_v43, %v2828_v46  ;;  %vm21027_vm8 = vmmov %vm20997_vm3 }
 0x23f   : > { %13780 = vmatmul.mubr.msk.bf16.gmra.mrb[56].mxu1 %vm21006_vm5, %v4932_v37  ;;  %v4820_v12 = vmul.f32 %v4784_v27, %v17714_v62  ;;  %v21010_v36 = vshll.u32 %v17838_v48, 16  ;;  %v4842_v19 = vpack.c.bf16 %v4822_v6, %v4821_v5  ;;  %v18014_v47 = vsel %vm17987_vm13, 1.0, %v20896_v49  ;;  %vm21029_vm13 = vmmov %vm20997_vm3 }
 0x240   : > { %13783 = vmatprep.mubr.msk.bf16.mxu1 %vm21009_vm6, %v4934_v33  ;;  %21011 = vst [vmem:[#allocation40_spill] sm:$0xff] %v18014_v47  ;;  %v4753_v27 = vadd.f32 %v17634_v54, %v4710_v15  ;;  %v4711_v43 = vmul.f32 %v14487_v3, %v17591_v40  ;;  %v4751_v5 = vadd.f32 %v17634_v54, %v4708_v24  ;;  %v18036_v7 = vld [vmem:[#allocation2 + $0x78] sm:$0xff]  ;;  %v18060_v15 = vsel %vm18021_vm0, 1.0, %v20896_v49  ;;  %vm21030_vm9 = vmmov %vm21024_vm1 }
 0x241   : > { %v5251_v60 = vrot.slane %v21010_v36, 7  ;;  %v4841_v46 = vpack.c.bf16 %v4820_v12, %v4819_v39  ;;  %v4709_v56 = vmul.f32 %v14488_v25, %v17591_v40  ;;  %21016 = vst [vmem:[#allocation41_spill] sm:$0xff] %v18036_v7  ;;  %4860 = vst.msk [vmem:[#allocation2 + $0x88] sm:$0xff] %vm21017_vm10, %v4842_v19  ;;  %v18044_v12 = vsel %vm18004_vm11, 1.0, %v20896_v49  ;;  %v18047_v24 = vld [vmem:[#allocation2 + $0x70] sm:$0xff] }
 0x242   : > { %v4789_v23 = vmax.f32 %v4753_v27, 0.0  ;;  %21018 = vst [vmem:[#allocation42_spill] sm:$0xff] %v18044_v12  ;;  %v4754_v63 = vadd.f32 %v17634_v54, %v4711_v43  ;;  %21019 = vst [vmem:[#allocation43_spill] sm:$0xff] %v18047_v24  ;;  %v4937_v39 = vrot.slane %v18036_v7, 7  ;;  %v4787_v40 = vmax.f32 %v4751_v5, 0.0 }
 0x243   : > { %v18038_v55 = vor.u32 %v5251_v60, %v5248_v11  ;;  %4859 = vst.msk [vmem:[#allocation2 + $0x80] sm:$0xff] %vm21020_vm12, %v4841_v46  ;;  %v4752_v11 = vadd.f32 %v17634_v54, %v4709_v56  ;;  %v4935_v37 = vrot.slane %v18047_v24, 7  ;;  %21021 = vst [vmem:[#allocation44_spill] sm:$0xff] %v18060_v15  ;;  %v18065_v33 = vsel %vm18031_vm15, 1.0, %v20896_v49 }
 0x244   : > { %v4790_v3 = vmax.f32 %v4754_v63, 0.0  ;;  %21022 = vst [vmem:[#allocation45_spill] sm:$0xff] %v18065_v33  ;;  %v4823_v19 = vmul.f32 %v4787_v40, %v18060_v15  ;;  %v5184_v34 = vshrl.u32 %v4863_v2, 16  ;;  %v5187_v43 = vshll.u32 %v4863_v2, 16  ;;  %vm21031_vm5 = vmmov %vm21024_vm1 }
 0x245   : > { %v18055_v6 = vsel %vm5182_vm2, %v5243_v9, %v18038_v55  ;;  %v4788_v25 = vmax.f32 %v4752_v11, 0.0  ;;  %v4936_v54 = vsel %vm21023_vm14, %v4933_v41, %v4935_v37  ;;  %v4938_v36 = vsel %vm21024_vm1, %v4935_v37, %v4937_v39  ;;  %vm21032_vm7 = vmmov %vm20997_vm3 }
 0x246   : > { %v4825_v9 = vmul.f32 %v4789_v23, %v18014_v47  ;;  %v4826_v60 = vmul.f32 %v4790_v3, %v18044_v12  ;;  %v5186_v63 = vrot.slane %v5184_v34, 6  ;;  %v5189_v40 = vrot.slane %v5187_v43, 7  ;;  %vm21033_vm11 = vmmov %vm20997_vm3 }
 0x247   : > { %13784 = vmatmul.mubr.msk.bf16.gmra.mrb[60].mxu1 %vm20997_vm3, %v4936_v54  ;;  %v4824_v27 = vmul.f32 %v4788_v25, %v18065_v33  ;;  %v5255_v2 = vshrl.u32 %v17881_v22, 16  ;;  %v5258_v25 = vshll.u32 %v17881_v22, 16  ;;  %v5264_v54 = vshrl.u32 %v17875_v61, 16  ;;  %vm21035_vm0 = vmmov %vm21024_vm1 }
 0x248   : > { %13787 = vmatprep.mubr.msk.bf16.mxu1 %vm21025_vm4, %v4938_v36  ;;  %v4844_v46 = vpack.c.bf16 %v4826_v60, %v4825_v9  ;;  %v18075_v21 = vld [vmem:[#allocation2 + $0x88] sm:$0xff]  ;;  %v5190_v3 = vor.u32 %v5189_v40, %v5186_v63  ;;  %vm5594_vm6 = vsmask.f32 256  ;;  %v21034_v60 = vshrl.u32 %v17054_v50, 16  ;;  %vm21036_vm15 = vmmov %vm20997_vm3 }
 0x249   : > { %v4843_v5 = vpack.c.bf16 %v4824_v27, %v4823_v19  ;;  %21026 = vst [vmem:[#allocation46_spill] sm:$0xff] %v18075_v21  ;;  %v4941_v56 = vrot.slane %v18075_v21, 7  ;;  %v18099_v27 = vrot.slane %v5255_v2, 6  ;;  %v18101_v34 = vrot.slane %v5258_v25, 7  ;;  %vm21038_vm10 = vmmov %vm20997_vm3 }
 0x24a   : > { %4862 = vst.msk [vmem:[#allocation2 + $0x98] sm:$0xff] %vm21027_vm8, %v4844_v46  ;;  %v18078_v41 = vld [vmem:[#allocation2 + $0x80] sm:$0xff]  ;;  %v18097_v19 = vrot.slane %v21034_v60, 7  ;;  %v18103_v43 = vrot.slane %v5264_v54, 6  ;;  %v18113_v40 = vshrl.u32 %v17968_v42, 16  ;;  %v21045_v15 = vshrl.u32 %v17842_v18, 16  ;;  %vm21052_vm12 = vmmov %vm20997_vm3 }
 0x24b   : > { %21028 = vst [vmem:[#allocation47_spill] sm:$0xff] %v18078_v41  ;;  %4861 = vst.msk [vmem:[#allocation2 + $0x90] sm:$0xff] %vm21029_vm13, %v4843_v5  ;;  %v4939_v23 = vrot.slane %v18078_v41, 7  ;;  %v18143_v5 = vshll.u32 %v18036_v7, 16  ;;  %v18152_v47 = vshrl.u32 %v18078_v41, 16  ;;  %v21047_v29 = vshll.u32 %v17796_v57, 16 }
 0x24c   : > { %v5614_v12 = vrot.slane %v21045_v15, 7  ;;  %v5620_v16 = vrot.slane %v5255_v2, 7  ;;  %v21051_v26 = vshrl.u32 %v17915_v51, 16  ;;  %v5632_v2 = vrot.slane %v18113_v40, 7  ;;  %vm21055_vm14 = vmmov %vm20997_vm3 }
 0x24d   : > { %v4940_v11 = vsel %vm21030_vm9, %v4937_v39, %v4939_v23  ;;  %v4942_v37 = vsel %vm21031_vm5, %v4939_v23, %v4941_v56  ;;  %v5199_v39 = vsel %vm5182_vm2, %v5190_v3, %v17726_v28  ;;  %v18126_v3 = vshrl.u32 %v18047_v24, 16  ;;  %vm21060_vm1 = vmmov %vm20997_vm3 }
 0x24e   : > { %v18136_v23 = vshrl.u32 %v18036_v7, 16  ;;  %v5629_v17 = vrot.slane %v21051_v26, 7  ;;  %v5644_v52 = vrot.slane %v18152_v47, 7  ;;  %vm21061_vm3 = vmmov %vm21060_vm1  ;;  %vm21077_vm9 = vsmask.f32 7424 }
 0x24f   : > { %13788 = vmatmul.mubr.msk.bf16.gmra.mrb[64].mxu1 %vm21032_vm7, %v4940_v11  ;;  %v18116_v11 = vshll.u32 %v17968_v42, 16  ;;  %v18133_v42 = vshll.u32 %v18047_v24, 16  ;;  %vm21071_vm4 = vmmov %vm21060_vm1 }
 0x250   : > { %13791 = vmatprep.mubr.msk.bf16.mxu1 %vm21033_vm11, %v4942_v37  ;;  %v18119_v37 = vshrl.u32 %v17964_v14, 16  ;;  %vm21073_vm8 = vmmov %vm21060_vm1 }
 0x251   : > { %21037 = vst [vmem:[#allocation48_spill] sm:$0xff] %v18116_v11  ;;  %vm21076_vm13 = vmmov %vm21060_vm1 }
 0x252   : > { %v18090_v36 = vld [vmem:[#allocation2 + $0x90] sm:$0x7f]  ;;  %vm21079_vm5 = vmmov %vm21060_vm1 }
 0x253   : > { %v4943_v9 = vrot.slane %v18090_v36, 7  ;;  %vm21080_vm7 = vmmov %vm21077_vm9 }
 0x254   : > { %vm21082_vm11 = vmmov %vm21080_vm7 }
 0x255   : > { %v4944_v46 = vsel %vm21035_vm0, %v4941_v56, %v4943_v9  ;;  %v18123_v56 = vshll.u32 %v17964_v14, 16  ;;  %v21039_v9 = vshrl.u32 %v17752_v35, 16  ;;  %v21042_v14 = vshrl.u32 %v17796_v57, 16  ;;  %vm21084_vm0 = vmmov %vm21080_vm7 }
 0x257   : > { %13792 = vmatmul.mubr.msk.bf16.gmra.mrb[68].mxu1 %vm21036_vm15, %v4944_v46  ;;  %v5602_v60 = vrot.slane %v21039_v9, 7  ;;  %v21040_v46 = vshrl.u32 %v17744_v59, 16  ;;  %v5611_v28 = vrot.slane %v21042_v14, 7  ;;  %v21043_v9 = vshll.u32 %v17752_v35, 16  ;;  %vm21086_vm15 = vmmov %vm21084_vm0 }
 0x258   : > { %13797 = vmatprep.mubr.msk.bf16.mxu1 %vm21038_vm10, %v5199_v39  ;;  %v21041_v39 = vshrl.u32 %v17802_v0, 16  ;;  %v21046_v14 = vshll.u32 %v17802_v0, 16  ;;  %v18162_v35 = vshrl.u32 %v18075_v21, 16  ;;  %v18176_v0 = vld [vmem:[%s20457_s4 + $0x18] sm:$0xff]   ;;  %vm21088_vm10 = vmmov %vm21060_vm1 }
 0x259   : > { %v5605_v63 = vrot.slane %v21040_v46, 7  ;;  %v5603_v49 = vor.u32 %v5602_v60, %v21043_v9  ;;  %v21044_v46 = vshll.u32 %v17744_v59, 16  ;;  %v5612_v44 = vor.u32 %v5611_v28, %v21047_v29 }
 0x25a   : > { %v5608_v22 = vrot.slane %v21041_v39, 7  ;;  %v18155_v39 = vshll.u32 %v18078_v41, 16  ;;  %v21048_v9 = vshll.u32 %v17842_v18, 16  ;;  %v5623_v18 = vrot.slane %v5264_v54, 7 }
 0x25b   : > { %v5606_v33 = vor.u32 %v5605_v63, %v21044_v46  ;;  %v18166_v59 = vsel %vm5594_vm6, %v18097_v19, %v5603_v49  ;;  %v21049_v49 = vshrl.u32 %v17838_v48, 16  ;;  %v21056_v54 = vshll.u32 %v17875_v61, 16 }
 0x25c   : > { %v5609_v62 = vor.u32 %v5608_v22, %v21046_v14  ;;  %v5615_v46 = vor.u32 %v5614_v12, %v21048_v9  ;;  %v18182_v57 = vsel %vm5594_vm6, %v5608_v22, %v5612_v44  ;;  %v21053_v44 = vshll.u32 %v17838_v48, 16 }
 0x25d   : > { %v18169_v15 = vsel %vm5594_vm6, %v5602_v60, %v5606_v33  ;;  %v5617_v14 = vrot.slane %v21049_v49, 7  ;;  %v21050_v60 = vshrl.u32 %v17921_v53, 16  ;;  %v18197_v22 = vor.u32 %v5620_v16, %v5258_v25 }
 0x25e   : > { %v18179_v29 = vsel %vm5594_vm6, %v5605_v63, %v5609_v62  ;;  %v18187_v33 = vsel %vm5594_vm6, %v5611_v28, %v5615_v46  ;;  %v5635_v28 = vrot.slane %v18119_v37, 7  ;;  %v5624_v26 = vor.u32 %v5623_v18, %v21056_v54 }
 0x25f   : > { %v5626_v9 = vrot.slane %v21050_v60, 7  ;;  %13798 = vmatmul.mubr.msk.bf16.vlgmr.msra.gmra.mrb[36].mxu1 %vm21052_vm12, %v17813_v13  ;;  %v5618_v62 = vor.u32 %v5617_v14, %v21053_v44  ;;  %21054 = vst [vmem:[#allocation49_spill] sm:$0xff] %v18197_v22  ;;  %v21057_v63 = vshll.u32 %v17921_v53, 16  ;;  %v21058_v48 = vshll.u32 %v17915_v51, 16  ;;  %vm21089_vm12 = vmmov %vm21060_vm1 }
 0x260   : > { %13834 = vmatpush3.bf16.msra.mxu1 %v17765_v1  ;;  %13801 = vmatprep.mubr.msk.bf16.mxu1 %vm21055_vm14, %v17851_v30  ;;  %v5638_v25 = vrot.slane %v18126_v3, 7  ;;  %v18217_v1 = vsel %vm5594_vm6, %v5617_v14, %v18197_v22  ;;  %v5633_v30 = vor.u32 %v5632_v2, %v18116_v11  ;;  %v5636_v60 = vor.u32 %v5635_v28, %v18123_v56  ;;  %v18362_v22 = vld [vmem:[#allocation2 + $0x98] sm:$0xff]  ;;  %vm21090_vm14 = vmmov %vm21084_vm0 }
 0x261   : > { %v5627_v13 = vor.u32 %v5626_v9, %v21057_v63  ;;  %v5630_v46 = vor.u32 %v5629_v17, %v21058_v48  ;;  %13871 = vmatprep.subr.bf16.mxu1 %v18176_v0  ;;  %v18213_v49 = vsel %vm5594_vm6, %v5614_v12, %v5618_v62  ;;  %v18222_v44 = vsel %vm5594_vm6, %v5620_v16, %v5624_v26 }
 0x262   : > { %v5639_v12 = vor.u32 %v5638_v25, %v18133_v42  ;;  %v18232_v62 = vsel %vm5594_vm6, %v5629_v17, %v5633_v30  ;;  %v18235_v14 = vsel %vm5594_vm6, %v5632_v2, %v5636_v60  ;;  %v5641_v48 = vrot.slane %v18136_v23, 7 }
 0x263   : > { %v18225_v54 = vsel %vm5594_vm6, %v5623_v18, %v5627_v13  ;;  %v18228_v63 = vsel %vm5594_vm6, %v5626_v9, %v5630_v46  ;;  %v21059_v16 = vshll.u32 %v17875_v61, 16  ;;  %v18242_v18 = vshll.u32 %v18075_v21, 16 }
 0x264   : > { %v18245_v9 = vsel %vm5594_vm6, %v5635_v28, %v5639_v12  ;;  %v20616_v13 = vrot.slane %v18162_v35, 7  ;;  %v5642_v17 = vor.u32 %v5641_v48, %v18143_v5  ;;  %v5645_v2 = vor.u32 %v5644_v52, %v18155_v39 }
 0x265   : > { %v5269_v26 = vrot.slane %v21059_v16, 7  ;;  %v5261_v61 = vor.u32 %v18101_v34, %v18099_v27  ;;  %v21062_v12 = vshrl.u32 %v17921_v53, 16  ;;  %v21065_v27 = vshrl.u32 %v17915_v51, 16 }
 0x266   : > { %v5648_v46 = vor.u32 %v20616_v13, %v18242_v18  ;;  %v18258_v30 = vsel %vm5594_vm6, %v5638_v25, %v5642_v17  ;;  %v18261_v28 = vsel %vm5594_vm6, %v5641_v48, %v5645_v2  ;;  %v21063_v13 = vshll.u32 %v17921_v53, 16  ;;  %v18277_v17 = vld [vmem:[#allocation2 + $0x10] sm:$0xff] }
 0x267   : > { %13802 = vmatmul.mubr.msk.bf16.gmra.mrb[40].mxu1 %vm21060_vm1, %v17891_v4  ;;  %v5270_v60 = vor.u32 %v5269_v26, %v18103_v43  ;;  %v5275_v16 = vrot.slane %v21062_v12, 6  ;;  %v5284_v34 = vrot.slane %v21065_v27, 6  ;;  %v21066_v25 = vshll.u32 %v17915_v51, 16  ;;  %v18288_v12 = vld [vmem:[#allocation2 + $0x28] sm:$0xff]  ;;  %v18291_v27 = vld [vmem:[#allocation2 + $0x30] sm:$0xff]  ;;  %vm21092_vm1 = vmmov %vm21084_vm0 }
 0x268   : > { %13805 = vmatprep.mubr.msk.bf16.mxu1 %vm21061_vm3, %v17934_v38  ;;  %v5278_v4 = vrot.slane %v21063_v13, 7  ;;  %v18271_v10 = vsel %vm5594_vm6, %v5644_v52, %v5648_v46  ;;  %v18279_v38 = vld [vmem:[#allocation2 + $0x18] sm:$0xff]  ;;  %v5262_v43 = vsel %vm5182_vm2, %v18038_v55, %v5261_v61  ;;  %v18284_v13 = vld [vmem:[#allocation2 + $0x20] sm:$0xff]  ;;  %v20631_v46 = vshll.u32 %v18277_v17, 16  ;;  %21069 = vst [vmem:[#allocation53_spill] sm:$0xff] %v18288_v12  ;;  %21070 = vst [vmem:[#allocation54_spill] sm:$0xff] %v18291_v27 }
 0x269   : > { %21064 = vst [vmem:[#allocation50_spill] sm:$0xff] %v18271_v10  ;;  %v5287_v48 = vrot.slane %v21066_v25, 7  ;;  %21067 = vst [vmem:[#allocation51_spill] sm:$0xff] %v18279_v38  ;;  %v5271_v26 = vsel %vm5182_vm2, %v5261_v61, %v5270_v60  ;;  %v20634_v55 = vshll.u32 %v18279_v38, 16  ;;  %v18297_v61 = vshrl.u32 %v18284_v13, 16 }
 0x26a   : > { %v5279_v53 = vor.u32 %v5278_v4, %v5275_v16  ;;  %21068 = vst [vmem:[#allocation52_spill] sm:$0xff] %v18284_v13  ;;  %v18300_v16 = vshll.u32 %v18284_v13, 16  ;;  %v18302_v4 = vld [vmem:[#allocation2 + $0x38] sm:$0xff]  ;;  %v18310_v25 = vshll.u32 %v18291_v27, 16  ;;  %v6659_v51 = vrot.slane %v20631_v46, 1  ;;  %vm21094_vm3 = vmmov %vm21084_vm0 }
 0x26b   : > { %v5288_v52 = vor.u32 %v5287_v48, %v5284_v34  ;;  %21072 = vst [vmem:[#allocation55_spill] sm:$0xff] %v18302_v4  ;;  %v18307_v34 = vshll.u32 %v18288_v12, 16  ;;  %v18316_v48 = vshll.u32 %v18302_v4, 16  ;;  %v18321_v2 = vshrl.u32 %v18291_v27, 16 }
 0x26c   : > { %v21074_v32 = vshrl.u32 %v18277_v17, 16  ;;  %v6672_v45 = vrot.slane %v18300_v16, 1  ;;  %v6688_v20 = vrot.slane %v18310_v25, 1  ;;  %v5293_v21 = vrot.slane %v18113_v40, 6 }
 0x26d   : > { %v6680_v58 = vrot.slane %v18307_v34, 1  ;;  %v18332_v41 = vshrl.u32 %v18302_v4, 16  ;;  %v21075_v46 = vshrl.u32 %v18279_v38, 16  ;;  %v6696_v24 = vrot.slane %v18316_v48, 1 }
 0x26e   : > { %v6660_v8 = vor.u32 %v6659_v51, %v21074_v32  ;;  %v6676_v51 = vor.u32 %v6672_v45, %v18297_v61  ;;  %v6692_v27 = vor.u32 %v6688_v20, %v18321_v2  ;;  %v5296_v4 = vrot.slane %v18116_v11, 7 }
 0x26f   : > { %13806 = vmatmul.mubr.msk.bf16.gmra.mrb[44].mxu1 %vm21071_vm4, %v17978_v31  ;;  %v18313_v31 = vshrl.u32 %v18288_v12, 16  ;;  %v5302_v12 = vrot.slane %v18119_v37, 6  ;;  %v6744_v38 = vrot.slane %v18123_v56, 1  ;;  %vm21096_vm4 = vmmov %vm21084_vm0 }
 0x270   : > { %13809 = vmatprep.mubr.msk.bf16.mxu1 %vm21073_vm8, %v18055_v6  ;;  %v6664_v6 = vrot.slane %v20634_v55, 1  ;;  %v18359_v13 = vsel %vm21086_vm15, %v6692_v27, %v6696_v24  ;;  %v18373_v27 = vshll.u32 %v18362_v22, 16  ;;  %vm21098_vm8 = vmmov %vm21084_vm0  ;;  %vm21113_vm15 = vcmask 1046528  }
 0x271   : > { %v6684_v55 = vor.u32 %v6680_v58, %v18313_v31  ;;  %21087 = vst [vmem:[#allocation60_spill] sm:$0xff] %v18359_v13 }
 0x272   : > { %v6668_v7 = vor.u32 %v6664_v6, %v21075_v46  ;;  %v18339_v32 = vsel %vm21077_vm9, %v6660_v8, %v6664_v6  ;;  %v5305_v8 = vrot.slane %v18123_v56, 7  ;;  %v18353_v6 = vsel %vm21082_vm11, %v6676_v51, %v6680_v58  ;;  %vm21103_vm9 = vmmov %vm21079_vm5 }
 0x273   : > { %21078 = vst [vmem:[#allocation56_spill] sm:$0xff] %v18339_v32  ;;  %21083 = vst [vmem:[#allocation58_spill] sm:$0xff] %v18353_v6  ;;  %v18356_v32 = vsel %vm21084_vm0, %v6684_v55, %v6688_v20  ;;  %v6752_v58 = vrot.slane %v18133_v42, 1  ;;  %v6760_v20 = vrot.slane %v18143_v5, 1  ;;  %v6768_v55 = vrot.slane %v18155_v39, 1 }
 0x274   : > { %v18348_v46 = vsel %vm21080_vm7, %v6668_v7, %v6672_v45  ;;  %21085 = vst [vmem:[#allocation59_spill] sm:$0xff] %v18356_v32  ;;  %v5289_v45 = vsel %vm5182_vm2, %v5279_v53, %v5288_v52  ;;  %v5297_v7 = vor.u32 %v5296_v4, %v5293_v21  ;;  %v5306_v10 = vor.u32 %v5305_v8, %v5302_v12  ;;  %vm21109_vm7 = vmmov %vm21103_vm9 }
 0x275   : > { %21081 = vst [vmem:[#allocation57_spill] sm:$0xff] %v18348_v46  ;;  %v20648_v46 = vrot.slane %v18116_v11, 1  ;;  %v5320_v56 = vrot.slane %v18136_v23, 6  ;;  %v6756_v12 = vor.u32 %v6752_v58, %v18126_v3  ;;  %v6764_v4 = vor.u32 %v6760_v20, %v18136_v23  ;;  %vm21110_vm11 = vmmov %vm21109_vm7 }
 0x276   : > { %v5323_v51 = vrot.slane %v18143_v5, 7  ;;  %v5348_v5 = vshll.u32 %v18090_v36, 16 }
 0x277   : > { %13810 = vmatmul.mubr.msk.bf16.gmra.mrb[48].mxu1 %vm21076_vm13, %v5262_v43  ;;  %v6700_v43 = vor.u32 %v6696_v24, %v18332_v41  ;;  %v5311_v24 = vrot.slane %v18126_v3, 6  ;;  %v6740_v21 = vor.u32 %v20648_v46, %v18113_v40  ;;  %v6772_v40 = vor.u32 %v6768_v55, %v18152_v47  ;;  %v18391_v46 = vld [vmem:[#allocation2 + $0x40] sm:$0xff]  ;;  %vm21102_vm13 = vmmov %vm21079_vm5 }
 0x278   : > { %13813 = vmatprep.mubr.msk.bf16.mxu1 %vm21079_vm5, %v5271_v26  ;;  %v5280_v26 = vsel %vm5182_vm2, %v5270_v60, %v5279_v53  ;;  %v5314_v60 = vrot.slane %v18133_v42, 7  ;;  %v6748_v53 = vor.u32 %v6744_v38, %v18119_v37  ;;  %v5298_v42 = vsel %vm5182_vm2, %v5288_v52, %v5297_v7  ;;  %vm21106_vm5 = vmmov %vm21084_vm0 }
 0x279   : > { %v18387_v8 = vsel %vm21090_vm14, %v6740_v21, %v6744_v38  ;;  %v18397_v23 = vsel %vm21094_vm3, %v6756_v12, %v6760_v20  ;;  %v18400_v3 = vsel %vm21096_vm4, %v6764_v4, %v6768_v55  ;;  %v18404_v38 = vshrl.u32 %v18362_v22, 16  ;;  %vm21111_vm0 = vmmov %vm21109_vm7 }
 0x27a   : > { %21091 = vst [vmem:[#allocation61_spill] sm:$0xff] %v18387_v8  ;;  %v18394_v37 = vsel %vm21092_vm1, %v6748_v53, %v6752_v58  ;;  %21095 = vst [vmem:[#allocation63_spill] sm:$0xff] %v18397_v23  ;;  %v6776_v52 = vrot.slane %v18242_v18, 1  ;;  %v5329_v53 = vrot.slane %v18152_v47, 6  ;;  %v5332_v12 = vrot.slane %v18155_v39, 7 }
 0x27b   : > { %21093 = vst [vmem:[#allocation62_spill] sm:$0xff] %v18394_v37  ;;  %21097 = vst [vmem:[#allocation64_spill] sm:$0xff] %v18400_v3  ;;  %v5338_v4 = vrot.slane %v18162_v35, 6  ;;  %v5350_v21 = vrot.slane %v5348_v5, 7  ;;  %v5324_v47 = vor.u32 %v5323_v51, %v5320_v56  ;;  %v18445_v56 = vld [vmem:[#allocation2 + $0x58] sm:$0xff]  ;;  %v21134_v11 = vshll.u32 %v18391_v46, 16 }
 0x27c   : > { %v18410_v58 = vsel %vm21098_vm8, %v6772_v40, %v6776_v52  ;;  %v18413_v20 = vor.u32 %v6776_v52, %v18162_v35  ;;  %v5341_v40 = vrot.slane %v18242_v18, 7  ;;  %v5333_v3 = vor.u32 %v5332_v12, %v5329_v53  ;;  %v18461_v53 = vld [vmem:[#allocation2 + $0x68] sm:$0xff]  ;;  %v18463_v12 = vld [vmem:[#allocation2 + $0x70] sm:$0xff]  ;;  %vm21119_vm14 = vmmov %vm21111_vm0 }
 0x27d   : > { %21099 = vst [vmem:[#allocation65_spill] sm:$0xff] %v18410_v58  ;;  %v5315_v58 = vor.u32 %v5314_v60, %v5311_v24  ;;  %v18443_v60 = vld [vmem:[#allocation2 + $0x50] sm:$0xff] }
 0x27e   : > { %21100 = vst [vmem:[#allocation66_spill] sm:$0xff] %v18413_v20  ;;  %v21104_v20 = vshll.u32 %v18391_v46, 16  ;;  %v5342_v39 = vor.u32 %v5341_v40, %v5338_v4  ;;  %v18479_v4 = vld [vmem:[#allocation2 + $0x80] sm:$0xff] }
 0x27f   : > { %13814 = vmatmul.mubr.msk.bf16.gmra.mrb[52].mxu1 %vm21088_vm10, %v5280_v26  ;;  %v5345_v26 = vshrl.u32 %v18090_v36, 16  ;;  %v5307_v36 = vsel %vm5182_vm2, %v5297_v7, %v5306_v10  ;;  %v5316_v5 = vsel %vm5182_vm2, %v5306_v10, %v5315_v58  ;;  %v5325_v24 = vsel %vm5182_vm2, %v5315_v58, %v5324_v47  ;;  %v18453_v10 = vld [vmem:[#allocation2 + $0x60] sm:$0xff]  ;;  %vm21115_vm10 = vmmov %vm21113_vm15 }
 0x280   : > { %13817 = vmatprep.mubr.msk.bf16.mxu1 %vm21089_vm12, %v5289_v45  ;;  %v20649_v45 = vrot.slane %v18373_v27, 1  ;;  %vm21117_vm12 = vmmov %vm21115_vm10 }
 0x281   : > { %v5347_v52 = vrot.slane %v5345_v26, 6  ;;  %vm21120_vm1 = vmmov %vm21115_vm10 }
 0x282   : > { %v18418_v55 = vor.u32 %v20649_v45, %v18404_v38  ;;  %v18429_v45 = vrot.slane %v21104_v20, 1  ;;  %v18439_v20 = vld [vmem:[#allocation2 + $0x48] sm:$0xff]  ;;  %vm21122_vm3 = vmmov %vm21120_vm1 }
 0x283   : > { %v5351_v23 = vor.u32 %v5350_v21, %v5347_v52  ;;  %v7867_v52 = vrot.slane %v18313_v31, 1  ;;  %v7552_v40 = vrot.slane %v18439_v20, 1  ;;  %v18506_v21 = vld [vmem:[#allocation2 + $0xa0] sm:$0xff]  ;;  %vm21124_vm4 = vmmov %vm21120_vm1  ;;  %v21137_v13 = vshll.u32 %v18439_v20, 16 }
 0x284   : > { %21101 = vst [vmem:[#allocation67_spill] sm:$0xff] %v18418_v55  ;;  %21105 = vst [vmem:[#allocation68_spill] sm:$0xff] %v18429_v45  ;;  %v15489_v55 = vld [vmem:[#allocation2] sm:$0x80] }
 0x285   : > { %v5596_v7 = vshrl.u32 %v15489_v55, 16  ;;  %vm21126_vm8 = vmmov %vm21120_vm1  ;;  %v7884_v32 = vrot.slane %v21137_v13, 2 }
 0x287   : > { %13818 = vmatmul.mubr.msk.bf16.gmra.mrb[56].mxu1 %vm21102_vm13, %v5298_v42  ;;  %v18433_v42 = vsel %vm21106_vm5, %v6700_v43, %v18429_v45  ;;  %v5598_v18 = vrot.slane %v5596_v7, 7  ;;  %v5334_v43 = vsel %vm5182_vm2, %v5324_v47, %v5333_v3  ;;  %v7554_v7 = vrot.slane %v18443_v60, 1  ;;  %vm21128_vm13 = vmmov %vm21120_vm1 }
 0x288   : > { %13821 = vmatprep.mubr.msk.bf16.mxu1 %vm21103_vm9, %v5307_v36  ;;  %21107 = vst [vmem:[#allocation69_spill] sm:$0xff] %v18433_v42  ;;  %v21108_v36 = vshll.u32 %v17054_v50, 16  ;;  %v5343_v50 = vsel %vm5182_vm2, %v5333_v3, %v5342_v39  ;;  %v7556_v47 = vrot.slane %v18445_v56, 1  ;;  %vm21130_vm9 = vmmov %vm21120_vm1  ;;  %v7880_v42 = vrot.slane %v21134_v11, 2 }
 0x289   : > { %v18499_v55 = vsel %vm21115_vm10, %v7552_v40, %v7554_v7  ;;  %vm21133_vm5 = vmmov %vm21111_vm0 }
 0x28a   : > { %v5600_v26 = vor.u32 %v18097_v19, %v21108_v36  ;;  %v18451_v19 = vsel %vm5182_vm2, %v5342_v39, %v5351_v23  ;;  %v18472_v39 = vld [vmem:[#allocation2 + $0x78] sm:$0xff]  ;;  %v18486_v23 = vld [vmem:[#allocation2 + $0x88] sm:$0xff]  ;;  %v7560_v36 = vrot.slane %v18461_v53, 1  ;;  %21116 = vst [vmem:[#allocation72_spill] sm:$0xff] %v18499_v55  ;;  %v18502_v3 = vsel %vm21117_vm12, %v7554_v7, %v7556_v47 }
 0x28b   : > { %21118 = vst [vmem:[#allocation73_spill] sm:$0xff] %v18502_v3  ;;  %v7872_v55 = vrot.slane %v18310_v25, 2 }
 0x28c   : > { %v18456_v51 = vsel %vm5594_vm6, %v5598_v18, %v5600_v26  ;;  %v7558_v26 = vrot.slane %v18453_v10, 1  ;;  %v7562_v18 = vrot.slane %v18463_v12, 1 }
 0x28e   : > { %v18512_v37 = vsel %vm21122_vm3, %v7558_v26, %v7560_v36  ;;  %v18519_v3 = vsel %vm21124_vm4, %v7560_v36, %v7562_v18  ;;  %vm21160_vm3 = vmmov %vm21133_vm5 }
 0x28f   : > { %13822 = vmatmul.mubr.msk.bf16.gmra.mrb[60].mxu1 %vm21109_vm7, %v5316_v5  ;;  %v20651_v5 = vrot.slane %v18391_v46, 1  ;;  %21123 = vst [vmem:[#allocation75_spill] sm:$0xff] %v18512_v37  ;;  %21125 = vst [vmem:[#allocation76_spill] sm:$0xff] %v18519_v3  ;;  %v7868_v3 = vrot.slane %v18307_v34, 2 }
 0x290   : > { %13825 = vmatprep.mubr.msk.bf16.mxu1 %vm21110_vm11, %v5325_v24  ;;  %v18491_v24 = vld [vmem:[#allocation2 + $0x18] sm:$0xfe]  ;;  %vm21135_vm7 = vmmov %vm21111_vm0  ;;  %vm21139_vm11 = vsmask.f32 6400 }
 0x291   : > { %21112 = vst [vmem:[#allocation70_spill] sm:$0xff] %v18491_v24  ;;  %v18496_v58 = vsel %vm21113_vm15, %v20651_v5, %v7552_v40  ;;  %v7564_v5 = vrot.slane %v18472_v39, 1  ;;  %v7566_v40 = vrot.slane %v18479_v4, 1  ;;  %v7856_v37 = vshrl.u32 %v18491_v24, 16 }
 0x292   : > { %21114 = vst [vmem:[#allocation71_spill] sm:$0xff] %v18496_v58  ;;  %v7859_v7 = vshll.u32 %v18491_v24, 16  ;;  %v7869_v24 = vor.u32 %v7868_v3, %v7867_v52 }
 0x297   : > { %13826 = vmatmul.mubr.msk.bf16.gmra.mrb[64].mxu1 %vm21111_vm0, %v5334_v43  ;;  %v18509_v43 = vsel %vm21120_vm1, %v7556_v47, %v7558_v26  ;;  %v18524_v47 = vsel %vm21126_vm8, %v7562_v18, %v7564_v5  ;;  %v18527_v26 = vsel %vm21128_vm13, %v7564_v5, %v7566_v40  ;;  %v7858_v18 = vrot.slane %v7856_v37, 1  ;;  %vm21140_vm0 = vmmov %vm21139_vm11 }
 0x298   : > { %13829 = vmatprep.mubr.msk.bf16.mxu1 %vm21119_vm14, %v5343_v50  ;;  %21121 = vst [vmem:[#allocation74_spill] sm:$0xff] %v18509_v43  ;;  %v20652_v50 = vrot.slane %v18486_v23, 1  ;;  %21127 = vst [vmem:[#allocation77_spill] sm:$0xff] %v18524_v47  ;;  %v7863_v47 = vrot.slane %v18297_v61, 1  ;;  %v7864_v5 = vrot.slane %v18300_v16, 2  ;;  %v7871_v43 = vrot.slane %v18321_v2, 1 }
 0x299   : > { %21129 = vst [vmem:[#allocation78_spill] sm:$0xff] %v18527_v26  ;;  %v7861_v26 = vrot.slane %v7859_v7, 2  ;;  %vm21141_vm15 = vmmov %vm21140_vm0 }
 0x29a   : > { %v18535_v36 = vsel %vm21130_vm9, %v7566_v40, %v20652_v50  ;;  %v7865_v8 = vor.u32 %v7864_v5, %v7863_v47  ;;  %v7875_v40 = vrot.slane %v18332_v41, 1  ;;  %v7876_v50 = vrot.slane %v18316_v48, 2  ;;  %vm21142_vm10 = vmmov %vm21140_vm0 }
 0x29b   : > { %21131 = vst [vmem:[#allocation79_spill] sm:$0xff] %v18535_v36  ;;  %v21132_v36 = vshrl.u32 %v18391_v46, 16  ;;  %v7862_v37 = vor.u32 %v7861_v26, %v7858_v18  ;;  %v7873_v7 = vor.u32 %v7872_v55, %v7871_v43  ;;  %v21136_v5 = vshrl.u32 %v18439_v20, 16  ;;  %vm21146_vm12 = vmmov %vm21140_vm0 }
 0x29c   : > { %v7877_v47 = vor.u32 %v7876_v50, %v7875_v40  ;;  %v18564_v55 = vsel %vm21140_vm0, %v7865_v8, %v7869_v24  ;;  %v21144_v43 = vshll.u32 %v18443_v60, 16  ;;  %v21145_v50 = vshrl.u32 %v18445_v56, 16  ;;  %vm21151_vm14 = vmmov %vm21140_vm0 }
 0x29d   : > { %v7879_v58 = vrot.slane %v21132_v36, 1  ;;  %v7883_v45 = vrot.slane %v21136_v5, 1  ;;  %v21138_v36 = vshrl.u32 %v18443_v60, 16  ;;  %v18567_v11 = vsel %vm21141_vm15, %v7869_v24, %v7873_v7  ;;  %vm21157_vm1 = vmmov %vm21140_vm0 }
 0x29e   : > { %v18570_v3 = vsel %vm21142_vm10, %v7873_v7, %v7877_v47  ;;  %v7888_v13 = vrot.slane %v21144_v43, 2  ;;  %v7891_v26 = vrot.slane %v21145_v50, 1  ;;  %v21149_v24 = vshrl.u32 %v18453_v10, 16  ;;  %v18595_v43 = vld [vmem:[%s20457_s4 + $0x20] sm:$0xff]   ;;  %vm21161_vm4 = vmmov %vm21140_vm0 }
 0x29f   : > { %13830 = vmatmul.mubr.msk.bf16.gmra.mrb[68].mxu1 %vm21133_vm5, %v18451_v19  ;;  %v7887_v6 = vrot.slane %v21138_v36, 1  ;;  %v18561_v19 = vsel %vm21139_vm11, %v7862_v37, %v7865_v8  ;;  %21143 = vst [vmem:[#allocation80_spill] sm:$0xff] %v18570_v3  ;;  %v7885_v52 = vor.u32 %v7884_v32, %v7883_v45  ;;  %v21148_v8 = vshll.u32 %v18445_v56, 16  ;;  %vm21162_vm8 = vmmov %vm21140_vm0 }
 0x2a0   : > { %13835 = vmatprep.mubr.msk.bf16.mxu1 %vm21135_vm7, %v18456_v51  ;;  %v7881_v51 = vor.u32 %v7880_v42, %v7879_v58  ;;  %v7895_v37 = vrot.slane %v21149_v24, 1  ;;  %v21150_v42 = vshll.u32 %v18453_v10, 16  ;;  %v21153_v7 = vshrl.u32 %v18461_v53, 16  ;;  %vm21164_vm13 = vmmov %vm21160_vm3 }
 0x2a1   : > { %v7892_v40 = vrot.slane %v21148_v8, 2  ;;  %v7889_v45 = vor.u32 %v7888_v13, %v7887_v6  ;;  %v21154_v36 = vshll.u32 %v18461_v53, 16  ;;  %v21155_v24 = vshrl.u32 %v18463_v12, 16  ;;  %vm21165_vm9 = vmmov %vm21140_vm0 }
 0x2a2   : > { %v18577_v18 = vsel %vm21146_vm12, %v7877_v47, %v7881_v51  ;;  %v7896_v58 = vrot.slane %v21150_v42, 2  ;;  %v18586_v32 = vsel %vm21151_vm14, %v7881_v51, %v7885_v52  ;;  %v7899_v5 = vrot.slane %v21153_v7, 1  ;;  %vm21168_vm5 = vmmov %vm21140_vm0 }
 0x2a3   : > { %21147 = vst [vmem:[#allocation81_spill] sm:$0xff] %v18577_v18  ;;  %21152 = vst [vmem:[#allocation82_spill] sm:$0xff] %v18586_v32  ;;  %v7900_v47 = vrot.slane %v21154_v36, 2  ;;  %v7893_v50 = vor.u32 %v7892_v40, %v7891_v26  ;;  %v7903_v42 = vrot.slane %v21155_v24, 1  ;;  %v21156_v51 = vshll.u32 %v18463_v12, 16 }
 0x2a4   : > { %v7897_v8 = vor.u32 %v7896_v58, %v7895_v37  ;;  %v18602_v6 = vsel %vm21157_vm1, %v7885_v52, %v7889_v45  ;;  %v21158_v7 = vshrl.u32 %v18472_v39, 16  ;;  %v21159_v18 = vshll.u32 %v18472_v39, 16  ;;  %vm21170_vm7 = vmmov %vm21140_vm0 }
 0x2a5   : > { %v7904_v32 = vrot.slane %v21156_v51, 2  ;;  %v7901_v13 = vor.u32 %v7900_v47, %v7899_v5  ;;  %v18611_v26 = vsel %vm21161_vm4, %v7889_v45, %v7893_v50  ;;  %v21163_v52 = vshrl.u32 %v18479_v4, 16  ;;  %vm21173_vm11 = vmmov %vm21140_vm0 }
 0x2a6   : > { %v7907_v36 = vrot.slane %v21158_v7, 1  ;;  %v7908_v3 = vrot.slane %v21159_v18, 2  ;;  %v18614_v40 = vsel %vm21162_vm8, %v7893_v50, %v7897_v8  ;;  %v21167_v47 = vshrl.u32 %v18486_v23, 16  ;;  %vm21176_vm15 = vmmov %vm21160_vm3 }
 0x2a7   : > { %13836 = vmatmul.mubr.msk.bf16.vlgmr.msra.gmra.mrb[36].mxu1 %vm21160_vm3, %v18166_v59  ;;  %v7905_v37 = vor.u32 %v7904_v32, %v7903_v42  ;;  %v7911_v58 = vrot.slane %v21163_v52, 1  ;;  %v18622_v18 = vsel %vm21165_vm9, %v7897_v8, %v7901_v13  ;;  %v21166_v59 = vshll.u32 %v18479_v4, 16  ;;  %vm21177_vm10 = vmmov %vm21140_vm0 }
 0x2a8   : > { %13872 = vmatpush3.bf16.msra.mxu1 %v18176_v0  ;;  %13839 = vmatprep.mubr.msk.bf16.mxu1 %vm21164_vm13, %v18169_v15  ;;  %v7909_v5 = vor.u32 %v7908_v3, %v7907_v36  ;;  %v7915_v50 = vrot.slane %v21167_v47, 1  ;;  %v21169_v0 = vshll.u32 %v18486_v23, 16  ;;  %v7923_v3 = vrot.slane %v18404_v38, 1  ;;  %vm21179_vm12 = vmmov %vm21160_vm3 }
 0x2a9   : > { %v7912_v45 = vrot.slane %v21166_v59, 2  ;;  %13909 = vmatprep.subr.bf16.mxu1 %v18595_v43  ;;  %v18630_v32 = vsel %vm21168_vm5, %v7901_v13, %v7905_v37  ;;  %v7924_v42 = vrot.slane %v18373_v27, 2  ;;  %v21171_v7 = vshrl.u32 %v18506_v21, 16  ;;  %vm21180_vm14 = vmmov %vm21160_vm3 }
 0x2aa   : > { %v7916_v24 = vrot.slane %v21169_v0, 2  ;;  %v18635_v15 = vsel %vm21170_vm7, %v7905_v37, %v7909_v5  ;;  %v21172_v52 = vshll.u32 %v18506_v21, 16  ;;  %vm21181_vm1 = vmmov %vm21160_vm3  ;;  %v21192_v0 = vld [vmem:[#allocation50_spill] sm:$0xff] }
 0x2ab   : > { %v7913_v8 = vor.u32 %v7912_v45, %v7911_v58  ;;  %v7927_v36 = vrot.slane %v21171_v7, 1  ;;  %v18648_v47 = vor.u32 %v7924_v42, %v7923_v3  ;;  %vm21182_vm3 = vmmov %vm21181_vm1  ;;  %v21194_v42 = vshll.u32 %v18277_v17, 16 }
 0x2ac   : > { %v18639_v51 = vor.u32 %v7916_v24, %v7915_v50  ;;  %v7928_v13 = vrot.slane %v21172_v52, 2  ;;  %vm21183_vm4 = vmmov %vm21181_vm1 }
 0x2ad   : > { %v18646_v59 = vsel %vm21173_vm11, %v7909_v5, %v7913_v8  ;;  %21174 = vst [vmem:[#allocation83_spill] sm:$0xff] %v18648_v47  ;;  %vm21184_vm8 = vmmov %vm21181_vm1  ;;  %v21191_v5 = vshrl.u32 %v18277_v17, 16 }
 0x2ae   : > { %v18652_v37 = vsel %vm21140_vm0, %v7913_v8, %v18639_v51  ;;  %v18654_v58 = vor.u32 %v7928_v13, %v7927_v36  ;;  %vm21185_vm13 = vmmov %vm21181_vm1  ;;  %v21195_v36 = vrot.slane %v18162_v35, 7  ;;  %v21196_v13 = vld [vmem:[#allocation51_spill] sm:$0xff]  ;;  %v15473_v35 = vld [vmem:[%s20457_s4 + $0x28] sm:$0xff]  }
 0x2af   : > { %13840 = vmatmul.mubr.msk.bf16.gmra.mrb[40].mxu1 %vm21176_vm15, %v18179_v29  ;;  %vm21186_vm9 = vmmov %vm21181_vm1  ;;  %v18683_v29 = vld [vmem:[#allocation2 + $0x90] sm:$0xff]  ;;  %v5960_v50 = vrot.slane %v21191_v5, 7 }
 0x2b0   : > { %21175 = vst [vmem:[#allocation84_spill] sm:$0xff] %v18654_v58  ;;  %v18661_v45 = vsel %vm21177_vm10, %v18648_v47, %v18654_v58  ;;  %13843 = vmatprep.mubr.msk.bf16.mxu1 %vm21179_vm12, %v18182_v57  ;;  %vm21187_vm5 = vmmov %vm21181_vm1  ;;  %v18688_v57 = vshrl.u32 %v18683_v29, 16  ;;  %v18698_v24 = vshll.u32 %v18683_v29, 16 }
 0x2b1   : > { %21178 = vst [vmem:[#allocation85_spill] sm:$0xff] %v18661_v45  ;;  %vm21188_vm7 = vmmov %vm21181_vm1  ;;  %v5963_v7 = vor.u32 %v21194_v42, %v5960_v50  ;;  %v5976_v45 = vrot.slane %v18297_v61, 7  ;;  %v5992_v61 = vrot.slane %v18321_v2, 7 }
 0x2b2   : > { %vm21189_vm11 = vmmov %vm21181_vm1 }
 0x2b3   : > { %vm21190_vm0 = vmmov %vm21181_vm1  ;;  %v5979_v42 = vor.u32 %v18300_v16, %v5976_v45 }
 0x2b4   : > { %vm21193_vm15 = vmmov %vm21190_vm0 }
 0x2b5   : > { %vm21198_vm10 = vmmov %vm21190_vm0 }
 0x2b6   : > { %vm21199_vm12 = vmmov %vm21190_vm0 }
 0x2b7   : > { %13844 = vmatmul.mubr.msk.bf16.gmra.mrb[44].mxu1 %vm21180_vm14, %v18187_v33  ;;  %v5931_v33 = vld [vmem:[#allocation2 + $0x8] sm:$0x80]  ;;  %vm21201_vm14 = vmmov %vm21190_vm0 }
 0x2b8   : > { %13847 = vmatprep.mubr.msk.bf16.mxu1 %vm21181_vm1, %v18213_v49  ;;  %v5653_v49 = vrot.slane %v18688_v57, 7  ;;  %vm21202_vm1 = vmmov %vm21190_vm0 }
 0x2ba   : > { %v5656_v8 = vor.u32 %v18698_v24, %v5653_v49 }
 0x2bc   : > { %v5657_v52 = vsel %vm5594_vm6, %v21195_v36, %v5656_v8  ;;  %v5984_v36 = vrot.slane %v18313_v31, 7 }
 0x2be   : > { %v5987_v16 = vor.u32 %v18307_v34, %v5984_v36 }
 0x2bf   : > { %13848 = vmatmul.mubr.msk.bf16.gmra.mrb[48].mxu1 %vm21182_vm3, %v18217_v1  ;;  %v5954_v1 = vshrl.u32 %v5931_v33, 16  ;;  %v21197_v33 = vshrl.u32 %v21196_v13, 16  ;;  %vm21203_vm3 = vmmov %vm21190_vm0 }
 0x2c0   : > { %13851 = vmatprep.mubr.msk.bf16.mxu1 %vm21183_vm4, %v18222_v44  ;;  %vm21204_vm4 = vmmov %vm21190_vm0 }
 0x2c1   : > { %v5956_v3 = vrot.slane %v5954_v1, 7  ;;  %v5968_v58 = vrot.slane %v21197_v33, 7  ;;  %v21200_v1 = vshll.u32 %v21196_v13, 16  ;;  %v5988_v33 = vsel %vm5594_vm6, %v5976_v45, %v5987_v16  ;;  %v15495_v45 = vld [vmem:[#allocation2 + $0x68] sm:$0xff] }
 0x2c2   : > { %v21254_v16 = vshll.u32 %v18439_v20, 16 }
 0x2c3   : > { %v5964_v5 = vsel %vm5594_vm6, %v5956_v3, %v5963_v7  ;;  %v5971_v47 = vor.u32 %v21200_v1, %v5968_v58  ;;  %v5980_v3 = vsel %vm5594_vm6, %v5968_v58, %v5979_v42  ;;  %v5995_v7 = vor.u32 %v18310_v25, %v5992_v61  ;;  %v21206_v58 = vld [vmem:[#allocation49_spill] sm:$0xff]  ;;  %v21247_v42 = vld [vmem:[#allocation58_spill] sm:$0xff] }
 0x2c4   : > { %v15492_v25 = vld [vmem:[#allocation2 + $0x50] sm:$0xff] }
 0x2c5   : > { %v5972_v8 = vsel %vm5594_vm6, %v5960_v50, %v5971_v47  ;;  %v6000_v47 = vrot.slane %v18332_v41, 7  ;;  %v5996_v31 = vsel %vm5594_vm6, %v5984_v36, %v5995_v7  ;;  %v6096_v41 = vrot.slane %v18404_v38, 7  ;;  %v15494_v38 = vld [vmem:[#allocation2 + $0x60] sm:$0xff]  ;;  %v21235_v50 = vld [vmem:[#allocation41_spill] sm:$0xff] }
 0x2c6   : > { %v21245_v1 = vld [vmem:[#allocation57_spill] sm:$0xff]  ;;  %v21252_v36 = vld [vmem:[#allocation68_spill] sm:$0xff]  ;;  %v6712_v7 = vrot.slane %v21254_v16, 1  ;;  %v21284_v16 = vrot.slane %v18373_v27, 1 }
 0x2c7   : > { %13852 = vmatmul.mubr.msk.bf16.gmra.mrb[52].mxu1 %vm21184_vm8, %v18225_v54  ;;  %v6003_v2 = vor.u32 %v18316_v48, %v6000_v47  ;;  %vm21205_vm8 = vmmov %vm21190_vm0  ;;  %v6012_v34 = vsel %vm5594_vm6, %v6000_v47, %v21206_v58  ;;  %v15493_v48 = vld [vmem:[#allocation2 + $0x58] sm:$0xff] }
 0x2c8   : > { %13855 = vmatprep.mubr.msk.bf16.mxu1 %vm21185_vm13, %v18228_v63  ;;  %vm21207_vm13 = vmmov %vm21190_vm0 }
 0x2cf   : > { %13856 = vmatmul.mubr.msk.bf16.gmra.mrb[56].mxu1 %vm21186_vm9, %v18232_v62  ;;  %vm21208_vm9 = vmmov %vm21190_vm0 }
 0x2d0   : > { %13859 = vmatprep.mubr.msk.bf16.mxu1 %vm21187_vm5, %v18235_v14  ;;  %vm21209_vm5 = vmmov %vm21190_vm0 }
 0x2d7   : > { %13860 = vmatmul.mubr.msk.bf16.gmra.mrb[60].mxu1 %vm21188_vm7, %v18245_v9  ;;  %vm21210_vm7 = vmmov %vm21190_vm0 }
 0x2d8   : > { %13863 = vmatprep.mubr.msk.bf16.mxu1 %vm21189_vm11, %v18258_v30  ;;  %vm21211_vm11 = vmmov %vm21190_vm0 }
 0x2df   : > { %13864 = vmatmul.mubr.msk.bf16.gmra.mrb[64].mxu1 %vm21190_vm0, %v18261_v28 }
 0x2e0   : > { %13867 = vmatprep.mubr.msk.bf16.mxu1 %vm21193_vm15, %v21192_v0  ;;  %vm21212_vm15 = vmmov %vm21190_vm0 }
 0x2e7   : > { %13868 = vmatmul.mubr.msk.bf16.gmra.mrb[68].mxu1 %vm21198_vm10, %v5657_v52  ;;  %vm21213_vm10 = vmmov %vm21190_vm0 }
 0x2e8   : > { %13873 = vmatprep.mubr.msk.bf16.mxu1 %vm21199_vm12, %v5964_v5  ;;  %vm21214_vm12 = vmmov %vm21190_vm0  ;;  %v15475_v5 = vld [vmem:[%s20457_s4 + $0x38] sm:$0xff]  }
 0x2ef   : > { %13874 = vmatmul.mubr.msk.bf16.vlgmr.msra.gmra.mrb[36].mxu1 %vm21201_vm14, %v5972_v8  ;;  %vm21215_vm14 = vmmov %vm21190_vm0  ;;  %v21250_v8 = vld [vmem:[#allocation60_spill] sm:$0xff] }
 0x2f0   : > { %13910 = vmatpush3.bf16.msra.mxu1 %v18595_v43  ;;  %13877 = vmatprep.mubr.msk.bf16.mxu1 %vm21202_vm1, %v5980_v3  ;;  %v6004_v43 = vsel %vm5594_vm6, %v5992_v61, %v6003_v2  ;;  %vm21216_vm1 = vmmov %vm21190_vm0  ;;  %v21253_v3 = vshrl.u32 %v18391_v46, 16 }
 0x2f1   : > { %13947 = vmatprep.subr.bf16.mxu1 %v15473_v35 }
 0x2f2   : > { %v6708_v61 = vor.u32 %v21253_v3, %v21252_v36  ;;  %v21281_v36 = vld [vmem:[#allocation66_spill] sm:$0xff] }
 0x2f7   : > { %13878 = vmatmul.mubr.msk.bf16.gmra.mrb[40].mxu1 %vm21203_vm3, %v5988_v33  ;;  %vm21217_vm3 = vmmov %vm21190_vm0  ;;  %v21255_v33 = vld [vmem:[#allocation69_spill] sm:$0xff] }
 0x2f8   : > { %13881 = vmatprep.mubr.msk.bf16.mxu1 %vm21204_vm4, %v5996_v31  ;;  %vm21218_vm4 = vmmov %vm21190_vm0  ;;  %v21258_v31 = vshll.u32 %v18443_v60, 16 }
 0x2fa   : > { %v6720_v2 = vrot.slane %v21258_v31, 1 }
 0x2ff   : > { %13882 = vmatmul.mubr.msk.bf16.gmra.mrb[44].mxu1 %vm21205_vm8, %v6004_v43  ;;  %vm21219_vm8 = vmmov %vm21190_vm0  ;;  %v21260_v43 = vshrl.u32 %v18443_v60, 16 }
 0x300   : > { %13885 = vmatprep.mubr.msk.bf16.mxu1 %vm21207_vm13, %v6012_v34  ;;  %vm21221_vm13 = vmmov %vm21190_vm0  ;;  %v21261_v34 = vshrl.u32 %v18439_v20, 16  ;;  %v21272_v20 = vld [vmem:[#allocation61_spill] sm:$0xff] }
 0x301   : > { %v6724_v58 = vor.u32 %v21260_v43, %v6720_v2 }
 0x307   : > { %13886 = vmatmul.mubr.msk.bf16.gmra.mrb[48].mxu1 %vm21208_vm9, %v18222_v44  ;;  %v6099_v44 = vor.u32 %v18373_v27, %v6096_v41  ;;  %vm21223_vm9 = vmmov %vm21190_vm0  ;;  %v6716_v41 = vor.u32 %v21261_v34, %v6712_v7  ;;  %v21296_v27 = vshll.u32 %v18453_v10, 16 }
 0x308   : > { %13889 = vmatprep.mubr.msk.bf16.mxu1 %vm21209_vm5, %v18225_v54  ;;  %vm21225_vm5 = vmmov %vm21190_vm0 }
 0x309   : > { %v6100_v54 = vsel %vm5594_vm6, %v5653_v49, %v6099_v44  ;;  %v21233_v49 = vld [vmem:[#allocation43_spill] sm:$0xff]  ;;  %v21262_v44 = vshll.u32 %v18445_v56, 16 }
 0x30f   : > { %13890 = vmatmul.mubr.msk.bf16.gmra.mrb[52].mxu1 %vm21210_vm7, %v18228_v63  ;;  %v15474_v63 = vld [vmem:[%s20457_s4 + $0x30] sm:$0xff]   ;;  %vm21227_vm7 = vmmov %vm21190_vm0 }
 0x310   : > { %13893 = vmatprep.mubr.msk.bf16.mxu1 %vm21211_vm11, %v18232_v62  ;;  %v21220_v62 = vld [vmem:[#allocation52_spill] sm:$0xff]  ;;  %vm21228_vm11 = vmmov %vm21190_vm0 }
 0x317   : > { %13894 = vmatmul.mubr.msk.bf16.gmra.mrb[56].mxu1 %vm21190_vm0, %v18235_v14  ;;  %v21222_v14 = vld [vmem:[#allocation53_spill] sm:$0xff] }
 0x318   : > { %13897 = vmatprep.mubr.msk.bf16.mxu1 %vm21212_vm15, %v18245_v9  ;;  %v21224_v9 = vld [vmem:[#allocation54_spill] sm:$0xff]  ;;  %vm21229_vm15 = vmmov %vm21190_vm0 }
 0x31f   : > { %13898 = vmatmul.mubr.msk.bf16.gmra.mrb[60].mxu1 %vm21213_vm10, %v18258_v30  ;;  %v21226_v30 = vld [vmem:[#allocation55_spill] sm:$0xff]  ;;  %vm21230_vm10 = vmmov %vm21190_vm0 }
 0x320   : > { %13901 = vmatprep.mubr.msk.bf16.mxu1 %vm21214_vm12, %v18261_v28  ;;  %v15490_v28 = vld [vmem:[#allocation2 + $0x40] sm:$0xff]  ;;  %vm21231_vm12 = vmmov %vm21190_vm0 }
 0x327   : > { %13902 = vmatmul.mubr.msk.bf16.gmra.mrb[64].mxu1 %vm21215_vm14, %v21192_v0  ;;  %vm21232_vm14 = vmmov %vm21190_vm0  ;;  %v21237_v0 = vld [vmem:[#allocation47_spill] sm:$0xff] }
 0x328   : > { %13905 = vmatprep.mubr.msk.bf16.mxu1 %vm21216_vm1, %v5657_v52  ;;  %vm21234_vm1 = vmmov %vm21190_vm0  ;;  %v21239_v52 = vld [vmem:[#allocation46_spill] sm:$0xff] }
 0x32f   : > { %13906 = vmatmul.mubr.msk.bf16.gmra.mrb[68].mxu1 %vm21217_vm3, %v6100_v54  ;;  %vm21236_vm3 = vmmov %vm21190_vm0  ;;  %v6728_v54 = vrot.slane %v21262_v44, 1 }
 0x330   : > { %13911 = vmatprep.mubr.msk.bf16.mxu1 %vm21218_vm4, %v18277_v17  ;;  %v15491_v17 = vld [vmem:[#allocation2 + $0x48] sm:$0xff]  ;;  %vm21238_vm4 = vmmov %vm21190_vm0 }
 0x337   : > { %13912 = vmatmul.mubr.msk.bf16.vlgmr.msra.gmra.mrb[36].mxu1 %vm21219_vm8, %v21196_v13  ;;  %vm21240_vm8 = vmmov %vm21190_vm0  ;;  %v21243_v13 = vld [vmem:[#allocation56_spill] sm:$0xff] }
 0x338   : > { %13948 = vmatpush3.bf16.msra.mxu1 %v15473_v35  ;;  %13915 = vmatprep.mubr.msk.bf16.mxu1 %vm21221_vm13, %v21220_v62  ;;  %vm21241_vm13 = vmmov %vm21190_vm0  ;;  %v21249_v35 = vld [vmem:[#allocation59_spill] sm:$0xff] }
 0x339   : > { %13985 = vmatprep.subr.bf16.mxu1 %v15474_v63 }
 0x33f   : > { %13916 = vmatmul.mubr.msk.bf16.gmra.mrb[40].mxu1 %vm21223_vm9, %v21222_v14  ;;  %vm21242_vm9 = vmmov %vm21190_vm0 }
 0x340   : > { %13919 = vmatprep.mubr.msk.bf16.mxu1 %vm21225_vm5, %v21224_v9  ;;  %vm21244_vm5 = vmmov %vm21190_vm0 }
 0x347   : > { %13920 = vmatmul.mubr.msk.bf16.gmra.mrb[44].mxu1 %vm21227_vm7, %v21226_v30  ;;  %vm21246_vm7 = vmmov %vm21190_vm0 }
 0x348   : > { %13923 = vmatprep.mubr.msk.bf16.mxu1 %vm21228_vm11, %v15490_v28  ;;  %vm21248_vm11 = vmmov %vm21190_vm0 }
 0x34f   : > { %13924 = vmatmul.mubr.msk.bf16.gmra.mrb[48].mxu1 %vm21190_vm0, %v15491_v17  ;;  %v21267_v17 = vshrl.u32 %v18445_v56, 16  ;;  %v6784_v56 = vrot.slane %v18698_v24, 1 }
 0x350   : > { %13927 = vmatprep.mubr.msk.bf16.mxu1 %vm21229_vm15, %v15492_v25  ;;  %vm21251_vm15 = vmmov %vm21190_vm0 }
 0x351   : > { %v6732_v25 = vor.u32 %v21267_v17, %v6728_v54 }
 0x357   : > { %13928 = vmatmul.mubr.msk.bf16.gmra.mrb[52].mxu1 %vm21230_vm10, %v15493_v48  ;;  %vm21256_vm10 = vmmov %vm21190_vm0  ;;  %v21268_v48 = vld [vmem:[#allocation48_spill] sm:$0xff] }
 0x358   : > { %13931 = vmatprep.mubr.msk.bf16.mxu1 %vm21231_vm12, %v15494_v38  ;;  %vm21257_vm12 = vsmask.f32 7424  ;;  %v21269_v60 = vrot.slane %v21268_v48, 1  ;;  %v21309_v48 = vshll.u32 %v18479_v4, 16 }
 0x359   : > { %v6713_v47 = vsel %vm21257_vm12, %v6708_v61, %v6712_v7 }
 0x35f   : > { %13932 = vmatmul.mubr.msk.bf16.gmra.mrb[56].mxu1 %vm21232_vm14, %v15495_v45  ;;  %vm21259_vm14 = vmmov %vm21190_vm0  ;;  %v21274_v45 = vld [vmem:[#allocation62_spill] sm:$0xff] }
 0x360   : > { %13935 = vmatprep.mubr.msk.bf16.mxu1 %vm21234_vm1, %v21233_v49  ;;  %vm21263_vm1 = vmmov %vm21257_vm12  ;;  %v21276_v49 = vld [vmem:[#allocation63_spill] sm:$0xff] }
 0x361   : > { %vm21283_vm12 = vmmov %vm21190_vm0 }
 0x367   : > { %13936 = vmatmul.mubr.msk.bf16.gmra.mrb[60].mxu1 %vm21236_vm3, %v21235_v50  ;;  %vm21264_vm3 = vmmov %vm21190_vm0  ;;  %v21278_v50 = vld [vmem:[#allocation64_spill] sm:$0xff] }
 0x368   : > { %13939 = vmatprep.mubr.msk.bf16.mxu1 %vm21238_vm4, %v21237_v0  ;;  %vm21265_vm4 = vmmov %vm21263_vm1  ;;  %v21279_v0 = vld [vmem:[#allocation65_spill] sm:$0xff] }
 0x369   : > { %v6729_v28 = vsel %vm21265_vm4, %v6724_v58, %v6728_v54  ;;  %v15476_v58 = vld [vmem:[%s20457_s4 + $0x40] sm:$0xff]  }
 0x36f   : > { %13940 = vmatmul.mubr.msk.bf16.gmra.mrb[64].mxu1 %vm21240_vm8, %v21239_v52  ;;  %vm21266_vm8 = vmmov %vm21190_vm0  ;;  %v6788_v52 = vor.u32 %v6784_v56, %v18688_v57 }
 0x370   : > { %13943 = vmatprep.mubr.msk.bf16.mxu1 %vm21241_vm13, %v18683_v29  ;;  %vm21270_vm13 = vmmov %vm21263_vm1 }
 0x371   : > { %v6737_v38 = vsel %vm21270_vm13, %v6732_v25, %v21269_v60  ;;  %vm21291_vm13 = vmmov %vm21190_vm0  ;;  %v7203_v60 = vrot.slane %v21309_v48, 1  ;;  %v21359_v48 = vrot.slane %v18486_v23, 1 }
 0x377   : > { %13944 = vmatmul.mubr.msk.bf16.gmra.mrb[68].mxu1 %vm21242_vm9, %v18362_v22  ;;  %vm21271_vm9 = vmmov %vm21190_vm0 }
 0x378   : > { %13949 = vmatprep.mubr.msk.bf16.mxu1 %vm21244_vm5, %v21243_v13  ;;  %vm21273_vm5 = vmmov %vm21190_vm0  ;;  %v6650_v13 = vld [vmem:[#allocation2 + $0xa0] sm:$0x1] }
 0x379   : > { %v6798_v61 = vshll.u32 %v6650_v13, 16 }
 0x37b   : > { %v6800_v31 = vrot.slane %v6798_v61, 1  ;;  %v21322_v61 = vshll.u32 %v18506_v21, 16 }
 0x37f   : > { %13950 = vmatmul.mubr.msk.bf16.vlgmr.msra.gmra.mrb[36].mxu1 %vm21246_vm7, %v21245_v1  ;;  %vm21275_vm7 = vmmov %vm21190_vm0 }
 0x380   : > { %13986 = vmatpush3.bf16.msra.mxu1 %v15474_v63  ;;  %13953 = vmatprep.mubr.msk.bf16.mxu1 %vm21248_vm11, %v21247_v42  ;;  %v6721_v63 = vsel %vm21263_vm1, %v6716_v41, %v6720_v2  ;;  %vm21277_vm11 = vmmov %vm21190_vm0  ;;  %v21287_v2 = vld [vmem:[#allocation67_spill] sm:$0xff]  ;;  %v21303_v41 = vshrl.u32 %v18461_v53, 16 }
 0x381   : > { %14023 = vmatprep.subr.bf16.mxu1 %v15475_v5 }
 0x387   : > { %13954 = vmatmul.mubr.msk.bf16.gmra.mrb[40].mxu1 %vm21190_vm0, %v21249_v35 }
 0x388   : > { %13957 = vmatprep.mubr.msk.bf16.mxu1 %vm21251_vm15, %v21250_v8  ;;  %vm21280_vm15 = vmmov %vm21190_vm0 }
 0x38f   : > { %13958 = vmatmul.mubr.msk.bf16.gmra.mrb[44].mxu1 %vm21256_vm10, %v21255_v33  ;;  %vm21282_vm10 = vmmov %vm21263_vm1 }
 0x390   : > { %13961 = vmatprep.mubr.msk.bf16.mxu1 %vm21259_vm14, %v6713_v47  ;;  %v6785_v3 = vsel %vm21282_vm10, %v21281_v36, %v6784_v56  ;;  %vm21285_vm14 = vmmov %vm21263_vm1 }
 0x391   : > { %v6793_v7 = vsel %vm21285_vm14, %v6788_v52, %v21284_v16  ;;  %vm21286_vm1 = vmmov %vm21190_vm0  ;;  %v21317_v52 = vshrl.u32 %v18486_v23, 16  ;;  %v7235_v16 = vrot.slane %v21322_v61, 1 }
 0x397   : > { %13962 = vmatmul.mubr.msk.bf16.gmra.mrb[48].mxu1 %vm21264_vm3, %v6721_v63  ;;  %vm21288_vm3 = vmmov %vm21265_vm4 }
 0x398   : > { %13965 = vmatprep.mubr.msk.bf16.mxu1 %vm21266_vm8, %v6729_v28  ;;  %v6801_v43 = vsel %vm21288_vm3, %v21287_v2, %v6800_v31  ;;  %vm21289_vm4 = vmmov %vm21190_vm0 }
 0x399   : > { %vm21290_vm8 = vmmov %vm21190_vm0 }
 0x39a   : > { %vm21298_vm10 = vmmov %vm21288_vm3 }
 0x39b   : > { %vm21304_vm14 = vmmov %vm21288_vm3 }
 0x39f   : > { %13966 = vmatmul.mubr.msk.bf16.gmra.mrb[52].mxu1 %vm21271_vm9, %v6737_v38  ;;  %vm21292_vm9 = vmmov %vm21190_vm0 }
 0x3a0   : > { %13969 = vmatprep.mubr.msk.bf16.mxu1 %vm21273_vm5, %v21272_v20  ;;  %vm21293_vm5 = vmmov %vm21190_vm0 }
 0x3a7   : > { %13970 = vmatmul.mubr.msk.bf16.gmra.mrb[56].mxu1 %vm21275_vm7, %v21274_v45  ;;  %vm21294_vm7 = vmmov %vm21190_vm0 }
 0x3a8   : > { %13973 = vmatprep.mubr.msk.bf16.mxu1 %vm21277_vm11, %v21276_v49  ;;  %vm21295_vm11 = vmmov %vm21190_vm0  ;;  %v21315_v49 = vshll.u32 %v18486_v23, 16  ;;  %v21374_v23 = vld [vmem:[#allocation82_spill] sm:$0xff] }
 0x3af   : > { %13974 = vmatmul.mubr.msk.bf16.gmra.mrb[60].mxu1 %vm21190_vm0, %v21278_v50  ;;  %v7211_v50 = vrot.slane %v21315_v49, 1 }
 0x3b0   : > { %13977 = vmatprep.mubr.msk.bf16.mxu1 %vm21280_vm15, %v21279_v0  ;;  %vm21297_vm15 = vmmov %vm21190_vm0 }
 0x3b1   : > { %v7215_v13 = vor.u32 %v21317_v52, %v7211_v50  ;;  %v19019_v52 = vld [vmem:[%s20460_s7] sm:$0xff]  }
 0x3b7   : > { %13978 = vmatmul.mubr.msk.bf16.gmra.mrb[64].mxu1 %vm21283_vm12, %v6785_v3  ;;  %vm21299_vm12 = vmmov %vm21190_vm0  ;;  %v7093_v3 = vld [vmem:[#allocation2 + $0xa8] sm:$0x1] }
 0x3b8   : > { %13981 = vmatprep.mubr.msk.bf16.mxu1 %vm21286_vm1, %v6793_v7  ;;  %vm21305_vm1 = vmmov %vm21190_vm0  ;;  %v7241_v31 = vshll.u32 %v7093_v3, 16 }
 0x3bf   : > { %13982 = vmatmul.mubr.msk.bf16.gmra.mrb[68].mxu1 %vm21289_vm4, %v6801_v43  ;;  %vm21306_vm4 = vmmov %vm21190_vm0  ;;  %v21326_v43 = vshrl.u32 %v18506_v21, 16 }
 0x3c0   : > { %13987 = vmatprep.mubr.msk.bf16.mxu1 %vm21290_vm8, %v21245_v1  ;;  %v7171_v1 = vrot.slane %v21296_v27, 1  ;;  %vm21311_vm8 = vmmov %vm21288_vm3 }
 0x3c1   : > { %v7239_v27 = vor.u32 %v21326_v43, %v7235_v16 }
 0x3c7   : > { %13988 = vmatmul.mubr.msk.bf16.vlgmr.msra.gmra.mrb[36].mxu1 %vm21291_vm13, %v21247_v42  ;;  %v21300_v42 = vshll.u32 %v18461_v53, 16  ;;  %v21310_v53 = vshrl.u32 %v18472_v39, 16  ;;  %vm21312_vm13 = vmmov %vm21190_vm0 }
 0x3c8   : > { %14024 = vmatpush3.bf16.msra.mxu1 %v15475_v5  ;;  %13991 = vmatprep.mubr.msk.bf16.mxu1 %vm21292_vm9, %v21249_v35  ;;  %v7172_v5 = vsel %vm21298_vm10, %v6732_v25, %v7171_v1  ;;  %vm21313_vm9 = vmmov %vm21288_vm3 }
 0x3c9   : > { %14061 = vmatprep.subr.bf16.mxu1 %v15476_v58  ;;  %v7179_v35 = vrot.slane %v21300_v42, 1  ;;  %vm21323_vm10 = vmmov %vm21305_vm1  ;;  %v21328_v42 = vld [vmem:[#allocation70_spill] sm:$0xff] }
 0x3cb   : > { %v7183_v44 = vor.u32 %v21303_v41, %v7179_v35  ;;  %v21338_v41 = vrot.slane %v18391_v46, 1  ;;  %v21347_v46 = vld [vmem:[#allocation74_spill] sm:$0xff] }
 0x3cf   : > { %13992 = vmatmul.mubr.msk.bf16.gmra.mrb[40].mxu1 %vm21293_vm5, %v21250_v8  ;;  %v21301_v8 = vshrl.u32 %v18453_v10, 16  ;;  %v21308_v10 = vshrl.u32 %v18463_v12, 16  ;;  %vm21314_vm5 = vmmov %vm21190_vm0 }
 0x3d0   : > { %13995 = vmatprep.mubr.msk.bf16.mxu1 %vm21294_vm7, %v21255_v33  ;;  %v21302_v33 = vshll.u32 %v18463_v12, 16  ;;  %v21316_v12 = vshrl.u32 %v18479_v4, 16  ;;  %vm21318_vm7 = vmmov %vm21288_vm3 }
 0x3d1   : > { %v7175_v34 = vor.u32 %v21301_v8, %v7171_v1  ;;  %v7243_v1 = vrot.slane %v7241_v31, 1 }
 0x3d2   : > { %v7207_v0 = vor.u32 %v21316_v12, %v7203_v60  ;;  %v21391_v12 = vld [vmem:[#allocation84_spill] sm:$0xff] }
 0x3d3   : > { %v7180_v54 = vsel %vm21304_vm14, %v7175_v34, %v7179_v35  ;;  %vm21325_vm14 = vmmov %vm21305_vm1  ;;  %v7541_v35 = vrot.slane %v21328_v42, 1 }
 0x3d7   : > { %13996 = vmatmul.mubr.msk.bf16.gmra.mrb[44].mxu1 %vm21295_vm11, %v6713_v47  ;;  %v7187_v47 = vrot.slane %v21302_v33, 1  ;;  %vm21319_vm11 = vmmov %vm21190_vm0  ;;  %v7548_v33 = vrot.slane %v21226_v30, 1  ;;  %v21343_v30 = vld [vmem:[#allocation72_spill] sm:$0xff] }
 0x3d8   : > { %13999 = vmatprep.mubr.msk.bf16.mxu1 %vm21190_vm0, %v6721_v63  ;;  %vm21320_vm0 = vmmov %vm21288_vm3 }
 0x3d9   : > { %v7188_v63 = vsel %vm21288_vm3, %v7183_v44, %v7187_v47  ;;  %v7191_v25 = vor.u32 %v21308_v10, %v7187_v47  ;;  %v7220_v36 = vsel %vm21320_vm0, %v7215_v13, %v6784_v56  ;;  %v7542_v56 = vrot.slane %v21220_v62, 1  ;;  %vm21329_vm3 = vmmov %vm21306_vm4  ;;  %v21345_v44 = vld [vmem:[#allocation73_spill] sm:$0xff] }
 0x3da   : > { %v7570_v10 = vrot.slane %v18683_v29, 1  ;;  %v7576_v29 = vrot.slane %v7093_v3, 1  ;;  %v19031_v3 = vld [vmem:[%s20458_s5] ss:$0 sm:$0xff] }
 0x3df   : > { %14000 = vmatmul.mubr.msk.bf16.gmra.mrb[48].mxu1 %vm21297_vm15, %v6729_v28  ;;  %v21307_v28 = vshll.u32 %v18472_v39, 16  ;;  %v7212_v39 = vsel %vm21318_vm7, %v7207_v0, %v7211_v50  ;;  %vm21321_vm15 = vmmov %vm21305_vm1  ;;  %v19014_v0 = vld [vmem:[#allocation3] sm:$0x80] }
 0x3e0   : > { %14003 = vmatprep.mubr.msk.bf16.mxu1 %vm21299_vm12, %v7172_v5  ;;  %vm21324_vm12 = vmmov %vm21320_vm0  ;;  %v8505_v13 = vrot.slane %v19014_v0, 7 }
 0x3e1   : > { %v7195_v17 = vrot.slane %v21307_v28, 1  ;;  %v7236_v4 = vsel %vm21324_vm12, %v21287_v2, %v7235_v16  ;;  %v7546_v2 = vrot.slane %v21224_v9, 1  ;;  %vm21335_vm7 = vmmov %vm21329_vm3  ;;  %v15477_v9 = vld [vmem:[%s20460_s7 + $0x8] sm:$0xff]   ;;  %v19036_v16 = vld [vmem:[%s20459_s6] ss:$0 sm:$0xff] }
 0x3e2   : > { %14099 = vmatprep.subr.bf16.mxu0 %v15477_v9  ;;  %v21353_v28 = vld [vmem:[#allocation77_spill] sm:$0xff] }
 0x3e3   : > { %v7199_v38 = vor.u32 %v21310_v53, %v7195_v17  ;;  %v7196_v20 = vsel %vm21311_vm8, %v7191_v25, %v7195_v17  ;;  %vm21331_vm8 = vmmov %vm21329_vm3  ;;  %14100 = vmatpush3.bf16.msra.mxu0 %v15477_v9  ;;  %v21355_v17 = vld [vmem:[#allocation78_spill] sm:$0xff]  ;;  %v21357_v25 = vld [vmem:[#allocation79_spill] sm:$0xff]  ;;  %v7572_v53 = vrot.slane %v18362_v22, 1 }
 0x3e4   : > { %v21370_v22 = vld [vmem:[#allocation80_spill] sm:$0xff]  ;;  %14137 = vmatprep.subr.bf16.mxu0 %v19019_v52 }
 0x3e5   : > { %v7204_v45 = vsel %vm21313_vm9, %v7199_v38, %v7203_v60  ;;  %vm21333_vm9 = vmmov %vm21329_vm3  ;;  %v7574_v38 = vrot.slane %v18506_v21, 1  ;;  %v21372_v21 = vld [vmem:[#allocation81_spill] sm:$0xff]  ;;  %v21396_v9 = vld [vmem:[#allocation28_spill] sm:$0xff] }
 0x3e7   : > { %14004 = vmatmul.mubr.msk.bf16.gmra.mrb[52].mxu1 %vm21305_vm1, %v7180_v54  ;;  %vm21327_vm1 = vmmov %vm21320_vm0  ;;  %v21349_v54 = vld [vmem:[#allocation75_spill] sm:$0xff] }
 0x3e8   : > { %14007 = vmatprep.mubr.msk.bf16.mxu1 %vm21306_vm4, %v7188_v63  ;;  %v7244_v5 = vsel %vm21327_vm1, %v7239_v27, %v7243_v1  ;;  %vm21330_vm4 = vcmask 1046528   ;;  %vm21337_vm0 = vmmov %vm21329_vm3  ;;  %v21351_v63 = vld [vmem:[#allocation76_spill] sm:$0xff] }
 0x3e9   : > { %v7543_v8 = vsel %vm21330_vm4, %v7541_v35, %v7542_v56  ;;  %vm21342_vm12 = vmmov %vm21337_vm0 }
 0x3ea   : > { %vm21346_vm1 = vmmov %vm21337_vm0 }
 0x3ef   : > { %14008 = vmatmul.mubr.msk.bf16.gmra.mrb[56].mxu1 %vm21312_vm13, %v7196_v20  ;;  %vm21332_vm13 = vmmov %vm21330_vm4 }
 0x3f0   : > { %14011 = vmatprep.mubr.msk.bf16.mxu1 %vm21314_vm5, %v7204_v45  ;;  %vm21334_vm5 = vmmov %vm21330_vm4 }
 0x3f7   : > { %14012 = vmatmul.mubr.msk.bf16.gmra.mrb[60].mxu1 %vm21319_vm11, %v7212_v39  ;;  %vm21336_vm11 = vmmov %vm21330_vm4 }
 0x3f8   : > { %14015 = vmatprep.mubr.msk.bf16.mxu1 %vm21321_vm15, %v7220_v36  ;;  %v7549_v47 = vsel %vm21336_vm11, %v7546_v2, %v7548_v33  ;;  %vm21339_vm15 = vmmov %vm21330_vm4 }
 0x3f9   : > { %vm21350_vm4 = vmmov %vm21337_vm0 }
 0x3ff   : > { %14016 = vmatmul.mubr.msk.bf16.gmra.mrb[64].mxu1 %vm21323_vm10, %v6793_v7  ;;  %v7544_v7 = vrot.slane %v21222_v14, 1  ;;  %v7551_v14 = vsel %vm21339_vm15, %v7548_v33, %v21338_v41  ;;  %vm21340_vm10 = vmmov %vm21337_vm0  ;;  %v21395_v41 = vld [vmem:[#allocation10_spill] sm:$0xff] }
 0x400   : > { %14019 = vmatprep.mubr.msk.bf16.mxu1 %vm21325_vm14, %v7236_v4  ;;  %vm21344_vm14 = vmmov %vm21337_vm0 }
 0x401   : > { %v7545_v34 = vsel %vm21332_vm13, %v7542_v56, %v7544_v7  ;;  %v7547_v62 = vsel %vm21334_vm5, %v7544_v7, %v7546_v2  ;;  %vm21354_vm13 = vmmov %vm21337_vm0 }
 0x402   : > { %vm21358_vm5 = vmmov %vm21337_vm0 }
 0x403   : > { %vm21363_vm15 = vmmov %vm21346_vm1 }
 0x407   : > { %14020 = vmatmul.mubr.msk.bf16.gmra.mrb[68].mxu1 %vm21329_vm3, %v7244_v5  ;;  %vm21348_vm3 = vmmov %vm21337_vm0 }
 0x408   : > { %14025 = vmatprep.mubr.msk.bf16.mxu1 %vm21331_vm8, %v7543_v8  ;;  %vm21352_vm8 = vmmov %vm21337_vm0 }
 0x40f   : > { %14026 = vmatmul.mubr.msk.bf16.vlgmr.msra.gmra.mrb[36].mxu1 %vm21333_vm9, %v7545_v34  ;;  %vm21356_vm9 = vmmov %vm21337_vm0 }
 0x410   : > { %14062 = vmatpush3.bf16.msra.mxu1 %v15476_v58  ;;  %14029 = vmatprep.mubr.msk.bf16.mxu1 %vm21335_vm7, %v7547_v62  ;;  %v21341_v58 = vld [vmem:[#allocation71_spill] sm:$0xff]  ;;  %vm21360_vm7 = vmmov %vm21336_vm11 }
 0x411   : > { %v7571_v60 = vsel %vm21360_vm7, %v21359_v48, %v7570_v10  ;;  %vm21361_vm11 = vmmov %vm21337_vm0 }
 0x417   : > { %14030 = vmatmul.mubr.msk.bf16.gmra.mrb[40].mxu1 %vm21337_vm0, %v7549_v47  ;;  %vm21362_vm0 = vmmov %vm21360_vm7 }
 0x418   : > { %14033 = vmatprep.mubr.msk.bf16.mxu1 %vm21340_vm10, %v7551_v14  ;;  %v7573_v20 = vsel %vm21362_vm0, %v7570_v10, %v7572_v53  ;;  %vm21364_vm10 = vmmov %vm21362_vm0 }
 0x419   : > { %v7575_v45 = vsel %vm21364_vm10, %v7572_v53, %v7574_v38  ;;  %vm21376_vm7 = vmmov %vm21346_vm1 }
 0x41f   : > { %14034 = vmatmul.mubr.msk.bf16.gmra.mrb[44].mxu1 %vm21342_vm12, %v21341_v58  ;;  %vm21365_vm12 = vmmov %vm21346_vm1 }
 0x420   : > { %14037 = vmatprep.mubr.msk.bf16.mxu1 %vm21344_vm14, %v21343_v30  ;;  %vm21366_vm14 = vmmov %vm21362_vm0 }
 0x421   : > { %v7577_v49 = vsel %vm21366_vm14, %v7574_v38, %v7576_v29  ;;  %vm21378_vm0 = vmmov %vm21346_vm1 }
 0x422   : > { %vm21380_vm10 = vmmov %vm21378_vm0 }
 0x423   : > { %vm21382_vm14 = vmmov %vm21378_vm0 }
 0x427   : > { %14038 = vmatmul.mubr.msk.bf16.gmra.mrb[48].mxu1 %vm21346_vm1, %v21345_v44 }
 0x428   : > { %14041 = vmatprep.mubr.msk.bf16.mxu1 %vm21348_vm3, %v21347_v46  ;;  %vm21367_vm3 = vmmov %vm21346_vm1  ;;  %v21397_v46 = vld [vmem:[#allocation11_spill] sm:$0xff] }
 0x42f   : > { %14042 = vmatmul.mubr.msk.bf16.gmra.mrb[52].mxu1 %vm21350_vm4, %v21349_v54  ;;  %vm21368_vm4 = vmmov %vm21346_vm1 }
 0x430   : > { %14045 = vmatprep.mubr.msk.bf16.mxu1 %vm21352_vm8, %v21351_v63  ;;  %vm21369_vm8 = vmmov %vm21346_vm1  ;;  %v21398_v63 = vld [vmem:[#allocation12_spill] sm:$0xff] }
 0x437   : > { %14046 = vmatmul.mubr.msk.bf16.gmra.mrb[56].mxu1 %vm21354_vm13, %v21353_v28  ;;  %vm21371_vm13 = vmmov %vm21346_vm1 }
 0x438   : > { %14049 = vmatprep.mubr.msk.bf16.mxu1 %vm21356_vm9, %v21355_v17  ;;  %vm21373_vm9 = vmmov %vm21346_vm1 }
 0x43f   : > { %14050 = vmatmul.mubr.msk.bf16.gmra.mrb[60].mxu1 %vm21358_vm5, %v21357_v25  ;;  %vm21375_vm5 = vmmov %vm21346_vm1 }
 0x440   : > { %14053 = vmatprep.mubr.msk.bf16.mxu1 %vm21361_vm11, %v7571_v60  ;;  %vm21377_vm11 = vmmov %vm21346_vm1 }
 0x447   : > { %14054 = vmatmul.mubr.msk.bf16.gmra.mrb[64].mxu1 %vm21363_vm15, %v7573_v20  ;;  %vm21379_vm15 = vmmov %vm21378_vm0 }
 0x448   : > { %14057 = vmatprep.mubr.msk.bf16.mxu1 %vm21365_vm12, %v7575_v45  ;;  %vm21381_vm12 = vmmov %vm21378_vm0 }
 0x44f   : > { %14058 = vmatmul.mubr.msk.bf16.gmra.mrb[68].mxu1 %vm21346_vm1, %v7577_v49  ;;  %vm21383_vm1 = vmmov %vm21378_vm0 }
 0x450   : > { %14063 = vmatprep.mubr.msk.bf16.mxu1 %vm21367_vm3, %v18561_v19  ;;  %v7919_v19 = vrot.slane %v18688_v57, 1  ;;  %vm21384_vm3 = vsmask.f32 6400  ;;  %v21386_v57 = vld [vmem:[#allocation83_spill] sm:$0xff] }
 0x457   : > { %14064 = vmatmul.mubr.msk.bf16.vlgmr.msra.gmra.mrb[36].mxu1 %vm21368_vm4, %v18564_v55  ;;  %v7920_v55 = vrot.slane %v18698_v24, 2  ;;  %vm21385_vm4 = vmmov %vm21378_vm0 }
 0x458   : > { %14067 = vmatprep.mubr.msk.bf16.mxu1 %vm21369_vm8, %v18567_v11  ;;  %vm21387_vm8 = vmmov %vm21384_vm3 }
 0x459   : > { %v7921_v11 = vor.u32 %v7920_v55, %v7919_v19 }
 0x45b   : > { %v7926_v24 = vsel %vm21387_vm8, %v7921_v11, %v21386_v57  ;;  %vm21414_vm8 = vmmov %vm21378_vm0 }
 0x45f   : > { %14068 = vmatmul.mubr.msk.bf16.gmra.mrb[40].mxu1 %vm21371_vm13, %v21370_v22  ;;  %vm21388_vm13 = vmmov %vm21378_vm0 }
 0x460   : > { %14071 = vmatprep.mubr.msk.bf16.mxu1 %vm21373_vm9, %v21372_v21  ;;  %vm21390_vm9 = vmmov %vm21378_vm0 }
 0x467   : > { %14072 = vmatmul.mubr.msk.bf16.gmra.mrb[44].mxu1 %vm21375_vm5, %v21374_v23  ;;  %vm21392_vm5 = vmmov %vm21384_vm3 }
 0x468   : > { %14075 = vmatprep.mubr.msk.bf16.mxu1 %vm21376_vm7, %v18602_v6  ;;  %v7851_v6 = vld [vmem:[#allocation2 + $0xa8] sm:$0x3]  ;;  %vm21393_vm7 = vmmov %vm21378_vm0 }
 0x46f   : > { %14076 = vmatmul.mubr.msk.bf16.gmra.mrb[48].mxu1 %vm21377_vm11, %v18611_v26  ;;  %v7922_v26 = vsel %vm21384_vm3, %v18639_v51, %v7921_v11  ;;  %v19012_v51 = vld [vmem:[#allocation3 + $0x8] sm:$0xff]  ;;  %vm21394_vm11 = vcmask 1040384   ;;  %v21401_v11 = vld [vmem:[#allocation13_spill] sm:$0xff] }
 0x470   : > { %14079 = vmatprep.mubr.msk.bf16.mxu1 %vm21378_vm0, %v18614_v40  ;;  %v7932_v40 = vshrl.u32 %v7851_v6, 16  ;;  %v8506_v39 = vrot.slane %v19012_v51, 7 }
 0x472   : > { %v8507_v36 = vsel %vm21394_vm11, %v8505_v13, %v8506_v39 }
 0x473   : > { %14101 = vmatprep.mubr.msk.bf16.mxu0 %vm21378_vm0, %v8507_v36 }
 0x477   : > { %14080 = vmatmul.mubr.msk.bf16.gmra.mrb[52].mxu1 %vm21379_vm15, %v18622_v18  ;;  %v7935_v18 = vshll.u32 %v7851_v6, 16  ;;  %vm21399_vm15 = vmmov %vm21378_vm0 }
 0x478   : > { %14083 = vmatprep.mubr.msk.bf16.mxu1 %vm21380_vm10, %v18630_v32  ;;  %v7934_v32 = vrot.slane %v7932_v40, 1  ;;  %vm21400_vm10 = vmmov %vm21378_vm0 }
 0x47f   : > { %14084 = vmatmul.mubr.msk.bf16.gmra.mrb[56].mxu1 %vm21381_vm12, %v18635_v15  ;;  %v7937_v15 = vrot.slane %v7935_v18, 2  ;;  %vm21405_vm12 = vmmov %vm21378_vm0 }
 0x480   : > { %14087 = vmatprep.mubr.msk.bf16.mxu1 %vm21382_vm14, %v18646_v59  ;;  %v21389_v59 = vld [vmem:[#allocation85_spill] sm:$0xff]  ;;  %vm21406_vm14 = vmmov %vm21378_vm0 }
 0x481   : > { %v7938_v50 = vor.u32 %v7937_v15, %v7934_v32  ;;  %v21403_v15 = vld [vmem:[#allocation14_spill] sm:$0xff] }
 0x487   : > { %14088 = vmatmul.mubr.msk.bf16.gmra.mrb[60].mxu1 %vm21383_vm1, %v18652_v37  ;;  %v7939_v37 = vsel %vm21392_vm5, %v21391_v12, %v7938_v50  ;;  %vm21407_vm1 = vmmov %vm21394_vm11 }
 0x488   : > { %14091 = vmatprep.mubr.msk.bf16.mxu1 %vm21385_vm4, %v7922_v26  ;;  %v21402_v26 = vld [vmem:[#allocation19_spill] sm:$0xff]  ;;  %vm21408_vm3 = vmmov %vm21407_vm1 }
 0x489   : > { %vm21411_vm4 = vmmov %vm21378_vm0 }
 0x48a   : > { %vm21417_vm5 = vmmov %vm21407_vm1 }
 0x48b   : > { %vm21421_vm11 = vmmov %vm21378_vm0 }
 0x48f   : > { %14092 = vmatmul.mubr.msk.bf16.gmra.mrb[64].mxu1 %vm21388_vm13, %v7926_v24  ;;  %v21404_v24 = vld [vmem:[#allocation21_spill] sm:$0xff]  ;;  %vm21415_vm13 = vmmov %vm21378_vm0 }
 0x490   : > { %14095 = vmatprep.mubr.msk.bf16.mxu1 %vm21390_vm9, %v21389_v59  ;;  %vm21416_vm9 = vmmov %vm21378_vm0 }
 0x497   : > { %14096 = vmatmul.mubr.msk.bf16.gmra.mrb[68].mxu1 %vm21393_vm7, %v7939_v37  ;;  %vm21418_vm7 = vmmov %vm21407_vm1 }
 0x52a   : > { %v14065_v61 = vpop.f32.mrb[36].mxu1 }
 0x52b   : > { %v8222_v31 = vmul.f32 %v14065_v61, %v19031_v3  ;;  %v8034_v4 = vpop.f32.mrb[37].mxu1 }
 0x52c   : > { %v8220_v43 = vmul.f32 %v19031_v3, %v8034_v4  ;;  %v14066_v27 = vpop.f32.mrb[38].mxu1 }
 0x52d   : > { %v8265_v1 = vadd.f32 %v19036_v16, %v8222_v31  ;;  %v8223_v56 = vmul.f32 %v14066_v27, %v19031_v3  ;;  %v8037_v5 = vpop.f32.mrb[39].mxu1 }
 0x52e   : > { %v8263_v42 = vadd.f32 %v19036_v16, %v8220_v43  ;;  %v8221_v35 = vmul.f32 %v19031_v3, %v8037_v5 }
 0x52f   : > { %v8301_v8 = vmax.f32 %v8265_v1, 0.0  ;;  %v8266_v7 = vadd.f32 %v19036_v16, %v8223_v56 }
 0x530   : > { %v8299_v2 = vmax.f32 %v8263_v42, 0.0  ;;  %v8264_v34 = vadd.f32 %v19036_v16, %v8221_v35 }
 0x531   : > { %v8302_v62 = vmax.f32 %v8266_v7, 0.0  ;;  %v8337_v14 = vmul.f32 %v8301_v8, %v21395_v41 }
 0x532   : > { %v8300_v33 = vmax.f32 %v8264_v34, 0.0  ;;  %v14069_v47 = vpop.f32.mrb[40].mxu1  ;;  %v8335_v54 = vmul.f32 %v8299_v2, %v21397_v46  ;;  %v19083_v34 = vld [vmem:[%s20460_s7 + $0x10] sm:$0xff]  }
 0x533   : > { %v8338_v58 = vmul.f32 %v8302_v62, %v21396_v9  ;;  %v8226_v30 = vmul.f32 %v14069_v47, %v19031_v3  ;;  %v8050_v44 = vpop.f32.mrb[41].mxu1 }
 0x534   : > { %v8336_v28 = vmul.f32 %v8300_v33, %v21398_v63  ;;  %v8224_v17 = vmul.f32 %v19031_v3, %v8050_v44  ;;  %v14070_v10 = vpop.f32.mrb[42].mxu1  ;;  %v21410_v44 = vld [vmem:[#allocation34_spill] sm:$0xff] }
 0x535   : > { %v8372_v25 = vpack.c.bf16 %v8338_v58, %v8337_v14  ;;  %v8269_v48 = vadd.f32 %v19036_v16, %v8226_v30  ;;  %v8227_v60 = vmul.f32 %v14070_v10, %v19031_v3  ;;  %v8053_v53 = vpop.f32.mrb[43].mxu1  ;;  %v21409_v58 = vld [vmem:[#allocation32_spill] sm:$0xff]  ;;  %v21412_v10 = vld [vmem:[#allocation33_spill] sm:$0xff] }
 0x536   : > { %v8371_v38 = vpack.c.bf16 %v8336_v28, %v8335_v54  ;;  %v8267_v20 = vadd.f32 %v19036_v16, %v8224_v17  ;;  %v8225_v45 = vmul.f32 %v19031_v3, %v8053_v53 }
 0x537   : > { %8390 = vst.msk [vmem:[#allocation3 + $0x18] sm:$0xff] %vm21399_vm15, %v8372_v25  ;;  %v8305_v29 = vmax.f32 %v8269_v48, 0.0  ;;  %v8270_v49 = vadd.f32 %v19036_v16, %v8227_v60  ;;  %v21413_v48 = vld [vmem:[#allocation15_spill] sm:$0xff]  ;;  %vm21424_vm15 = vmmov %vm21378_vm0 }
 0x538   : > { %8389 = vst.msk [vmem:[#allocation3 + $0x10] sm:$0xff] %vm21400_vm10, %v8371_v38  ;;  %v8303_v22 = vmax.f32 %v8267_v20, 0.0  ;;  %v8268_v21 = vadd.f32 %v19036_v16, %v8225_v45  ;;  %vm21425_vm10 = vmmov %vm21378_vm0 }
 0x539   : > { %v8306_v23 = vmax.f32 %v8270_v49, 0.0  ;;  %v8341_v6 = vmul.f32 %v8305_v29, %v21401_v11 }
 0x53a   : > { %v8304_v19 = vmax.f32 %v8268_v21, 0.0  ;;  %v14073_v55 = vpop.f32.mrb[44].mxu1  ;;  %v8339_v57 = vmul.f32 %v8303_v22, %v21403_v15 }
 0x53b   : > { %v8342_v40 = vmul.f32 %v8306_v23, %v21402_v26  ;;  %v8230_v18 = vmul.f32 %v14073_v55, %v19031_v3  ;;  %v8066_v32 = vpop.f32.mrb[45].mxu1 }
 0x53c   : > { %v8340_v59 = vmul.f32 %v8304_v19, %v21404_v24  ;;  %v8228_v50 = vmul.f32 %v19031_v3, %v8066_v32  ;;  %v14074_v12 = vpop.f32.mrb[46].mxu1 }
 0x53d   : > { %v8374_v37 = vpack.c.bf16 %v8342_v40, %v8341_v6  ;;  %v8273_v13 = vadd.f32 %v19036_v16, %v8230_v18  ;;  %v8231_v36 = vmul.f32 %v14074_v12, %v19031_v3  ;;  %v8069_v61 = vpop.f32.mrb[47].mxu1 }
 0x53e   : > { %v8373_v31 = vpack.c.bf16 %v8340_v59, %v8339_v57  ;;  %v8271_v4 = vadd.f32 %v19036_v16, %v8228_v50  ;;  %v8229_v43 = vmul.f32 %v19031_v3, %v8069_v61  ;;  %v19070_v27 = vld [vmem:[#allocation3 + $0x18] sm:$0xff] }
 0x53f   : > { %8392 = vst.msk [vmem:[#allocation3 + $0x28] sm:$0xff] %vm21405_vm12, %v8374_v37  ;;  %v8309_v1 = vmax.f32 %v8273_v13, 0.0  ;;  %v8274_v56 = vadd.f32 %v19036_v16, %v8231_v36  ;;  %v19074_v5 = vld [vmem:[#allocation3 + $0x10] sm:$0xff]  ;;  %v8510_v42 = vrot.slane %v19070_v27, 7  ;;  %v21419_v13 = vld [vmem:[#allocation17_spill] sm:$0xff]  ;;  %vm21426_vm12 = vmmov %vm21407_vm1 }
 0x540   : > { %8391 = vst.msk [vmem:[#allocation3 + $0x20] sm:$0xff] %vm21406_vm14, %v8373_v31  ;;  %v8307_v35 = vmax.f32 %v8271_v4, 0.0  ;;  %v8272_v8 = vadd.f32 %v19036_v16, %v8229_v43  ;;  %v8508_v7 = vrot.slane %v19074_v5, 7  ;;  %v21420_v61 = vld [vmem:[#allocation8_spill] sm:$0xff]  ;;  %vm21427_vm14 = vmmov %vm21407_vm1 }
 0x541   : > { %v8310_v2 = vmax.f32 %v8274_v56, 0.0  ;;  %v8345_v30 = vmul.f32 %v8309_v1, %v21409_v58  ;;  %v21422_v1 = vld [vmem:[#allocation16_spill] sm:$0xff] }
 0x542   : > { %v8308_v62 = vmax.f32 %v8272_v8, 0.0  ;;  %v14077_v33 = vpop.f32.mrb[48].mxu1  ;;  %v8509_v47 = vsel %vm21407_vm1, %v8506_v39, %v8508_v7  ;;  %v8511_v14 = vsel %vm21408_vm3, %v8508_v7, %v8510_v42  ;;  %v8343_v25 = vmul.f32 %v8307_v35, %v21412_v10  ;;  %v21423_v35 = vld [vmem:[#allocation18_spill] sm:$0xff]  ;;  %vm21430_vm1 = vmmov %vm21378_vm0 }
 0x543   : > { %v8346_v54 = vmul.f32 %v8310_v2, %v21410_v44  ;;  %v8234_v28 = vmul.f32 %v14077_v33, %v19031_v3  ;;  %v8082_v17 = vpop.f32.mrb[49].mxu1  ;;  %14102 = vmatmul.mubr.msk.bf16.vlgmr.msra.gmra.mrb[36].mxu0 %vm21411_vm4, %v8509_v47  ;;  %vm21433_vm3 = vmmov %vm21378_vm0 }
 0x544   : > { %v8344_v60 = vmul.f32 %v8308_v62, %v21413_v48  ;;  %v8232_v53 = vmul.f32 %v19031_v3, %v8082_v17  ;;  %14138 = vmatpush3.bf16.msra.mxu0 %v19019_v52  ;;  %v14078_v39 = vpop.f32.mrb[50].mxu1  ;;  %14105 = vmatprep.mubr.msk.bf16.mxu0 %vm21414_vm8, %v8511_v14  ;;  %vm21434_vm4 = vmmov %vm21378_vm0 }
 0x545   : > { %v8376_v38 = vpack.c.bf16 %v8346_v54, %v8345_v30  ;;  %v8277_v20 = vadd.f32 %v19036_v16, %v8234_v28  ;;  %v8235_v45 = vmul.f32 %v14078_v39, %v19031_v3  ;;  %v8085_v29 = vpop.f32.mrb[51].mxu1  ;;  %14175 = vmatprep.subr.bf16.mxu0 %v19083_v34  ;;  %vm21435_vm8 = vmmov %vm21378_vm0 }
 0x546   : > { %v8375_v49 = vpack.c.bf16 %v8344_v60, %v8343_v25  ;;  %v8275_v22 = vadd.f32 %v19036_v16, %v8232_v53  ;;  %v8233_v21 = vmul.f32 %v19031_v3, %v8085_v29  ;;  %v19103_v23 = vld [vmem:[#allocation3 + $0x28] sm:$0xff] }
 0x547   : > { %8394 = vst.msk [vmem:[#allocation3 + $0x38] sm:$0xff] %vm21415_vm13, %v8376_v38  ;;  %v8313_v52 = vmax.f32 %v8277_v20, 0.0  ;;  %v8278_v19 = vadd.f32 %v19036_v16, %v8235_v45  ;;  %v19107_v55 = vld [vmem:[#allocation3 + $0x20] sm:$0xff]  ;;  %v8514_v6 = vrot.slane %v19103_v23, 7  ;;  %vm21436_vm13 = vmmov %vm21417_vm5 }
 0x548   : > { %8393 = vst.msk [vmem:[#allocation3 + $0x30] sm:$0xff] %vm21416_vm9, %v8375_v49  ;;  %v8311_v40 = vmax.f32 %v8275_v22, 0.0  ;;  %v8276_v18 = vadd.f32 %v19036_v16, %v8233_v21  ;;  %v8512_v32 = vrot.slane %v19107_v55, 7  ;;  %vm21437_vm9 = vmmov %vm21417_vm5 }
 0x549   : > { %v8314_v57 = vmax.f32 %v8278_v19, 0.0  ;;  %v8349_v36 = vmul.f32 %v8313_v52, %v21419_v13  ;;  %v21428_v52 = vld [vmem:[#allocation35_spill] sm:$0xff] }
 0x54a   : > { %v8312_v59 = vmax.f32 %v8276_v18, 0.0  ;;  %v14081_v50 = vpop.f32.mrb[52].mxu1  ;;  %v8513_v12 = vsel %vm21417_vm5, %v8510_v42, %v8512_v32  ;;  %v8515_v37 = vsel %vm21418_vm7, %v8512_v32, %v8514_v6  ;;  %v8347_v56 = vmul.f32 %v8311_v40, %v21422_v1  ;;  %v21429_v40 = vld [vmem:[#allocation9_spill] sm:$0xff]  ;;  %vm21440_vm5 = vmmov %vm21378_vm0 }
 0x54b   : > { %v8350_v31 = vmul.f32 %v8314_v57, %v21420_v61  ;;  %v8238_v4 = vmul.f32 %v14081_v50, %v19031_v3  ;;  %v8098_v43 = vpop.f32.mrb[53].mxu1  ;;  %14106 = vmatmul.mubr.msk.bf16.gmra.mrb[40].mxu0 %vm21421_vm11, %v8513_v12  ;;  %v21432_v12 = vld [vmem:[#allocation22_spill] sm:$0xff]  ;;  %vm21443_vm7 = vmmov %vm21378_vm0 }
 0x54c   : > { %v8348_v8 = vmul.f32 %v8312_v59, %v21423_v35  ;;  %v8236_v7 = vmul.f32 %v19031_v3, %v8098_v43  ;;  %v14082_v2 = vpop.f32.mrb[54].mxu1  ;;  %14109 = vmatprep.mubr.msk.bf16.mxu0 %vm21378_vm0, %v8515_v37  ;;  %v21431_v59 = vld [vmem:[#allocation20_spill] sm:$0xff]  ;;  %vm21444_vm11 = vmmov %vm21378_vm0 }
 0x54d   : > { %v8378_v42 = vpack.c.bf16 %v8350_v31, %v8349_v36  ;;  %v8281_v62 = vadd.f32 %v19036_v16, %v8238_v4  ;;  %v8239_v33 = vmul.f32 %v14082_v2, %v19031_v3  ;;  %v8101_v47 = vpop.f32.mrb[55].mxu1 }
 0x54e   : > { %v8377_v14 = vpack.c.bf16 %v8348_v8, %v8347_v56  ;;  %v8279_v30 = vadd.f32 %v19036_v16, %v8236_v7  ;;  %v8237_v54 = vmul.f32 %v19031_v3, %v8101_v47  ;;  %v19127_v28 = vld [vmem:[#allocation3 + $0x38] sm:$0xff] }
 0x54f   : > { %8396 = vst.msk [vmem:[#allocation3 + $0x48] sm:$0xff] %vm21424_vm15, %v8378_v42  ;;  %v8317_v17 = vmax.f32 %v8281_v62, 0.0  ;;  %v8282_v25 = vadd.f32 %v19036_v16, %v8239_v33  ;;  %v19131_v60 = vld [vmem:[#allocation3 + $0x30] sm:$0xff]  ;;  %v8518_v53 = vrot.slane %v19127_v28, 7  ;;  %vm21445_vm15 = vmmov %vm21437_vm9 }
 0x550   : > { %8395 = vst.msk [vmem:[#allocation3 + $0x40] sm:$0xff] %vm21425_vm10, %v8377_v14  ;;  %v8315_v39 = vmax.f32 %v8279_v30, 0.0  ;;  %v8280_v38 = vadd.f32 %v19036_v16, %v8237_v54  ;;  %v8516_v20 = vrot.slane %v19131_v60, 7  ;;  %vm21446_vm10 = vmmov %vm21437_vm9 }
 0x551   : > { %v8318_v45 = vmax.f32 %v8282_v25, 0.0  ;;  %v8353_v19 = vmul.f32 %v8317_v17, %v21428_v52 }
 0x552   : > { %v8316_v29 = vmax.f32 %v8280_v38, 0.0  ;;  %v14085_v49 = vpop.f32.mrb[56].mxu1  ;;  %v8517_v22 = vsel %vm21426_vm12, %v8514_v6, %v8516_v20  ;;  %v8519_v21 = vsel %vm21427_vm14, %v8516_v20, %v8518_v53  ;;  %v8351_v50 = vmul.f32 %v8315_v39, %v21431_v59  ;;  %vm21449_vm12 = vmmov %vm21378_vm0 }
 0x553   : > { %v8354_v18 = vmul.f32 %v8318_v45, %v21429_v40  ;;  %v8242_v32 = vmul.f32 %v14085_v49, %v19031_v3  ;;  %v8114_v57 = vpop.f32.mrb[57].mxu1  ;;  %14110 = vmatmul.mubr.msk.bf16.gmra.mrb[44].mxu0 %vm21430_vm1, %v8517_v22  ;;  %v21439_v22 = vld [vmem:[#allocation25_spill] sm:$0xff]  ;;  %vm21452_vm14 = vmmov %vm21378_vm0 }
 0x554   : > { %v8352_v37 = vmul.f32 %v8316_v29, %v21432_v12  ;;  %v8240_v36 = vmul.f32 %v19031_v3, %v8114_v57  ;;  %v14086_v31 = vpop.f32.mrb[58].mxu1  ;;  %14113 = vmatprep.mubr.msk.bf16.mxu0 %vm21433_vm3, %v8519_v21  ;;  %v21438_v29 = vld [vmem:[#allocation23_spill] sm:$0xff]  ;;  %vm21454_vm1 = vmmov %vm21378_vm0  ;;  %v21476_v12 = vld [vmem:[#allocation40_spill] sm:$0xff] }
 0x555   : > { %v8380_v6 = vpack.c.bf16 %v8354_v18, %v8353_v19  ;;  %v8285_v4 = vadd.f32 %v19036_v16, %v8242_v32  ;;  %v8243_v43 = vmul.f32 %v14086_v31, %v19031_v3  ;;  %v8117_v56 = vpop.f32.mrb[59].mxu1  ;;  %v21441_v32 = vld [vmem:[#allocation24_spill] sm:$0xff]  ;;  %vm21455_vm3 = vmmov %vm21378_vm0 }
 0x556   : > { %v8379_v8 = vpack.c.bf16 %v8352_v37, %v8351_v50  ;;  %v8283_v7 = vadd.f32 %v19036_v16, %v8240_v36  ;;  %v8241_v2 = vmul.f32 %v19031_v3, %v8117_v56  ;;  %v19151_v42 = vld [vmem:[#allocation3 + $0x48] sm:$0xff] }
 0x557   : > { %8398 = vst.msk [vmem:[#allocation3 + $0x58] sm:$0xff] %vm21434_vm4, %v8380_v6  ;;  %v8321_v62 = vmax.f32 %v8285_v4, 0.0  ;;  %v8286_v33 = vadd.f32 %v19036_v16, %v8243_v43  ;;  %v19155_v47 = vld [vmem:[#allocation3 + $0x40] sm:$0xff]  ;;  %v8522_v14 = vrot.slane %v19151_v42, 7  ;;  %vm21457_vm4 = vmmov %vm21437_vm9 }
 0x558   : > { %8397 = vst.msk [vmem:[#allocation3 + $0x50] sm:$0xff] %vm21435_vm8, %v8379_v8  ;;  %v8319_v30 = vmax.f32 %v8283_v7, 0.0  ;;  %v8284_v54 = vadd.f32 %v19036_v16, %v8241_v2  ;;  %v8520_v17 = vrot.slane %v19155_v47, 7  ;;  %v21442_v50 = vld [vmem:[#allocation26_spill] sm:$0xff]  ;;  %vm21458_vm8 = vmmov %vm21457_vm4 }
 0x559   : > { %v8322_v25 = vmax.f32 %v8286_v33, 0.0  ;;  %v8357_v49 = vmul.f32 %v8321_v62, %v21438_v29  ;;  %v8461_v62 = vld [vmem:[#allocation3] sm:$0xc0] }
 0x55a   : > { %v8320_v39 = vmax.f32 %v8284_v54, 0.0  ;;  %v14089_v38 = vpop.f32.mrb[60].mxu1  ;;  %v8521_v20 = vsel %vm21436_vm13, %v8518_v53, %v8520_v17  ;;  %v8523_v45 = vsel %vm21437_vm9, %v8520_v17, %v8522_v14  ;;  %v8355_v57 = vmul.f32 %v8319_v30, %v21441_v32  ;;  %vm21461_vm13 = vmmov %vm21378_vm0  ;;  %v21463_v32 = vld [vmem:[#allocation39_spill] sm:$0xff] }
 0x55b   : > { %v8358_v21 = vmul.f32 %v8322_v25, %v21439_v22  ;;  %v8246_v19 = vmul.f32 %v14089_v38, %v19031_v3  ;;  %v8130_v18 = vpop.f32.mrb[61].mxu1  ;;  %14114 = vmatmul.mubr.msk.bf16.gmra.mrb[48].mxu0 %vm21440_vm5, %v8521_v20  ;;  %v20662_v25 = vshrl.u32 %v19012_v51, 16  ;;  %v21459_v22 = vld [vmem:[#allocation36_spill] sm:$0xff]  ;;  %vm21464_vm9 = vmmov %vm21378_vm0 }
 0x55c   : > { %v8356_v37 = vmul.f32 %v8320_v39, %v21442_v50  ;;  %v8244_v36 = vmul.f32 %v19031_v3, %v8130_v18  ;;  %v14090_v31 = vpop.f32.mrb[62].mxu1  ;;  %14117 = vmatprep.mubr.msk.bf16.mxu0 %vm21443_vm7, %v8523_v45  ;;  %v21460_v50 = vld [vmem:[#allocation38_spill] sm:$0xff]  ;;  %vm21466_vm5 = vmmov %vm21378_vm0 }
 0x55d   : > { %v8382_v53 = vpack.c.bf16 %v8358_v21, %v8357_v49  ;;  %v8289_v6 = vadd.f32 %v19036_v16, %v8246_v19  ;;  %v8247_v4 = vmul.f32 %v14090_v31, %v19031_v3  ;;  %v8133_v43 = vpop.f32.mrb[63].mxu1  ;;  %v8780_v49 = vshrl.u32 %v8461_v62, 16  ;;  %v21447_v31 = vld [vmem:[#allocation27_spill] sm:$0xff]  ;;  %vm21469_vm7 = vmmov %vm21378_vm0 }
 0x55e   : > { %v8381_v56 = vpack.c.bf16 %v8356_v37, %v8355_v57  ;;  %v8287_v8 = vadd.f32 %v19036_v16, %v8244_v36  ;;  %v8245_v7 = vmul.f32 %v19031_v3, %v8133_v43  ;;  %v19175_v2 = vld [vmem:[#allocation3 + $0x58] sm:$0xff]  ;;  %v8783_v36 = vshll.u32 %v8461_v62, 16 }
 0x55f   : > { %8400 = vst.msk [vmem:[#allocation3 + $0x68] sm:$0xff] %vm21444_vm11, %v8382_v53  ;;  %v8325_v33 = vmax.f32 %v8289_v6, 0.0  ;;  %v8290_v30 = vadd.f32 %v19036_v16, %v8247_v4  ;;  %v19179_v54 = vld [vmem:[#allocation3 + $0x50] sm:$0xff]  ;;  %v8526_v17 = vrot.slane %v19175_v2, 7  ;;  %v21448_v6 = vld [vmem:[#allocation29_spill] sm:$0xff]  ;;  %vm21473_vm11 = vmmov %vm21457_vm4 }
 0x560   : > { %8399 = vst.msk [vmem:[#allocation3 + $0x60] sm:$0xff] %vm21378_vm0, %v8381_v56  ;;  %v8323_v39 = vmax.f32 %v8287_v8, 0.0  ;;  %v8288_v38 = vadd.f32 %v19036_v16, %v8245_v7  ;;  %v8524_v20 = vrot.slane %v19179_v54, 7  ;;  %v19195_v8 = vrot.slane %v20662_v25, 6  ;;  %v21450_v7 = vld [vmem:[#allocation30_spill] sm:$0xff]  ;;  %vm21474_vm0 = vmmov %vm21457_vm4 }
 0x561   : > { %v8326_v45 = vmax.f32 %v8290_v30, 0.0  ;;  %v8361_v53 = vmul.f32 %v8325_v33, %v21447_v31  ;;  %v20663_v25 = vshrl.u32 %v19074_v5, 16 }
 0x562   : > { %v8324_v19 = vmax.f32 %v8288_v38, 0.0  ;;  %v14093_v18 = vpop.f32.mrb[64].mxu1  ;;  %v8525_v57 = vsel %vm21445_vm15, %v8522_v14, %v8524_v20  ;;  %v8527_v37 = vsel %vm21446_vm10, %v8524_v20, %v8526_v17  ;;  %v8359_v30 = vmul.f32 %v8323_v39, %v21450_v7  ;;  %v21451_v38 = vld [vmem:[#allocation31_spill] sm:$0xff]  ;;  %vm21478_vm15 = vmmov %vm21454_vm1 }
 0x563   : > { %v8362_v4 = vmul.f32 %v8326_v45, %v21448_v6  ;;  %v8250_v43 = vmul.f32 %v14093_v18, %v19031_v3  ;;  %v8146_v56 = vpop.f32.mrb[65].mxu1  ;;  %14118 = vmatmul.mubr.msk.bf16.gmra.mrb[52].mxu0 %vm21449_vm12, %v8525_v57  ;;  %vm21481_vm10 = vmmov %vm21454_vm1 }
 0x564   : > { %v8360_v14 = vmul.f32 %v8324_v19, %v21451_v38  ;;  %v8248_v20 = vmul.f32 %v19031_v3, %v8146_v56  ;;  %v14094_v62 = vpop.f32.mrb[66].mxu1  ;;  %14121 = vmatprep.mubr.msk.bf16.mxu0 %vm21452_vm14, %v8527_v37  ;;  %v21453_v56 = vshll.u32 %v19012_v51, 16  ;;  %vm21483_vm12 = vmmov %vm21454_vm1 }
 0x565   : > { %v8384_v45 = vpack.c.bf16 %v8362_v4, %v8361_v53  ;;  %v8293_v18 = vadd.f32 %v19036_v16, %v8250_v43  ;;  %v8251_v57 = vmul.f32 %v14094_v62, %v19031_v3  ;;  %v8149_v21 = vpop.f32.mrb[67].mxu1  ;;  %vm21485_vm14 = vmmov %vm21454_vm1 }
 0x566   : > { %v8383_v6 = vpack.c.bf16 %v8360_v14, %v8359_v30  ;;  %v8291_v39 = vadd.f32 %v19036_v16, %v8248_v20  ;;  %v8249_v19 = vmul.f32 %v19031_v3, %v8149_v21  ;;  %v19207_v38 = vld [vmem:[#allocation3 + $0x68] sm:$0xff]  ;;  %v19211_v37 = vrot.slane %v21453_v56, 7 }
 0x567   : > { %8402 = vst.msk [vmem:[#allocation3 + $0x78] sm:$0xff] %vm21454_vm1, %v8384_v45  ;;  %v8329_v53 = vmax.f32 %v8293_v18, 0.0  ;;  %v8294_v4 = vadd.f32 %v19036_v16, %v8251_v57  ;;  %v19215_v43 = vld [vmem:[#allocation3 + $0x60] sm:$0xff]  ;;  %v8530_v62 = vrot.slane %v19207_v38, 7  ;;  %v19218_v30 = vrot.slane %v8780_v49, 6  ;;  %vm21486_vm1 = vmmov %vm21474_vm0 }
 0x568   : > { %8401 = vst.msk [vmem:[#allocation3 + $0x70] sm:$0xff] %vm21455_vm3, %v8383_v6  ;;  %v8327_v21 = vmax.f32 %v8291_v39, 0.0  ;;  %v8292_v14 = vadd.f32 %v19036_v16, %v8249_v19  ;;  %v8528_v20 = vrot.slane %v19215_v43, 7  ;;  %v19223_v56 = vrot.slane %v8783_v36, 7  ;;  %vm21487_vm3 = vmmov %vm21474_vm0 }
 0x569   : > { %v8330_v33 = vmax.f32 %v8294_v4, 0.0  ;;  %v8799_v45 = vrot.slane %v20663_v25, 6  ;;  %v21456_v57 = vshrl.u32 %v19070_v27, 16  ;;  %v8365_v36 = vmul.f32 %v8329_v53, %v21459_v22 }
 0x56a   : > { %v8328_v49 = vmax.f32 %v8292_v14, 0.0  ;;  %v14097_v7 = vpop.f32.mrb[68].mxu1  ;;  %v8529_v6 = vsel %vm21457_vm4, %v8526_v17, %v8528_v20  ;;  %v8531_v39 = vsel %vm21458_vm8, %v8528_v20, %v8530_v62  ;;  %v20664_v53 = vshll.u32 %v19107_v55, 16  ;;  %vm21488_vm4 = vmmov %vm21466_vm5 }
 0x56b   : > { %v8808_v31 = vrot.slane %v21456_v57, 6  ;;  %v8366_v4 = vmul.f32 %v8330_v33, %v21460_v50  ;;  %v8254_v29 = vmul.f32 %v14097_v7, %v19031_v3  ;;  %v8162_v25 = vpop.f32.mrb[69].mxu1  ;;  %14122 = vmatmul.mubr.msk.bf16.gmra.mrb[56].mxu0 %vm21461_vm13, %v8529_v6  ;;  %v21462_v57 = vld [vmem:[#allocation37_spill] sm:$0xff]  ;;  %v21472_v22 = vshrl.u32 %v19103_v23, 16  ;;  %vm21489_vm8 = vmmov %vm21488_vm4 }
 0x56c   : > { %v8363_v14 = vmul.f32 %v8327_v21, %v21462_v57  ;;  %v8364_v40 = vmul.f32 %v8328_v49, %v21463_v32  ;;  %v8252_v17 = vmul.f32 %v19031_v3, %v8162_v25  ;;  %v14098_v20 = vpop.f32.mrb[70].mxu1  ;;  %14125 = vmatprep.mubr.msk.bf16.mxu0 %vm21464_vm9, %v8531_v39  ;;  %v8820_v6 = vrot.slane %v20664_v53, 7  ;;  %v21479_v53 = vld [vmem:[#allocation44_spill] sm:$0xff]  ;;  %vm21497_vm13 = vmmov %vm21474_vm0 }
 0x56d   : > { %v8386_v19 = vpack.c.bf16 %v8366_v4, %v8365_v36  ;;  %v8297_v33 = vadd.f32 %v19036_v16, %v8254_v29  ;;  %v8255_v7 = vmul.f32 %v14098_v20, %v19031_v3  ;;  %v8165_v50 = vpop.f32.mrb[71].mxu1  ;;  %v21468_v20 = vshll.u32 %v19074_v5, 16  ;;  %vm21498_vm9 = vmmov %vm21488_vm4 }
 0x56e   : > { %v8385_v18 = vpack.c.bf16 %v8364_v40, %v8363_v14  ;;  %v8295_v21 = vadd.f32 %v19036_v16, %v8252_v17  ;;  %v8253_v49 = vmul.f32 %v19031_v3, %v8165_v50  ;;  %v19248_v32 = vld [vmem:[#allocation3 + $0x78] sm:$0xff]  ;;  %v21470_v17 = vshll.u32 %v19070_v27, 16 }
 0x56f   : > { %21465 = vst [vmem:[#allocation50_spill] sm:$0xff] %v19248_v32  ;;  %8404 = vst.msk [vmem:[#allocation3 + $0x88] sm:$0xff] %vm21466_vm5, %v8386_v19  ;;  %v8333_v39 = vmax.f32 %v8297_v33, 0.0  ;;  %v8298_v36 = vadd.f32 %v19036_v16, %v8255_v7  ;;  %v19253_v29 = vld [vmem:[#allocation3 + $0x70] sm:$0xff]  ;;  %v8534_v4 = vrot.slane %v19248_v32, 7  ;;  %v8802_v40 = vrot.slane %v21468_v20, 7 }
 0x570   : > { %21467 = vst [vmem:[#allocation51_spill] sm:$0xff] %v19253_v29  ;;  %8403 = vst.msk [vmem:[#allocation3 + $0x80] sm:$0xff] %vm21469_vm7, %v8385_v18  ;;  %v8331_v14 = vmax.f32 %v8295_v21, 0.0  ;;  %v8296_v3 = vadd.f32 %v19036_v16, %v8253_v49  ;;  %v8532_v50 = vrot.slane %v19253_v29, 7  ;;  %v8811_v19 = vrot.slane %v21470_v17, 7 }
 0x571   : > { %v8334_v33 = vmax.f32 %v8298_v36, 0.0  ;;  %v21471_v7 = vshrl.u32 %v19107_v55, 16  ;;  %v8826_v20 = vrot.slane %v21472_v22, 6  ;;  %v21475_v21 = vshll.u32 %v19103_v23, 16  ;;  %v21477_v36 = vld [vmem:[#allocation42_spill] sm:$0xff]  ;;  %v21480_v22 = vld [vmem:[#allocation45_spill] sm:$0xff]  ;;  %vm21501_vm5 = vmmov %vm21488_vm4 }
 0x572   : > { %v8332_v57 = vmax.f32 %v8296_v3, 0.0  ;;  %v8533_v18 = vsel %vm21473_vm11, %v8530_v62, %v8532_v50  ;;  %v8535_v16 = vsel %vm21474_vm0, %v8532_v50, %v8534_v4  ;;  %v8369_v17 = vmul.f32 %v8333_v39, %v21476_v12  ;;  %vm21509_vm7 = vmmov %vm21488_vm4 }
 0x573   : > { %v8817_v25 = vrot.slane %v21471_v7, 6  ;;  %v8829_v49 = vrot.slane %v21475_v21, 7  ;;  %v8370_v52 = vmul.f32 %v8334_v33, %v21477_v36  ;;  %14126 = vmatmul.mubr.msk.bf16.gmra.mrb[60].mxu0 %vm21478_vm15, %v8533_v18  ;;  %v8794_v7 = vor.u32 %v19211_v37, %v19195_v8  ;;  %vm21511_vm11 = vmmov %vm21488_vm4 }
 0x574   : > { %v8367_v59 = vmul.f32 %v8331_v14, %v21479_v53  ;;  %v8368_v3 = vmul.f32 %v8332_v57, %v21480_v22  ;;  %14129 = vmatprep.mubr.msk.bf16.mxu0 %vm21481_vm10, %v8535_v16  ;;  %v8786_v62 = vor.u32 %v19223_v56, %v19218_v30  ;;  %v8803_v50 = vor.u32 %v8802_v40, %v8799_v45  ;;  %vm21519_vm0 = vmmov %vm21488_vm4 }
 0x575   : > { %v8388_v21 = vpack.c.bf16 %v8370_v52, %v8369_v17  ;;  %v8812_v61 = vor.u32 %v8811_v19, %v8808_v31  ;;  %v8821_v39 = vor.u32 %v8820_v6, %v8817_v25  ;;  %v8833_v33 = vshrl.u32 %v19131_v60, 16  ;;  %vm21520_vm15 = vmmov %vm21519_vm0 }
 0x576   : > { %v8387_v36 = vpack.c.bf16 %v8368_v3, %v8367_v59  ;;  %v19284_v18 = vld [vmem:[#allocation3 + $0x88] sm:$0xff]  ;;  %v19286_v12 = vor.u32 %v8829_v49, %v8826_v20  ;;  %v8836_v8 = vshll.u32 %v19131_v60, 16  ;;  %v8842_v30 = vshrl.u32 %v19127_v28, 16  ;;  %vm21521_vm10 = vmmov %vm21519_vm0 }
 0x577   : > { %21482 = vst [vmem:[#allocation49_spill] sm:$0xff] %v19284_v18  ;;  %8406 = vst.msk [vmem:[#allocation3 + $0x98] sm:$0xff] %vm21483_vm12, %v8388_v21  ;;  %v19290_v37 = vld [vmem:[#allocation3 + $0x80] sm:$0xff]  ;;  %v8538_v57 = vrot.slane %v19284_v18, 7  ;;  %v8795_v59 = vsel %vm5182_vm2, %v8786_v62, %v8794_v7  ;;  %v19298_v31 = vsel %vm5182_vm2, %v8794_v7, %v8803_v50  ;;  %v19301_v56 = vsel %vm5182_vm2, %v8803_v50, %v8812_v61 }
 0x578   : > { %21484 = vst [vmem:[#allocation52_spill] sm:$0xff] %v19290_v37  ;;  %8405 = vst.msk [vmem:[#allocation3 + $0x90] sm:$0xff] %vm21485_vm14, %v8387_v36  ;;  %v8536_v52 = vrot.slane %v19290_v37, 7  ;;  %v19304_v60 = vsel %vm5182_vm2, %v8812_v61, %v8821_v39  ;;  %v19306_v45 = vrot.slane %v8833_v33, 6  ;;  %v19312_v40 = vsel %vm5182_vm2, %v8821_v39, %v19286_v12 }
 0x579   : > { %v19314_v14 = vrot.slane %v8836_v8, 7  ;;  %v19317_v19 = vrot.slane %v8842_v30, 6  ;;  %v19326_v17 = vshrl.u32 %v19179_v54, 16  ;;  %v19329_v36 = vshll.u32 %v19179_v54, 16  ;;  %vm21522_vm12 = vmmov %vm21519_vm0 }
 0x57a   : > { %v8537_v6 = vsel %vm21486_vm1, %v8534_v4, %v8536_v52  ;;  %v8539_v25 = vsel %vm21487_vm3, %v8536_v52, %v8538_v57  ;;  %v21490_v7 = vshrl.u32 %v19074_v5, 16  ;;  %v21491_v62 = vshrl.u32 %v19070_v27, 16  ;;  %vm21523_vm14 = vmmov %vm21519_vm0 }
 0x57b   : > { %14130 = vmatmul.mubr.msk.bf16.gmra.mrb[64].mxu0 %vm21488_vm4, %v8537_v6  ;;  %v21492_v21 = vshrl.u32 %v19107_v55, 16  ;;  %v21493_v52 = vshrl.u32 %v19103_v23, 16  ;;  %v19345_v49 = vshll.u32 %v19175_v2, 16  ;;  %v19348_v54 = vshrl.u32 %v19215_v43, 16  ;;  %vm21525_vm3 = vmmov %vm21519_vm0 }
 0x57c   : > { %14133 = vmatprep.mubr.msk.bf16.mxu0 %vm21489_vm8, %v8539_v25  ;;  %v19333_v3 = vrot.slane %v21490_v7, 7  ;;  %v9200_v50 = vrot.slane %v21491_v62, 7  ;;  %v19342_v25 = vshrl.u32 %v19175_v2, 16  ;;  %v19351_v7 = vshll.u32 %v19215_v43, 16 }
 0x57d   : > { %v9203_v39 = vrot.slane %v21492_v21, 7  ;;  %v9206_v6 = vrot.slane %v21493_v52, 7  ;;  %v19356_v62 = vshrl.u32 %v19207_v38, 16  ;;  %v21494_v21 = vshll.u32 %v19070_v27, 16 }
 0x57e   : > { %v21495_v20 = vshll.u32 %v19107_v55, 16  ;;  %v21496_v2 = vshll.u32 %v19103_v23, 16  ;;  %v19366_v53 = vshll.u32 %v19207_v38, 16  ;;  %v19369_v43 = vshrl.u32 %v19253_v29, 16 }
 0x57f   : > { %v19353_v16 = vld [vmem:[#allocation3 + $0x90] sm:$0x7f]  ;;  %v9201_v52 = vor.u32 %v9200_v50, %v21494_v21  ;;  %v19372_v35 = vshll.u32 %v19253_v29, 16  ;;  %v19375_v27 = vshrl.u32 %v19248_v32, 16  ;;  %v19378_v55 = vshll.u32 %v19248_v32, 16 }
 0x580   : > { %v9204_v4 = vor.u32 %v9203_v39, %v21495_v20  ;;  %v9207_v61 = vor.u32 %v9206_v6, %v21496_v2  ;;  %v8540_v22 = vrot.slane %v19353_v16, 7  ;;  %v19389_v21 = vshrl.u32 %v19290_v37, 16 }
 0x581   : > { %v19382_v23 = vsel %vm5594_vm6, %v19333_v3, %v9201_v52  ;;  %v19392_v2 = vshll.u32 %v19290_v37, 16  ;;  %v9209_v1 = vrot.slane %v8833_v33, 7  ;;  %v9212_v44 = vrot.slane %v8842_v30, 7 }
 0x582   : > { %v19385_v20 = vsel %vm5594_vm6, %v9200_v50, %v9204_v4  ;;  %v8541_v38 = vsel %vm21497_vm13, %v8538_v57, %v8540_v22  ;;  %v19395_v13 = vsel %vm5594_vm6, %v9203_v39, %v9207_v61  ;;  %v21499_v52 = vshrl.u32 %v19155_v47, 16 }
 0x583   : > { %14134 = vmatmul.mubr.msk.bf16.gmra.mrb[68].mxu0 %vm21498_vm9, %v8541_v38  ;;  %v21500_v4 = vshrl.u32 %v19151_v42, 16  ;;  %v19404_v22 = vshrl.u32 %v19284_v18, 16  ;;  %v9221_v57 = vrot.slane %v19326_v17, 7  ;;  %v9224_v61 = vrot.slane %v19342_v25, 7 }
 0x584   : > { %v9215_v48 = vrot.slane %v21499_v52, 7  ;;  %14139 = vmatprep.mubr.msk.bf16.mxu0 %vm21501_vm5, %v8795_v59  ;;  %v9227_v39 = vrot.slane %v19348_v54, 7  ;;  %v9210_v38 = vor.u32 %v9209_v1, %v8836_v8  ;;  %v21502_v33 = vshll.u32 %v19127_v28, 16 }
 0x585   : > { %v9218_v50 = vrot.slane %v21500_v4, 7  ;;  %v21503_v52 = vshll.u32 %v19155_v47, 16  ;;  %v21504_v4 = vshll.u32 %v19151_v42, 16  ;;  %v19416_v59 = vshll.u32 %v19284_v18, 16 }
 0x586   : > { %v9213_v30 = vor.u32 %v9212_v44, %v21502_v33  ;;  %v9222_v26 = vor.u32 %v9221_v57, %v19329_v36  ;;  %v9225_v24 = vor.u32 %v9224_v61, %v19345_v49  ;;  %v9228_v11 = vor.u32 %v9227_v39, %v19351_v7 }
 0x587   : > { %v9216_v58 = vor.u32 %v9215_v48, %v21503_v52  ;;  %v9219_v10 = vor.u32 %v9218_v50, %v21504_v4  ;;  %v19422_v8 = vsel %vm5594_vm6, %v9206_v6, %v9210_v38  ;;  %v9230_v6 = vrot.slane %v19356_v62, 7 }
 0x588   : > { %v19425_v33 = vsel %vm5594_vm6, %v9209_v1, %v9213_v30  ;;  %v19434_v15 = vsel %vm5594_vm6, %v9218_v50, %v9222_v26  ;;  %v19437_v9 = vsel %vm5594_vm6, %v9221_v57, %v9225_v24  ;;  %v19440_v63 = vsel %vm5594_vm6, %v9224_v61, %v9228_v11  ;;  %v19446_v1 = vld [vmem:[%s20460_s7 + $0x18] sm:$0xff]  }
 0x589   : > { %v19428_v52 = vsel %vm5594_vm6, %v9212_v44, %v9216_v58  ;;  %v19431_v4 = vsel %vm5594_vm6, %v9215_v48, %v9219_v10  ;;  %21505 = vst [vmem:[#allocation53_spill] sm:$0xff] %v19440_v63  ;;  %v9233_v58 = vrot.slane %v19369_v43, 7  ;;  %v9236_v44 = vrot.slane %v19375_v27, 7 }
 0x58a   : > { %v9239_v26 = vrot.slane %v19389_v21, 7  ;;  %v21506_v24 = vshll.u32 %v19127_v28, 16  ;;  %v21507_v11 = vshrl.u32 %v19155_v47, 16  ;;  %v21508_v57 = vshll.u32 %v19155_v47, 16 }
 0x58b   : > { %v9231_v38 = vor.u32 %v9230_v6, %v19366_v53  ;;  %14140 = vmatmul.mubr.msk.bf16.vlgmr.msra.gmra.mrb[36].mxu0 %vm21509_vm7, %v19298_v31  ;;  %v9234_v30 = vor.u32 %v9233_v58, %v19372_v35  ;;  %v9237_v41 = vor.u32 %v9236_v44, %v19378_v55  ;;  %v21510_v28 = vrot.slane %v19404_v22, 7 }
 0x58c   : > { %v8847_v48 = vrot.slane %v21506_v24, 7  ;;  %v8853_v50 = vrot.slane %v21507_v11, 6  ;;  %v8856_v61 = vrot.slane %v21508_v57, 7  ;;  %v9240_v10 = vor.u32 %v9239_v26, %v19392_v2  ;;  %14176 = vmatpush3.bf16.msra.mxu0 %v19083_v34  ;;  %14143 = vmatprep.mubr.msk.bf16.mxu0 %vm21511_vm11, %v19301_v56 }
 0x58d   : > { %v9243_v24 = vor.u32 %v21510_v28, %v19416_v59  ;;  %v21512_v47 = vshrl.u32 %v19151_v42, 16  ;;  %v21513_v31 = vshll.u32 %v19151_v42, 16  ;;  %v8871_v46 = vrot.slane %v19326_v17, 6  ;;  %14213 = vmatprep.subr.bf16.mxu0 %v19446_v1 }
 0x58e   : > { %v19476_v18 = vsel %vm5594_vm6, %v9227_v39, %v9231_v38  ;;  %v19480_v28 = vsel %vm5594_vm6, %v9230_v6, %v9234_v30  ;;  %v19483_v34 = vsel %vm5594_vm6, %v9233_v58, %v9237_v41  ;;  %v19486_v56 = vsel %vm5594_vm6, %v9236_v44, %v9240_v10 }
 0x58f   : > { %v8862_v11 = vrot.slane %v21512_v47, 6  ;;  %v8865_v57 = vrot.slane %v21513_v31, 7  ;;  %21514 = vst [vmem:[#allocation54_spill] sm:$0xff] %v19476_v18  ;;  %21515 = vst [vmem:[#allocation55_spill] sm:$0xff] %v19480_v28  ;;  %v19489_v47 = vsel %vm5594_vm6, %v9239_v26, %v9243_v24  ;;  %v8874_v42 = vrot.slane %v19329_v36, 7 }
 0x590   : > { %21516 = vst [vmem:[#allocation43_spill] sm:$0xff] %v19483_v34  ;;  %21517 = vst [vmem:[#allocation41_spill] sm:$0xff] %v19486_v56  ;;  %v8880_v31 = vrot.slane %v19342_v25, 6  ;;  %v8883_v39 = vrot.slane %v19345_v49, 7  ;;  %v8839_v41 = vor.u32 %v19314_v14, %v19306_v45  ;;  %v8848_v6 = vor.u32 %v8847_v48, %v19317_v19 }
 0x591   : > { %21518 = vst [vmem:[#allocation47_spill] sm:$0xff] %v19489_v47  ;;  %v8857_v58 = vor.u32 %v8856_v61, %v8853_v50  ;;  %v8866_v44 = vor.u32 %v8865_v57, %v8862_v11  ;;  %v8875_v26 = vor.u32 %v8874_v42, %v8871_v46  ;;  %v8889_v38 = vrot.slane %v19348_v54, 6  ;;  %v10228_v61 = vld [vmem:[#allocation3 + $0x18] sm:$0xff] }
 0x592   : > { %v19501_v10 = vor.u32 %v8883_v39, %v8880_v31  ;;  %v8892_v30 = vrot.slane %v19351_v7, 7  ;;  %v8849_v24 = vsel %vm5182_vm2, %v8839_v41, %v8848_v6  ;;  %v8901_v48 = vrot.slane %v19366_v53, 7  ;;  %v19528_v39 = vld [vmem:[#allocation3 + $0x90] sm:$0xff] }
 0x593   : > { %14144 = vmatmul.mubr.msk.bf16.gmra.mrb[40].mxu0 %vm21519_vm0, %v19304_v60  ;;  %v8840_v60 = vsel %vm5182_vm2, %v19286_v12, %v8839_v41  ;;  %v8858_v45 = vsel %vm5182_vm2, %v8848_v6, %v8857_v58  ;;  %v19512_v14 = vsel %vm5182_vm2, %v8866_v44, %v8875_v26  ;;  %v8898_v12 = vrot.slane %v19356_v62, 6 }
 0x594   : > { %14147 = vmatprep.mubr.msk.bf16.mxu0 %vm21520_vm15, %v19312_v40  ;;  %v8867_v40 = vsel %vm5182_vm2, %v8857_v58, %v8866_v44  ;;  %v19516_v46 = vsel %vm5182_vm2, %v8875_v26, %v19501_v10  ;;  %v19519_v19 = vor.u32 %v8892_v30, %v8889_v38  ;;  %v8907_v50 = vrot.slane %v19369_v43, 6  ;;  %v19534_v26 = vld [vmem:[#allocation3 + $0x20] sm:$0xff] }
 0x595   : > { %v8910_v11 = vrot.slane %v19372_v35, 7  ;;  %v8916_v57 = vrot.slane %v19375_v27, 6  ;;  %v8919_v42 = vrot.slane %v19378_v55, 7  ;;  %v8925_v31 = vrot.slane %v19389_v21, 6 }
 0x596   : > { %v8928_v41 = vrot.slane %v19392_v2, 7  ;;  %v8934_v6 = vrot.slane %v19404_v22, 6  ;;  %v8937_v58 = vrot.slane %v19416_v59, 7  ;;  %v9191_v44 = vshrl.u32 %v19014_v0, 16 }
 0x597   : > { %v8941_v38 = vshrl.u32 %v19353_v16, 16  ;;  %v8944_v30 = vshll.u32 %v19353_v16, 16  ;;  %v20675_v37 = vrot.slane %v19329_v36, 1  ;;  %v19542_v32 = vshrl.u32 %v19528_v39, 16 }
 0x598   : > { %v10323_v29 = vrot.slane %v19345_v49, 1  ;;  %v10331_v47 = vrot.slane %v19351_v7, 1  ;;  %v10339_v0 = vrot.slane %v19366_v53, 1  ;;  %v10347_v34 = vrot.slane %v19372_v35, 1 }
 0x599   : > { %v10319_v16 = vor.u32 %v20675_v37, %v19326_v17  ;;  %v10355_v28 = vrot.slane %v19378_v55, 1  ;;  %v19554_v18 = vshll.u32 %v19528_v39, 16  ;;  %vm21524_vm1 = vsmask.f32 7424 }
 0x59a   : > { %v10327_v49 = vor.u32 %v10323_v29, %v19342_v25  ;;  %v10335_v53 = vor.u32 %v10331_v47, %v19348_v54  ;;  %v10343_v35 = vor.u32 %v10339_v0, %v19356_v62  ;;  %v10351_v55 = vor.u32 %v10347_v34, %v19369_v43  ;;  %vm21526_vm4 = vmmov %vm21524_vm1 }
 0x59b   : > { %14148 = vmatmul.mubr.msk.bf16.gmra.mrb[44].mxu0 %vm21521_vm10, %v8840_v60  ;;  %v19538_v60 = vld [vmem:[#allocation3 + $0x98] sm:$0xff]  ;;  %v19565_v17 = vsel %vm21524_vm1, %v10319_v16, %v10323_v29  ;;  %v10261_v37 = vshrl.u32 %v10228_v61, 16  ;;  %vm21527_vm8 = vmmov %vm21524_vm1  ;;  %v10359_v54 = vor.u32 %v10355_v28, %v19375_v27  ;;  %v10363_v43 = vrot.slane %v19392_v2, 1 }
 0x59c   : > { %14151 = vmatprep.mubr.msk.bf16.mxu0 %vm21522_vm12, %v8849_v24  ;;  %v10257_v24 = vshll.u32 %v10228_v61, 16  ;;  %v19557_v63 = vshll.u32 %v19538_v60, 16  ;;  %v19571_v56 = vsel %vm21526_vm4, %v10327_v49, %v10331_v47  ;;  %v19574_v25 = vsel %vm21527_vm8, %v10335_v53, %v10339_v0  ;;  %vm21530_vm13 = vmmov %vm21524_vm1 }
 0x59d   : > { %21528 = vst [vmem:[#allocation46_spill] sm:$0xff] %v19574_v25  ;;  %v19582_v29 = vsel %vm21530_vm13, %v10343_v35, %v10347_v34  ;;  %vm21532_vm9 = vmmov %vm21524_vm1  ;;  %v19589_v47 = vshrl.u32 %v19538_v60, 16  ;;  %v19593_v61 = vrot.slane %v19554_v18, 1  ;;  %v8943_v0 = vrot.slane %v8941_v38, 6 }
 0x59e   : > { %v19562_v7 = vrot.slane %v10257_v24, 1  ;;  %21531 = vst [vmem:[#allocation56_spill] sm:$0xff] %v19582_v29  ;;  %v19585_v62 = vsel %vm21532_vm9, %v10351_v55, %v10355_v28  ;;  %v10387_v27 = vrot.slane %v19557_v63, 1  ;;  %vm21535_vm5 = vmmov %vm21524_vm1  ;;  %v10367_v34 = vor.u32 %v10363_v43, %v19389_v21 }
 0x59f   : > { %21533 = vst [vmem:[#allocation57_spill] sm:$0xff] %v19585_v62  ;;  %21534 = vst [vmem:[#allocation58_spill] sm:$0xff] %v19593_v61  ;;  %v19597_v16 = vsel %vm21535_vm5, %v10359_v54, %v10363_v43  ;;  %v8946_v49 = vrot.slane %v8944_v30, 7  ;;  %v10383_v53 = vor.u32 %v19593_v61, %v19542_v32  ;;  %v8902_v35 = vor.u32 %v8901_v48, %v8898_v12 }
 0x5a0   : > { %21536 = vst [vmem:[#allocation59_spill] sm:$0xff] %v19597_v16  ;;  %v10698_v28 = vor.u32 %v10261_v37, %v19562_v7  ;;  %v21538_v55 = vshrl.u32 %v19012_v51, 16  ;;  %vm21539_vm7 = vmmov %vm21524_vm1  ;;  %v8911_v21 = vor.u32 %v8910_v11, %v8907_v50  ;;  %v8920_v30 = vor.u32 %v8919_v42, %v8916_v57  ;;  %v19637_v57 = vld [vmem:[#allocation3 + $0x30] sm:$0xff] }
 0x5a1   : > { %vm21541_vm11 = vmmov %vm21524_vm1  ;;  %v8929_v12 = vor.u32 %v8928_v41, %v8925_v31  ;;  %v8938_v48 = vor.u32 %v8937_v58, %v8934_v6  ;;  %v8947_v50 = vor.u32 %v8946_v49, %v8943_v0  ;;  %v8894_v11 = vsel %vm5182_vm2, %v19501_v10, %v19519_v19  ;;  %v19646_v41 = vld [vmem:[#allocation3 + $0x38] sm:$0xff] }
 0x5a2   : > { %v19609_v38 = vrot.slane %v21538_v55, 7  ;;  %vm21542_vm0 = vmmov %vm21524_vm1  ;;  %v19630_v55 = vld [vmem:[#allocation3 + $0x28] sm:$0xff]  ;;  %v8912_v42 = vsel %vm5182_vm2, %v8902_v35, %v8911_v21  ;;  %vm21552_vm1 = vcmask 1046528   ;;  %v21584_v62 = vshrl.u32 %v19637_v57, 16 }
 0x5a3   : > { %14152 = vmatmul.mubr.msk.bf16.gmra.mrb[48].mxu0 %vm21523_vm14, %v8858_v45  ;;  %v21529_v45 = vshll.u32 %v19534_v26, 16  ;;  %vm21544_vm15 = vmmov %vm21542_vm0  ;;  %v20676_v31 = vshrl.u32 %v19630_v55, 16  ;;  %v19651_v6 = vsel %vm5182_vm2, %v8920_v30, %v8929_v12  ;;  %v19654_v10 = vsel %vm5182_vm2, %v8929_v12, %v8938_v48  ;;  %v19678_v12 = vld [vmem:[#allocation3 + $0x58] sm:$0xff] }
 0x5a4   : > { %14155 = vmatprep.mubr.msk.bf16.mxu0 %vm21525_vm3, %v8867_v40  ;;  %v10371_v40 = vrot.slane %v19416_v59, 1  ;;  %v19605_v59 = vor.u32 %v10387_v27, %v19589_v47  ;;  %v19623_v43 = vsel %vm21544_vm15, %v10383_v53, %v10387_v27  ;;  %vm21546_vm10 = vmmov %vm21525_vm3  ;;  %v19664_v27 = vld [vmem:[#allocation3 + $0x48] sm:$0xff]  ;;  %v19667_v0 = vsel %vm5182_vm2, %v8938_v48, %v8947_v50  ;;  %v19680_v48 = vld [vmem:[#allocation3 + $0x60] sm:$0xff] }
 0x5a5   : > { %v19579_v24 = vrot.slane %v21529_v45, 1  ;;  %21545 = vst [vmem:[#allocation48_spill] sm:$0xff] %v19623_v43  ;;  %vm21548_vm12 = vmmov %vm21525_vm3  ;;  %v19687_v50 = vrot.slane %v20676_v31, 1  ;;  %v11147_v53 = vrot.slane %v19664_v27, 1  ;;  %v19732_v43 = vld [vmem:[#allocation3 + $0x88] sm:$0xff]  ;;  %v21586_v29 = vshrl.u32 %v19646_v41, 16 }
 0x5a6   : > { %v10375_v2 = vor.u32 %v10371_v40, %v19404_v22  ;;  %21537 = vst [vmem:[#allocation60_spill] sm:$0xff] %v19605_v59  ;;  %v19612_v54 = vsel %vm21539_vm7, %v10367_v34, %v10371_v40  ;;  %v9193_v40 = vrot.slane %v9191_v44, 7  ;;  %v21547_v34 = vshll.u32 %v19012_v51, 16  ;;  %vm21556_vm4 = vmmov %vm21552_vm1 }
 0x5a7   : > { %21540 = vst [vmem:[#allocation68_spill] sm:$0xff] %v19612_v54  ;;  %v19616_v37 = vsel %vm21541_vm11, %v10698_v28, %v19579_v24  ;;  %v19643_v51 = vsel %vm5182_vm2, %v8911_v21, %v8920_v30  ;;  %v19703_v21 = vld [vmem:[#allocation3 + $0x78] sm:$0xff]  ;;  %vm21558_vm8 = vmmov %vm21552_vm1 }
 0x5a8   : > { %v19620_v45 = vsel %vm21542_vm0, %v10375_v2, %v19593_v61  ;;  %v9195_v28 = vor.u32 %v19609_v38, %v21547_v34  ;;  %v11141_v34 = vrot.slane %v19637_v57, 1  ;;  %v19713_v2 = vld [vmem:[#allocation3 + $0x80] sm:$0xff]  ;;  %vm21562_vm9 = vmmov %vm21552_vm1 }
 0x5a9   : > { %21543 = vst [vmem:[#allocation69_spill] sm:$0xff] %v19620_v45  ;;  %vm21564_vm5 = vmmov %vm21552_vm1 }
 0x5aa   : > { %v19657_v58 = vsel %vm5594_vm6, %v9193_v40, %v9195_v28  ;;  %v11143_v40 = vrot.slane %v19646_v41, 1  ;;  %vm21567_vm11 = vmmov %vm21552_vm1 }
 0x5ab   : > { %14156 = vmatmul.mubr.msk.bf16.gmra.mrb[52].mxu0 %vm21546_vm10, %v19512_v14  ;;  %v8903_v14 = vsel %vm5182_vm2, %v19519_v19, %v8902_v35  ;;  %v21549_v19 = vshll.u32 %v19074_v5, 16  ;;  %v19672_v35 = vld [vmem:[#allocation3 + $0x50] sm:$0xff]  ;;  %vm21550_vm2 = vmmov %vm21525_vm3  ;;  %v20680_v5 = vrot.slane %v19534_v26, 1 }
 0x5ac   : > { %14159 = vmatprep.mubr.msk.bf16.mxu0 %vm21548_vm12, %v19516_v46  ;;  %v19648_v46 = vld [vmem:[#allocation3 + $0x40] sm:$0xff]  ;;  %vm21551_vm14 = vmmov %vm21550_vm2  ;;  %v19725_v28 = vsel %vm21556_vm4, %v11141_v34, %v11143_v40  ;;  %v11149_v59 = vrot.slane %v19672_v35, 1  ;;  %vm21593_vm4 = vsmask.f32 6400 }
 0x5ad   : > { %v19662_v44 = vor.u32 %v19333_v3, %v21549_v19  ;;  %v19689_v19 = vld [vmem:[#allocation3 + $0x68] sm:$0xff]  ;;  %v19694_v3 = vld [vmem:[#allocation3 + $0x70] sm:$0xff]  ;;  %v11145_v31 = vrot.slane %v19648_v46, 1  ;;  %vm21554_vm3 = vmmov %vm21552_vm1  ;;  %21557 = vst [vmem:[#allocation63_spill] sm:$0xff] %v19725_v28  ;;  %v11159_v28 = vrot.slane %v19703_v21, 1 }
 0x5ae   : > { %vm21560_vm13 = vmmov %vm21550_vm2 }
 0x5af   : > { %v19728_v61 = vsel %vm21558_vm8, %v11143_v40, %v11145_v31  ;;  %v19742_v40 = vsel %vm21562_vm9, %v11145_v31, %v11147_v53  ;;  %vm21566_vm7 = vmmov %vm21550_vm2 }
 0x5b0   : > { %21559 = vst [vmem:[#allocation64_spill] sm:$0xff] %v19728_v61  ;;  %21563 = vst [vmem:[#allocation66_spill] sm:$0xff] %v19742_v40  ;;  %v19745_v61 = vsel %vm21564_vm5, %v11147_v53, %v11149_v59  ;;  %v21583_v53 = vshll.u32 %v19630_v55, 16 }
 0x5b1   : > { %21565 = vst [vmem:[#allocation67_spill] sm:$0xff] %v19745_v61  ;;  %vm21569_vm0 = vmmov %vm21552_vm1  ;;  %v19764_v61 = vld [vmem:[#allocation3 + $0xa0] sm:$0xff] }
 0x5b2   : > { %vm21571_vm15 = vmmov %vm21569_vm0  ;;  %v11463_v16 = vrot.slane %v21583_v53, 2 }
 0x5b3   : > { %14160 = vmatmul.mubr.msk.bf16.gmra.mrb[56].mxu0 %vm21550_vm2, %v8894_v11  ;;  %v11151_v11 = vrot.slane %v19678_v12, 1  ;;  %vm21573_vm10 = vmmov %vm21569_vm0 }
 0x5b4   : > { %14163 = vmatprep.mubr.msk.bf16.mxu0 %vm21551_vm14, %v8903_v14  ;;  %v11139_v14 = vrot.slane %v19630_v55, 1  ;;  %vm21575_vm12 = vmmov %vm21569_vm0 }
 0x5b5   : > { %v19752_v45 = vsel %vm21567_vm11, %v11149_v59, %v11151_v11  ;;  %vm21577_vm2 = vmmov %vm21569_vm0  ;;  %v20682_v59 = vrot.slane %v19732_v43, 1 }
 0x5b6   : > { %v19719_v30 = vsel %vm21552_vm1, %v20680_v5, %v11139_v14  ;;  %v19722_v49 = vsel %vm21554_vm3, %v11139_v14, %v11141_v34  ;;  %v11153_v5 = vrot.slane %v19680_v48, 1  ;;  %v11157_v14 = vrot.slane %v19694_v3, 1  ;;  %v19739_v34 = vld [vmem:[#allocation3 + $0x18] sm:$0xfe]  ;;  %21568 = vst [vmem:[#allocation70_spill] sm:$0xff] %v19752_v45  ;;  %vm21579_vm14 = vmmov %vm21569_vm0 }
 0x5b7   : > { %21553 = vst [vmem:[#allocation61_spill] sm:$0xff] %v19719_v30  ;;  %21555 = vst [vmem:[#allocation62_spill] sm:$0xff] %v19722_v49  ;;  %v11155_v30 = vrot.slane %v19689_v19, 1  ;;  %v11161_v49 = vrot.slane %v19713_v2, 1 }
 0x5b8   : > { %21561 = vst [vmem:[#allocation65_spill] sm:$0xff] %v19739_v34  ;;  %v19767_v40 = vsel %vm21575_vm12, %v11157_v14, %v11159_v28  ;;  %vm21589_vm1 = vmmov %vm21566_vm7 }
 0x5b9   : > { %v19758_v54 = vsel %vm21571_vm15, %v11153_v5, %v11155_v30  ;;  %v19761_v31 = vsel %vm21573_vm10, %v11155_v30, %v11157_v14  ;;  %21576 = vst [vmem:[#allocation74_spill] sm:$0xff] %v19767_v40  ;;  %v11454_v30 = vshll.u32 %v19739_v34, 16  ;;  %v19781_v14 = vsel %vm21579_vm14, %v11161_v49, %v20682_v59  ;;  %vm21592_vm3 = vmmov %vm21589_vm1 }
 0x5ba   : > { %21572 = vst [vmem:[#allocation72_spill] sm:$0xff] %v19758_v54  ;;  %21574 = vst [vmem:[#allocation73_spill] sm:$0xff] %v19761_v31  ;;  %v11451_v54 = vshrl.u32 %v19739_v34, 16  ;;  %v21582_v40 = vshll.u32 %v19534_v26, 16  ;;  %v21585_v59 = vshll.u32 %v19637_v57, 16 }
 0x5bb   : > { %14164 = vmatmul.mubr.msk.bf16.gmra.mrb[60].mxu0 %vm21560_vm13, %v8912_v42  ;;  %v19755_v42 = vsel %vm21569_vm0, %v11151_v11, %v11153_v5  ;;  %21580 = vst [vmem:[#allocation76_spill] sm:$0xff] %v19781_v14  ;;  %v11456_v45 = vrot.slane %v11454_v30, 2  ;;  %v21587_v11 = vshll.u32 %v19646_v41, 16  ;;  %vm21596_vm8 = vmmov %vm21593_vm4 }
 0x5bc   : > { %14167 = vmatprep.mubr.msk.bf16.mxu0 %vm21566_vm7, %v19643_v51  ;;  %21570 = vst [vmem:[#allocation71_spill] sm:$0xff] %v19755_v42  ;;  %v19770_v51 = vsel %vm21577_vm2, %v11159_v28, %v11161_v49  ;;  %v21581_v28 = vshrl.u32 %v19534_v26, 16  ;;  %v11459_v31 = vrot.slane %v21582_v40, 2  ;;  %v11453_v42 = vrot.slane %v11451_v54, 1  ;;  %vm21597_vm13 = vmmov %vm21593_vm4 }
 0x5bd   : > { %21578 = vst [vmem:[#allocation75_spill] sm:$0xff] %v19770_v51  ;;  %v11466_v49 = vrot.slane %v21584_v62, 1  ;;  %v11467_v14 = vrot.slane %v21585_v59, 2  ;;  %v11470_v40 = vrot.slane %v21586_v29, 1  ;;  %v11471_v25 = vrot.slane %v21587_v11, 2  ;;  %vm21599_vm9 = vmmov %vm21593_vm4 }
 0x5be   : > { %v11458_v51 = vrot.slane %v21581_v28, 1  ;;  %v11457_v28 = vor.u32 %v11456_v45, %v11453_v42  ;;  %v21588_v54 = vshrl.u32 %v19648_v46, 16  ;;  %v21590_v62 = vshll.u32 %v19648_v46, 16  ;;  %vm21603_vm5 = vmmov %vm21593_vm4 }
 0x5bf   : > { %v11468_v53 = vor.u32 %v11467_v14, %v11466_v49  ;;  %v21591_v45 = vshrl.u32 %v19664_v27, 16  ;;  %v11472_v59 = vor.u32 %v11471_v25, %v11470_v40  ;;  %v21594_v11 = vshll.u32 %v19664_v27, 16  ;;  %vm21607_vm7 = vmmov %vm21593_vm4 }
 0x5c0   : > { %v11460_v34 = vor.u32 %v11459_v31, %v11458_v51  ;;  %v11474_v30 = vrot.slane %v21588_v54, 1  ;;  %v11464_v31 = vor.u32 %v11463_v16, %v19687_v50  ;;  %v11475_v51 = vrot.slane %v21590_v62, 2  ;;  %vm21611_vm11 = vmmov %vm21593_vm4 }
 0x5c1   : > { %v11478_v42 = vrot.slane %v21591_v45, 1  ;;  %v11479_v54 = vrot.slane %v21594_v11, 2  ;;  %v21598_v62 = vshll.u32 %v19672_v35, 16  ;;  %v21601_v40 = vshrl.u32 %v19678_v12, 16  ;;  %vm21614_vm0 = vmmov %vm21593_vm4 }
 0x5c2   : > { %v19811_v29 = vsel %vm21593_vm4, %v11457_v28, %v11460_v34  ;;  %v19818_v50 = vsel %vm21596_vm8, %v11460_v34, %v11464_v31  ;;  %v19821_v14 = vsel %vm21597_vm13, %v11464_v31, %v11468_v53  ;;  %v11476_v49 = vor.u32 %v11475_v51, %v11474_v30  ;;  %vm21617_vm15 = vmmov %vm21589_vm1 }
 0x5c3   : > { %14168 = vmatmul.mubr.msk.bf16.gmra.mrb[64].mxu0 %vm21589_vm1, %v19651_v6  ;;  %v21595_v6 = vshrl.u32 %v19672_v35, 16  ;;  %v19826_v28 = vsel %vm21599_vm9, %v11468_v53, %v11472_v59  ;;  %v11480_v25 = vor.u32 %v11479_v54, %v11478_v42  ;;  %v11486_v45 = vrot.slane %v21601_v40, 1  ;;  %vm21618_vm10 = vmmov %vm21614_vm0 }
 0x5c4   : > { %14171 = vmatprep.mubr.msk.bf16.mxu0 %vm21592_vm3, %v19654_v10  ;;  %v11483_v10 = vrot.slane %v21598_v62, 2  ;;  %21600 = vst [vmem:[#allocation77_spill] sm:$0xff] %v19826_v28  ;;  %v21602_v11 = vshll.u32 %v19678_v12, 16  ;;  %v19833_v34 = vsel %vm21603_vm5, %v11472_v59, %v11476_v49  ;;  %v21605_v31 = vshrl.u32 %v19680_v48, 16  ;;  %vm21621_vm12 = vmmov %vm21589_vm1 }
 0x5c5   : > { %v11482_v16 = vrot.slane %v21595_v6, 1  ;;  %21604 = vst [vmem:[#allocation78_spill] sm:$0xff] %v19833_v34  ;;  %v21606_v51 = vshll.u32 %v19680_v48, 16  ;;  %v19840_v53 = vsel %vm21607_vm7, %v11476_v49, %v11480_v25  ;;  %v21609_v54 = vshrl.u32 %v19689_v19, 16  ;;  %vm21622_vm2 = vmmov %vm21614_vm0 }
 0x5c6   : > { %v11487_v6 = vrot.slane %v21602_v11, 2  ;;  %v11490_v30 = vrot.slane %v21605_v31, 1  ;;  %21608 = vst [vmem:[#allocation79_spill] sm:$0xff] %v19840_v53  ;;  %v21610_v28 = vshll.u32 %v19689_v19, 16  ;;  %v21613_v34 = vshll.u32 %v19694_v3, 16  ;;  %vm21626_vm14 = vmmov %vm21614_vm0 }
 0x5c7   : > { %v11484_v5 = vor.u32 %v11483_v10, %v11482_v16  ;;  %v11491_v62 = vrot.slane %v21606_v51, 2  ;;  %v11494_v40 = vrot.slane %v21609_v54, 1  ;;  %v21612_v10 = vshrl.u32 %v19694_v3, 16  ;;  %vm21628_vm1 = vmmov %vm21614_vm0 }
 0x5c8   : > { %v11488_v42 = vor.u32 %v11487_v6, %v11486_v45  ;;  %v11495_v11 = vrot.slane %v21610_v28, 2  ;;  %v11499_v51 = vrot.slane %v21613_v34, 2  ;;  %v21615_v6 = vshrl.u32 %v19703_v21, 16  ;;  %vm21629_vm3 = vmmov %vm21614_vm0 }
 0x5c9   : > { %v19847_v59 = vsel %vm21611_vm11, %v11480_v25, %v11484_v5  ;;  %v11492_v16 = vor.u32 %v11491_v62, %v11490_v30  ;;  %v11498_v31 = vrot.slane %v21612_v10, 1  ;;  %v21616_v53 = vshll.u32 %v19703_v21, 16  ;;  %vm21632_vm4 = vmmov %vm21614_vm0 }
 0x5ca   : > { %v19854_v49 = vsel %vm21614_vm0, %v11484_v5, %v11488_v42  ;;  %v11496_v45 = vor.u32 %v11495_v11, %v11494_v40  ;;  %v11502_v54 = vrot.slane %v21615_v6, 1  ;;  %v21619_v62 = vshrl.u32 %v19713_v2, 16  ;;  %vm21633_vm8 = vmmov %vm21614_vm0 }
 0x5cb   : > { %v11503_v28 = vrot.slane %v21616_v53, 2  ;;  %14172 = vmatmul.mubr.msk.bf16.gmra.mrb[68].mxu0 %vm21617_vm15, %v19667_v0  ;;  %v19863_v25 = vsel %vm21618_vm10, %v11488_v42, %v11492_v16  ;;  %v11500_v30 = vor.u32 %v11499_v51, %v11498_v31  ;;  %v21620_v5 = vshll.u32 %v19713_v2, 16  ;;  %vm21635_vm13 = vmmov %vm21614_vm0 }
 0x5cc   : > { %v11506_v34 = vrot.slane %v21619_v62, 1  ;;  %14177 = vmatprep.mubr.msk.bf16.mxu0 %vm21621_vm12, %v19657_v58  ;;  %v19872_v40 = vsel %vm21622_vm2, %v11492_v16, %v11496_v45  ;;  %v21624_v11 = vshrl.u32 %v19732_v43, 16  ;;  %v21625_v42 = vshll.u32 %v19732_v43, 16  ;;  %vm21636_vm9 = vmmov %vm21621_vm12 }
 0x5cd   : > { %v11507_v10 = vrot.slane %v21620_v5, 2  ;;  %21623 = vst [vmem:[#allocation80_spill] sm:$0xff] %v19872_v40  ;;  %v11504_v53 = vor.u32 %v11503_v28, %v11502_v54  ;;  %v19879_v31 = vsel %vm21626_vm14, %v11496_v45, %v11500_v30  ;;  %v11514_v62 = vrot.slane %v19542_v32, 1  ;;  %vm21637_vm5 = vmmov %vm21614_vm0 }
 0x5ce   : > { %v11510_v0 = vrot.slane %v21624_v11, 1  ;;  %v11511_v6 = vrot.slane %v21625_v42, 2  ;;  %21627 = vst [vmem:[#allocation81_spill] sm:$0xff] %v19879_v31  ;;  %v11515_v5 = vrot.slane %v19554_v18, 2  ;;  %v11518_v54 = vrot.slane %v19589_v47, 1  ;;  %vm21639_vm7 = vmmov %vm21636_vm9 }
 0x5cf   : > { %v11508_v51 = vor.u32 %v11507_v10, %v11506_v34  ;;  %v19884_v58 = vsel %vm21628_vm1, %v11500_v30, %v11504_v53  ;;  %v11519_v28 = vrot.slane %v19557_v63, 2  ;;  %v21630_v45 = vshrl.u32 %v19764_v61, 16  ;;  %vm21640_vm11 = vmmov %vm21639_vm7 }
 0x5d0   : > { %v11512_v16 = vor.u32 %v11511_v6, %v11510_v0  ;;  %v11516_v42 = vor.u32 %v11515_v5, %v11514_v62  ;;  %v21631_v34 = vshll.u32 %v19764_v61, 16  ;;  %v15481_v0 = vld [vmem:[%s20460_s7 + $0x20] sm:$0xff]   ;;  %v9199_v62 = vsel %vm5594_vm6, %v19609_v38, %v19662_v44  ;;  %vm21641_vm0 = vmmov %vm21639_vm7  ;;  %v21650_v38 = vld [vmem:[#allocation54_spill] sm:$0xff] }
 0x5d1   : > { %v19889_v11 = vsel %vm21629_vm3, %v11504_v53, %v11508_v51  ;;  %v11522_v31 = vrot.slane %v21630_v45, 1  ;;  %v11520_v30 = vor.u32 %v11519_v28, %v11518_v54  ;;  %vm21642_vm15 = vmmov %vm21641_vm0  ;;  %v9526_v54 = vld [vmem:[#allocation3 + $0x8] sm:$0x80]  ;;  %v9248_v28 = vrot.slane %v19542_v32, 7  ;;  %v15482_v32 = vld [vmem:[%s20460_s7 + $0x28] sm:$0xff]  }
 0x5d2   : > { %v11523_v10 = vrot.slane %v21631_v34, 2  ;;  %v19896_v40 = vsel %vm21632_vm4, %v11508_v51, %v11512_v16  ;;  %v19902_v6 = vsel %vm21633_vm8, %v11512_v16, %v11516_v42  ;;  %vm21643_vm10 = vmmov %vm21641_vm0  ;;  %v21654_v16 = vld [vmem:[#allocation43_spill] sm:$0xff]  ;;  %v9549_v45 = vshrl.u32 %v9526_v54, 16  ;;  %v21695_v54 = vld [vmem:[#allocation49_spill] sm:$0xff] }
 0x5d3   : > { %v19910_v5 = vsel %vm21635_vm13, %v11516_v42, %v11520_v30  ;;  %14178 = vmatmul.mubr.msk.bf16.vlgmr.msra.gmra.mrb[36].mxu0 %vm21636_vm9, %v9199_v62  ;;  %vm21644_vm12 = vmmov %vm21641_vm0  ;;  %v21656_v42 = vld [vmem:[#allocation41_spill] sm:$0xff]  ;;  %v21658_v34 = vld [vmem:[#allocation47_spill] sm:$0xff]  ;;  %v21660_v62 = vrot.slane %v19404_v22, 7 }
 0x5d4   : > { %v19904_v53 = vor.u32 %v11523_v10, %v11522_v31  ;;  %14214 = vmatpush3.bf16.msra.mxu0 %v19446_v1  ;;  %14181 = vmatprep.mubr.msk.bf16.mxu0 %vm21639_vm7, %v19382_v23  ;;  %vm21645_vm2 = vmmov %vm21641_vm0  ;;  %v21648_v1 = vld [vmem:[#allocation53_spill] sm:$0xff]  ;;  %v21652_v31 = vld [vmem:[#allocation55_spill] sm:$0xff]  ;;  %v9251_v10 = vor.u32 %v19554_v18, %v9248_v28 }
 0x5d5   : > { %14251 = vmatprep.subr.bf16.mxu0 %v15481_v0  ;;  %vm21646_vm14 = vmmov %vm21641_vm0  ;;  %v15496_v18 = vld [vmem:[#allocation3 + $0x10] sm:$0xff]  ;;  %v15498_v22 = vld [vmem:[#allocation3 + $0x20] sm:$0xff] }
 0x5d6   : > { %21634 = vst [vmem:[#allocation82_spill] sm:$0xff] %v19904_v53  ;;  %v19915_v51 = vsel %vm21637_vm5, %v11520_v30, %v19904_v53  ;;  %vm21647_vm1 = vmmov %vm21641_vm0  ;;  %v9551_v30 = vrot.slane %v9549_v45, 7  ;;  %v9252_v53 = vsel %vm5594_vm6, %v21660_v62, %v9251_v10  ;;  %v21701_v10 = vshrl.u32 %v19534_v26, 16 }
 0x5d7   : > { %21638 = vst [vmem:[#allocation83_spill] sm:$0xff] %v19915_v51  ;;  %vm21649_vm3 = vmmov %vm21641_vm0  ;;  %v21702_v62 = vshll.u32 %v19630_v55, 16 }
 0x5d8   : > { %vm21651_vm4 = vmmov %vm21641_vm0  ;;  %v9559_v51 = vsel %vm5594_vm6, %v9551_v30, %v19662_v44  ;;  %v15505_v44 = vld [vmem:[#allocation3 + $0x58] sm:$0xff]  ;;  %v10271_v30 = vor.u32 %v21701_v10, %v19579_v24  ;;  %v21707_v24 = vshrl.u32 %v19637_v57, 16 }
 0x5d9   : > { %vm21653_vm8 = vmmov %vm21641_vm0  ;;  %v21741_v10 = vld [vmem:[#allocation60_spill] sm:$0xff] }
 0x5da   : > { %vm21655_vm13 = vmmov %vm21641_vm0 }
 0x5db   : > { %14182 = vmatmul.mubr.msk.bf16.gmra.mrb[40].mxu0 %vm21640_vm11, %v19385_v20  ;;  %vm21657_vm9 = vmmov %vm21641_vm0 }
 0x5dc   : > { %14185 = vmatprep.mubr.msk.bf16.mxu0 %vm21641_vm0, %v19395_v13  ;;  %vm21659_vm5 = vmmov %vm21641_vm0 }
 0x5dd   : > { %vm21661_vm7 = vmmov %vm21641_vm0 }
 0x5de   : > { %vm21662_vm11 = vmmov %vm21641_vm0 }
 0x5e3   : > { %14186 = vmatmul.mubr.msk.bf16.gmra.mrb[44].mxu0 %vm21642_vm15, %v19422_v8  ;;  %vm21663_vm15 = vmmov %vm21641_vm0 }
 0x5e4   : > { %14189 = vmatprep.mubr.msk.bf16.mxu0 %vm21643_vm10, %v19425_v33  ;;  %vm21664_vm10 = vmmov %vm21641_vm0 }
 0x5eb   : > { %14190 = vmatmul.mubr.msk.bf16.gmra.mrb[48].mxu0 %vm21644_vm12, %v19428_v52  ;;  %vm21665_vm12 = vmmov %vm21641_vm0 }
 0x5ec   : > { %14193 = vmatprep.mubr.msk.bf16.mxu0 %vm21645_vm2, %v19431_v4  ;;  %vm21666_vm2 = vmmov %vm21641_vm0 }
 0x5f3   : > { %14194 = vmatmul.mubr.msk.bf16.gmra.mrb[52].mxu0 %vm21646_vm14, %v19434_v15  ;;  %vm21667_vm14 = vmmov %vm21641_vm0 }
 0x5f4   : > { %14197 = vmatprep.mubr.msk.bf16.mxu0 %vm21647_vm1, %v19437_v9  ;;  %vm21668_vm1 = vmmov %vm21641_vm0 }
 0x5fb   : > { %14198 = vmatmul.mubr.msk.bf16.gmra.mrb[56].mxu0 %vm21649_vm3, %v21648_v1  ;;  %vm21669_vm3 = vmmov %vm21641_vm0 }
 0x5fc   : > { %14201 = vmatprep.mubr.msk.bf16.mxu0 %vm21651_vm4, %v21650_v38  ;;  %vm21670_vm4 = vmmov %vm21641_vm0 }
 0x603   : > { %14202 = vmatmul.mubr.msk.bf16.gmra.mrb[60].mxu0 %vm21653_vm8, %v21652_v31  ;;  %vm21671_vm8 = vmmov %vm21641_vm0 }
 0x604   : > { %14205 = vmatprep.mubr.msk.bf16.mxu0 %vm21655_vm13, %v21654_v16  ;;  %vm21672_vm13 = vmmov %vm21641_vm0 }
 0x60b   : > { %14206 = vmatmul.mubr.msk.bf16.gmra.mrb[64].mxu0 %vm21657_vm9, %v21656_v42  ;;  %vm21673_vm9 = vmmov %vm21641_vm0 }
 0x60c   : > { %14209 = vmatprep.mubr.msk.bf16.mxu0 %vm21659_vm5, %v21658_v34  ;;  %vm21674_vm5 = vmmov %vm21641_vm0 }
 0x613   : > { %14210 = vmatmul.mubr.msk.bf16.gmra.mrb[68].mxu0 %vm21661_vm7, %v9252_v53  ;;  %vm21675_vm7 = vmmov %vm21641_vm0 }
 0x614   : > { %14215 = vmatprep.mubr.msk.bf16.mxu0 %vm21662_vm11, %v9559_v51  ;;  %vm21676_vm11 = vmmov %vm21641_vm0  ;;  %v21690_v51 = vld [vmem:[#allocation51_spill] sm:$0xff] }
 0x61b   : > { %14216 = vmatmul.mubr.msk.bf16.vlgmr.msra.gmra.mrb[36].mxu0 %vm21641_vm0, %v19382_v23  ;;  %v15483_v23 = vld [vmem:[%s20460_s7 + $0x30] sm:$0xff]  }
 0x61c   : > { %14252 = vmatpush3.bf16.msra.mxu0 %v15481_v0  ;;  %14219 = vmatprep.mubr.msk.bf16.mxu0 %vm21663_vm15, %v19385_v20  ;;  %vm21677_vm15 = vmmov %vm21641_vm0  ;;  %v15497_v20 = vld [vmem:[#allocation3 + $0x18] sm:$0xff]  ;;  %v15506_v0 = vld [vmem:[#allocation3 + $0x60] sm:$0xff] }
 0x61d   : > { %14289 = vmatprep.subr.bf16.mxu0 %v15482_v32 }
 0x623   : > { %14220 = vmatmul.mubr.msk.bf16.gmra.mrb[40].mxu0 %vm21664_vm10, %v19395_v13  ;;  %vm21678_vm10 = vmmov %vm21641_vm0 }
 0x624   : > { %14223 = vmatprep.mubr.msk.bf16.mxu0 %vm21665_vm12, %v19422_v8  ;;  %vm21679_vm12 = vmmov %vm21641_vm0  ;;  %v15500_v8 = vld [vmem:[#allocation3 + $0x30] sm:$0xff] }
 0x62b   : > { %14224 = vmatmul.mubr.msk.bf16.gmra.mrb[44].mxu0 %vm21666_vm2, %v19425_v33  ;;  %vm21680_vm2 = vmmov %vm21641_vm0  ;;  %v15501_v33 = vld [vmem:[#allocation3 + $0x38] sm:$0xff] }
 0x62c   : > { %14227 = vmatprep.mubr.msk.bf16.mxu0 %vm21667_vm14, %v19428_v52  ;;  %vm21681_vm14 = vmmov %vm21641_vm0  ;;  %v15502_v52 = vld [vmem:[#allocation3 + $0x40] sm:$0xff] }
 0x633   : > { %14228 = vmatmul.mubr.msk.bf16.gmra.mrb[48].mxu0 %vm21668_vm1, %v19431_v4  ;;  %vm21683_vm1 = vmmov %vm21641_vm0  ;;  %v15503_v4 = vld [vmem:[#allocation3 + $0x48] sm:$0xff] }
 0x634   : > { %14231 = vmatprep.mubr.msk.bf16.mxu0 %vm21669_vm3, %v19434_v15  ;;  %v9691_v15 = vrot.slane %v19589_v47, 7  ;;  %vm21684_vm3 = vmmov %vm21641_vm0  ;;  %v15504_v47 = vld [vmem:[#allocation3 + $0x50] sm:$0xff] }
 0x63b   : > { %14232 = vmatmul.mubr.msk.bf16.gmra.mrb[52].mxu0 %vm21670_vm4, %v19437_v9  ;;  %v9694_v9 = vor.u32 %v19557_v63, %v9691_v15  ;;  %v15499_v63 = vld [vmem:[#allocation3 + $0x28] sm:$0xff]  ;;  %vm21685_vm4 = vmmov %vm21641_vm0 }
 0x63c   : > { %14235 = vmatprep.mubr.msk.bf16.mxu0 %vm21671_vm8, %v21648_v1  ;;  %vm21686_vm8 = vmmov %vm21641_vm0  ;;  %v21692_v1 = vld [vmem:[#allocation50_spill] sm:$0xff] }
 0x63d   : > { %v9695_v13 = vsel %vm5594_vm6, %v9248_v28, %v9694_v9  ;;  %vm21682_vm6 = vmmov %vm21641_vm0  ;;  %v15484_v15 = vld [vmem:[%s20460_s7 + $0x38] sm:$0xff]  }
 0x643   : > { %14236 = vmatmul.mubr.msk.bf16.gmra.mrb[56].mxu0 %vm21672_vm13, %v21650_v38  ;;  %vm21687_vm13 = vmmov %vm21641_vm0  ;;  %v21694_v38 = vld [vmem:[#allocation52_spill] sm:$0xff] }
 0x644   : > { %14239 = vmatprep.mubr.msk.bf16.mxu0 %vm21673_vm9, %v21652_v31  ;;  %vm21688_vm9 = vmmov %vm21641_vm0  ;;  %v10227_v31 = vld [vmem:[#allocation3 + $0x10] sm:$0xff] }
 0x64b   : > { %14240 = vmatmul.mubr.msk.bf16.gmra.mrb[60].mxu0 %vm21674_vm5, %v21654_v16  ;;  %vm21689_vm5 = vmmov %vm21641_vm0  ;;  %v10252_v16 = vshll.u32 %v10227_v31, 16 }
 0x64c   : > { %14243 = vmatprep.mubr.msk.bf16.mxu0 %vm21675_vm7, %v21656_v42  ;;  %vm21691_vm7 = vmmov %vm21641_vm0  ;;  %v10250_v42 = vshrl.u32 %v10227_v31, 16 }
 0x64d   : > { %v10254_v28 = vrot.slane %v10252_v16, 1 }
 0x64f   : > { %v10255_v45 = vor.u32 %v10254_v28, %v10250_v42  ;;  %v21735_v28 = vld [vmem:[#allocation68_spill] sm:$0xff]  ;;  %v10245_v42 = vld [vmem:[#allocation3 + $0xa0] sm:$0x1] }
 0x653   : > { %14244 = vmatmul.mubr.msk.bf16.gmra.mrb[64].mxu0 %vm21676_vm11, %v21658_v34  ;;  %vm21693_vm11 = vmmov %vm21641_vm0 }
 0x654   : > { %14247 = vmatprep.mubr.msk.bf16.mxu0 %vm21641_vm0, %v9252_v53  ;;  %v15507_v53 = vld [vmem:[#allocation3 + $0x68] sm:$0xff] }
 0x65b   : > { %14248 = vmatmul.mubr.msk.bf16.gmra.mrb[68].mxu0 %vm21677_vm15, %v9695_v13  ;;  %vm21696_vm15 = vmmov %vm21641_vm0 }
 0x65c   : > { %14253 = vmatprep.mubr.msk.bf16.mxu0 %vm21678_vm10, %v15496_v18  ;;  %vm21697_vm10 = vmmov %vm21641_vm0 }
 0x663   : > { %14254 = vmatmul.mubr.msk.bf16.vlgmr.msra.gmra.mrb[36].mxu0 %vm21679_vm12, %v15497_v20  ;;  %vm21698_vm12 = vmmov %vm21641_vm0  ;;  %v21708_v20 = vshrl.u32 %v19630_v55, 16  ;;  %v21716_v55 = vshrl.u32 %v19646_v41, 16 }
 0x664   : > { %14290 = vmatpush3.bf16.msra.mxu0 %v15482_v32  ;;  %14257 = vmatprep.mubr.msk.bf16.mxu0 %vm21680_vm2, %v15498_v22  ;;  %vm21699_vm2 = vsmask.f32 7424  ;;  %v10275_v32 = vrot.slane %v21702_v62, 1  ;;  %v15485_v62 = vld [vmem:[%s20460_s7 + $0x40] sm:$0xff]  }
 0x665   : > { %14327 = vmatprep.subr.bf16.mxu0 %v15483_v23  ;;  %v10260_v34 = vsel %vm21699_vm2, %v10255_v45, %v19562_v7  ;;  %v21705_v7 = vshll.u32 %v19637_v57, 16  ;;  %v21715_v57 = vshrl.u32 %v19648_v46, 16  ;;  %v21737_v45 = vld [vmem:[#allocation69_spill] sm:$0xff] }
 0x666   : > { %v10279_v22 = vor.u32 %v21708_v20, %v10275_v32 }
 0x667   : > { %v10283_v13 = vrot.slane %v21705_v7, 1 }
 0x669   : > { %v10287_v18 = vor.u32 %v21707_v24, %v10283_v13 }
 0x66b   : > { %14258 = vmatmul.mubr.msk.bf16.gmra.mrb[40].mxu0 %vm21681_vm14, %v15499_v63  ;;  %vm21700_vm14 = vmmov %vm21641_vm0  ;;  %v21709_v63 = vshll.u32 %v19646_v41, 16  ;;  %v21727_v41 = vld [vmem:[#allocation46_spill] sm:$0xff] }
 0x66c   : > { %14261 = vmatprep.mubr.msk.bf16.mxu0 %vm21682_vm6, %v15500_v8  ;;  %vm21703_vm6 = vmmov %vm21641_vm0 }
 0x66d   : > { %v10291_v8 = vrot.slane %v21709_v63, 1 }
 0x673   : > { %14262 = vmatmul.mubr.msk.bf16.gmra.mrb[44].mxu0 %vm21683_vm1, %v15501_v33  ;;  %vm21704_vm1 = vmmov %vm21699_vm2 }
 0x674   : > { %14265 = vmatprep.mubr.msk.bf16.mxu0 %vm21684_vm3, %v15502_v52  ;;  %v10276_v9 = vsel %vm21704_vm1, %v10271_v30, %v10275_v32  ;;  %vm21706_vm3 = vmmov %vm21641_vm0  ;;  %v21748_v32 = vshll.u32 %v19672_v35, 16 }
 0x675   : > { %vm21726_vm2 = vmmov %vm21641_vm0 }
 0x676   : > { %v10750_v7 = vrot.slane %v21748_v32, 1 }
 0x67b   : > { %14266 = vmatmul.mubr.msk.bf16.gmra.mrb[48].mxu0 %vm21685_vm4, %v15503_v4  ;;  %vm21710_vm4 = vmmov %vm21704_vm1 }
 0x67c   : > { %14269 = vmatprep.mubr.msk.bf16.mxu0 %vm21686_vm8, %v15504_v47  ;;  %v10284_v33 = vsel %vm21710_vm4, %v10279_v22, %v10283_v13  ;;  %vm21711_vm8 = vmmov %vm21641_vm0  ;;  %v21752_v13 = vshll.u32 %v19678_v12, 16  ;;  %v21755_v22 = vshrl.u32 %v19678_v12, 16  ;;  %v21763_v12 = vshrl.u32 %v19689_v19, 16 }
 0x67d   : > { %vm21736_vm4 = vmmov %vm21641_vm0 }
 0x683   : > { %14270 = vmatmul.mubr.msk.bf16.gmra.mrb[52].mxu0 %vm21687_vm13, %v15505_v44  ;;  %vm21712_vm13 = vmmov %vm21704_vm1  ;;  %v10295_v44 = vor.u32 %v21716_v55, %v10291_v8 }
 0x684   : > { %14273 = vmatprep.mubr.msk.bf16.mxu0 %vm21688_vm9, %v15506_v0  ;;  %v10292_v52 = vsel %vm21712_vm13, %v10287_v18, %v10291_v8  ;;  %vm21714_vm9 = vmmov %vm21641_vm0  ;;  %v21717_v0 = vshll.u32 %v19664_v27, 16  ;;  %v21754_v18 = vshll.u32 %v19680_v48, 16 }
 0x685   : > { %vm21740_vm13 = vmmov %vm21641_vm0 }
 0x686   : > { %v10766_v20 = vrot.slane %v21754_v18, 1 }
 0x68b   : > { %14274 = vmatmul.mubr.msk.bf16.gmra.mrb[56].mxu0 %vm21689_vm5, %v15507_v53  ;;  %v10307_v53 = vrot.slane %v21717_v0, 1  ;;  %vm21718_vm5 = vmmov %vm21704_vm1 }
 0x68c   : > { %14277 = vmatprep.mubr.msk.bf16.mxu0 %vm21691_vm7, %v21690_v51  ;;  %vm21719_vm7 = vmmov %vm21641_vm0 }
 0x693   : > { %14278 = vmatmul.mubr.msk.bf16.gmra.mrb[60].mxu0 %vm21693_vm11, %v21692_v1  ;;  %vm21720_vm11 = vmmov %vm21704_vm1 }
 0x694   : > { %14281 = vmatprep.mubr.msk.bf16.mxu0 %vm21641_vm0, %v21694_v38  ;;  %v21721_v38 = vshrl.u32 %v19664_v27, 16  ;;  %v21731_v27 = vld [vmem:[#allocation57_spill] sm:$0xff] }
 0x696   : > { %v10311_v31 = vor.u32 %v21721_v38, %v10307_v53  ;;  %v21770_v38 = vshll.u32 %v19713_v2, 16 }
 0x69b   : > { %14282 = vmatmul.mubr.msk.bf16.gmra.mrb[64].mxu0 %vm21696_vm15, %v21695_v54  ;;  %vm21723_vm15 = vmmov %vm21704_vm1  ;;  %v21729_v54 = vld [vmem:[#allocation56_spill] sm:$0xff] }
 0x69c   : > { %14285 = vmatprep.mubr.msk.bf16.mxu0 %vm21697_vm10, %v19528_v39  ;;  %vm21724_vm10 = vmmov %vm21641_vm0 }
 0x69d   : > { %vm21732_vm1 = vmmov %vm21641_vm0 }
 0x6a3   : > { %14286 = vmatmul.mubr.msk.bf16.gmra.mrb[68].mxu0 %vm21698_vm12, %v19538_v60  ;;  %vm21725_vm12 = vmmov %vm21641_vm0 }
 0x6a4   : > { %14291 = vmatprep.mubr.msk.bf16.mxu0 %vm21700_vm14, %v10260_v34  ;;  %vm21728_vm14 = vmmov %vm21641_vm0 }
 0x6ab   : > { %14292 = vmatmul.mubr.msk.bf16.vlgmr.msra.gmra.mrb[36].mxu0 %vm21703_vm6, %v19616_v37  ;;  %vm21730_vm6 = vmmov %vm21641_vm0 }
 0x6ac   : > { %14328 = vmatpush3.bf16.msra.mxu0 %v15483_v23  ;;  %14295 = vmatprep.mubr.msk.bf16.mxu0 %vm21706_vm3, %v10276_v9  ;;  %v21713_v23 = vshll.u32 %v19648_v46, 16  ;;  %v21722_v46 = vrot.slane %v19329_v36, 1  ;;  %v21733_v36 = vld [vmem:[#allocation59_spill] sm:$0xff]  ;;  %vm21734_vm3 = vmmov %vm21641_vm0 }
 0x6ad   : > { %14365 = vmatprep.subr.bf16.mxu0 %v15484_v15 }
 0x6ae   : > { %v10299_v4 = vrot.slane %v21713_v23, 1  ;;  %v10316_v16 = vsel %vm21723_vm15, %v10311_v31, %v21722_v46  ;;  %vm21746_vm15 = vmmov %vm21641_vm0 }
 0x6b0   : > { %v10303_v47 = vor.u32 %v21715_v57, %v10299_v4  ;;  %v10300_v51 = vsel %vm21718_vm5, %v10295_v44, %v10299_v4  ;;  %v21762_v57 = vshll.u32 %v19694_v3, 16 }
 0x6b2   : > { %v10308_v1 = vsel %vm21720_vm11, %v10303_v47, %v10307_v53  ;;  %vm21745_vm11 = vmmov %vm21641_vm0  ;;  %v10782_v47 = vrot.slane %v21762_v57, 1  ;;  %v21768_v53 = vshll.u32 %v19703_v21, 16  ;;  %v21817_v57 = vld [vmem:[#allocation75_spill] sm:$0xff] }
 0x6b3   : > { %14296 = vmatmul.mubr.msk.bf16.gmra.mrb[40].mxu0 %vm21711_vm8, %v10284_v33  ;;  %vm21738_vm8 = vmmov %vm21641_vm0 }
 0x6b4   : > { %14299 = vmatprep.mubr.msk.bf16.mxu0 %vm21714_vm9, %v10292_v52  ;;  %vm21742_vm9 = vmmov %vm21718_vm5 }
 0x6b5   : > { %vm21743_vm5 = vmmov %vm21641_vm0 }
 0x6bb   : > { %14300 = vmatmul.mubr.msk.bf16.gmra.mrb[44].mxu0 %vm21719_vm7, %v10300_v51  ;;  %vm21744_vm7 = vmmov %vm21641_vm0 }
 0x6bc   : > { %14303 = vmatprep.mubr.msk.bf16.mxu0 %vm21641_vm0, %v10308_v1 }
 0x6c3   : > { %14304 = vmatmul.mubr.msk.bf16.gmra.mrb[48].mxu0 %vm21724_vm10, %v10316_v16  ;;  %vm21747_vm10 = vmmov %vm21641_vm0 }
 0x6c4   : > { %14307 = vmatprep.mubr.msk.bf16.mxu0 %vm21725_vm12, %v19565_v17  ;;  %v10393_v17 = vshll.u32 %v10245_v42, 16  ;;  %vm21749_vm12 = vmmov %vm21641_vm0 }
 0x6c6   : > { %v10395_v34 = vrot.slane %v10393_v17, 1  ;;  %v21781_v17 = vld [vmem:[#allocation58_spill] sm:$0xff] }
 0x6c8   : > { %v10396_v30 = vsel %vm21742_vm9, %v21741_v10, %v10395_v34  ;;  %v10688_v34 = vld [vmem:[#allocation3 + $0xa8] sm:$0x1] }
 0x6cb   : > { %14308 = vmatmul.mubr.msk.bf16.gmra.mrb[52].mxu0 %vm21726_vm2, %v19571_v56  ;;  %v21739_v56 = vld [vmem:[#allocation48_spill] sm:$0xff]  ;;  %vm21750_vm2 = vmmov %vm21742_vm9 }
 0x6cc   : > { %14311 = vmatprep.mubr.msk.bf16.mxu0 %vm21728_vm14, %v21727_v41  ;;  %vm21751_vm14 = vmmov %vm21641_vm0 }
 0x6cd   : > { %vm21766_vm9 = vmmov %vm21750_vm2 }
 0x6d3   : > { %14312 = vmatmul.mubr.msk.bf16.gmra.mrb[56].mxu0 %vm21730_vm6, %v21729_v54  ;;  %vm21756_vm6 = vmmov %vm21750_vm2  ;;  %v21776_v54 = vshll.u32 %v19732_v43, 16 }
 0x6d4   : > { %14315 = vmatprep.mubr.msk.bf16.mxu0 %vm21732_vm1, %v21731_v27  ;;  %vm21757_vm1 = vmmov %vm21641_vm0 }
 0x6d5   : > { %v10806_v27 = vrot.slane %v21776_v54, 1  ;;  %v8408_v54 = vld [vmem:[#allocation2 + $0x18] sm:$0xff] }
 0x6db   : > { %14316 = vmatmul.mubr.msk.bf16.gmra.mrb[60].mxu0 %vm21734_vm3, %v21733_v36  ;;  %vm21758_vm3 = vmmov %vm21750_vm2 }
 0x6dc   : > { %14319 = vmatprep.mubr.msk.bf16.mxu0 %vm21736_vm4, %v21735_v28  ;;  %vm21759_vm4 = vmmov %vm21641_vm0  ;;  %v21778_v28 = vshrl.u32 %v19732_v43, 16 }
 0x6de   : > { %v10810_v42 = vor.u32 %v21778_v28, %v10806_v27  ;;  %v8407_v28 = vld [vmem:[#allocation2 + $0x10] sm:$0xff] }
 0x6e3   : > { %14320 = vmatmul.mubr.msk.bf16.gmra.mrb[64].mxu0 %vm21738_vm8, %v21737_v45  ;;  %vm21764_vm8 = vmmov %vm21750_vm2 }
 0x6e4   : > { %14323 = vmatprep.mubr.msk.bf16.mxu0 %vm21740_vm13, %v21739_v56  ;;  %vm21765_vm13 = vmmov %vm21641_vm0 }
 0x6eb   : > { %14324 = vmatmul.mubr.msk.bf16.gmra.mrb[68].mxu0 %vm21743_vm5, %v10396_v30  ;;  %vm21767_vm5 = vmmov %vm21641_vm0  ;;  %v21784_v30 = vshll.u32 %v19764_v61, 16 }
 0x6ec   : > { %14329 = vmatprep.mubr.msk.bf16.mxu0 %vm21744_vm7, %v19616_v37  ;;  %v10751_v37 = vsel %vm21750_vm2, %v10311_v31, %v10750_v7  ;;  %v10798_v31 = vrot.slane %v21770_v38, 1  ;;  %vm21772_vm7 = vmmov %vm21750_vm2 }
 0x6ed   : > { %v10830_v32 = vrot.slane %v21784_v30, 1 }
 0x6f3   : > { %14330 = vmatmul.mubr.msk.bf16.vlgmr.msra.gmra.mrb[36].mxu0 %vm21745_vm11, %v10276_v9  ;;  %v10758_v9 = vrot.slane %v21752_v13, 1  ;;  %vm21773_vm11 = vmmov %vm21641_vm0 }
 0x6f4   : > { %14366 = vmatpush3.bf16.msra.mxu0 %v15484_v15  ;;  %14333 = vmatprep.mubr.msk.bf16.mxu0 %vm21641_vm0, %v10284_v33  ;;  %v21753_v15 = vshrl.u32 %v19672_v35, 16  ;;  %v21761_v35 = vshrl.u32 %v19680_v48, 16  ;;  %v21769_v48 = vshrl.u32 %v19694_v3, 16  ;;  %vm21774_vm0 = vmmov %vm21750_vm2  ;;  %v21777_v3 = vshrl.u32 %v19713_v2, 16 }
 0x6f5   : > { %14403 = vmatprep.subr.bf16.mxu0 %v15485_v62  ;;  %v10762_v63 = vor.u32 %v21755_v22, %v10758_v9  ;;  %vm21782_vm2 = vmmov %vm21774_vm0 }
 0x6f6   : > { %v10754_v24 = vor.u32 %v21753_v15, %v10750_v7  ;;  %v10770_v4 = vor.u32 %v21761_v35, %v10766_v20  ;;  %v10802_v36 = vor.u32 %v21777_v3, %v10798_v31  ;;  %v10815_v45 = vsel %vm21782_vm2, %v10810_v42, %v21781_v17  ;;  %v21813_v35 = vld [vmem:[#allocation73_spill] sm:$0xff]  ;;  %v20256_v3 = vld [vmem:[%s20462_s9] ss:$0 sm:$0xff] }
 0x6f7   : > { %v10767_v33 = vsel %vm21758_vm3, %v10762_v63, %v10766_v20  ;;  %v10836_v7 = vshll.u32 %v10688_v34, 16  ;;  %vm21787_vm3 = vmmov %vm21759_vm4  ;;  %v21792_v20 = vrot.slane %v19534_v26, 1  ;;  %v21799_v63 = vld [vmem:[#allocation63_spill] sm:$0xff] }
 0x6f8   : > { %v10759_v8 = vsel %vm21756_vm6, %v10754_v24, %v10758_v9  ;;  %vm21785_vm6 = vmmov %vm21757_vm1  ;;  %v21790_v24 = vld [vmem:[#allocation65_spill] sm:$0xff]  ;;  %v21805_v26 = vld [vmem:[#allocation67_spill] sm:$0xff] }
 0x6f9   : > { %v10838_v9 = vrot.slane %v10836_v7, 1  ;;  %v11136_v18 = vrot.slane %v21790_v24, 1  ;;  %v8425_v7 = vunpack.c.l.bf16 %v8407_v28 }
 0x6fb   : > { %14334 = vmatmul.mubr.msk.bf16.gmra.mrb[40].mxu0 %vm21746_vm15, %v10292_v52  ;;  %v21760_v52 = vshll.u32 %v19689_v19, 16  ;;  %v21771_v19 = vshrl.u32 %v19703_v21, 16  ;;  %vm21775_vm15 = vmmov %vm21757_vm1 }
 0x6fc   : > { %14337 = vmatprep.mubr.msk.bf16.mxu0 %vm21747_vm10, %v10300_v51  ;;  %v10790_v51 = vrot.slane %v21768_v53, 1  ;;  %vm21779_vm10 = vmmov %vm21774_vm0  ;;  %v11169_v53 = vrot.slane %v19764_v61, 1 }
 0x6fd   : > { %v10774_v23 = vrot.slane %v21760_v52, 1  ;;  %v10807_v21 = vsel %vm21779_vm10, %v10802_v36, %v10806_v27  ;;  %v21807_v52 = vld [vmem:[#allocation70_spill] sm:$0xff] }
 0x6fe   : > { %v10794_v46 = vor.u32 %v21771_v19, %v10790_v51  ;;  %v21852_v19 = vld [vmem:[#allocation82_spill] sm:$0xff] }
 0x6ff   : > { %v10778_v55 = vor.u32 %v21763_v12, %v10774_v23  ;;  %v10775_v44 = vsel %vm21764_vm8, %v10770_v4, %v10774_v23  ;;  %vm21791_vm8 = vmmov %vm21787_vm3  ;;  %v21809_v23 = vld [vmem:[#allocation71_spill] sm:$0xff]  ;;  %v21815_v4 = vld [vmem:[#allocation74_spill] sm:$0xff] }
 0x700   : > { %v10799_v41 = vsel %vm21774_vm0, %v10794_v46, %v10798_v31  ;;  %v21819_v12 = vld [vmem:[#allocation76_spill] sm:$0xff]  ;;  %v21850_v31 = vld [vmem:[#allocation83_spill] sm:$0xff] }
 0x701   : > { %v10783_v0 = vsel %vm21766_vm9, %v10778_v55, %v10782_v47  ;;  %vm21794_vm9 = vmmov %vm21787_vm3  ;;  %v21821_v55 = vrot.slane %v19732_v43, 1  ;;  %v21837_v43 = vld [vmem:[#allocation79_spill] sm:$0xff]  ;;  %v12081_v46 = vld [vmem:[%s20463_s10 + $0x8] sm:$0xff] }
 0x703   : > { %14338 = vmatmul.mubr.msk.bf16.gmra.mrb[44].mxu0 %vm21749_vm12, %v10308_v1  ;;  %v10786_v1 = vor.u32 %v21769_v48, %v10782_v47  ;;  %vm21780_vm12 = vmmov %vm21757_vm1  ;;  %v11165_v47 = vrot.slane %v19528_v39, 1  ;;  %v11171_v39 = vrot.slane %v10688_v34, 1 }
 0x704   : > { %14341 = vmatprep.mubr.msk.bf16.mxu0 %vm21751_vm14, %v10751_v37  ;;  %vm21783_vm14 = vmmov %vm21757_vm1  ;;  %v21788_v37 = vshrl.u32 %v19764_v61, 16  ;;  %v21835_v61 = vld [vmem:[#allocation78_spill] sm:$0xff] }
 0x705   : > { %v10791_v16 = vsel %vm21772_vm7, %v10786_v1, %v10790_v51  ;;  %vm21798_vm7 = vmmov %vm21787_vm3 }
 0x706   : > { %v10834_v13 = vor.u32 %v21788_v37, %v10830_v32 }
 0x70b   : > { %14342 = vmatmul.mubr.msk.bf16.gmra.mrb[48].mxu0 %vm21757_vm1, %v10759_v8  ;;  %vm21786_vm1 = vmmov %vm21774_vm0  ;;  %v21801_v8 = vld [vmem:[#allocation64_spill] sm:$0xff] }
 0x70c   : > { %14345 = vmatprep.mubr.msk.bf16.mxu0 %vm21759_vm4, %v10767_v33  ;;  %v10831_v2 = vsel %vm21786_vm1, %v21741_v10, %v10830_v32  ;;  %vm21789_vm4 = vmmov %vm21774_vm0  ;;  %v21797_v10 = vld [vmem:[#allocation62_spill] sm:$0xff] }
 0x70d   : > { %v10839_v15 = vsel %vm21789_vm4, %v10834_v13, %v10838_v9  ;;  %vm21802_vm0 = vmmov %vm21787_vm3  ;;  %v21803_v33 = vld [vmem:[#allocation66_spill] sm:$0xff]  ;;  %v8428_v9 = vunpack.c.h.bf16 %v8408_v54 }
 0x70e   : > { %vm21806_vm10 = vmmov %vm21802_vm0 }
 0x70f   : > { %vm21810_vm2 = vmmov %vm21802_vm0 }
 0x710   : > { %vm21816_vm1 = vmmov %vm21802_vm0 }
 0x711   : > { %vm21820_vm4 = vmmov %vm21802_vm0 }
 0x713   : > { %14346 = vmatmul.mubr.msk.bf16.gmra.mrb[52].mxu0 %vm21765_vm13, %v10775_v44  ;;  %vm21793_vm13 = vcmask 1046528  }
 0x714   : > { %14349 = vmatprep.mubr.msk.bf16.mxu0 %vm21767_vm5, %v10783_v0  ;;  %v11138_v22 = vsel %vm21793_vm13, %v11136_v18, %v21792_v20  ;;  %vm21796_vm5 = vmmov %vm21787_vm3  ;;  %v11167_v0 = vrot.slane %v19538_v60, 1  ;;  %v21833_v60 = vld [vmem:[#allocation77_spill] sm:$0xff]  ;;  %v8426_v18 = vunpack.c.h.bf16 %v8407_v28 }
 0x71b   : > { %14350 = vmatmul.mubr.msk.bf16.gmra.mrb[56].mxu0 %vm21773_vm11, %v10791_v16  ;;  %vm21800_vm11 = vmmov %vm21787_vm3  ;;  %v21855_v16 = vmov 0.0  }
 0x71c   : > { %14353 = vmatprep.mubr.msk.bf16.mxu0 %vm21775_vm15, %v10799_v41  ;;  %vm21804_vm15 = vmmov %vm21802_vm0  ;;  %v20251_v41 = vld [vmem:[%s20461_s8] ss:$0 sm:$0xff] }
 0x723   : > { %14354 = vmatmul.mubr.msk.bf16.gmra.mrb[60].mxu0 %vm21780_vm12, %v10807_v21  ;;  %vm21808_vm12 = vmmov %vm21802_vm0 }
 0x724   : > { %14357 = vmatprep.mubr.msk.bf16.mxu0 %vm21783_vm14, %v10815_v45  ;;  %vm21812_vm14 = vmmov %vm21802_vm0  ;;  %v8427_v45 = vunpack.c.l.bf16 %v8408_v54 }
 0x72b   : > { %14358 = vmatmul.mubr.msk.bf16.gmra.mrb[64].mxu0 %vm21785_vm6, %v21739_v56  ;;  %v21795_v56 = vld [vmem:[#allocation61_spill] sm:$0xff]  ;;  %vm21814_vm6 = vmmov %vm21802_vm0 }
 0x72c   : > { %14361 = vmatprep.mubr.msk.bf16.mxu0 %vm21787_vm3, %v10831_v2  ;;  %vm21818_vm3 = vmmov %vm21802_vm0 }
 0x733   : > { %14362 = vmatmul.mubr.msk.bf16.gmra.mrb[68].mxu0 %vm21791_vm8, %v10839_v15  ;;  %vm21822_vm8 = vmmov %vm21793_vm13 }
 0x734   : > { %14367 = vmatprep.mubr.msk.bf16.mxu0 %vm21794_vm9, %v11138_v22  ;;  %v11166_v44 = vsel %vm21822_vm8, %v21821_v55, %v11165_v47  ;;  %vm21823_vm13 = vmmov %vm21802_vm0 }
 0x735   : > { %vm21824_vm9 = vmmov %vm21822_vm8 }
 0x736   : > { %v11168_v51 = vsel %vm21824_vm9, %v11165_v47, %v11167_v0  ;;  %vm21844_vm9 = vmmov %vm21816_vm1 }
 0x73b   : > { %14368 = vmatmul.mubr.msk.bf16.vlgmr.msra.gmra.mrb[36].mxu0 %vm21796_vm5, %v21795_v56  ;;  %vm21825_vm5 = vmmov %vm21802_vm0  ;;  %v8410_v56 = vld [vmem:[#allocation2 + $0x28] sm:$0xff] }
 0x73c   : > { %14404 = vmatpush3.bf16.msra.mxu0 %v15485_v62  ;;  %14371 = vmatprep.mubr.msk.bf16.mxu0 %vm21798_vm7, %v21797_v10  ;;  %v21811_v62 = vld [vmem:[#allocation72_spill] sm:$0xff]  ;;  %vm21826_vm7 = vmmov %vm21822_vm8  ;;  %v8431_v47 = vunpack.c.l.bf16 %v8410_v56 }
 0x73d   : > { %v11170_v48 = vsel %vm21826_vm7, %v11167_v0, %v11169_v53  ;;  %vm21840_vm8 = vmmov %vm21816_vm1 }
 0x743   : > { %14372 = vmatmul.mubr.msk.bf16.gmra.mrb[40].mxu0 %vm21800_vm11, %v21799_v63  ;;  %vm21827_vm11 = vmmov %vm21802_vm0 }
 0x744   : > { %14375 = vmatprep.mubr.msk.bf16.mxu0 %vm21802_vm0, %v21801_v8  ;;  %vm21828_vm0 = vmmov %vm21826_vm7 }
 0x745   : > { %v11172_v1 = vsel %vm21828_vm0, %v11169_v53, %v11171_v39  ;;  %vm21846_vm7 = vmmov %vm21816_vm1  ;;  %v8432_v53 = vunpack.c.h.bf16 %v8410_v56  ;;  %v21857_v39 = vld [vmem:[#allocation10_spill] sm:$0xff]  ;;  %v21867_v56 = vld [vmem:[#allocation21_spill] sm:$0xff] }
 0x746   : > { %vm21848_vm0 = vmmov %vm21816_vm1 }
 0x74b   : > { %14376 = vmatmul.mubr.msk.bf16.gmra.mrb[44].mxu0 %vm21804_vm15, %v21803_v33  ;;  %vm21829_vm15 = vmmov %vm21816_vm1 }
 0x74c   : > { %14379 = vmatprep.mubr.msk.bf16.mxu0 %vm21806_vm10, %v21805_v26  ;;  %vm21830_vm10 = vmmov %vm21816_vm1  ;;  %v8409_v26 = vld [vmem:[#allocation2 + $0x20] sm:$0xff] }
 0x74d   : > { %v8429_v0 = vunpack.c.l.bf16 %v8409_v26 }
 0x753   : > { %14380 = vmatmul.mubr.msk.bf16.gmra.mrb[48].mxu0 %vm21808_vm12, %v21807_v52  ;;  %vm21831_vm12 = vmmov %vm21816_vm1 }
 0x754   : > { %14383 = vmatprep.mubr.msk.bf16.mxu0 %vm21810_vm2, %v21809_v23  ;;  %vm21832_vm2 = vmmov %vm21816_vm1 }
 0x75b   : > { %14384 = vmatmul.mubr.msk.bf16.gmra.mrb[52].mxu0 %vm21812_vm14, %v21811_v62  ;;  %vm21834_vm14 = vmmov %vm21816_vm1 }
 0x75c   : > { %14387 = vmatprep.mubr.msk.bf16.mxu0 %vm21814_vm6, %v21813_v35  ;;  %vm21836_vm6 = vmmov %vm21816_vm1  ;;  %v21856_v35 = vld [vmem:[#allocation11_spill] sm:$0xff] }
 0x763   : > { %14388 = vmatmul.mubr.msk.bf16.gmra.mrb[56].mxu0 %vm21816_vm1, %v21815_v4 }
 0x764   : > { %14391 = vmatprep.mubr.msk.bf16.mxu0 %vm21818_vm3, %v21817_v57  ;;  %vm21838_vm3 = vmmov %vm21816_vm1 }
 0x76b   : > { %14392 = vmatmul.mubr.msk.bf16.gmra.mrb[60].mxu0 %vm21820_vm4, %v21819_v12  ;;  %vm21839_vm4 = vmmov %vm21816_vm1 }
 0x76c   : > { %14395 = vmatprep.mubr.msk.bf16.mxu0 %vm21823_vm13, %v11166_v44  ;;  %vm21842_vm13 = vmmov %vm21816_vm1 }
 0x773   : > { %14396 = vmatmul.mubr.msk.bf16.gmra.mrb[64].mxu0 %vm21825_vm5, %v11168_v51  ;;  %vm21845_vm5 = vmmov %vm21816_vm1 }
 0x774   : > { %14399 = vmatprep.mubr.msk.bf16.mxu0 %vm21827_vm11, %v11170_v48  ;;  %vm21847_vm11 = vmmov %vm21816_vm1 }
 0x77b   : > { %14400 = vmatmul.mubr.msk.bf16.gmra.mrb[68].mxu0 %vm21829_vm15, %v11172_v1  ;;  %vm21849_vm15 = vmmov %vm21848_vm0 }
 0x77c   : > { %14405 = vmatprep.mubr.msk.bf16.mxu0 %vm21830_vm10, %v19811_v29  ;;  %v21841_v29 = vld [vmem:[#allocation80_spill] sm:$0xff]  ;;  %vm21851_vm10 = vmmov %vm21848_vm0 }
 0x783   : > { %14406 = vmatmul.mubr.msk.bf16.vlgmr.msra.gmra.mrb[36].mxu0 %vm21831_vm12, %v19818_v50  ;;  %v21843_v50 = vld [vmem:[#allocation81_spill] sm:$0xff]  ;;  %vm21853_vm12 = vsmask.f32 6400 }
 0x784   : > { %14409 = vmatprep.mubr.msk.bf16.mxu0 %vm21832_vm2, %v19821_v14  ;;  %v11446_v14 = vld [vmem:[#allocation3 + $0xa8] sm:$0x3]  ;;  %vm21854_vm2 = vmmov %vm21848_vm0 }
 0x78b   : > { %14410 = vmatmul.mubr.msk.bf16.gmra.mrb[40].mxu0 %vm21834_vm14, %v21833_v60  ;;  %vm15575_vm14 = vmmov 0   ;;  %v21858_v60 = vld [vmem:[#allocation12_spill] sm:$0xff] }
 0x78c   : > { %14413 = vmatprep.mubr.msk.bf16.mxu0 %vm21836_vm6, %v21835_v61  ;;  %14445 = vmatprep.mubr.msk.f32.mxu1 %vm15575_vm14, %v21855_v16  ;;  %vm21860_vm6 = vmmov %vm21848_vm0 }
 0x78d   : > { %vm21887_vm14 = vmmov %vm21848_vm0 }
 0x793   : > { %14414 = vmatmul.mubr.msk.bf16.gmra.mrb[44].mxu0 %vm21816_vm1, %v21837_v43  ;;  %vm21861_vm1 = vmmov %vm21848_vm0 }
 0x794   : > { %14417 = vmatprep.mubr.msk.bf16.mxu0 %vm21838_vm3, %v19847_v59  ;;  %v11527_v59 = vshrl.u32 %v11446_v14, 16  ;;  %vm21862_vm3 = vmmov %vm21848_vm0 }
 0x79b   : > { %14418 = vmatmul.mubr.msk.bf16.gmra.mrb[48].mxu0 %vm21839_vm4, %v19854_v49  ;;  %v11530_v49 = vshll.u32 %v11446_v14, 16  ;;  %vm21863_vm4 = vmmov %vm21848_vm0 }
 0x79c   : > { %14421 = vmatprep.mubr.msk.bf16.mxu0 %vm21840_vm8, %v19863_v25  ;;  %v11529_v25 = vrot.slane %v11527_v59, 1  ;;  %vm21866_vm8 = vmmov %vm21848_vm0 }
 0x79d   : > { %v11532_v38 = vrot.slane %v11530_v49, 2 }
 0x7a3   : > { %14422 = vmatmul.mubr.msk.bf16.gmra.mrb[52].mxu0 %vm21842_vm13, %v21841_v29  ;;  %vm21869_vm13 = vmmov %vm21848_vm0 }
 0x7a4   : > { %14425 = vmatprep.mubr.msk.bf16.mxu0 %vm21844_vm9, %v21843_v50  ;;  %v21859_v50 = vld [vmem:[#allocation28_spill] sm:$0xff]  ;;  %vm21870_vm9 = vmmov %vm21848_vm0 }
 0x7ab   : > { %14426 = vmatmul.mubr.msk.bf16.gmra.mrb[56].mxu0 %vm21845_vm5, %v19884_v58  ;;  %v11533_v58 = vor.u32 %v11532_v38, %v11529_v25  ;;  %v8430_v25 = vunpack.c.h.bf16 %v8409_v26  ;;  %vm21871_vm5 = vmmov %vm21848_vm0 }
 0x7ac   : > { %14429 = vmatprep.mubr.msk.bf16.mxu0 %vm21846_vm7, %v19889_v11  ;;  %vm21874_vm7 = vmmov %vm21848_vm0 }
 0x7ad   : > { %v11534_v11 = vsel %vm21853_vm12, %v21852_v19, %v11533_v58  ;;  %vm21884_vm12 = vmmov %vm21848_vm0 }
 0x7b3   : > { %14430 = vmatmul.mubr.msk.bf16.gmra.mrb[60].mxu0 %vm21847_vm11, %v19896_v40  ;;  %v15574_v40 = vmov 0.0|0.0   ;;  %vm21877_vm11 = vmmov %vm21848_vm0 }
 0x7b4   : > { %14433 = vmatprep.mubr.msk.bf16.mxu0 %vm21848_vm0, %v19902_v6  ;;  %14448 = vmatprep.subr.bf16.mxu1 %v15574_v40  ;;  %v12080_v6 = vld [vmem:[%s20463_s10] sm:$0xff] }
 0x7bb   : > { %14434 = vmatmul.mubr.msk.bf16.gmra.mrb[64].mxu0 %vm21849_vm15, %v19910_v5  ;;  %v14449_v5 = vpack.c.bf16 %v12081_v46, %v12080_v6  ;;  %vm21878_vm15 = vmmov %vm21848_vm0 }
 0x7bc   : > { %14437 = vmatprep.mubr.msk.bf16.mxu0 %vm21851_vm10, %v21850_v31  ;;  %vm21881_vm10 = vmmov %vm21848_vm0 }
 0x7bd   : > { %14450 = vmatpush3.bf16.msra.mxu1 %v14449_v5 }
 0x7c3   : > { %14438 = vmatmul.mubr.msk.bf16.gmra.mrb[68].mxu0 %vm21854_vm2, %v11534_v11  ;;  %v8412_v11 = vld [vmem:[#allocation2 + $0x38] sm:$0xff]  ;;  %vm21885_vm2 = vmmov %vm21848_vm0 }
 0x856   : > { %v14407_v27 = vpop.f32.mrb[36].mxu0 }
 0x857   : > { %v11817_v36 = vmul.f32 %v14407_v27, %v20251_v41  ;;  %v11629_v42 = vpop.f32.mrb[37].mxu0 }
 0x858   : > { %v11815_v21 = vmul.f32 %v20251_v41, %v11629_v42  ;;  %v14408_v17 = vpop.f32.mrb[38].mxu0 }
 0x859   : > { %v11860_v34 = vadd.f32 %v20256_v3, %v11817_v36  ;;  %v11818_v30 = vmul.f32 %v14408_v17, %v20251_v41  ;;  %v11632_v32 = vpop.f32.mrb[39].mxu0  ;;  %v8411_v36 = vld [vmem:[#allocation2 + $0x30] sm:$0xff] }
 0x85a   : > { %v11858_v2 = vadd.f32 %v20256_v3, %v11815_v21  ;;  %v11816_v37 = vmul.f32 %v20251_v41, %v11632_v32  ;;  %v8435_v21 = vunpack.c.l.bf16 %v8412_v11 }
 0x85b   : > { %v11896_v13 = vadd.f32 %v11860_v34, %v8427_v45  ;;  %v11861_v15 = vadd.f32 %v20256_v3, %v11818_v30  ;;  %v21864_v34 = vld [vmem:[#allocation14_spill] sm:$0xff] }
 0x85c   : > { %v11894_v24 = vadd.f32 %v11858_v2, %v8425_v7  ;;  %v11859_v20 = vadd.f32 %v20256_v3, %v11816_v37 }
 0x85d   : > { %v11897_v22 = vadd.f32 %v11861_v15, %v8428_v9  ;;  %v11932_v10 = vmax.f32 %v11896_v13, 0.0  ;;  %v21865_v13 = vld [vmem:[#allocation13_spill] sm:$0xff] }
 0x85e   : > { %v11930_v63 = vmax.f32 %v11894_v24, 0.0  ;;  %v11895_v8 = vadd.f32 %v11859_v20, %v8426_v18  ;;  %v14411_v33 = vpop.f32.mrb[40].mxu0  ;;  %v8433_v18 = vunpack.c.l.bf16 %v8411_v36 }
 0x85f   : > { %v11933_v52 = vmax.f32 %v11897_v22, 0.0  ;;  %v11821_v23 = vmul.f32 %v14411_v33, %v20251_v41  ;;  %v11645_v62 = vpop.f32.mrb[41].mxu0  ;;  %v11968_v1 = vmul.f32 %v11932_v10, %v21857_v39  ;;  %v8414_v33 = vld [vmem:[#allocation2 + $0x48] sm:$0xff] }
 0x860   : > { %v11966_v4 = vmul.f32 %v11930_v63, %v21856_v35  ;;  %v11931_v57 = vmax.f32 %v11895_v8, 0.0  ;;  %v11819_v12 = vmul.f32 %v20251_v41, %v11645_v62  ;;  %v14412_v55 = vpop.f32.mrb[42].mxu0  ;;  %v21868_v35 = vld [vmem:[#allocation19_spill] sm:$0xff] }
 0x861   : > { %v11864_v44 = vadd.f32 %v20256_v3, %v11821_v23  ;;  %v11822_v51 = vmul.f32 %v14412_v55, %v20251_v41  ;;  %v11648_v48 = vpop.f32.mrb[43].mxu0  ;;  %v11969_v14 = vmul.f32 %v11933_v52, %v21859_v50  ;;  %v12005_v5 = vsel %vm21862_vm3, %v11968_v1, 0.0  ;;  %v8413_v55 = vld [vmem:[#allocation2 + $0x40] sm:$0xff]  ;;  %vm21893_vm3 = vmmov %vm21848_vm0 }
 0x862   : > { %v11967_v61 = vmul.f32 %v11931_v57, %v21858_v60  ;;  %v11862_v43 = vadd.f32 %v20256_v3, %v11819_v12  ;;  %v11820_v29 = vmul.f32 %v20251_v41, %v11648_v48  ;;  %v12002_v38 = vsel %vm21860_vm6, %v11966_v4, 0.0  ;;  %vm21888_vm6 = vmmov %vm21848_vm0 }
 0x863   : > { %v11900_v59 = vadd.f32 %v11864_v44, %v8431_v47  ;;  %v11865_v49 = vadd.f32 %v20256_v3, %v11822_v51  ;;  %v12007_v28 = vsel %vm21863_vm4, %v11969_v14, 0.0  ;;  %v8436_v23 = vunpack.c.h.bf16 %v8412_v11  ;;  %vm21894_vm4 = vmmov %vm21848_vm0 }
 0x864   : > { %v12003_v31 = vsel %vm21861_vm1, %v11967_v61, 0.0  ;;  %v11898_v58 = vadd.f32 %v11862_v43, %v8429_v0  ;;  %v11863_v19 = vadd.f32 %v20256_v3, %v11820_v29  ;;  %v8434_v0 = vunpack.c.h.bf16 %v8411_v36  ;;  %vm21892_vm1 = vmmov %vm21848_vm0 }
 0x865   : > { %v12004_v40 = vadd.f32 %v12003_v31, %v12002_v38  ;;  %v11936_v6 = vmax.f32 %v11900_v59, 0.0  ;;  %v11901_v46 = vadd.f32 %v11865_v49, %v8432_v53  ;;  %v8439_v51 = vunpack.c.l.bf16 %v8414_v33 }
 0x866   : > { %v11934_v16 = vmax.f32 %v11898_v58, 0.0  ;;  %v11899_v54 = vadd.f32 %v11863_v19, %v8430_v25  ;;  %v14415_v27 = vpop.f32.mrb[44].mxu0  ;;  %v8437_v14 = vunpack.c.l.bf16 %v8413_v55  ;;  %v21872_v25 = vld [vmem:[#allocation33_spill] sm:$0xff] }
 0x867   : > { %v12006_v42 = vadd.f32 %v12005_v5, %v12004_v40  ;;  %v11825_v17 = vmul.f32 %v14415_v27, %v20251_v41  ;;  %v11661_v45 = vpop.f32.mrb[45].mxu0  ;;  %v11937_v32 = vmax.f32 %v11901_v46, 0.0  ;;  %v11972_v9 = vmul.f32 %v11936_v6, %v21865_v13 }
 0x868   : > { %v11970_v30 = vmul.f32 %v11934_v16, %v21864_v34  ;;  %v11935_v7 = vmax.f32 %v11899_v54, 0.0  ;;  %v11823_v2 = vmul.f32 %v20251_v41, %v11661_v45  ;;  %v14416_v37 = vpop.f32.mrb[46].mxu0  ;;  %v8440_v46 = vunpack.c.h.bf16 %v8414_v33  ;;  %v21873_v16 = vld [vmem:[#allocation32_spill] sm:$0xff]  ;;  %v21875_v45 = vld [vmem:[#allocation15_spill] sm:$0xff] }
 0x869   : > { %v12008_v15 = vadd.f32 %v12007_v28, %v12006_v42  ;;  %v11868_v24 = vadd.f32 %v20256_v3, %v11825_v17  ;;  %v11664_v20 = vpop.f32.mrb[47].mxu0  ;;  %v11826_v8 = vmul.f32 %v14416_v37, %v20251_v41  ;;  %v11973_v4 = vmul.f32 %v11937_v32, %v21868_v35  ;;  %v8416_v42 = vld [vmem:[#allocation2 + $0x58] sm:$0xff] }
 0x86a   : > { %v12009_v22 = vsel %vm21866_vm8, %v11970_v30, 0.0  ;;  %v11971_v10 = vmul.f32 %v11935_v7, %v21867_v56  ;;  %v11866_v63 = vadd.f32 %v20256_v3, %v11823_v2  ;;  %v11824_v62 = vmul.f32 %v20251_v41, %v11664_v20  ;;  %v21876_v7 = vld [vmem:[#allocation34_spill] sm:$0xff]  ;;  %vm21897_vm8 = vmmov %vm21848_vm0 }
 0x86b   : > { %v12010_v26 = vadd.f32 %v12009_v22, %v12008_v15  ;;  %v11904_v52 = vadd.f32 %v11868_v24, %v8435_v21  ;;  %v11869_v12 = vadd.f32 %v20256_v3, %v11826_v8  ;;  %v12013_v48 = vsel %vm21870_vm9, %v11972_v9, 0.0  ;;  %v8415_v21 = vld [vmem:[#allocation2 + $0x50] sm:$0xff]  ;;  %vm21901_vm9 = vmmov %vm21848_vm0 }
 0x86c   : > { %v12011_v57 = vsel %vm21869_vm13, %v11971_v10, 0.0  ;;  %v11902_v47 = vadd.f32 %v11866_v63, %v8433_v18  ;;  %v11867_v53 = vadd.f32 %v20256_v3, %v11824_v62  ;;  %v12015_v49 = vsel %vm21871_vm5, %v11973_v4, 0.0  ;;  %vm21900_vm13 = vmmov %vm21848_vm0 }
 0x86d   : > { %v12012_v44 = vadd.f32 %v12011_v57, %v12010_v26  ;;  %v11940_v39 = vmax.f32 %v11904_v52, 0.0  ;;  %v11905_v60 = vadd.f32 %v11869_v12, %v8436_v23  ;;  %v8438_v9 = vunpack.c.h.bf16 %v8413_v55  ;;  %v21879_v57 = vld [vmem:[#allocation16_spill] sm:$0xff]  ;;  %vm21903_vm5 = vmmov %vm21848_vm0 }
 0x86e   : > { %v11938_v1 = vmax.f32 %v11902_v47, 0.0  ;;  %v14419_v61 = vpop.f32.mrb[48].mxu0  ;;  %v11903_v29 = vadd.f32 %v11867_v53, %v8434_v0  ;;  %v8443_v18 = vunpack.c.l.bf16 %v8416_v42  ;;  %v8441_v20 = vunpack.c.l.bf16 %v8415_v21 }
 0x86f   : > { %v12014_v43 = vadd.f32 %v12013_v48, %v12012_v44  ;;  %v11829_v50 = vmul.f32 %v14419_v61, %v20251_v41  ;;  %v11677_v59 = vpop.f32.mrb[49].mxu0  ;;  %v11941_v31 = vmax.f32 %v11905_v60, 0.0  ;;  %v11976_v54 = vmul.f32 %v11940_v39, %v21873_v16  ;;  %v8418_v39 = vld [vmem:[#allocation2 + $0x68] sm:$0xff] }
 0x870   : > { %v11974_v38 = vmul.f32 %v11938_v1, %v21872_v25  ;;  %v11827_v58 = vmul.f32 %v20251_v41, %v11677_v59  ;;  %v14420_v19 = vpop.f32.mrb[50].mxu0  ;;  %v11939_v40 = vmax.f32 %v11903_v29, 0.0  ;;  %v8444_v62 = vunpack.c.h.bf16 %v8416_v42  ;;  %v21880_v1 = vld [vmem:[#allocation17_spill] sm:$0xff] }
 0x871   : > { %v12016_v11 = vadd.f32 %v12015_v49, %v12014_v43  ;;  %v11872_v6 = vadd.f32 %v20256_v3, %v11829_v50  ;;  %v11680_v5 = vpop.f32.mrb[51].mxu0  ;;  %v11830_v28 = vmul.f32 %v14420_v19, %v20251_v41  ;;  %v11977_v2 = vmul.f32 %v11941_v31, %v21876_v7  ;;  %v21882_v50 = vld [vmem:[#allocation18_spill] sm:$0xff]  ;;  %v21886_v7 = vld [vmem:[#allocation20_spill] sm:$0xff] }
 0x872   : > { %v12017_v27 = vsel %vm21874_vm7, %v11974_v38, 0.0  ;;  %v11870_v36 = vadd.f32 %v20256_v3, %v11827_v58  ;;  %v11975_v34 = vmul.f32 %v11939_v40, %v21875_v45  ;;  %v11828_v32 = vmul.f32 %v20251_v41, %v11680_v5  ;;  %v8417_v38 = vld [vmem:[#allocation2 + $0x60] sm:$0xff]  ;;  %vm21904_vm7 = vmmov %vm21848_vm0 }
 0x873   : > { %v12018_v17 = vadd.f32 %v12017_v27, %v12016_v11  ;;  %v11908_v30 = vadd.f32 %v11872_v6, %v8439_v51  ;;  %v11873_v13 = vadd.f32 %v20256_v3, %v11830_v28  ;;  %v12021_v33 = vsel %vm21848_vm0, %v11976_v54, 0.0  ;;  %v21883_v40 = vld [vmem:[#allocation8_spill] sm:$0xff] }
 0x874   : > { %v11906_v37 = vadd.f32 %v11870_v36, %v8437_v14  ;;  %v12019_v15 = vsel %vm21877_vm11, %v11975_v34, 0.0  ;;  %v11871_v24 = vadd.f32 %v20256_v3, %v11828_v32  ;;  %v12023_v35 = vsel %vm21878_vm15, %v11977_v2, 0.0  ;;  %vm21908_vm11 = vmmov %vm21848_vm0 }
 0x875   : > { %v12020_v22 = vadd.f32 %v12019_v15, %v12018_v17  ;;  %v11944_v56 = vmax.f32 %v11908_v30, 0.0  ;;  %v11909_v63 = vadd.f32 %v11873_v13, %v8440_v46  ;;  %v8442_v19 = vunpack.c.h.bf16 %v8415_v21  ;;  %vm21909_vm15 = vmmov %vm21848_vm0 }
 0x876   : > { %v11942_v10 = vmax.f32 %v11906_v37, 0.0  ;;  %v14423_v8 = vpop.f32.mrb[52].mxu0  ;;  %v11907_v26 = vadd.f32 %v11871_v24, %v8438_v9  ;;  %v8447_v11 = vunpack.c.l.bf16 %v8418_v39  ;;  %v8445_v28 = vunpack.c.l.bf16 %v8417_v38 }
 0x877   : > { %v11833_v52 = vmul.f32 %v14423_v8, %v20251_v41  ;;  %v11693_v23 = vpop.f32.mrb[53].mxu0  ;;  %v12022_v4 = vadd.f32 %v12021_v33, %v12020_v22  ;;  %v11945_v44 = vmax.f32 %v11909_v63, 0.0  ;;  %v11980_v60 = vmul.f32 %v11944_v56, %v21880_v1  ;;  %v8420_v33 = vld [vmem:[#allocation2 + $0x78] sm:$0xff] }
 0x878   : > { %v11978_v47 = vmul.f32 %v11942_v10, %v21879_v57  ;;  %v11831_v12 = vmul.f32 %v20251_v41, %v11693_v23  ;;  %v14424_v55 = vpop.f32.mrb[54].mxu0  ;;  %v11943_v0 = vmax.f32 %v11907_v26, 0.0  ;;  %v8448_v42 = vunpack.c.h.bf16 %v8418_v39  ;;  %v8419_v26 = vld [vmem:[#allocation2 + $0x70] sm:$0xff] }
 0x879   : > { %v11876_v53 = vadd.f32 %v20256_v3, %v11833_v52  ;;  %v11834_v51 = vmul.f32 %v14424_v55, %v20251_v41  ;;  %v11696_v48 = vpop.f32.mrb[55].mxu0  ;;  %v12024_v61 = vadd.f32 %v12023_v35, %v12022_v4  ;;  %v11981_v6 = vmul.f32 %v11945_v44, %v21883_v40  ;;  %v21889_v52 = vld [vmem:[#allocation35_spill] sm:$0xff] }
 0x87a   : > { %v12025_v43 = vsel %vm21881_vm10, %v11978_v47, 0.0  ;;  %v11874_v29 = vadd.f32 %v20256_v3, %v11831_v12  ;;  %v11979_v14 = vmul.f32 %v11943_v0, %v21882_v50  ;;  %v11832_v25 = vmul.f32 %v20251_v41, %v11696_v48  ;;  %v21891_v12 = vld [vmem:[#allocation9_spill] sm:$0xff]  ;;  %vm21912_vm10 = vmmov %vm21848_vm0 }
 0x87b   : > { %v11912_v59 = vadd.f32 %v11876_v53, %v8443_v18  ;;  %v11877_v49 = vadd.f32 %v20256_v3, %v11834_v51  ;;  %v12026_v31 = vadd.f32 %v12025_v43, %v12024_v61  ;;  %v12029_v17 = vsel %vm21885_vm2, %v11980_v60, 0.0  ;;  %vm21916_vm2 = vmmov %vm21848_vm0 }
 0x87c   : > { %v11910_v58 = vadd.f32 %v11874_v29, %v8441_v20  ;;  %v12027_v46 = vsel %vm21884_vm12, %v11979_v14, 0.0  ;;  %v11875_v16 = vadd.f32 %v20256_v3, %v11832_v25  ;;  %v12031_v15 = vsel %vm21887_vm14, %v11981_v6, 0.0  ;;  %vm21915_vm12 = vmmov %vm21848_vm0 }
 0x87d   : > { %v11913_v5 = vadd.f32 %v11877_v49, %v8444_v62  ;;  %v12028_v54 = vadd.f32 %v12027_v46, %v12026_v31  ;;  %v11948_v45 = vmax.f32 %v11912_v59, 0.0  ;;  %v8446_v20 = vunpack.c.h.bf16 %v8417_v38  ;;  %v21890_v62 = vld [vmem:[#allocation22_spill] sm:$0xff]  ;;  %vm21918_vm14 = vmmov %vm21848_vm0 }
 0x87e   : > { %v11946_v27 = vmax.f32 %v11910_v58, 0.0  ;;  %v14427_v36 = vpop.f32.mrb[56].mxu0  ;;  %v11911_v34 = vadd.f32 %v11875_v16, %v8442_v19  ;;  %v8451_v48 = vunpack.c.l.bf16 %v8420_v33  ;;  %v8449_v39 = vunpack.c.l.bf16 %v8419_v26  ;;  %v21895_v58 = vld [vmem:[#allocation24_spill] sm:$0xff] }
 0x87f   : > { %v11837_v30 = vmul.f32 %v14427_v36, %v20251_v41  ;;  %v11709_v21 = vpop.f32.mrb[57].mxu0  ;;  %v12030_v32 = vadd.f32 %v12029_v17, %v12028_v54  ;;  %v11949_v37 = vmax.f32 %v11913_v5, 0.0  ;;  %v11984_v23 = vmul.f32 %v11948_v45, %v21889_v52  ;;  %v21896_v36 = vld [vmem:[#allocation23_spill] sm:$0xff] }
 0x880   : > { %v11982_v2 = vmul.f32 %v11946_v27, %v21886_v7  ;;  %v11835_v13 = vmul.f32 %v20251_v41, %v11709_v21  ;;  %v14428_v9 = vpop.f32.mrb[58].mxu0  ;;  %v11947_v24 = vmax.f32 %v11911_v34, 0.0  ;;  %v8452_v25 = vunpack.c.h.bf16 %v8420_v33  ;;  %v8422_v27 = vld [vmem:[#allocation2 + $0x88] sm:$0xff]  ;;  %v21898_v34 = vld [vmem:[#allocation26_spill] sm:$0xff] }
 0x881   : > { %v11880_v18 = vadd.f32 %v20256_v3, %v11837_v30  ;;  %v11712_v22 = vpop.f32.mrb[59].mxu0  ;;  %v12032_v56 = vadd.f32 %v12031_v15, %v12030_v32  ;;  %v11838_v8 = vmul.f32 %v14428_v9, %v20251_v41  ;;  %v11985_v55 = vmul.f32 %v11949_v37, %v21891_v12 }
 0x882   : > { %v12033_v10 = vsel %vm21888_vm6, %v11982_v2, 0.0  ;;  %v11878_v63 = vadd.f32 %v20256_v3, %v11835_v13  ;;  %v11983_v35 = vmul.f32 %v11947_v24, %v21890_v62  ;;  %v11836_v57 = vmul.f32 %v20251_v41, %v11712_v22  ;;  %v8421_v2 = vld [vmem:[#allocation2 + $0x80] sm:$0xff]  ;;  %v21899_v24 = vld [vmem:[#allocation25_spill] sm:$0xff]  ;;  %vm21919_vm6 = vmmov %vm21848_vm0 }
 0x883   : > { %v11916_v4 = vadd.f32 %v11880_v18, %v8447_v11  ;;  %v12034_v47 = vadd.f32 %v12033_v10, %v12032_v56  ;;  %v11881_v0 = vadd.f32 %v20256_v3, %v11838_v8  ;;  %v12037_v50 = vsel %vm21893_vm3, %v11984_v23, 0.0  ;;  %vm21924_vm3 = vmmov %vm21848_vm0 }
 0x884   : > { %v11914_v44 = vadd.f32 %v11878_v63, %v8445_v28  ;;  %v12035_v53 = vsel %vm21892_vm1, %v11983_v35, 0.0  ;;  %v11879_v51 = vadd.f32 %v20256_v3, %v11836_v57  ;;  %v12039_v38 = vsel %vm21894_vm4, %v11985_v55, 0.0  ;;  %vm21923_vm1 = vmmov %vm21848_vm0 }
 0x885   : > { %v12036_v1 = vadd.f32 %v12035_v53, %v12034_v47  ;;  %v11952_v60 = vmax.f32 %v11916_v4, 0.0  ;;  %v11917_v43 = vadd.f32 %v11881_v0, %v8448_v42  ;;  %v8450_v9 = vunpack.c.h.bf16 %v8419_v26  ;;  %v21902_v47 = vld [vmem:[#allocation30_spill] sm:$0xff]  ;;  %vm21925_vm4 = vmmov %vm21848_vm0 }
 0x886   : > { %v11950_v61 = vmax.f32 %v11914_v44, 0.0  ;;  %v14431_v29 = vpop.f32.mrb[60].mxu0  ;;  %v11915_v14 = vadd.f32 %v11879_v51, %v8446_v20  ;;  %v8455_v15 = vunpack.c.l.bf16 %v8422_v27  ;;  %v8453_v33 = vunpack.c.l.bf16 %v8421_v2 }
 0x887   : > { %v11841_v59 = vmul.f32 %v14431_v29, %v20251_v41  ;;  %v11725_v49 = vpop.f32.mrb[61].mxu0  ;;  %v12038_v31 = vadd.f32 %v12037_v50, %v12036_v1  ;;  %v11953_v6 = vmax.f32 %v11917_v43, 0.0  ;;  %v11988_v28 = vmul.f32 %v11952_v60, %v21896_v36  ;;  %v8424_v50 = vld [vmem:[#allocation2 + $0x98] sm:$0xff] }
 0x888   : > { %v11986_v19 = vmul.f32 %v11950_v61, %v21895_v58  ;;  %v11839_v11 = vmul.f32 %v20251_v41, %v11725_v49  ;;  %v14432_v40 = vpop.f32.mrb[62].mxu0  ;;  %v11951_v46 = vmax.f32 %v11915_v14, 0.0  ;;  %v8456_v52 = vunpack.c.h.bf16 %v8422_v27  ;;  %v8423_v14 = vld [vmem:[#allocation2 + $0x90] sm:$0xff] }
 0x889   : > { %v11884_v5 = vadd.f32 %v20256_v3, %v11841_v59  ;;  %v11842_v16 = vmul.f32 %v14432_v40, %v20251_v41  ;;  %v11728_v54 = vpop.f32.mrb[63].mxu0  ;;  %v12040_v42 = vadd.f32 %v12039_v38, %v12038_v31  ;;  %v11989_v18 = vmul.f32 %v11953_v6, %v21899_v24  ;;  %v21905_v59 = vld [vmem:[#allocation27_spill] sm:$0xff] }
 0x88a   : > { %v12041_v17 = vsel %vm21897_vm8, %v11986_v19, 0.0  ;;  %v11882_v45 = vadd.f32 %v20256_v3, %v11839_v11  ;;  %v11987_v30 = vmul.f32 %v11951_v46, %v21898_v34  ;;  %v11840_v7 = vmul.f32 %v20251_v41, %v11728_v54  ;;  %v21907_v11 = vld [vmem:[#allocation29_spill] sm:$0xff]  ;;  %vm21926_vm8 = vmmov %vm21848_vm0 }
 0x88b   : > { %v11920_v21 = vadd.f32 %v11884_v5, %v8451_v48  ;;  %v11885_v32 = vadd.f32 %v20256_v3, %v11842_v16  ;;  %v12042_v37 = vadd.f32 %v12041_v17, %v12040_v42  ;;  %v12045_v23 = vsel %vm21901_vm9, %v11988_v28, 0.0 }
 0x88c   : > { %v11918_v13 = vadd.f32 %v11882_v45, %v8449_v39  ;;  %v12043_v20 = vsel %vm21900_vm13, %v11987_v30, 0.0  ;;  %v11883_v56 = vadd.f32 %v20256_v3, %v11840_v7  ;;  %v12047_v53 = vsel %vm21903_vm5, %v11989_v18, 0.0 }
 0x88d   : > { %v11921_v22 = vadd.f32 %v11885_v32, %v8452_v25  ;;  %v12044_v10 = vadd.f32 %v12043_v20, %v12042_v37  ;;  %v11956_v62 = vmax.f32 %v11920_v21, 0.0  ;;  %v8454_v39 = vunpack.c.h.bf16 %v8421_v2  ;;  %v21906_v25 = vld [vmem:[#allocation31_spill] sm:$0xff] }
 0x88e   : > { %v11954_v63 = vmax.f32 %v11918_v13, 0.0  ;;  %v14435_v8 = vpop.f32.mrb[64].mxu0  ;;  %v11919_v35 = vadd.f32 %v11883_v56, %v8450_v9  ;;  %v8459_v54 = vunpack.c.l.bf16 %v8424_v50  ;;  %v8457_v27 = vunpack.c.l.bf16 %v8423_v14  ;;  %v21910_v13 = vld [vmem:[#allocation37_spill] sm:$0xff] }
 0x88f   : > { %v11845_v4 = vmul.f32 %v14435_v8, %v20251_v41  ;;  %v11741_v26 = vpop.f32.mrb[65].mxu0  ;;  %v12046_v57 = vadd.f32 %v12045_v23, %v12044_v10  ;;  %v11957_v55 = vmax.f32 %v11921_v22, 0.0  ;;  %v11992_v49 = vmul.f32 %v11956_v62, %v21905_v59  ;;  %v21913_v62 = vld [vmem:[#allocation39_spill] sm:$0xff] }
 0x890   : > { %v11990_v12 = vmul.f32 %v11954_v63, %v21902_v47  ;;  %v11843_v44 = vmul.f32 %v20251_v41, %v11741_v26  ;;  %v14436_v0 = vpop.f32.mrb[66].mxu0  ;;  %v11955_v51 = vmax.f32 %v11919_v35, 0.0  ;;  %v8460_v7 = vunpack.c.h.bf16 %v8424_v50  ;;  %v21911_v63 = vld [vmem:[#allocation36_spill] sm:$0xff] }
 0x891   : > { %v11888_v48 = vadd.f32 %v20256_v3, %v11845_v4  ;;  %v11744_v1 = vpop.f32.mrb[67].mxu0  ;;  %v12048_v60 = vadd.f32 %v12047_v53, %v12046_v57  ;;  %v11846_v29 = vmul.f32 %v14436_v0, %v20251_v41  ;;  %v11993_v40 = vmul.f32 %v11957_v55, %v21907_v11  ;;  %v21917_v50 = vld [vmem:[#allocation44_spill] sm:$0xff] }
 0x892   : > { %v12049_v61 = vsel %vm21904_vm7, %v11990_v12, 0.0  ;;  %v11886_v43 = vadd.f32 %v20256_v3, %v11843_v44  ;;  %v11991_v38 = vmul.f32 %v11955_v51, %v21906_v25  ;;  %v11844_v58 = vmul.f32 %v20251_v41, %v11744_v1  ;;  %v21914_v44 = vld [vmem:[#allocation38_spill] sm:$0xff] }
 0x893   : > { %v11924_v31 = vadd.f32 %v11888_v48, %v8455_v15  ;;  %v12050_v19 = vadd.f32 %v12049_v61, %v12048_v60  ;;  %v11889_v46 = vadd.f32 %v20256_v3, %v11846_v29  ;;  %v12053_v34 = vsel %vm21848_vm0, %v11992_v49, 0.0 }
 0x894   : > { %v11922_v6 = vadd.f32 %v11886_v43, %v8453_v33  ;;  %v12051_v5 = vsel %vm21908_vm11, %v11991_v38, 0.0  ;;  %v11887_v16 = vadd.f32 %v20256_v3, %v11844_v58  ;;  %v12055_v2 = vsel %vm21909_vm15, %v11993_v40, 0.0  ;;  %v21922_v40 = vld [vmem:[#allocation42_spill] sm:$0xff] }
 0x895   : > { %v12052_v36 = vadd.f32 %v12051_v5, %v12050_v19  ;;  %v11960_v28 = vmax.f32 %v11924_v31, 0.0  ;;  %v11925_v17 = vadd.f32 %v11889_v46, %v8456_v52  ;;  %v8458_v55 = vunpack.c.h.bf16 %v8423_v14  ;;  %v21920_v31 = vld [vmem:[#allocation40_spill] sm:$0xff]  ;;  %v21921_v19 = vld [vmem:[#allocation45_spill] sm:$0xff] }
 0x896   : > { %v11958_v42 = vmax.f32 %v11922_v6, 0.0  ;;  %v14439_v45 = vpop.f32.mrb[68].mxu0  ;;  %v11923_v30 = vadd.f32 %v11887_v16, %v8454_v39 }
 0x897   : > { %v11849_v21 = vmul.f32 %v14439_v45, %v20251_v41  ;;  %v11757_v32 = vpop.f32.mrb[69].mxu0  ;;  %v12054_v37 = vadd.f32 %v12053_v34, %v12052_v36  ;;  %v11961_v18 = vmax.f32 %v11925_v17, 0.0  ;;  %v11996_v8 = vmul.f32 %v11960_v28, %v21911_v63 }
 0x898   : > { %v11994_v9 = vmul.f32 %v11958_v42, %v21910_v13  ;;  %v11847_v15 = vmul.f32 %v20251_v41, %v11757_v32  ;;  %v14440_v24 = vpop.f32.mrb[70].mxu0  ;;  %v11959_v20 = vmax.f32 %v11923_v30, 0.0  ;;  %v12082_v32 = vld [vmem:[%s20464_s11] sm:$0x1] }
 0x899   : > { %v11892_v22 = vadd.f32 %v20256_v3, %v11849_v21  ;;  %v11850_v56 = vmul.f32 %v14440_v24, %v20251_v41  ;;  %v11760_v10 = vpop.f32.mrb[71].mxu0  ;;  %v12056_v33 = vadd.f32 %v12055_v2, %v12054_v37  ;;  %v11997_v0 = vmul.f32 %v11961_v18, %v21914_v44 }
 0x89a   : > { %v12057_v52 = vsel %vm21912_vm10, %v11994_v9, 0.0  ;;  %v11890_v23 = vadd.f32 %v20256_v3, %v11847_v15  ;;  %v11995_v35 = vmul.f32 %v11959_v20, %v21913_v62  ;;  %v11848_v57 = vmul.f32 %v20251_v41, %v11760_v10 }
 0x89b   : > { %v11928_v4 = vadd.f32 %v11892_v22, %v8459_v54  ;;  %v11893_v26 = vadd.f32 %v20256_v3, %v11850_v56  ;;  %v12058_v47 = vadd.f32 %v12057_v52, %v12056_v33  ;;  %v12061_v60 = vsel %vm21916_vm2, %v11996_v8, 0.0 }
 0x89c   : > { %v11926_v12 = vadd.f32 %v11890_v23, %v8457_v27  ;;  %v12059_v53 = vsel %vm21915_vm12, %v11995_v35, 0.0  ;;  %v11891_v48 = vadd.f32 %v20256_v3, %v11848_v57  ;;  %v12063_v41 = vsel %vm21918_vm14, %v11997_v0, 0.0 }
 0x89d   : > { %v11929_v51 = vadd.f32 %v11893_v26, %v8460_v7  ;;  %v12060_v39 = vadd.f32 %v12059_v53, %v12058_v47  ;;  %v11964_v61 = vmax.f32 %v11928_v4, 0.0 }
 0x89e   : > { %v11962_v1 = vmax.f32 %v11926_v12, 0.0  ;;  %v11927_v43 = vadd.f32 %v11891_v48, %v8458_v55 }
 0x89f   : > { %v12062_v29 = vadd.f32 %v12061_v60, %v12060_v39  ;;  %v11965_v49 = vmax.f32 %v11929_v51, 0.0  ;;  %v12000_v58 = vmul.f32 %v11964_v61, %v21920_v31 }
 0x8a0   : > { %v11998_v59 = vmul.f32 %v11962_v1, %v21917_v50  ;;  %v11963_v14 = vmax.f32 %v11927_v43, 0.0 }
 0x8a1   : > { %v12064_v25 = vadd.f32 %v12063_v41, %v12062_v29  ;;  %v12001_v6 = vmul.f32 %v11965_v49, %v21922_v40  ;;  %v12069_v16 = vsel %vm21924_vm3, %v12000_v58, 0.0 }
 0x8a2   : > { %v12065_v38 = vsel %vm21919_vm6, %v11998_v59, 0.0  ;;  %v11999_v3 = vmul.f32 %v11963_v14, %v21921_v19 }
 0x8a3   : > { %v12066_v11 = vadd.f32 %v12065_v38, %v12064_v25  ;;  %v12071_v27 = vsel %vm21925_vm4, %v12001_v6, 0.0 }
 0x8a4   : > { %v12067_v46 = vsel %vm21923_vm1, %v11999_v3, 0.0 }
 0x8a5   : > { %v12068_v5 = vadd.f32 %v12067_v46, %v12066_v11 }
 0x8a7   : > { %v12070_v54 = vadd.f32 %v12069_v16, %v12068_v5 }
 0x8a9   : > { %v12072_v36 = vadd.f32 %v12071_v27, %v12070_v54 }
 0x8ab   : > { %v12073_v28 = vrot.slane %v12072_v36, 4 }
 0x8ad   : > { %v12074_v42 = vadd.f32 %v12073_v28, %v12072_v36 }
 0x8af   : > { %v12075_v17 = vrot.slane %v12074_v42, 2 }
 0x8b1   : > { %v12076_v45 = vadd.f32 %v12075_v17, %v12074_v42 }
 0x8b3   : > { %v12077_v34 = vrot.slane %v12076_v45, 1 }
 0x8b5   : > { %v12078_v30 = vadd.f32 %v12077_v34, %v12076_v45 }
 0x8b7   : > { %v12079_v21 = vmul.f32 0.00390625, %v12078_v30 }
 0x8b9   : > { %14446 = vmatmul.mubr.msk.f32.vlgmr.msra.gmra.mrb[72].mxu1 %vm21926_vm8, %v12079_v21 }
 0x98c   : > { %v12152_v7 = vpop.f32.mrb[72].mxu1 }
 0x98d   : > { %v12153_v2 = vadd.f32 %v12152_v7, %v12082_v32  ;;  %v14447_v37 = vpop.f32.mrb[73].mxu1 }
 0x98f   : > { %12156 = vst [vmem:[%s405_s18] sm:$0x1] %v12153_v2 }
 0x990   : > { %15521 = shalt.err (!%p15518_p3)
}
 0x991   : > { %s15522_s29 = scalar_lea.hbm %s20411_s26, 16  ;;  %s15526_s17 = scalar_lea.hbm %s20465_s12, 32 }
 0x992   : > { %p15523_p4 = scmp.ne.s32.totalorder %s20411_s26, %s15522_s29  ;;  %p15527_p9 = scmp.lt.u32.totalorder %s20411_s26, %s20465_s12 }
 0x993   : > { %p15528_p10 = scmp.lt.u32.totalorder %s15526_s17, %s15522_s29  ;;  %p15530_p12 = scmp.lt.u32.totalorder %s15522_s29, %s20411_s26 }
 0x994   : > { %p15524_p7 = pnand %p15523_p4, %p15680_p5 }
 0x995   : > { %p15529_p11 = por %p15528_p10, %p15527_p9 }
 0x996   : > { %p15525_p8 = pneg %p15524_p7 }
 0x997   : > { %p15531_p13 = por %p15530_p12, %p15529_p11 }
 0x999   : > { %p15532_p0 = pnand %p15531_p13, %p15525_p8 }
 0x99b   : > { %15535 = shalt.err (!%p15532_p0)
}
 0x99c   : > { %15318 = dma.vmem_to_hbm [thread:$0]  (%p15680_p5), %s20413_s19, 16, %s20411_s26, %s12158_s28  }
 0x99d PF: > { %p15324_p1 = scmp.ge.s32.totalorder %s15570_s24, 2  ;;  %s12182_s0 = sand.u32 1, %s15558_s21  }
 0x99e   : > { %s12183_s15 = scalar_lea.sflag [#allocation5], %s12182_s0 }
 0x99f   : > { %p15321_p2 = pnand %p15324_p1, %p15684_p6 }
 0x9a1   : > { %15553 = dma.done.wait (!%p15321_p2), %s12183_s15, 16  }
 0x9a2   : > { %15555 = vsyncadd (!%p15321_p2), %s12183_s15, 4294967280  ;;  %s21927_s16 = sld [smem:[#allocation7_spill]]  ;;  %p22_p3 = scmp.ge.s32.totalorder %s15667_s27, 4  }
 0x9a3   : > { %s21928_s21 = smov %s15562_s22  ;;  %s21929_s22 = smov %s15566_s23 }
 0x9a4   : > { %s21931_s24 = smov %s15667_s27  ;;  %24 = sbr.rel (!%p22_p3) target bundleno = 5 (0x5), region = 127 }
 0x9a8   : > { %s21930_s23 = smov %s21927_s16 }
 0x9ab   :  { %12187 = vsyncpa [#allocation5], 1 }
 0x9ac   :  { %12189 = vsyncpa [#allocation5 + $0x1], 1 }

</bundles_post_ra>
